<compile_context>
chip_gen: v7x
topology: tpu7x:2x2x1
jax: 0.10.0
libtpu: 0.0.40
codegen_flags: <defaults>
</compile_context>

<pallas_src>
import math

import jax
import jax.numpy as jnp
import numpy as np
from jax import lax
from jax.experimental import pallas as pl
from jax.experimental.pallas import tpu as pltpu

CH = 32          # in_ch == out_ch == 32 in the module
KSIZE = 5        # Conv1d kernel size (spatial=False)
PAD = KSIZE // 2
EPS = 1e-5       # GroupNorm default eps
_MAX_BT = 40     # keep GroupNorm indicator matmuls below the conv MXU cost (crossover ~40)
_MAX_CHUNK = 4096


def latent_prior_kernel(x_ref, t_ref, m_ref,
                        w_in_ref, b_in_ref,
                        conv_w_ref, conv_b_ref, gn_w_ref, gn_b_ref,
                        w_out_ref, b_out_ref,
                        o_ref):
    # Static shapes:
    #   x_ref : (1, 1, chunk)  lane-packed x (each sample: [data(L), zeros(2*PAD)])
    #   t_ref : (1, 1, bt)     per-sample times for this tile
    #   m_ref : (chunk, bt)    segment indicator (1 at valid lanes of sample b)
    #   conv_w_ref : (n_layers*KSIZE, CH, CH)   tap-major conv weights (out, in)
    #   o_ref : (1, 1, chunk)  lane-dense packed output row
    n_layers = gn_w_ref.shape[0]
    chunk = x_ref.shape[-1]
    bt = t_ref.shape[-1]
    lpad = chunk // bt
    seq_len = lpad - 2 * PAD

    xc = x_ref[0]                       # (1, chunk)
    t_row = t_ref[0]                    # (1, bt)
    m_mat = m_ref[...]                  # (chunk, bt)
    w_in = w_in_ref[...]                # (CH, 2)
    b_in = b_in_ref[...]                # (CH, 1)
    w_out = w_out_ref[...]              # (1, CH)
    b_out = b_out_ref[...]              # (1, 1)
    inv_l = jnp.float32(1.0 / seq_len)

    # Contract the bt axis of (rows, bt) against m_mat (chunk, bt) -> (rows, chunk).
    # Broadcasts per-sample values to their packed lanes AND zeroes gap lanes.
    dn = (((1,), (1,)), ((), ()))

    def bcast(v):                       # (rows, bt) -> (rows, chunk)
        return lax.dot_general(v, m_mat, dn, preferred_element_type=jnp.float32)

    # in_layer: Conv1d(2, CH, 1).  Channel 0 is x, channel 1 is the broadcast times.
    c_b = w_in[:, 1:2] * t_row + b_in            # (CH, bt) per-sample constant part
    h = w_in[:, 0:1] * xc + bcast(c_b)           # (CH, chunk); gap lanes exactly 0

    for i in range(n_layers):                    # small & static -> unrolled
        # Conv1d(CH, CH, 5, padding=2): five accumulating (CH,CH)@(CH,chunk) MXU dots
        # on lane-rotated views of h (no padded scratch, no (5*CH, chunk) temporary).
        y = jnp.dot(conv_w_ref[i * KSIZE + PAD], h,
                    preferred_element_type=jnp.float32)
        for k in range(KSIZE):
            if k == PAD:
                continue
            h_k = pltpu.roll(h, shift=(PAD - k) % chunk, axis=1)   # XLU, off MXU path
            y = y + jnp.dot(conv_w_ref[i * KSIZE + k], h_k,
                            preferred_element_type=jnp.float32)
        y = y + conv_b_ref[i]                                       # (CH, 1) bias

        # GroupNorm(32, 32): 1 channel/group -> per-(channel, sample) stats over L.
        # One fused stats matmul (sum & sum of squares) and one fused broadcast-back.
        stats = jnp.dot(jnp.concatenate([y, y * y], axis=0), m_mat,
                        preferred_element_type=jnp.float32)         # (2*CH, bt)
        mean = stats[:CH] * inv_l
        var = jnp.maximum(stats[CH:] * inv_l - mean * mean, 0.0)
        inv_std = lax.rsqrt(var + EPS)
        scale = gn_w_ref[i] * inv_std                               # (CH, bt)
        shift = gn_b_ref[i] - mean * scale                          # (CH, bt)
        affine = bcast(jnp.concatenate([scale, shift], axis=0))     # (2*CH, chunk)
        y = y * affine[:CH] + affine[CH:]        # gap lanes -> exactly 0 again

        # SiLU + residual (gap lanes of h stay exactly zero).
        y = y * jax.nn.sigmoid(y)
        h = h + y

    # out_layer: Conv1d(CH, 1, 1); single lane-dense (1, chunk) store.
    o_ref[0] = jnp.dot(w_out, h, preferred_element_type=jnp.float32) + b_out


def _choose_bt(lpad):
    """Samples per tile so chunk = bt*lpad is 128-lane aligned and of modest size."""
    g = 128 // math.gcd(lpad, 128)        # smallest bt with bt*lpad % 128 == 0
    if g > _MAX_BT:                       # cannot align without oversized bt; fall back
        return 32
    bt = g
    while bt * 2 <= _MAX_BT and bt * 2 * lpad <= _MAX_CHUNK:
        bt *= 2
    return bt


def latent_prior_forward(x, times, params):
    B, L = x.shape
    lpad = L + 2 * PAD
    bt = _choose_bt(lpad)
    num_tiles = pl.cdiv(B, bt)            # >= 2 tiles for large B -> both v7x TCs busy
    bp = bt * num_tiles
    chunk = bt * lpad

    xf = x.astype(jnp.float32)
    tf = times.astype(jnp.float32).reshape(B)
    if bp != B:                           # pad batch with dummy samples (discarded)
        xf = jnp.pad(xf, ((0, bp - B), (0, 0)))
        tf = jnp.pad(tf, (0, bp - B))

    # Lane-packed x: each sample occupies lpad lanes = [data(L), zeros(2*PAD)].
    x_packed = (jnp.zeros((bp, lpad), jnp.float32).at[:, :L].set(xf)
                .reshape(num_tiles, 1, chunk))
    t_row = tf.reshape(num_tiles, 1, bt)

    # Segment indicator: m_mat[b*lpad + j, b] = 1 for j < L (shared by every tile).
    eye = jnp.eye(bt, dtype=jnp.float32)
    m_mat = (jnp.zeros((bt, lpad, bt), jnp.float32)
             .at[:, :L, :].set(jnp.broadcast_to(eye[:, None, :], (bt, L, bt)))
             .reshape(chunk, bt))

    def const_spec(arr):                  # untiled operand, constant block index
        nd = arr.ndim
        return pl.BlockSpec(arr.shape, lambda i, _nd=nd: (0,) * _nd)

    args = (x_packed, t_row, m_mat,
            params["w_in"], params["b_in"],
            params["conv_w"], params["conv_b"],
            params["gn_w"], params["gn_b"],
            params["w_out"], params["b_out"])

    in_specs = [pl.BlockSpec((1, 1, chunk), lambda i: (i, 0, 0)),
                pl.BlockSpec((1, 1, bt), lambda i: (i, 0, 0))] + \
               [const_spec(a) for a in args[2:]]

    out = pl.pallas_call(
        latent_prior_kernel,
        out_shape=jax.ShapeDtypeStruct((num_tiles, 1, chunk), jnp.float32),
        grid_spec=pltpu.PrefetchScalarGridSpec(
            num_scalar_prefetch=0,
            grid=(num_tiles,),
            in_specs=in_specs,
            out_specs=pl.BlockSpec((1, 1, chunk), lambda i: (i, 0, 0)),
        ),
        compiler_params=pltpu.CompilerParams(
            dimension_semantics=("parallel",),
            vmem_limit_bytes=32 * 1024 * 1024),
    )(*args)

    # Strip the per-sample gap lanes host-side (cheap reshape + slice).
    return out.reshape(bp, lpad)[:B, :L]


def init_params(key, n_layers):
    ks = jax.random.split(key, 8)
    w_in = 0.3 * jax.random.normal(ks[0], (CH, 2), jnp.float32)
    b_in = 0.1 * jax.random.normal(ks[1], (CH, 1), jnp.float32)
    # PyTorch Conv1d weight layout: (out, in, k)
    conv_w_oik = 0.1 * jax.random.normal(ks[2], (n_layers, CH, CH, KSIZE), jnp.float32)
    conv_b = 0.1 * jax.random.normal(ks[3], (n_layers, CH, 1), jnp.float32)
    gn_w = 1.0 + 0.1 * jax.random.normal(ks[4], (n_layers, CH, 1), jnp.float32)
    gn_b = 0.1 * jax.random.normal(ks[5], (n_layers, CH, 1), jnp.float32)
    w_out = 0.3 * jax.random.normal(ks[6], (1, CH), jnp.float32)
    b_out = 0.1 * jax.random.normal(ks[7], (1, 1), jnp.float32)
    # Tap-major layout for the kernel: conv_w[l*KSIZE + k][o, i] = torch_w[l, o, i, k]
    conv_w = jnp.transpose(conv_w_oik, (0, 3, 1, 2)).reshape(n_layers * KSIZE, CH, CH)
    return dict(w_in=w_in, b_in=b_in, conv_w=conv_w, conv_w_oik=conv_w_oik,
                conv_b=conv_b, gn_w=gn_w, gn_b=gn_b, w_out=w_out, b_out=b_out)


def ref_forward(x, times, params, n_layers):
    """Pure-JAX reference mirroring the PyTorch forward (two-pass GroupNorm)."""
    B, L = x.shape
    t = jnp.tile(times[:, None, None], (1, 1, L))                       # (B,1,L)
    h = jnp.concatenate([x[:, None, :], t], axis=1)                     # (B,2,L)
    h = jnp.einsum("oi,bil->bol", params["w_in"], h,
                   precision=lax.Precision.HIGHEST) + params["b_in"][None]
    for i in range(n_layers):
        y = lax.conv_general_dilated(
            h, params["conv_w_oik"][i], window_strides=(1,), padding=[(PAD, PAD)],
            dimension_numbers=("NCH", "OIH", "NCH"),
            precision=lax.Precision.HIGHEST)
        y = y + params["conv_b"][i][None]
        mean = jnp.mean(y, axis=-1, keepdims=True)
        var = jnp.mean((y - mean) ** 2, axis=-1, keepdims=True)
        y = (y - mean) / jnp.sqrt(var + EPS)
        y = y * params["gn_w"][i][None] + params["gn_b"][i][None]
        y = y * jax.nn.sigmoid(y)
        h = h + y
    out = jnp.einsum("oi,bil->bol", params["w_out"], h,
                     precision=lax.Precision.HIGHEST) + params["b_out"][None]
    return out[:, 0, :]


if __name__ == "__main__":
    latent_dim, embed_dim, n_layers, num_timesteps = 8, 8, 3, 100
    B = 2
    L = latent_dim + embed_dim                  # x.shape[1]

    key = jax.random.PRNGKey(0)
    kx, kt, kp = jax.random.split(key, 3)
    x = jax.random.normal(kx, (B, L), jnp.float32)
    times = jax.random.uniform(kt, (B,), jnp.float32) * num_timesteps
    params = init_params(kp, n_layers)

    out = jax.block_until_ready(latent_prior_forward(x, times, params))
    ref = ref_forward(x, times, params, n_layers)
    assert out.shape == (B, L)
    # Tolerance slightly relaxed vs. the two-pass reference because the kernel uses
    # one-pass GroupNorm statistics (E[y^2] - mean^2); errors remain ~1e-5.
    np.testing.assert_allclose(np.asarray(out), np.asarray(ref), rtol=5e-4, atol=5e-4)
    print("KERNEL_OK")
</pallas_src>

<mosaic_0001>
module attributes {stable_mosaic.version = 11 : i64} {
  func.func @latent_prior_kernel(%arg0: i32, %arg1: memref<1x1x640xf32, #tpu.memory_space<vmem>>, %arg2: memref<1x1x32xf32, #tpu.memory_space<vmem>>, %arg3: memref<640x32xf32, #tpu.memory_space<vmem>>, %arg4: memref<32x2xf32, #tpu.memory_space<vmem>>, %arg5: memref<32x1xf32, #tpu.memory_space<vmem>>, %arg6: memref<15x32x32xf32, #tpu.memory_space<vmem>>, %arg7: memref<3x32x1xf32, #tpu.memory_space<vmem>>, %arg8: memref<3x32x1xf32, #tpu.memory_space<vmem>>, %arg9: memref<3x32x1xf32, #tpu.memory_space<vmem>>, %arg10: memref<1x32xf32, #tpu.memory_space<vmem>>, %arg11: memref<1x1xf32, #tpu.memory_space<vmem>>, %arg12: memref<1x1x640xf32, #tpu.memory_space<vmem>>) attributes {dimension_semantics = [#tpu.dimension_semantics<parallel>], iteration_bounds = array<i64: 1>, scalar_prefetch = 0 : i64, scratch_operands = 0 : i64, tpu.core_type = #tpu.core_type<tc>, window_params = [{transform_indices = @transform_0, window_bounds = array<i64: 1, 1, 640>}, {transform_indices = @transform_1, window_bounds = array<i64: 1, 1, 32>}, {pipeline_mode = #tpu.pipeline_mode<synchronous>, transform_indices = @transform_2, window_bounds = array<i64: 640, 32>}, {pipeline_mode = #tpu.pipeline_mode<synchronous>, transform_indices = @transform_3, window_bounds = array<i64: 32, 2>}, {pipeline_mode = #tpu.pipeline_mode<synchronous>, transform_indices = @transform_4, window_bounds = array<i64: 32, 1>}, {pipeline_mode = #tpu.pipeline_mode<synchronous>, transform_indices = @transform_5, window_bounds = array<i64: 15, 32, 32>}, {pipeline_mode = #tpu.pipeline_mode<synchronous>, transform_indices = @transform_6, window_bounds = array<i64: 3, 32, 1>}, {pipeline_mode = #tpu.pipeline_mode<synchronous>, transform_indices = @transform_7, window_bounds = array<i64: 3, 32, 1>}, {pipeline_mode = #tpu.pipeline_mode<synchronous>, transform_indices = @transform_8, window_bounds = array<i64: 3, 32, 1>}, {pipeline_mode = #tpu.pipeline_mode<synchronous>, transform_indices = @transform_9, window_bounds = array<i64: 1, 32>}, {pipeline_mode = #tpu.pipeline_mode<synchronous>, transform_indices = @transform_10, window_bounds = array<i64: 1, 1>}, {transform_indices = @transform_11, window_bounds = array<i64: 1, 1, 640>}]} {
    %c0 = arith.constant 0 : index
    %c0_0 = arith.constant 0 : index
    %c0_1 = arith.constant 0 : index
    %0 = vector.load %arg1[%c0, %c0_0, %c0_1] : memref<1x1x640xf32, #tpu.memory_space<vmem>>, vector<1x1x640xf32>
    %1 = vector.shape_cast %0 : vector<1x1x640xf32> to vector<1x640xf32>
    %c0_2 = arith.constant 0 : index
    %c0_3 = arith.constant 0 : index
    %c0_4 = arith.constant 0 : index
    %2 = vector.load %arg2[%c0_2, %c0_3, %c0_4] : memref<1x1x32xf32, #tpu.memory_space<vmem>>, vector<1x1x32xf32>
    %3 = vector.shape_cast %2 : vector<1x1x32xf32> to vector<1x32xf32>
    %c0_5 = arith.constant 0 : index
    %c0_6 = arith.constant 0 : index
    %4 = vector.load %arg3[%c0_5, %c0_6] : memref<640x32xf32, #tpu.memory_space<vmem>>, vector<640x32xf32>
    %c0_7 = arith.constant 0 : index
    %c0_8 = arith.constant 0 : index
    %5 = vector.load %arg4[%c0_7, %c0_8] : memref<32x2xf32, #tpu.memory_space<vmem>>, vector<32x2xf32>
    %c0_9 = arith.constant 0 : index
    %c0_10 = arith.constant 0 : index
    %6 = vector.load %arg5[%c0_9, %c0_10] : memref<32x1xf32, #tpu.memory_space<vmem>>, vector<32x1xf32>
    %c0_11 = arith.constant 0 : index
    %c0_12 = arith.constant 0 : index
    %7 = vector.load %arg10[%c0_11, %c0_12] : memref<1x32xf32, #tpu.memory_space<vmem>>, vector<1x32xf32>
    %c0_13 = arith.constant 0 : index
    %c0_14 = arith.constant 0 : index
    %8 = vector.load %arg11[%c0_13, %c0_14] : memref<1x1xf32, #tpu.memory_space<vmem>>, vector<1x1xf32>
    %9 = vector.extract_strided_slice %5 {offsets = [0, 1], sizes = [32, 1], strides = [1, 1]} : vector<32x2xf32> to vector<32x1xf32>
    %10 = vector.broadcast %9 : vector<32x1xf32> to vector<32x32xf32>
    %11 = vector.broadcast %3 : vector<1x32xf32> to vector<32x32xf32>
    %12 = arith.mulf %10, %11 : vector<32x32xf32>
    %13 = vector.broadcast %6 : vector<32x1xf32> to vector<32x32xf32>
    %14 = arith.addf %12, %13 : vector<32x32xf32>
    %15 = vector.extract_strided_slice %5 {offsets = [0, 0], sizes = [32, 1], strides = [1, 1]} : vector<32x2xf32> to vector<32x1xf32>
    %16 = vector.broadcast %15 : vector<32x1xf32> to vector<32x640xf32>
    %17 = vector.broadcast %1 : vector<1x640xf32> to vector<32x640xf32>
    %18 = arith.mulf %16, %17 : vector<32x640xf32>
    %cst = arith.constant dense<0.000000e+00> : vector<32x640xf32>
    %19 = tpu.matmul %14, %4, %cst {dimension_numbers = #tpu.dot_dimension_numbers<[1], [1], [0], [0], [0, 0, 1, 0], [], []>} : vector<32x32xf32>, vector<640x32xf32>, vector<32x640xf32> -> vector<32x640xf32>
    %20 = arith.addf %18, %19 : vector<32x640xf32>
    %c2 = arith.constant 2 : index
    %c0_15 = arith.constant 0 : index
    %c0_16 = arith.constant 0 : index
    %21 = vector.load %arg6[%c2, %c0_15, %c0_16] : memref<15x32x32xf32, #tpu.memory_space<vmem>>, vector<1x32x32xf32>
    %22 = vector.shape_cast %21 : vector<1x32x32xf32> to vector<32x32xf32>
    %cst_17 = arith.constant dense<0.000000e+00> : vector<32x640xf32>
    %23 = tpu.matmul %22, %20, %cst_17 {dimension_numbers = #tpu.dot_dimension_numbers<[1], [0], [0], [1], [0, 0, 1, 1], [], []>} : vector<32x32xf32>, vector<32x640xf32>, vector<32x640xf32> -> vector<32x640xf32>
    %c2_i32 = arith.constant 2 : i32
    %24 = tpu.dynamic_rotate %20 by %c2_i32 dim 1 : vector<32x640xf32>, i32 -> vector<32x640xf32>
    %c0_18 = arith.constant 0 : index
    %c0_19 = arith.constant 0 : index
    %c0_20 = arith.constant 0 : index
    %25 = vector.load %arg6[%c0_18, %c0_19, %c0_20] : memref<15x32x32xf32, #tpu.memory_space<vmem>>, vector<1x32x32xf32>
    %26 = vector.shape_cast %25 : vector<1x32x32xf32> to vector<32x32xf32>
    %cst_21 = arith.constant dense<0.000000e+00> : vector<32x640xf32>
    %27 = tpu.matmul %26, %24, %cst_21 {dimension_numbers = #tpu.dot_dimension_numbers<[1], [0], [0], [1], [0, 0, 1, 1], [], []>} : vector<32x32xf32>, vector<32x640xf32>, vector<32x640xf32> -> vector<32x640xf32>
    %28 = arith.addf %23, %27 : vector<32x640xf32>
    %c1_i32 = arith.constant 1 : i32
    %29 = tpu.dynamic_rotate %20 by %c1_i32 dim 1 : vector<32x640xf32>, i32 -> vector<32x640xf32>
    %c1 = arith.constant 1 : index
    %c0_22 = arith.constant 0 : index
    %c0_23 = arith.constant 0 : index
    %30 = vector.load %arg6[%c1, %c0_22, %c0_23] : memref<15x32x32xf32, #tpu.memory_space<vmem>>, vector<1x32x32xf32>
    %31 = vector.shape_cast %30 : vector<1x32x32xf32> to vector<32x32xf32>
    %cst_24 = arith.constant dense<0.000000e+00> : vector<32x640xf32>
    %32 = tpu.matmul %31, %29, %cst_24 {dimension_numbers = #tpu.dot_dimension_numbers<[1], [0], [0], [1], [0, 0, 1, 1], [], []>} : vector<32x32xf32>, vector<32x640xf32>, vector<32x640xf32> -> vector<32x640xf32>
    %33 = arith.addf %28, %32 : vector<32x640xf32>
    %c639_i32 = arith.constant 639 : i32
    %34 = tpu.dynamic_rotate %20 by %c639_i32 dim 1 : vector<32x640xf32>, i32 -> vector<32x640xf32>
    %c3 = arith.constant 3 : index
    %c0_25 = arith.constant 0 : index
    %c0_26 = arith.constant 0 : index
    %35 = vector.load %arg6[%c3, %c0_25, %c0_26] : memref<15x32x32xf32, #tpu.memory_space<vmem>>, vector<1x32x32xf32>
    %36 = vector.shape_cast %35 : vector<1x32x32xf32> to vector<32x32xf32>
    %cst_27 = arith.constant dense<0.000000e+00> : vector<32x640xf32>
    %37 = tpu.matmul %36, %34, %cst_27 {dimension_numbers = #tpu.dot_dimension_numbers<[1], [0], [0], [1], [0, 0, 1, 1], [], []>} : vector<32x32xf32>, vector<32x640xf32>, vector<32x640xf32> -> vector<32x640xf32>
    %38 = arith.addf %33, %37 : vector<32x640xf32>
    %c638_i32 = arith.constant 638 : i32
    %39 = tpu.dynamic_rotate %20 by %c638_i32 dim 1 : vector<32x640xf32>, i32 -> vector<32x640xf32>
    %c4 = arith.constant 4 : index
    %c0_28 = arith.constant 0 : index
    %c0_29 = arith.constant 0 : index
    %40 = vector.load %arg6[%c4, %c0_28, %c0_29] : memref<15x32x32xf32, #tpu.memory_space<vmem>>, vector<1x32x32xf32>
    %41 = vector.shape_cast %40 : vector<1x32x32xf32> to vector<32x32xf32>
    %cst_30 = arith.constant dense<0.000000e+00> : vector<32x640xf32>
    %42 = tpu.matmul %41, %39, %cst_30 {dimension_numbers = #tpu.dot_dimension_numbers<[1], [0], [0], [1], [0, 0, 1, 1], [], []>} : vector<32x32xf32>, vector<32x640xf32>, vector<32x640xf32> -> vector<32x640xf32>
    %43 = arith.addf %38, %42 : vector<32x640xf32>
    %c0_31 = arith.constant 0 : index
    %c0_32 = arith.constant 0 : index
    %c0_33 = arith.constant 0 : index
    %44 = vector.load %arg7[%c0_31, %c0_32, %c0_33] : memref<3x32x1xf32, #tpu.memory_space<vmem>>, vector<1x32x1xf32>
    %45 = vector.shape_cast %44 : vector<1x32x1xf32> to vector<32x1xf32>
    %46 = vector.broadcast %45 : vector<32x1xf32> to vector<32x640xf32>
    %47 = arith.addf %43, %46 : vector<32x640xf32>
    %48 = arith.mulf %47, %47 : vector<32x640xf32>
    %49 = tpu.concatenate %47, %48 in 0 : vector<32x640xf32>, vector<32x640xf32> -> vector<64x640xf32>
    %cst_34 = arith.constant dense<0.000000e+00> : vector<64x32xf32>
    %50 = tpu.matmul %49, %4, %cst_34 {dimension_numbers = #tpu.dot_dimension_numbers<[1], [0], [0], [1], [0, 0, 1, 1], [], []>} : vector<64x640xf32>, vector<640x32xf32>, vector<64x32xf32> -> vector<64x32xf32>
    %51 = vector.extract_strided_slice %50 {offsets = [0, 0], sizes = [32, 32], strides = [1, 1]} : vector<64x32xf32> to vector<32x32xf32>
    %cst_35 = arith.constant 6.250000e-02 : f32
    %52 = vector.broadcast %cst_35 : f32 to vector<32x32xf32>
    %53 = arith.mulf %51, %52 : vector<32x32xf32>
    %54 = vector.extract_strided_slice %50 {offsets = [32, 0], sizes = [32, 32], strides = [1, 1]} : vector<64x32xf32> to vector<32x32xf32>
    %cst_36 = arith.constant 6.250000e-02 : f32
    %55 = vector.broadcast %cst_36 : f32 to vector<32x32xf32>
    %56 = arith.mulf %54, %55 : vector<32x32xf32>
    %57 = arith.mulf %53, %53 : vector<32x32xf32>
    %58 = arith.subf %56, %57 : vector<32x32xf32>
    %cst_37 = arith.constant 0.000000e+00 : f32
    %59 = vector.broadcast %cst_37 : f32 to vector<32x32xf32>
    %60 = arith.maximumf %58, %59 : vector<32x32xf32>
    %cst_38 = arith.constant 9.99999974E-6 : f32
    %61 = vector.broadcast %cst_38 : f32 to vector<32x32xf32>
    %62 = arith.addf %60, %61 : vector<32x32xf32>
    %63 = math.rsqrt %62 : vector<32x32xf32>
    %c0_39 = arith.constant 0 : index
    %c0_40 = arith.constant 0 : index
    %c0_41 = arith.constant 0 : index
    %64 = vector.load %arg8[%c0_39, %c0_40, %c0_41] : memref<3x32x1xf32, #tpu.memory_space<vmem>>, vector<1x32x1xf32>
    %65 = vector.shape_cast %64 : vector<1x32x1xf32> to vector<32x1xf32>
    %66 = vector.broadcast %65 : vector<32x1xf32> to vector<32x32xf32>
    %67 = arith.mulf %66, %63 : vector<32x32xf32>
    %c0_42 = arith.constant 0 : index
    %c0_43 = arith.constant 0 : index
    %c0_44 = arith.constant 0 : index
    %68 = vector.load %arg9[%c0_42, %c0_43, %c0_44] : memref<3x32x1xf32, #tpu.memory_space<vmem>>, vector<1x32x1xf32>
    %69 = vector.shape_cast %68 : vector<1x32x1xf32> to vector<32x1xf32>
    %70 = arith.mulf %53, %67 : vector<32x32xf32>
    %71 = vector.broadcast %69 : vector<32x1xf32> to vector<32x32xf32>
    %72 = arith.subf %71, %70 : vector<32x32xf32>
    %73 = tpu.concatenate %67, %72 in 0 : vector<32x32xf32>, vector<32x32xf32> -> vector<64x32xf32>
    %cst_45 = arith.constant dense<0.000000e+00> : vector<64x640xf32>
    %74 = tpu.matmul %73, %4, %cst_45 {dimension_numbers = #tpu.dot_dimension_numbers<[1], [1], [0], [0], [0, 0, 1, 0], [], []>} : vector<64x32xf32>, vector<640x32xf32>, vector<64x640xf32> -> vector<64x640xf32>
    %75 = vector.extract_strided_slice %74 {offsets = [0, 0], sizes = [32, 640], strides = [1, 1]} : vector<64x640xf32> to vector<32x640xf32>
    %76 = arith.mulf %47, %75 : vector<32x640xf32>
    %77 = vector.extract_strided_slice %74 {offsets = [32, 0], sizes = [32, 640], strides = [1, 1]} : vector<64x640xf32> to vector<32x640xf32>
    %78 = arith.addf %76, %77 : vector<32x640xf32>
    %79 = arith.negf %78 : vector<32x640xf32>
    %80 = math.exp %79 : vector<32x640xf32>
    %cst_46 = arith.constant 1.000000e+00 : f32
    %81 = vector.broadcast %cst_46 : f32 to vector<32x640xf32>
    %82 = arith.addf %81, %80 : vector<32x640xf32>
    %83 = arith.divf %81, %82 : vector<32x640xf32>
    %84 = arith.mulf %78, %83 : vector<32x640xf32>
    %85 = arith.addf %20, %84 : vector<32x640xf32>
    %c7 = arith.constant 7 : index
    %c0_47 = arith.constant 0 : index
    %c0_48 = arith.constant 0 : index
    %86 = vector.load %arg6[%c7, %c0_47, %c0_48] : memref<15x32x32xf32, #tpu.memory_space<vmem>>, vector<1x32x32xf32>
    %87 = vector.shape_cast %86 : vector<1x32x32xf32> to vector<32x32xf32>
    %cst_49 = arith.constant dense<0.000000e+00> : vector<32x640xf32>
    %88 = tpu.matmul %87, %85, %cst_49 {dimension_numbers = #tpu.dot_dimension_numbers<[1], [0], [0], [1], [0, 0, 1, 1], [], []>} : vector<32x32xf32>, vector<32x640xf32>, vector<32x640xf32> -> vector<32x640xf32>
    %c2_i32_50 = arith.constant 2 : i32
    %89 = tpu.dynamic_rotate %85 by %c2_i32_50 dim 1 : vector<32x640xf32>, i32 -> vector<32x640xf32>
    %c5 = arith.constant 5 : index
    %c0_51 = arith.constant 0 : index
    %c0_52 = arith.constant 0 : index
    %90 = vector.load %arg6[%c5, %c0_51, %c0_52] : memref<15x32x32xf32, #tpu.memory_space<vmem>>, vector<1x32x32xf32>
    %91 = vector.shape_cast %90 : vector<1x32x32xf32> to vector<32x32xf32>
    %cst_53 = arith.constant dense<0.000000e+00> : vector<32x640xf32>
    %92 = tpu.matmul %91, %89, %cst_53 {dimension_numbers = #tpu.dot_dimension_numbers<[1], [0], [0], [1], [0, 0, 1, 1], [], []>} : vector<32x32xf32>, vector<32x640xf32>, vector<32x640xf32> -> vector<32x640xf32>
    %93 = arith.addf %88, %92 : vector<32x640xf32>
    %c1_i32_54 = arith.constant 1 : i32
    %94 = tpu.dynamic_rotate %85 by %c1_i32_54 dim 1 : vector<32x640xf32>, i32 -> vector<32x640xf32>
    %c6 = arith.constant 6 : index
    %c0_55 = arith.constant 0 : index
    %c0_56 = arith.constant 0 : index
    %95 = vector.load %arg6[%c6, %c0_55, %c0_56] : memref<15x32x32xf32, #tpu.memory_space<vmem>>, vector<1x32x32xf32>
    %96 = vector.shape_cast %95 : vector<1x32x32xf32> to vector<32x32xf32>
    %cst_57 = arith.constant dense<0.000000e+00> : vector<32x640xf32>
    %97 = tpu.matmul %96, %94, %cst_57 {dimension_numbers = #tpu.dot_dimension_numbers<[1], [0], [0], [1], [0, 0, 1, 1], [], []>} : vector<32x32xf32>, vector<32x640xf32>, vector<32x640xf32> -> vector<32x640xf32>
    %98 = arith.addf %93, %97 : vector<32x640xf32>
    %c639_i32_58 = arith.constant 639 : i32
    %99 = tpu.dynamic_rotate %85 by %c639_i32_58 dim 1 : vector<32x640xf32>, i32 -> vector<32x640xf32>
    %c8 = arith.constant 8 : index
    %c0_59 = arith.constant 0 : index
    %c0_60 = arith.constant 0 : index
    %100 = vector.load %arg6[%c8, %c0_59, %c0_60] : memref<15x32x32xf32, #tpu.memory_space<vmem>>, vector<1x32x32xf32>
    %101 = vector.shape_cast %100 : vector<1x32x32xf32> to vector<32x32xf32>
    %cst_61 = arith.constant dense<0.000000e+00> : vector<32x640xf32>
    %102 = tpu.matmul %101, %99, %cst_61 {dimension_numbers = #tpu.dot_dimension_numbers<[1], [0], [0], [1], [0, 0, 1, 1], [], []>} : vector<32x32xf32>, vector<32x640xf32>, vector<32x640xf32> -> vector<32x640xf32>
    %103 = arith.addf %98, %102 : vector<32x640xf32>
    %c638_i32_62 = arith.constant 638 : i32
    %104 = tpu.dynamic_rotate %85 by %c638_i32_62 dim 1 : vector<32x640xf32>, i32 -> vector<32x640xf32>
    %c9 = arith.constant 9 : index
    %c0_63 = arith.constant 0 : index
    %c0_64 = arith.constant 0 : index
    %105 = vector.load %arg6[%c9, %c0_63, %c0_64] : memref<15x32x32xf32, #tpu.memory_space<vmem>>, vector<1x32x32xf32>
    %106 = vector.shape_cast %105 : vector<1x32x32xf32> to vector<32x32xf32>
    %cst_65 = arith.constant dense<0.000000e+00> : vector<32x640xf32>
    %107 = tpu.matmul %106, %104, %cst_65 {dimension_numbers = #tpu.dot_dimension_numbers<[1], [0], [0], [1], [0, 0, 1, 1], [], []>} : vector<32x32xf32>, vector<32x640xf32>, vector<32x640xf32> -> vector<32x640xf32>
    %108 = arith.addf %103, %107 : vector<32x640xf32>
    %c1_66 = arith.constant 1 : index
    %c0_67 = arith.constant 0 : index
    %c0_68 = arith.constant 0 : index
    %109 = vector.load %arg7[%c1_66, %c0_67, %c0_68] : memref<3x32x1xf32, #tpu.memory_space<vmem>>, vector<1x32x1xf32>
    %110 = vector.shape_cast %109 : vector<1x32x1xf32> to vector<32x1xf32>
    %111 = vector.broadcast %110 : vector<32x1xf32> to vector<32x640xf32>
    %112 = arith.addf %108, %111 : vector<32x640xf32>
    %113 = arith.mulf %112, %112 : vector<32x640xf32>
    %114 = tpu.concatenate %112, %113 in 0 : vector<32x640xf32>, vector<32x640xf32> -> vector<64x640xf32>
    %cst_69 = arith.constant dense<0.000000e+00> : vector<64x32xf32>
    %115 = tpu.matmul %114, %4, %cst_69 {dimension_numbers = #tpu.dot_dimension_numbers<[1], [0], [0], [1], [0, 0, 1, 1], [], []>} : vector<64x640xf32>, vector<640x32xf32>, vector<64x32xf32> -> vector<64x32xf32>
    %116 = vector.extract_strided_slice %115 {offsets = [0, 0], sizes = [32, 32], strides = [1, 1]} : vector<64x32xf32> to vector<32x32xf32>
    %cst_70 = arith.constant 6.250000e-02 : f32
    %117 = vector.broadcast %cst_70 : f32 to vector<32x32xf32>
    %118 = arith.mulf %116, %117 : vector<32x32xf32>
    %119 = vector.extract_strided_slice %115 {offsets = [32, 0], sizes = [32, 32], strides = [1, 1]} : vector<64x32xf32> to vector<32x32xf32>
    %cst_71 = arith.constant 6.250000e-02 : f32
    %120 = vector.broadcast %cst_71 : f32 to vector<32x32xf32>
    %121 = arith.mulf %119, %120 : vector<32x32xf32>
    %122 = arith.mulf %118, %118 : vector<32x32xf32>
    %123 = arith.subf %121, %122 : vector<32x32xf32>
    %cst_72 = arith.constant 0.000000e+00 : f32
    %124 = vector.broadcast %cst_72 : f32 to vector<32x32xf32>
    %125 = arith.maximumf %123, %124 : vector<32x32xf32>
    %cst_73 = arith.constant 9.99999974E-6 : f32
    %126 = vector.broadcast %cst_73 : f32 to vector<32x32xf32>
    %127 = arith.addf %125, %126 : vector<32x32xf32>
    %128 = math.rsqrt %127 : vector<32x32xf32>
    %c1_74 = arith.constant 1 : index
    %c0_75 = arith.constant 0 : index
    %c0_76 = arith.constant 0 : index
    %129 = vector.load %arg8[%c1_74, %c0_75, %c0_76] : memref<3x32x1xf32, #tpu.memory_space<vmem>>, vector<1x32x1xf32>
    %130 = vector.shape_cast %129 : vector<1x32x1xf32> to vector<32x1xf32>
    %131 = vector.broadcast %130 : vector<32x1xf32> to vector<32x32xf32>
    %132 = arith.mulf %131, %128 : vector<32x32xf32>
    %c1_77 = arith.constant 1 : index
    %c0_78 = arith.constant 0 : index
    %c0_79 = arith.constant 0 : index
    %133 = vector.load %arg9[%c1_77, %c0_78, %c0_79] : memref<3x32x1xf32, #tpu.memory_space<vmem>>, vector<1x32x1xf32>
    %134 = vector.shape_cast %133 : vector<1x32x1xf32> to vector<32x1xf32>
    %135 = arith.mulf %118, %132 : vector<32x32xf32>
    %136 = vector.broadcast %134 : vector<32x1xf32> to vector<32x32xf32>
    %137 = arith.subf %136, %135 : vector<32x32xf32>
    %138 = tpu.concatenate %132, %137 in 0 : vector<32x32xf32>, vector<32x32xf32> -> vector<64x32xf32>
    %cst_80 = arith.constant dense<0.000000e+00> : vector<64x640xf32>
    %139 = tpu.matmul %138, %4, %cst_80 {dimension_numbers = #tpu.dot_dimension_numbers<[1], [1], [0], [0], [0, 0, 1, 0], [], []>} : vector<64x32xf32>, vector<640x32xf32>, vector<64x640xf32> -> vector<64x640xf32>
    %140 = vector.extract_strided_slice %139 {offsets = [0, 0], sizes = [32, 640], strides = [1, 1]} : vector<64x640xf32> to vector<32x640xf32>
    %141 = arith.mulf %112, %140 : vector<32x640xf32>
    %142 = vector.extract_strided_slice %139 {offsets = [32, 0], sizes = [32, 640], strides = [1, 1]} : vector<64x640xf32> to vector<32x640xf32>
    %143 = arith.addf %141, %142 : vector<32x640xf32>
    %144 = arith.negf %143 : vector<32x640xf32>
    %145 = math.exp %144 : vector<32x640xf32>
    %cst_81 = arith.constant 1.000000e+00 : f32
    %146 = vector.broadcast %cst_81 : f32 to vector<32x640xf32>
    %147 = arith.addf %146, %145 : vector<32x640xf32>
    %148 = arith.divf %146, %147 : vector<32x640xf32>
    %149 = arith.mulf %143, %148 : vector<32x640xf32>
    %150 = arith.addf %85, %149 : vector<32x640xf32>
    %c12 = arith.constant 12 : index
    %c0_82 = arith.constant 0 : index
    %c0_83 = arith.constant 0 : index
    %151 = vector.load %arg6[%c12, %c0_82, %c0_83] : memref<15x32x32xf32, #tpu.memory_space<vmem>>, vector<1x32x32xf32>
    %152 = vector.shape_cast %151 : vector<1x32x32xf32> to vector<32x32xf32>
    %cst_84 = arith.constant dense<0.000000e+00> : vector<32x640xf32>
    %153 = tpu.matmul %152, %150, %cst_84 {dimension_numbers = #tpu.dot_dimension_numbers<[1], [0], [0], [1], [0, 0, 1, 1], [], []>} : vector<32x32xf32>, vector<32x640xf32>, vector<32x640xf32> -> vector<32x640xf32>
    %c2_i32_85 = arith.constant 2 : i32
    %154 = tpu.dynamic_rotate %150 by %c2_i32_85 dim 1 : vector<32x640xf32>, i32 -> vector<32x640xf32>
    %c10 = arith.constant 10 : index
    %c0_86 = arith.constant 0 : index
    %c0_87 = arith.constant 0 : index
    %155 = vector.load %arg6[%c10, %c0_86, %c0_87] : memref<15x32x32xf32, #tpu.memory_space<vmem>>, vector<1x32x32xf32>
    %156 = vector.shape_cast %155 : vector<1x32x32xf32> to vector<32x32xf32>
    %cst_88 = arith.constant dense<0.000000e+00> : vector<32x640xf32>
    %157 = tpu.matmul %156, %154, %cst_88 {dimension_numbers = #tpu.dot_dimension_numbers<[1], [0], [0], [1], [0, 0, 1, 1], [], []>} : vector<32x32xf32>, vector<32x640xf32>, vector<32x640xf32> -> vector<32x640xf32>
    %158 = arith.addf %153, %157 : vector<32x640xf32>
    %c1_i32_89 = arith.constant 1 : i32
    %159 = tpu.dynamic_rotate %150 by %c1_i32_89 dim 1 : vector<32x640xf32>, i32 -> vector<32x640xf32>
    %c11 = arith.constant 11 : index
    %c0_90 = arith.constant 0 : index
    %c0_91 = arith.constant 0 : index
    %160 = vector.load %arg6[%c11, %c0_90, %c0_91] : memref<15x32x32xf32, #tpu.memory_space<vmem>>, vector<1x32x32xf32>
    %161 = vector.shape_cast %160 : vector<1x32x32xf32> to vector<32x32xf32>
    %cst_92 = arith.constant dense<0.000000e+00> : vector<32x640xf32>
    %162 = tpu.matmul %161, %159, %cst_92 {dimension_numbers = #tpu.dot_dimension_numbers<[1], [0], [0], [1], [0, 0, 1, 1], [], []>} : vector<32x32xf32>, vector<32x640xf32>, vector<32x640xf32> -> vector<32x640xf32>
    %163 = arith.addf %158, %162 : vector<32x640xf32>
    %c639_i32_93 = arith.constant 639 : i32
    %164 = tpu.dynamic_rotate %150 by %c639_i32_93 dim 1 : vector<32x640xf32>, i32 -> vector<32x640xf32>
    %c13 = arith.constant 13 : index
    %c0_94 = arith.constant 0 : index
    %c0_95 = arith.constant 0 : index
    %165 = vector.load %arg6[%c13, %c0_94, %c0_95] : memref<15x32x32xf32, #tpu.memory_space<vmem>>, vector<1x32x32xf32>
    %166 = vector.shape_cast %165 : vector<1x32x32xf32> to vector<32x32xf32>
    %cst_96 = arith.constant dense<0.000000e+00> : vector<32x640xf32>
    %167 = tpu.matmul %166, %164, %cst_96 {dimension_numbers = #tpu.dot_dimension_numbers<[1], [0], [0], [1], [0, 0, 1, 1], [], []>} : vector<32x32xf32>, vector<32x640xf32>, vector<32x640xf32> -> vector<32x640xf32>
    %168 = arith.addf %163, %167 : vector<32x640xf32>
    %c638_i32_97 = arith.constant 638 : i32
    %169 = tpu.dynamic_rotate %150 by %c638_i32_97 dim 1 : vector<32x640xf32>, i32 -> vector<32x640xf32>
    %c14 = arith.constant 14 : index
    %c0_98 = arith.constant 0 : index
    %c0_99 = arith.constant 0 : index
    %170 = vector.load %arg6[%c14, %c0_98, %c0_99] : memref<15x32x32xf32, #tpu.memory_space<vmem>>, vector<1x32x32xf32>
    %171 = vector.shape_cast %170 : vector<1x32x32xf32> to vector<32x32xf32>
    %cst_100 = arith.constant dense<0.000000e+00> : vector<32x640xf32>
    %172 = tpu.matmul %171, %169, %cst_100 {dimension_numbers = #tpu.dot_dimension_numbers<[1], [0], [0], [1], [0, 0, 1, 1], [], []>} : vector<32x32xf32>, vector<32x640xf32>, vector<32x640xf32> -> vector<32x640xf32>
    %173 = arith.addf %168, %172 : vector<32x640xf32>
    %c2_101 = arith.constant 2 : index
    %c0_102 = arith.constant 0 : index
    %c0_103 = arith.constant 0 : index
    %174 = vector.load %arg7[%c2_101, %c0_102, %c0_103] : memref<3x32x1xf32, #tpu.memory_space<vmem>>, vector<1x32x1xf32>
    %175 = vector.shape_cast %174 : vector<1x32x1xf32> to vector<32x1xf32>
    %176 = vector.broadcast %175 : vector<32x1xf32> to vector<32x640xf32>
    %177 = arith.addf %173, %176 : vector<32x640xf32>
    %178 = arith.mulf %177, %177 : vector<32x640xf32>
    %179 = tpu.concatenate %177, %178 in 0 : vector<32x640xf32>, vector<32x640xf32> -> vector<64x640xf32>
    %cst_104 = arith.constant dense<0.000000e+00> : vector<64x32xf32>
    %180 = tpu.matmul %179, %4, %cst_104 {dimension_numbers = #tpu.dot_dimension_numbers<[1], [0], [0], [1], [0, 0, 1, 1], [], []>} : vector<64x640xf32>, vector<640x32xf32>, vector<64x32xf32> -> vector<64x32xf32>
    %181 = vector.extract_strided_slice %180 {offsets = [0, 0], sizes = [32, 32], strides = [1, 1]} : vector<64x32xf32> to vector<32x32xf32>
    %cst_105 = arith.constant 6.250000e-02 : f32
    %182 = vector.broadcast %cst_105 : f32 to vector<32x32xf32>
    %183 = arith.mulf %181, %182 : vector<32x32xf32>
    %184 = vector.extract_strided_slice %180 {offsets = [32, 0], sizes = [32, 32], strides = [1, 1]} : vector<64x32xf32> to vector<32x32xf32>
    %cst_106 = arith.constant 6.250000e-02 : f32
    %185 = vector.broadcast %cst_106 : f32 to vector<32x32xf32>
    %186 = arith.mulf %184, %185 : vector<32x32xf32>
    %187 = arith.mulf %183, %183 : vector<32x32xf32>
    %188 = arith.subf %186, %187 : vector<32x32xf32>
    %cst_107 = arith.constant 0.000000e+00 : f32
    %189 = vector.broadcast %cst_107 : f32 to vector<32x32xf32>
    %190 = arith.maximumf %188, %189 : vector<32x32xf32>
    %cst_108 = arith.constant 9.99999974E-6 : f32
    %191 = vector.broadcast %cst_108 : f32 to vector<32x32xf32>
    %192 = arith.addf %190, %191 : vector<32x32xf32>
    %193 = math.rsqrt %192 : vector<32x32xf32>
    %c2_109 = arith.constant 2 : index
    %c0_110 = arith.constant 0 : index
    %c0_111 = arith.constant 0 : index
    %194 = vector.load %arg8[%c2_109, %c0_110, %c0_111] : memref<3x32x1xf32, #tpu.memory_space<vmem>>, vector<1x32x1xf32>
    %195 = vector.shape_cast %194 : vector<1x32x1xf32> to vector<32x1xf32>
    %196 = vector.broadcast %195 : vector<32x1xf32> to vector<32x32xf32>
    %197 = arith.mulf %196, %193 : vector<32x32xf32>
    %c2_112 = arith.constant 2 : index
    %c0_113 = arith.constant 0 : index
    %c0_114 = arith.constant 0 : index
    %198 = vector.load %arg9[%c2_112, %c0_113, %c0_114] : memref<3x32x1xf32, #tpu.memory_space<vmem>>, vector<1x32x1xf32>
    %199 = vector.shape_cast %198 : vector<1x32x1xf32> to vector<32x1xf32>
    %200 = arith.mulf %183, %197 : vector<32x32xf32>
    %201 = vector.broadcast %199 : vector<32x1xf32> to vector<32x32xf32>
    %202 = arith.subf %201, %200 : vector<32x32xf32>
    %203 = tpu.concatenate %197, %202 in 0 : vector<32x32xf32>, vector<32x32xf32> -> vector<64x32xf32>
    %cst_115 = arith.constant dense<0.000000e+00> : vector<64x640xf32>
    %204 = tpu.matmul %203, %4, %cst_115 {dimension_numbers = #tpu.dot_dimension_numbers<[1], [1], [0], [0], [0, 0, 1, 0], [], []>} : vector<64x32xf32>, vector<640x32xf32>, vector<64x640xf32> -> vector<64x640xf32>
    %205 = vector.extract_strided_slice %204 {offsets = [0, 0], sizes = [32, 640], strides = [1, 1]} : vector<64x640xf32> to vector<32x640xf32>
    %206 = arith.mulf %177, %205 : vector<32x640xf32>
    %207 = vector.extract_strided_slice %204 {offsets = [32, 0], sizes = [32, 640], strides = [1, 1]} : vector<64x640xf32> to vector<32x640xf32>
    %208 = arith.addf %206, %207 : vector<32x640xf32>
    %209 = arith.negf %208 : vector<32x640xf32>
    %210 = math.exp %209 : vector<32x640xf32>
    %cst_116 = arith.constant 1.000000e+00 : f32
    %211 = vector.broadcast %cst_116 : f32 to vector<32x640xf32>
    %212 = arith.addf %211, %210 : vector<32x640xf32>
    %213 = arith.divf %211, %212 : vector<32x640xf32>
    %214 = arith.mulf %208, %213 : vector<32x640xf32>
    %215 = arith.addf %150, %214 : vector<32x640xf32>
    %cst_117 = arith.constant dense<0.000000e+00> : vector<1x640xf32>
    %216 = tpu.matmul %7, %215, %cst_117 {dimension_numbers = #tpu.dot_dimension_numbers<[1], [0], [0], [1], [0, 0, 1, 1], [], []>} : vector<1x32xf32>, vector<32x640xf32>, vector<1x640xf32> -> vector<1x640xf32>
    %217 = vector.broadcast %8 : vector<1x1xf32> to vector<1x640xf32>
    %218 = arith.addf %216, %217 : vector<1x640xf32>
    %c0_118 = arith.constant 0 : index
    %c0_119 = arith.constant 0 : index
    %c0_120 = arith.constant 0 : index
    %219 = vector.load %arg12[%c0_118, %c0_119, %c0_120] : memref<1x1x640xf32, #tpu.memory_space<vmem>>, vector<1x1x640xf32>
    %220 = vector.shape_cast %219 : vector<1x1x640xf32> to vector<1x640xf32>
    %221 = vector.shape_cast %218 : vector<1x640xf32> to vector<1x1x640xf32>
    tpu.vector_store %arg12[%c0_118, %c0_119, %c0_120], %221 {strides = array<i32>} : memref<1x1x640xf32, #tpu.memory_space<vmem>>, vector<1x1x640xf32>,
    return
  }
  func.func @transform_0(%arg0: i32) -> (i32, i32, i32) {
    %c0_i32 = arith.constant 0 : i32
    %c0_i32_0 = arith.constant 0 : i32
    %c0_i32_1 = arith.constant 0 : i32
    return %arg0, %c0_i32, %c0_i32_0 : i32, i32, i32
  }
  func.func @transform_1(%arg0: i32) -> (i32, i32, i32) {
    %c0_i32 = arith.constant 0 : i32
    %c0_i32_0 = arith.constant 0 : i32
    %c0_i32_1 = arith.constant 0 : i32
    return %arg0, %c0_i32, %c0_i32_0 : i32, i32, i32
  }
  func.func @transform_2(%arg0: i32) -> (i32, i32) {
    %c0_i32 = arith.constant 0 : i32
    %c0_i32_0 = arith.constant 0 : i32
    %c0_i32_1 = arith.constant 0 : i32
    return %c0_i32, %c0_i32_0 : i32, i32
  }
  func.func @transform_3(%arg0: i32) -> (i32, i32) {
    %c0_i32 = arith.constant 0 : i32
    %c0_i32_0 = arith.constant 0 : i32
    %c0_i32_1 = arith.constant 0 : i32
    return %c0_i32, %c0_i32_0 : i32, i32
  }
  func.func @transform_4(%arg0: i32) -> (i32, i32) {
    %c0_i32 = arith.constant 0 : i32
    %c0_i32_0 = arith.constant 0 : i32
    %c0_i32_1 = arith.constant 0 : i32
    return %c0_i32, %c0_i32_0 : i32, i32
  }
  func.func @transform_5(%arg0: i32) -> (i32, i32, i32) {
    %c0_i32 = arith.constant 0 : i32
    %c0_i32_0 = arith.constant 0 : i32
    %c0_i32_1 = arith.constant 0 : i32
    %c0_i32_2 = arith.constant 0 : i32
    return %c0_i32, %c0_i32_0, %c0_i32_1 : i32, i32, i32
  }
  func.func @transform_6(%arg0: i32) -> (i32, i32, i32) {
    %c0_i32 = arith.constant 0 : i32
    %c0_i32_0 = arith.constant 0 : i32
    %c0_i32_1 = arith.constant 0 : i32
    %c0_i32_2 = arith.constant 0 : i32
    return %c0_i32, %c0_i32_0, %c0_i32_1 : i32, i32, i32
  }
  func.func @transform_7(%arg0: i32) -> (i32, i32, i32) {
    %c0_i32 = arith.constant 0 : i32
    %c0_i32_0 = arith.constant 0 : i32
    %c0_i32_1 = arith.constant 0 : i32
    %c0_i32_2 = arith.constant 0 : i32
    return %c0_i32, %c0_i32_0, %c0_i32_1 : i32, i32, i32
  }
  func.func @transform_8(%arg0: i32) -> (i32, i32, i32) {
    %c0_i32 = arith.constant 0 : i32
    %c0_i32_0 = arith.constant 0 : i32
    %c0_i32_1 = arith.constant 0 : i32
    %c0_i32_2 = arith.constant 0 : i32
    return %c0_i32, %c0_i32_0, %c0_i32_1 : i32, i32, i32
  }
  func.func @transform_9(%arg0: i32) -> (i32, i32) {
    %c0_i32 = arith.constant 0 : i32
    %c0_i32_0 = arith.constant 0 : i32
    %c0_i32_1 = arith.constant 0 : i32
    return %c0_i32, %c0_i32_0 : i32, i32
  }
  func.func @transform_10(%arg0: i32) -> (i32, i32) {
    %c0_i32 = arith.constant 0 : i32
    %c0_i32_0 = arith.constant 0 : i32
    %c0_i32_1 = arith.constant 0 : i32
    return %c0_i32, %c0_i32_0 : i32, i32
  }
  func.func @transform_11(%arg0: i32) -> (i32, i32, i32) {
    %c0_i32 = arith.constant 0 : i32
    %c0_i32_0 = arith.constant 0 : i32
    %c0_i32_1 = arith.constant 0 : i32
    return %arg0, %c0_i32, %c0_i32_0 : i32, i32, i32
  }
}

</mosaic_0001>

<bundles_post_ra>
// kernel: tpu_custom_call.1
= control target key start
LH: loop header
LB: loop body
LE: loop exit
PB: predicated region body
PF: predicated region fallthrough
CT: control target
= control target key end

     0   :  { %s17972_s0 = inlined_call_operand.vmem [shape: f32[1,1,640], index: 0, kind: input, shape index: {}]   ;;  %s17973_s1 = inlined_call_operand.vmem [shape: f32[1,1,32], index: 1, kind: input, shape index: {}]   ;;  %s17974_s2 = inlined_call_operand.vmem [shape: f32[640,32], index: 2, kind: input, shape index: {}]   ;;  %s17975_s3 = inlined_call_operand.vmem [shape: f32[32,2], index: 3, kind: input, shape index: {}]   ;;  %s17976_s4 = inlined_call_operand.vmem [shape: f32[32,1], index: 4, kind: input, shape index: {}]   ;;  %s17977_s5 = inlined_call_operand.vmem [shape: f32[15,32,32], index: 5, kind: input, shape index: {}]   ;;  %s17978_s6 = inlined_call_operand.vmem [shape: f32[3,32,1], index: 6, kind: input, shape index: {}]   ;;  %s17979_s7 = inlined_call_operand.vmem [shape: f32[3,32,1], index: 7, kind: input, shape index: {}]   ;;  %s17980_s8 = inlined_call_operand.vmem [shape: f32[3,32,1], index: 8, kind: input, shape index: {}]   ;;  %s17981_s9 = inlined_call_operand.vmem [shape: f32[1,32], index: 9, kind: input, shape index: {}]   ;;  %s17982_s10 = inlined_call_operand.<no memory space> [shape: f32[1,1], index: 10, kind: input, shape index: {}]   ;;  %s17983_s11 = inlined_call_operand.hbm [shape: f32[1,1,640], index: 11, kind: output, shape index: {}]  }
   0x1   :  { %v16_v0 = vstv %s17982_s10 }
   0x2   :  { %17 = vst [vmem:[#allocation2] sm:$0x1] %v16_v0 }
   0x3   :  { %v13962_v1 = vld [vmem:[%s17975_s3 + $0x8] sm:$0xff]  ;;  %v13967_v2 = vld [vmem:[%s17975_s3] sm:$0xff]  ;;  %vm249_vm0 = vcmask 261120   ;;  %v13885_v3 = vmov 1   ;;  %v61_v18 = vld [vmem:[%s17974_s2 + $0x90] sm:$0xff]  ;;  %v13886_v19 = vmov 0  }
   0x4   :  { %12993 = vset.pattern.permute.xlu1 %v13885_v3  ;;  %12991 = vset.pattern.permute.xlu0 %v13885_v3  ;;  %v128_v4 = vld [vmem:[%s17976_s4 + $0x8] sm:$0xff]  ;;  %v127_v5 = vld [vmem:[%s17976_s4] sm:$0xff]  ;;  %vm13985_vm1 = vmpackc.low %vm249_vm0, %vm249_vm0 }
   0x5   :  { %140 = vperm.xlu1 %12993, %v13962_v1   ;;  %135 = vperm.xlu0 %12991, %v13967_v2   ;;  %v59_v6 = vld [vmem:[%s17974_s2 + $0x80] sm:$0xff]  ;;  %v60_v7 = vld [vmem:[%s17974_s2 + $0x88] sm:$0xff]  ;;  %v62_v21 = vld [vmem:[%s17974_s2 + $0x98] sm:$0xff] }
   0x6   :  { %v43_v9 = vld [vmem:[%s17974_s2] sm:$0xff]  ;;  %v13992_v10 = vpack.c.bf16 %v60_v7, %v59_v6  ;;  %v44_v11 = vld [vmem:[%s17974_s2 + $0x8] sm:$0xff]  ;;  %v14021_v22 = vpack.c.bf16 %v62_v21, %v61_v18  ;;  %v93_v23 = vld [vmem:[%s17974_s2 + $0x190] sm:$0xff] }
   0x7   :  { %v91_v12 = vld [vmem:[%s17974_s2 + $0x180] sm:$0xff]  ;;  %v92_v13 = vld [vmem:[%s17974_s2 + $0x188] sm:$0xff]  ;;  %v14003_v14 = vpack.c.bf16 %v44_v11, %v43_v9  ;;  %v94_v24 = vld [vmem:[%s17974_s2 + $0x198] sm:$0xff] }
   0x8   :  { %18185 = vst [vmem:[#allocation6_spill] sm:$0xff] %v13992_v10  ;;  %v14005_v15 = vpack.c.bf16 %v92_v13, %v91_v12  ;;  %v75_v16 = vld [vmem:[%s17974_s2 + $0x100] sm:$0xff]  ;;  %v76_v17 = vld [vmem:[%s17974_s2 + $0x108] sm:$0xff]  ;;  %18189 = vst [vmem:[#allocation10_spill] sm:$0xff] %v14021_v22  ;;  %11496 = vmatprep.subr.msk.bf16.mxu0 %vm13985_vm1, %v13992_v10  ;;  %v14038_v26 = vpack.c.bf16 %v94_v24, %v93_v23 }
   0x9   :  { %18186 = vst [vmem:[#allocation7_spill] sm:$0xff] %v14003_v14  ;;  %12994 = vset.pattern.permute.xlu1 %v13886_v19  ;;  %12992 = vset.pattern.permute.xlu0 %v13886_v19  ;;  %v14016_v20 = vpack.c.bf16 %v76_v17, %v75_v16  ;;  %v129_v25 = vld [vmem:[%s17976_s4 + $0x10] sm:$0xff]  ;;  %v46_v29 = vld [vmem:[%s17974_s2 + $0x18] sm:$0xff]  ;;  %v63_v32 = vld [vmem:[%s17974_s2 + $0xa0] sm:$0xff] }
   0xa   :  { %18187 = vst [vmem:[#allocation8_spill] sm:$0xff] %v14005_v15  ;;  %170 = vperm.xlu1 %12994, %v128_v4   ;;  %165 = vperm.xlu0 %12992, %v127_v5   ;;  %18190 = vst [vmem:[#allocation11_spill] sm:$0xff] %v14038_v26  ;;  %v125_v27 = vld [vmem:[%s17975_s3 + $0x10] sm:$0xff]  ;;  %v78_v31 = vld [vmem:[%s17974_s2 + $0x118] sm:$0xff] }
   0xb   :  { %18188 = vst [vmem:[#allocation9_spill] sm:$0xff] %v14016_v20  ;;  %11544 = vmatprep.subr.msk.bf16.mxu1 %vm13985_vm1, %v14005_v15  ;;  %11499 = vmatpush3.bf16.xpose.msk.msra.mxu0 %vm13985_vm1, %v14003_v14  ;;  %v45_v28 = vld [vmem:[%s17974_s2 + $0x10] sm:$0xff]  ;;  %v64_v33 = vld [vmem:[%s17974_s2 + $0xa8] sm:$0xff]  ;;  %v95_v34 = vld [vmem:[%s17974_s2 + $0x1a0] sm:$0xff] }
   0xc   :  { %11547 = vmatpush3.bf16.xpose.msk.msra.mxu1 %vm13985_vm1, %v14016_v20  ;;  %11502 = vmatprep.subr.msk.bf16.mxu0 %vm13985_vm1, %v14021_v22  ;;  %v77_v30 = vld [vmem:[%s17974_s2 + $0x110] sm:$0xff]  ;;  %v96_v35 = vld [vmem:[%s17974_s2 + $0x1a8] sm:$0xff]  ;;  %v130_v36 = vld [vmem:[%s17976_s4 + $0x18] sm:$0xff]  ;;  %v14085_v38 = vpack.c.bf16 %v46_v29, %v45_v28  ;;  %v14089_v40 = vpack.c.bf16 %v64_v33, %v63_v32 }
   0xd   :  { %11550 = vmatprep.subr.msk.bf16.mxu1 %vm13985_vm1, %v14038_v26  ;;  %v126_v37 = vld [vmem:[%s17975_s3 + $0x18] sm:$0xff]  ;;  %v14087_v39 = vpack.c.bf16 %v78_v31, %v77_v30  ;;  %v14091_v41 = vpack.c.bf16 %v96_v35, %v95_v34  ;;  %v47_v42 = vld [vmem:[%s17974_s2 + $0x20] sm:$0xff]  ;;  %v48_v43 = vld [vmem:[%s17974_s2 + $0x28] sm:$0xff] }
   0xe   :  { %12995 = vset.pattern.permute.xlu1 %v13885_v3  ;;  %175 = vperm.xlu0 %12992, %v129_v25   ;;  %18191 = vst [vmem:[#allocation12_spill] sm:$0xff] %v14085_v38  ;;  %18193 = vst [vmem:[#allocation14_spill] sm:$0xff] %v14089_v40  ;;  %v79_v44 = vld [vmem:[%s17974_s2 + $0x120] sm:$0xff]  ;;  %v80_v45 = vld [vmem:[%s17974_s2 + $0x128] sm:$0xff]  ;;  %v14130_v50 = vpack.c.bf16 %v48_v43, %v47_v42 }
   0xf   :  { %145 = vperm.xlu1 %12995, %v125_v27   ;;  %18192 = vst [vmem:[#allocation13_spill] sm:$0xff] %v14087_v39  ;;  %18194 = vst [vmem:[#allocation15_spill] sm:$0xff] %v14091_v41  ;;  %v65_v46 = vld [vmem:[%s17974_s2 + $0xb0] sm:$0xff]  ;;  %v66_v47 = vld [vmem:[%s17974_s2 + $0xb8] sm:$0xff]  ;;  %v14132_v51 = vpack.c.bf16 %v80_v45, %v79_v44 }
  0x10   :  { %v97_v48 = vld [vmem:[%s17974_s2 + $0x1b0] sm:$0xff]  ;;  %v98_v49 = vld [vmem:[%s17974_s2 + $0x1b8] sm:$0xff]  ;;  %18195 = vst [vmem:[#allocation16_spill] sm:$0xff] %v14130_v50  ;;  %v14135_v52 = vpack.c.bf16 %v66_v47, %v65_v46  ;;  %v67_v58 = vld [vmem:[%s17974_s2 + $0xc0] sm:$0xff] }
  0x11   :  { %18196 = vst [vmem:[#allocation17_spill] sm:$0xff] %v14132_v51  ;;  %v14137_v53 = vpack.c.bf16 %v98_v49, %v97_v48  ;;  %v49_v54 = vld [vmem:[%s17974_s2 + $0x30] sm:$0xff]  ;;  %v50_v55 = vld [vmem:[%s17974_s2 + $0x38] sm:$0xff]  ;;  %v68_v59 = vld [vmem:[%s17974_s2 + $0xc8] sm:$0xff] }
  0x12   :  { %180 = vperm.xlu0 %12992, %v130_v36   ;;  %18197 = vst [vmem:[#allocation18_spill] sm:$0xff] %v14135_v52  ;;  %v81_v56 = vld [vmem:[%s17974_s2 + $0x130] sm:$0xff]  ;;  %v82_v57 = vld [vmem:[%s17974_s2 + $0x138] sm:$0xff]  ;;  %v99_v60 = vld [vmem:[%s17974_s2 + $0x1c0] sm:$0xff] }
  0x13   :  { %150 = vperm.xlu1 %12995, %v126_v37   ;;  %11505 = vmatpush3.bf16.xpose.msk.msra.mxu0 %vm13985_vm1, %v14085_v38  ;;  %18198 = vst [vmem:[#allocation19_spill] sm:$0xff] %v14137_v53  ;;  %v100_v61 = vld [vmem:[%s17974_s2 + $0x1c8] sm:$0xff] }
  0x14   :  { %11553 = vmatpush3.bf16.xpose.msk.msra.mxu1 %vm13985_vm1, %v14087_v39  ;;  %11508 = vmatprep.subr.msk.bf16.mxu0 %vm13985_vm1, %v14089_v40 }
  0x15   :  { %11556 = vmatprep.subr.msk.bf16.mxu1 %vm13985_vm1, %v14091_v41 }
  0x16   :  { %192 = vperm.xlu0 %12992, %v13962_v1  }
  0x17   :  { %12996 = vset.pattern.permute.xlu1 %v13886_v19 }
  0x18   :  { %188 = vperm.xlu1 %12996, %v13967_v2  }
  0x1a   :  { %200 = vperm.xlu0 %12992, %v126_v37  }
  0x1b   :  { %11511 = vmatpush3.bf16.xpose.msk.msra.mxu0 %vm13985_vm1, %v14130_v50 }
  0x1c   :  { %11559 = vmatpush3.bf16.xpose.msk.msra.mxu1 %vm13985_vm1, %v14132_v51  ;;  %11514 = vmatprep.subr.msk.bf16.mxu0 %vm13985_vm1, %v14135_v52 }
  0x1d   :  { %11562 = vmatprep.subr.msk.bf16.mxu1 %vm13985_vm1, %v14137_v53  ;;  %196 = vperm.xlu1 %12996, %v125_v27  }
  0x1e   :  { %18 = vsyncpa [#allocation4], 0  ;;  %v14175_v62 = vpack.c.bf16 %v50_v55, %v49_v54  ;;  %v14177_v63 = vpack.c.bf16 %v82_v57, %v81_v56  ;;  %v14179_v0 = vpack.c.bf16 %v68_v59, %v67_v58  ;;  %v14181_v1 = vpack.c.bf16 %v100_v61, %v99_v60  ;;  %v51_v2 = vld [vmem:[%s17974_s2 + $0x40] sm:$0xff]  ;;  %v52_v3 = vld [vmem:[%s17974_s2 + $0x48] sm:$0xff]  ;;  %s13889_s23 = smov 1   ;;  %s13890_s24 = smov 127  }
  0x1f   :  { %v83_v4 = vld [vmem:[%s17974_s2 + $0x140] sm:$0xff]  ;;  %v84_v5 = vld [vmem:[%s17974_s2 + $0x148] sm:$0xff]  ;;  %v69_v6 = vld [vmem:[%s17974_s2 + $0xd0] sm:$0xff]  ;;  %v14219_v12 = vpack.c.bf16 %v52_v3, %v51_v2  ;;  %s13891_s25 = smov 126   ;;  %vm13893_vm6 = vmmov 0  }
  0x20   :  { %18199 = vst [vmem:[#allocation20_spill] sm:$0xff] %v14175_v62  ;;  %18200 = vst [vmem:[#allocation21_spill] sm:$0xff] %v14177_v63  ;;  %v70_v7 = vld [vmem:[%s17974_s2 + $0xd8] sm:$0xff]  ;;  %v101_v9 = vld [vmem:[%s17974_s2 + $0x1d0] sm:$0xff]  ;;  %v14221_v13 = vpack.c.bf16 %v84_v5, %v83_v4 }
  0x21   :  { %18201 = vst [vmem:[#allocation22_spill] sm:$0xff] %v14179_v0  ;;  %18202 = vst [vmem:[#allocation23_spill] sm:$0xff] %v14181_v1  ;;  %v102_v11 = vld [vmem:[%s17974_s2 + $0x1d8] sm:$0xff]  ;;  %v14223_v16 = vpack.c.bf16 %v70_v7, %v69_v6  ;;  %v53_v18 = vld [vmem:[%s17974_s2 + $0x50] sm:$0xff] }
  0x22   :  { %18203 = vst [vmem:[#allocation24_spill] sm:$0xff] %v14219_v12  ;;  %18204 = vst [vmem:[#allocation25_spill] sm:$0xff] %v14221_v13  ;;  %v14225_v17 = vpack.c.bf16 %v102_v11, %v101_v9  ;;  %v54_v19 = vld [vmem:[%s17974_s2 + $0x58] sm:$0xff]  ;;  %v85_v21 = vld [vmem:[%s17974_s2 + $0x150] sm:$0xff] }
  0x23   :  { %11517 = vmatpush3.bf16.xpose.msk.msra.mxu0 %vm13985_vm1, %v14175_v62  ;;  %18205 = vst [vmem:[#allocation26_spill] sm:$0xff] %v14223_v16  ;;  %v86_v23 = vld [vmem:[%s17974_s2 + $0x158] sm:$0xff]  ;;  %v71_v24 = vld [vmem:[%s17974_s2 + $0xe0] sm:$0xff]  ;;  %v72_v25 = vld [vmem:[%s17974_s2 + $0xe8] sm:$0xff]  ;;  %v14263_v29 = vpack.c.bf16 %v54_v19, %v53_v18 }
  0x24   :  { %11565 = vmatpush3.bf16.xpose.msk.msra.mxu1 %vm13985_vm1, %v14177_v63  ;;  %11520 = vmatprep.subr.msk.bf16.mxu0 %vm13985_vm1, %v14179_v0  ;;  %18206 = vst [vmem:[#allocation27_spill] sm:$0xff] %v14225_v17  ;;  %v103_v27 = vld [vmem:[%s17974_s2 + $0x1e0] sm:$0xff]  ;;  %v104_v28 = vld [vmem:[%s17974_s2 + $0x1e8] sm:$0xff]  ;;  %v14265_v30 = vpack.c.bf16 %v86_v23, %v85_v21  ;;  %v14267_v31 = vpack.c.bf16 %v72_v25, %v71_v24  ;;  %v73_v37 = vld [vmem:[%s17974_s2 + $0xf0] sm:$0xff] }
  0x25   :  { %11568 = vmatprep.subr.msk.bf16.mxu1 %vm13985_vm1, %v14181_v1  ;;  %18207 = vst [vmem:[#allocation28_spill] sm:$0xff] %v14263_v29  ;;  %v14269_v32 = vpack.c.bf16 %v104_v28, %v103_v27  ;;  %v55_v33 = vld [vmem:[%s17974_s2 + $0x60] sm:$0xff]  ;;  %v56_v34 = vld [vmem:[%s17974_s2 + $0x68] sm:$0xff]  ;;  %v74_v42 = vld [vmem:[%s17974_s2 + $0xf8] sm:$0xff] }
  0x26   :  { %18208 = vst [vmem:[#allocation29_spill] sm:$0xff] %v14265_v30  ;;  %18209 = vst [vmem:[#allocation30_spill] sm:$0xff] %v14267_v31  ;;  %v87_v35 = vld [vmem:[%s17974_s2 + $0x160] sm:$0xff]  ;;  %v88_v36 = vld [vmem:[%s17974_s2 + $0x168] sm:$0xff]  ;;  %v14307_v45 = vpack.c.bf16 %v56_v34, %v55_v33  ;;  %v14311_v47 = vpack.c.bf16 %v74_v42, %v73_v37 }
  0x27   :  { %18210 = vst [vmem:[#allocation31_spill] sm:$0xff] %v14269_v32  ;;  %v105_v43 = vld [vmem:[%s17974_s2 + $0x1f0] sm:$0xff]  ;;  %v106_v44 = vld [vmem:[%s17974_s2 + $0x1f8] sm:$0xff]  ;;  %v14309_v46 = vpack.c.bf16 %v88_v36, %v87_v35  ;;  %v107_v57 = vld [vmem:[%s17974_s2 + $0x200] sm:$0xff] }
  0x28   :  { %18211 = vst [vmem:[#allocation32_spill] sm:$0xff] %v14307_v45  ;;  %18213 = vst [vmem:[#allocation34_spill] sm:$0xff] %v14311_v47  ;;  %v14313_v48 = vpack.c.bf16 %v106_v44, %v105_v43  ;;  %v57_v49 = vld [vmem:[%s17974_s2 + $0x70] sm:$0xff]  ;;  %v58_v54 = vld [vmem:[%s17974_s2 + $0x78] sm:$0xff] }
  0x29   :  { %18212 = vst [vmem:[#allocation33_spill] sm:$0xff] %v14309_v46  ;;  %v89_v55 = vld [vmem:[%s17974_s2 + $0x170] sm:$0xff]  ;;  %v90_v56 = vld [vmem:[%s17974_s2 + $0x178] sm:$0xff]  ;;  %v108_v58 = vld [vmem:[%s17974_s2 + $0x208] sm:$0xff]  ;;  %v14345_v59 = vpack.c.bf16 %v58_v54, %v57_v49 }
  0x2a   :  { %18214 = vst [vmem:[#allocation35_spill] sm:$0xff] %v14313_v48  ;;  %v14347_v60 = vpack.c.bf16 %v90_v56, %v89_v55  ;;  %v14349_v61 = vpack.c.bf16 %v108_v58, %v107_v57  ;;  %v9250_v4 = vld [vmem:[%s17973_s1] ss:$0 sm:$0xff]  ;;  %v109_v7 = vld [vmem:[%s17974_s2 + $0x210] sm:$0xff]  ;;  %v110_v9 = vld [vmem:[%s17974_s2 + $0x218] sm:$0xff] }
  0x2b   :  { %11523 = vmatpush3.bf16.xpose.msk.msra.mxu0 %vm13985_vm1, %v14219_v12  ;;  %18215 = vst [vmem:[#allocation36_spill] sm:$0xff] %v14345_v59  ;;  %v14369_v23 = vpack.c.bf16 %v110_v9, %v109_v7  ;;  %v111_v33 = vld [vmem:[%s17974_s2 + $0x220] sm:$0xff]  ;;  %v112_v34 = vld [vmem:[%s17974_s2 + $0x228] sm:$0xff]  ;;  %v113_v44 = vld [vmem:[%s17974_s2 + $0x230] sm:$0xff] }
  0x2c   :  { %11571 = vmatpush3.bf16.xpose.msk.msra.mxu1 %vm13985_vm1, %v14221_v13  ;;  %11526 = vmatprep.subr.msk.bf16.mxu0 %vm13985_vm1, %v14223_v16  ;;  %18216 = vst [vmem:[#allocation37_spill] sm:$0xff] %v14347_v60  ;;  %v14393_v42 = vpack.c.bf16 %v112_v34, %v111_v33  ;;  %v114_v49 = vld [vmem:[%s17974_s2 + $0x238] sm:$0xff]  ;;  %v115_v55 = vld [vmem:[%s17974_s2 + $0x240] sm:$0xff]  ;;  %v116_v56 = vld [vmem:[%s17974_s2 + $0x248] sm:$0xff] }
  0x2d   :  { %11574 = vmatprep.subr.msk.bf16.mxu1 %vm13985_vm1, %v14225_v17  ;;  %18217 = vst [vmem:[#allocation38_spill] sm:$0xff] %v14369_v23  ;;  %v14414_v54 = vpack.c.bf16 %v114_v49, %v113_v44  ;;  %v14428_v57 = vpack.c.bf16 %v116_v56, %v115_v55  ;;  %v117_v58 = vld [vmem:[%s17974_s2 + $0x250] sm:$0xff]  ;;  %v122_v9 = vld [vmem:[%s17974_s2 + $0x278] sm:$0xff] }
  0x2e   :  { %18218 = vst [vmem:[#allocation39_spill] sm:$0xff] %v14393_v42  ;;  %v121_v7 = vld [vmem:[%s17974_s2 + $0x270] sm:$0xff] }
  0x2f   :  { %18219 = vst [vmem:[#allocation40_spill] sm:$0xff] %v14414_v54  ;;  %18220 = vst [vmem:[#allocation41_spill] sm:$0xff] %v14428_v57 }
  0x33   :  { %11529 = vmatpush3.bf16.xpose.msk.msra.mxu0 %vm13985_vm1, %v14263_v29 }
  0x34   :  { %11577 = vmatpush3.bf16.xpose.msk.msra.mxu1 %vm13985_vm1, %v14265_v30  ;;  %11532 = vmatprep.subr.msk.bf16.mxu0 %vm13985_vm1, %v14267_v31 }
  0x35   :  { %11580 = vmatprep.subr.msk.bf16.mxu1 %vm13985_vm1, %v14269_v32 }
  0x3b   :  { %11535 = vmatpush3.bf16.xpose.msk.msra.mxu0 %vm13985_vm1, %v14307_v45 }
  0x3c   :  { %11583 = vmatpush3.bf16.xpose.msk.msra.mxu1 %vm13985_vm1, %v14309_v46  ;;  %11538 = vmatprep.subr.msk.bf16.mxu0 %vm13985_vm1, %v14311_v47 }
  0x3d   :  { %11586 = vmatprep.subr.msk.bf16.mxu1 %vm13985_vm1, %v14313_v48 }
  0x43   :  { %11541 = vmatpush3.bf16.xpose.msk.msra.mxu0 %vm13985_vm1, %v14345_v59 }
  0x44   :  { %11589 = vmatpush3.bf16.xpose.msk.msra.mxu1 %vm13985_vm1, %v14347_v60  ;;  %11592 = vmatprep.subr.msk.bf16.mxu0 %vm13985_vm1, %v14349_v61 }
  0x84   :  { %v136_v2 = vpop.permute.xlu0 %135  ;;  %v141_v3 = vpop.permute.xlu1 %140 }
  0x85   :  { %v160_v5 = vmul.f32 %v9250_v4, %v141_v3  ;;  %v159_v6 = vmul.f32 %v9250_v4, %v136_v2  ;;  %v118_v2 = vld [vmem:[%s17974_s2 + $0x258] sm:$0xff] }
  0x86   :  { %v14442_v3 = vpack.c.bf16 %v118_v2, %v117_v58 }
  0x88   :  { %18221 = vst [vmem:[#allocation42_spill] sm:$0xff] %v14442_v3 }
  0x89   :  { %v166_v11 = vpop.permute.xlu0 %165  ;;  %v171_v18 = vpop.permute.xlu1 %170 }
  0x8a   :  { %v183_v19 = vadd.f32 %v166_v11, %v159_v6  ;;  %v184_v21 = vadd.f32 %v171_v18, %v160_v5  ;;  %v120_v5 = vld [vmem:[%s17974_s2 + $0x268] sm:$0xff]  ;;  %v14470_v11 = vpack.c.bf16 %v122_v9, %v121_v7  ;;  %v17984_v18 = vlaneseq }
  0x8c   :  { %10010 = vmatprep.mubr.msk.f32.mxu0 %vm249_vm0, %v183_v19  ;;  %10050 = vmatprep.mubr.msk.f32.mxu1 %vm249_vm0, %v183_v19  ;;  %18223 = vst [vmem:[#allocation44_spill] sm:$0xff] %v14470_v11 }
  0x8d   :  { %10011 = vmatmul.mubr.msk.f32.vlgmr.msra.gmra.mrb[0].mxu0 %vm249_vm0, %v183_v19  ;;  %10051 = vmatmul.mubr.msk.f32.vlgmr.msra.gmra.mrb[0].mxu1 %vm249_vm0, %v183_v19  ;;  %v176_v24 = vpop.permute.xlu0 %175 }
  0x8e   :  { %11595 = vmatpush3.bf16.xpose.msk.msra.mxu0 %vm13985_vm1, %v14349_v61  ;;  %v146_v25 = vpop.permute.xlu1 %145  ;;  %10012 = vmatprep.mubr.msk.f32.mxu0 %vm249_vm0, %v184_v21 }
  0x8f   :  { %v161_v27 = vmul.f32 %v9250_v4, %v146_v25  ;;  %10052 = vmatprep.mubr.msk.f32.mxu1 %vm249_vm0, %v184_v21  ;;  %11598 = vmatprep.subr.msk.bf16.mxu0 %vm13985_vm1, %v14369_v23 }
  0x91   :  { %v185_v28 = vadd.f32 %v176_v24, %v161_v27  ;;  %10013 = vmatmul.mubr.msk.f32.gmra.mrb[2].mxu0 %vm249_vm0, %v184_v21  ;;  %10053 = vmatmul.mubr.msk.f32.gmra.mrb[2].mxu1 %vm249_vm0, %v184_v21  ;;  %v181_v37 = vpop.permute.xlu0 %180  ;;  %v14508_v24 = vld [vmem:[%s17972_s0] sm:$0x1f]  ;;  %s13887_s0 = smov 2  }
  0x92   :  { %v151_v35 = vpop.permute.xlu1 %150 }
  0x93   :  { %v162_v36 = vmul.f32 %v9250_v4, %v151_v35  ;;  %10014 = vmatprep.mubr.msk.f32.mxu0 %vm249_vm0, %v185_v28  ;;  %10054 = vmatprep.mubr.msk.f32.mxu1 %vm249_vm0, %v185_v28  ;;  %v119_v4 = vld [vmem:[%s17974_s2 + $0x260] sm:$0xff] }
  0x94   :  { %v14456_v6 = vpack.c.bf16 %v120_v5, %v119_v4 }
  0x95   :  { %v186_v43 = vadd.f32 %v181_v37, %v162_v36  ;;  %10015 = vmatmul.mubr.msk.f32.gmra.mrb[4].mxu0 %vm249_vm0, %v185_v28  ;;  %10055 = vmatmul.mubr.msk.f32.gmra.mrb[4].mxu1 %vm249_vm0, %v185_v28 }
  0x96   :  { %11601 = vmatpush3.bf16.xpose.msk.msra.mxu0 %vm13985_vm1, %v14369_v23  ;;  %18222 = vst [vmem:[#allocation43_spill] sm:$0xff] %v14456_v6 }
  0x97   :  { %10016 = vmatprep.mubr.msk.f32.mxu0 %vm249_vm0, %v186_v43  ;;  %10056 = vmatprep.mubr.msk.f32.mxu1 %vm249_vm0, %v186_v43  ;;  %v14511_v27 = vpop.permute.xlu1 %188 }
  0x98   :  { %11604 = vmatprep.subr.msk.bf16.mxu0 %vm13985_vm1, %v14393_v42 }
  0x99   :  { %10017 = vmatmul.mubr.msk.f32.gmra.mrb[6].mxu0 %vm249_vm0, %v186_v43  ;;  %10057 = vmatmul.mubr.msk.f32.gmra.mrb[6].mxu1 %vm249_vm0, %v186_v43 }
  0x9a   :  { %11003 = vmatprep.mubr.msk.f32.mxu0 %vm249_vm0, %v183_v19  ;;  %v14502_v19 = vshrl.u32 %v17984_v18, 7 }
  0x9c   :  { %18224 = vst [vmem:[#allocation45_spill] sm:$0xff] %v14502_v19  ;;  %v218_v25 = vsub.s32 3, %v14502_v19  ;;  %v210_v34 = vsub.s32 1, %v14502_v19  ;;  %v14522_v49 = vpop.permute.xlu1 %196 }
  0x9e   :  { %11607 = vmatpush3.bf16.xpose.msk.msra.mxu0 %vm13985_vm1, %v14393_v42  ;;  %v219_v35 = vrot.slane %v14508_v24, %v218_v25  ;;  %v211_v58 = vrot.slane %v14508_v24, %v210_v34 }
  0x9f   :  { %11610 = vmatprep.subr.msk.bf16.mxu0 %vm13985_vm1, %v14414_v54 }
  0xa0   :  { %v232_v37 = vmul.f32 %v219_v35, %v14511_v27  ;;  %v230_v9 = vmul.f32 %v211_v58, %v14511_v27 }
  0xa6   :  { %11613 = vmatpush3.bf16.xpose.msk.msra.mxu0 %vm13985_vm1, %v14414_v54 }
  0xa7   :  { %11616 = vmatprep.subr.msk.bf16.mxu0 %vm13985_vm1, %v14428_v57 }
  0xae   :  { %11619 = vmatpush3.bf16.xpose.msk.msra.mxu0 %vm13985_vm1, %v14428_v57 }
  0xaf   :  { %11622 = vmatprep.subr.msk.bf16.mxu0 %vm13985_vm1, %v14442_v3 }
  0xb6   :  { %11625 = vmatpush3.bf16.xpose.msk.msra.mxu0 %vm13985_vm1, %v14442_v3 }
  0xb7   :  { %11628 = vmatprep.subr.msk.bf16.mxu0 %vm13985_vm1, %v14456_v6 }
  0xbe   :  { %11631 = vmatpush3.bf16.xpose.msk.msra.mxu0 %vm13985_vm1, %v14456_v6 }
  0xbf   :  { %11634 = vmatprep.subr.msk.bf16.mxu0 %vm13985_vm1, %v14470_v11 }
  0xc6   :  { %11637 = vmatpush3.bf16.xpose.msk.msra.mxu0 %vm13985_vm1, %v14470_v11 }
  0xc7   :  { %11759 = vmatprep.subr.bf16.mxu0 %v13992_v10 }
  0xcd   :  { %11004 = vmatmul.mubr.msk.f32.vlgmr.msra.gmra.mrb[8].mxu0 %vm249_vm0, %v184_v21  ;;  %v214_v21 = vsub.s32 2, %v14502_v19 }
  0xce   :  { %11006 = vmatprep.mubr.msk.f32.mxu0 %vm249_vm0, %v185_v28  ;;  %11761 = vmatpush3.bf16.msra.mxu0 %v14003_v14  ;;  %v17988_v28 = vsub.s32 0, %v14502_v19 }
  0xcf   :  { %11763 = vmatprep.subr.bf16.mxu0 %v14021_v22  ;;  %v215_v33 = vrot.slane %v14508_v24, %v214_v21 }
  0xd0   :  { %v207_v44 = vrot.slane %v14508_v24, %v17988_v28 }
  0xd1   :  { %11007 = vmatmul.mubr.msk.f32.gmra.mrb[10].mxu0 %vm249_vm0, %v186_v43  ;;  %v231_v36 = vmul.f32 %v215_v33, %v14511_v27  ;;  %v193_v43 = vpop.permute.xlu0 %192 }
  0xd2   :  { %11765 = vmatpush3.bf16.msra.mxu0 %v14085_v38  ;;  %v229_v2 = vmul.f32 %v207_v44, %v14511_v27  ;;  %v234_v25 = vmul.f32 %v207_v44, %v193_v43  ;;  %v236_v18 = vmul.f32 %v215_v33, %v193_v43 }
  0xd3   :  { %11767 = vmatprep.subr.bf16.mxu0 %v14089_v40 }
  0xd6   :  { %11769 = vmatpush3.bf16.msra.mxu0 %v14130_v50 }
  0xd7   :  { %11771 = vmatprep.subr.bf16.mxu0 %v14135_v52  ;;  %v201_v52 = vpop.permute.xlu0 %200 }
  0xd8   :  { %v245_v38 = vmul.f32 %v211_v58, %v201_v52 }
  0xda   :  { %11773 = vmatpush3.bf16.msra.mxu0 %v14175_v62  ;;  %v242_v62 = vmul.f32 %v219_v35, %v14522_v49 }
  0xdb   :  { %11775 = vmatprep.subr.bf16.mxu0 %v14179_v0 }
  0xde   :  { %11777 = vmatpush3.bf16.msra.mxu0 %v14219_v12  ;;  %v240_v12 = vmul.f32 %v211_v58, %v14522_v49 }
  0xdf   :  { %11779 = vmatprep.subr.bf16.mxu0 %v14223_v16 }
  0xe2   :  { %11781 = vmatpush3.bf16.msra.mxu0 %v14263_v29 }
  0xe3   :  { %11783 = vmatprep.subr.bf16.mxu0 %v14267_v31  ;;  %v241_v31 = vmul.f32 %v215_v33, %v14522_v49 }
  0xe6   :  { %11785 = vmatpush3.bf16.msra.mxu0 %v14307_v45  ;;  %v237_v45 = vmul.f32 %v219_v35, %v193_v43 }
  0xe7   :  { %11787 = vmatprep.subr.bf16.mxu0 %v14311_v47  ;;  %v235_v47 = vmul.f32 %v211_v58, %v193_v43 }
  0xea   :  { %11789 = vmatpush3.bf16.msra.mxu0 %v14345_v59 }
  0xeb   :  { %11791 = vmatprep.subr.bf16.mxu0 %v14005_v15 }
 0x160   :  { %v568_v55 = vpop.f32.mrb[0].mxu0  ;;  %v657_v56 = vpop.f32.mrb[0].mxu1 }
 0x161   :  { %v14526_v4 = vadd.f32 %v657_v56, %v231_v36  ;;  %v570_v5 = vpop.f32.mrb[1].mxu0  ;;  %v659_v7 = vpop.f32.mrb[1].mxu1  ;;  %v14532_v29 = vadd.f32 %v568_v55, %v229_v2  ;;  %v239_v2 = vmul.f32 %v207_v44, %v14522_v49 }
 0x162   :  { %v14529_v21 = vadd.f32 %v659_v7, %v232_v37  ;;  %v14539_v37 = vadd.f32 %v570_v5, %v230_v9 }
 0x163   :  { %18225 = vst [vmem:[#allocation46_spill] sm:$0xff] %v14526_v4 }
 0x164   :  { %18226 = vst [vmem:[#allocation47_spill] sm:$0xff] %v14529_v21  ;;  %v574_v59 = vpop.f32.mrb[2].mxu0  ;;  %v663_v28 = vpop.f32.mrb[2].mxu1 }
 0x165   :  { %v14534_v34 = vadd.f32 %v574_v59, %v234_v25  ;;  %v14536_v36 = vadd.f32 %v663_v28, %v236_v18  ;;  %v576_v56 = vpop.f32.mrb[3].mxu0  ;;  %v665_v16 = vpop.f32.mrb[3].mxu1  ;;  %v244_v25 = vmul.f32 %v207_v44, %v201_v52 }
 0x166   :  { %v14541_v7 = vadd.f32 %v576_v56, %v235_v47  ;;  %v14543_v0 = vadd.f32 %v665_v16, %v237_v45  ;;  %v246_v56 = vmul.f32 %v215_v33, %v201_v52  ;;  %v222_v33 = vsub.s32 4, %v14502_v19 }
 0x167   :  { %18227 = vst [vmem:[#allocation48_spill] sm:$0xff] %v14536_v36  ;;  %v14548_v55 = vpack.i.bf16 %v14534_v34, %v14532_v29 }
 0x168   :  { %18228 = vst [vmem:[#allocation49_spill] sm:$0xff] %v14543_v0  ;;  %v580_v59 = vpop.f32.mrb[4].mxu0  ;;  %v669_v18 = vpop.f32.mrb[4].mxu1  ;;  %v14552_v28 = vpack.i.bf16 %v14541_v7, %v14539_v37 }
 0x169   :  { %v14555_v5 = vadd.f32 %v669_v18, %v241_v31  ;;  %v582_v47 = vpop.f32.mrb[5].mxu0  ;;  %v671_v16 = vpop.f32.mrb[5].mxu1  ;;  %12998 = vrot.lane.b32.xlu1 %v14548_v55, %s13887_s0  ;;  %v247_v31 = vmul.f32 %v219_v35, %v201_v52  ;;  %v14565_v18 = vadd.f32 %v580_v59, %v239_v2 }
 0x16a   :  { %v14559_v45 = vadd.f32 %v582_v47, %v240_v12  ;;  %v14561_v9 = vadd.f32 %v671_v16, %v242_v62  ;;  %13003 = vrot.lane.b32.xlu0 %v14552_v28, %s13887_s0 }
 0x16b   :  { %18229 = vst [vmem:[#allocation50_spill] sm:$0xff] %v14555_v5 }
 0x16c   :  { %18230 = vst [vmem:[#allocation51_spill] sm:$0xff] %v14559_v45  ;;  %18231 = vst [vmem:[#allocation52_spill] sm:$0xff] %v14561_v9  ;;  %v586_v50 = vpop.f32.mrb[6].mxu0  ;;  %v675_v40 = vpop.f32.mrb[6].mxu1 }
 0x16d   :  { %v14567_v22 = vadd.f32 %v586_v50, %v244_v25  ;;  %v14569_v14 = vadd.f32 %v675_v40, %v246_v56  ;;  %v588_v10 = vpop.f32.mrb[7].mxu0  ;;  %v677_v12 = vpop.f32.mrb[7].mxu1  ;;  %v223_v50 = vrot.slane %v14508_v24, %v222_v33  ;;  %v13027_v33 = vpack.i.bf16 %v14536_v36, %v14526_v4 }
 0x16e   :  { %v14571_v47 = vadd.f32 %v588_v10, %v245_v38  ;;  %v14573_v62 = vadd.f32 %v677_v12, %v247_v31 }
 0x16f   :  { %18232 = vst [vmem:[#allocation53_spill] sm:$0xff] %v14569_v14  ;;  %v14577_v44 = vpack.i.bf16 %v14567_v22, %v14565_v18  ;;  %v238_v35 = vmul.f32 %v223_v50, %v193_v43  ;;  %v233_v58 = vmul.f32 %v223_v50, %v14511_v27  ;;  %v248_v2 = vmul.f32 %v223_v50, %v201_v52 }
 0x170   :  { %18233 = vst [vmem:[#allocation54_spill] sm:$0xff] %v14571_v47  ;;  %18234 = vst [vmem:[#allocation55_spill] sm:$0xff] %v14573_v62  ;;  %v243_v25 = vmul.f32 %v223_v50, %v14522_v49  ;;  %v13017_v43 = vpack.i.bf16 %v14571_v47, %v14559_v45  ;;  %v18019_v52 = vmov 0.0   ;;  %v13032_v49 = vpack.i.bf16 %v14543_v0, %v14529_v21 }
 0x171   :  { %13008 = vrot.lane.b32.xlu0 %v14577_v44, %s13887_s0  ;;  %933 = vmatprep.mubr.f32.mxu1 %v18019_v52  ;;  %v13042_v50 = vpack.i.bf16 %v14573_v62, %v14561_v9 }
 0x1a0   :  { %v11005_v40 = vpop.f32.mrb[8].mxu0 }
 0x1a1   :  { %v14584_v59 = vadd.f32 %v11005_v40, %v238_v35  ;;  %v746_v10 = vpop.f32.mrb[9].mxu0  ;;  %v13037_v35 = vpack.i.bf16 %v14569_v14, %v14555_v5  ;;  %v18239_v40 = vlaneseq }
 0x1a2   :  { %v14586_v38 = vadd.f32 %v746_v10, %v233_v58 }
 0x1a3   :  { %18235 = vst [vmem:[#allocation56_spill] sm:$0xff] %v14584_v59  ;;  %v14640_v58 = vand.u32 127, %v18239_v40 }
 0x1a4   :  { %18236 = vst [vmem:[#allocation57_spill] sm:$0xff] %v14586_v38  ;;  %v11008_v16 = vpop.f32.mrb[10].mxu0  ;;  %v13012_v56 = vpack.i.bf16 %v14584_v59, %v14586_v38 }
 0x1a5   :  { %v14591_v31 = vadd.f32 %v11008_v16, %v248_v2  ;;  %v756_v12 = vpop.f32.mrb[11].mxu0  ;;  %18240 = vst [vmem:[#allocation60_spill] sm:$0xff] %v14640_v58  ;;  %vm832_vm2 = vcmp.lt.s32.totalorder %v14640_v58, 2  ;;  %vm1447_vm3 = vcmp.lt.s32.totalorder %v14640_v58, 1  ;;  %vm1808_vm4 = vcmp.lt.s32.totalorder %v14640_v58, 127 }
 0x1a6   :  { %v14593_v24 = vadd.f32 %v756_v12, %v243_v25  ;;  %13013 = vrot.lane.b32.xlu1 %v13012_v56, %s13887_s0  ;;  %vm2169_vm5 = vcmp.lt.s32.totalorder %v14640_v58, 126 }
 0x1a7   :  { %18237 = vst [vmem:[#allocation58_spill] sm:$0xff] %v14591_v31 }
 0x1a8   :  { %18238 = vst [vmem:[#allocation59_spill] sm:$0xff] %v14593_v24  ;;  %v13022_v27 = vpack.i.bf16 %v14591_v31, %v14593_v24 }
 0x1aa   :  { %13023 = vrot.lane.b32.xlu0 %v13022_v27, %s13887_s0  ;;  %13018 = vrot.lane.b32.xlu1 %v13017_v43, %s13887_s0 }
 0x1ae   :  { %13033 = vrot.lane.b32.xlu0 %v13032_v49, %s13887_s0  ;;  %13028 = vrot.lane.b32.xlu1 %v13027_v33, %s13887_s0 }
 0x1b2   :  { %13043 = vrot.lane.b32.xlu0 %v13042_v50, %s13887_s0  ;;  %13038 = vrot.lane.b32.xlu1 %v13037_v35, %s13887_s0 }
 0x1b6   :  { %13053 = vrot.lane.b32.xlu0 %v14552_v28, %s13889_s23  ;;  %13048 = vrot.lane.b32.xlu1 %v14548_v55, %s13889_s23 }
 0x1ba   :  { %13063 = vrot.lane.b32.xlu0 %v14577_v44, %s13889_s23  ;;  %13058 = vrot.lane.b32.xlu1 %v13012_v56, %s13889_s23 }
 0x1be   :  { %13073 = vrot.lane.b32.xlu0 %v13022_v27, %s13889_s23  ;;  %13068 = vrot.lane.b32.xlu1 %v13017_v43, %s13889_s23 }
 0x1c2   :  { %13083 = vrot.lane.b32.xlu0 %v13032_v49, %s13889_s23  ;;  %13078 = vrot.lane.b32.xlu1 %v13027_v33, %s13889_s23 }
 0x1c6   :  { %13093 = vrot.lane.b32.xlu0 %v13042_v50, %s13889_s23  ;;  %13088 = vrot.lane.b32.xlu1 %v13037_v35, %s13889_s23 }
 0x1ca   :  { %13103 = vrot.lane.b32.xlu0 %v13027_v33, %s13890_s24  ;;  %13098 = vrot.lane.b32.xlu1 %v14552_v28, %s13890_s24 }
 0x1ce   :  { %13113 = vrot.lane.b32.xlu0 %v13017_v43, %s13890_s24  ;;  %13108 = vrot.lane.b32.xlu1 %v14548_v55, %s13890_s24 }
 0x1d2   :  { %13123 = vrot.lane.b32.xlu0 %v14577_v44, %s13890_s24  ;;  %13118 = vrot.lane.b32.xlu1 %v13037_v35, %s13890_s24 }
 0x1d6   :  { %13133 = vrot.lane.b32.xlu0 %v13012_v56, %s13890_s24  ;;  %13128 = vrot.lane.b32.xlu1 %v13032_v49, %s13890_s24 }
 0x1da   :  { %13143 = vrot.lane.b32.xlu0 %v13022_v27, %s13890_s24  ;;  %13138 = vrot.lane.b32.xlu1 %v13042_v50, %s13890_s24 }
 0x1db   :  { %v12999_v10 = vpop.permute.xlu1 %12998 }
 0x1dc   :  { %v13001_v2 = vunpack.i.h.bf16 %v12999_v10  ;;  %v13000_v16 = vunpack.i.l.bf16 %v12999_v10  ;;  %v14645_v25 = vpop.permute.xlu0 %13003 }
 0x1dd   :  { %v18024_v12 = vunpack.i.h.bf16 %v14645_v25  ;;  %v18023_v52 = vunpack.i.l.bf16 %v14645_v25  ;;  %v18241_v57 = vunpack.i.h.bf16 %v14645_v25  ;;  %v18242_v42 = vunpack.i.l.bf16 %v14645_v25 }
 0x1de   :  { %13153 = vrot.lane.b32.xlu0 %v13027_v33, %s13891_s25  ;;  %13148 = vrot.lane.b32.xlu1 %v14552_v28, %s13891_s25  ;;  %v2491_v28 = vld [vmem:[%s17978_s6 + $0x8] sm:$0xff] }
 0x1df   :  { %v845_v40 = vsel %vm832_vm2, %v13000_v16, %v18023_v52  ;;  %v846_v10 = vsel %vm832_vm2, %v13001_v2, %v18024_v12  ;;  %v2926_v33 = vld [vmem:[%s17980_s8 + $0x8] sm:$0xff] }
 0x1e0   :  { %v11638_v19 = vpack.c.bf16 %v846_v10, %v845_v40  ;;  %v2927_v40 = vld [vmem:[%s17980_s8 + $0x10] sm:$0xff] }
 0x1e2   :  { %13163 = vrot.lane.b32.xlu0 %v13017_v43, %s13891_s25  ;;  %13158 = vrot.lane.b32.xlu1 %v14548_v55, %s13891_s25  ;;  %v2493_v55 = vld [vmem:[%s17978_s6 + $0x18] sm:$0xff] }
 0x1e3   :  { %11639 = vmatprep.subr.bf16.mxu1 %v11638_v19  ;;  %v2490_v19 = vld [vmem:[%s17978_s6] sm:$0xff]  ;;  %v2900_v43 = vld [vmem:[%s17979_s7 + $0x18] sm:$0xff]  ;;  %v13009_v10 = vpop.permute.xlu0 %13008 }
 0x1e6   :  { %13173 = vrot.lane.b32.xlu0 %v14577_v44, %s13891_s25  ;;  %13168 = vrot.lane.b32.xlu1 %v13037_v35, %s13891_s25  ;;  %v2492_v44 = vld [vmem:[%s17978_s6 + $0x10] sm:$0xff]  ;;  %v2928_v35 = vld [vmem:[%s17980_s8 + $0x18] sm:$0xff] }
 0x1ea   :  { %13183 = vrot.lane.b32.xlu0 %v13012_v56, %s13891_s25  ;;  %13178 = vrot.lane.b32.xlu1 %v13032_v49, %s13891_s25  ;;  %v2898_v56 = vld [vmem:[%s17979_s7 + $0x8] sm:$0xff]  ;;  %v2899_v49 = vld [vmem:[%s17979_s7 + $0x10] sm:$0xff] }
 0x1ee   :  { %13193 = vrot.lane.b32.xlu0 %v13022_v27, %s13891_s25  ;;  %13188 = vrot.lane.b32.xlu1 %v13042_v50, %s13891_s25  ;;  %v2897_v27 = vld [vmem:[%s17979_s7] sm:$0xff] }
 0x1ef   :  { %v2925_v50 = vld [vmem:[%s17980_s8] sm:$0xff] }
 0x1f2   :  { %2501 = vperm.xlu0 %12992, %v2491_v28   ;;  %2496 = vperm.xlu1 %12996, %v2490_v19  }
 0x1f6   :  { %2511 = vperm.xlu0 %12992, %v2493_v55   ;;  %2506 = vperm.xlu1 %12996, %v2492_v44  }
 0x1fa   :  { %2908 = vperm.xlu0 %12992, %v2898_v56   ;;  %2903 = vperm.xlu1 %12996, %v2897_v27   ;;  %v13011_v27 = vunpack.i.h.bf16 %v13009_v10 }
 0x1fe   :  { %2918 = vperm.xlu0 %12992, %v2900_v43   ;;  %2913 = vperm.xlu1 %12996, %v2899_v49   ;;  %v13010_v43 = vunpack.i.l.bf16 %v13009_v10 }
 0x202   :  { %2940 = vperm.xlu0 %12992, %v2926_v33   ;;  %2935 = vperm.xlu1 %12996, %v2925_v50  }
 0x206   :  { %2950 = vperm.xlu0 %12992, %v2928_v35   ;;  %2945 = vperm.xlu1 %12996, %v2927_v40  }
 0x218   :  { %v13014_v28 = vpop.permute.xlu1 %13013 }
 0x219   :  { %v13016_v19 = vunpack.i.h.bf16 %v13014_v28  ;;  %v13015_v55 = vunpack.i.l.bf16 %v13014_v28 }
 0x21b   :  { %v849_v44 = vsel %vm832_vm2, %v13015_v55, %v13000_v16  ;;  %v850_v56 = vsel %vm832_vm2, %v13016_v19, %v13001_v2 }
 0x21c   :  { %v14710_v49 = vpop.permute.xlu0 %13023  ;;  %v13019_v33 = vpop.permute.xlu1 %13018  ;;  %v11640_v50 = vpack.c.bf16 %v850_v56, %v849_v44 }
 0x21d   :  { %v13026_v52 = vunpack.i.h.bf16 %v14710_v49  ;;  %v13025_v35 = vunpack.i.l.bf16 %v14710_v49  ;;  %v13021_v40 = vunpack.i.h.bf16 %v13019_v33  ;;  %v13020_v12 = vunpack.i.l.bf16 %v13019_v33 }
 0x21e   :  { %11641 = vmatpush1.bf16.msra.mxu1 %v11640_v50 }
 0x21f   :  { %v851_v28 = vsel %vm832_vm2, %v13025_v35, %v13010_v43  ;;  %v852_v16 = vsel %vm832_vm2, %v13026_v52, %v13011_v27  ;;  %v847_v2 = vsel %vm832_vm2, %v13010_v43, %v13020_v12  ;;  %v848_v10 = vsel %vm832_vm2, %v13011_v27, %v13021_v40  ;;  %v853_v27 = vld [vmem:[%s17977_s5] sm:$0xff] }
 0x220   :  { %v13034_v44 = vpop.permute.xlu0 %13033  ;;  %v13029_v56 = vpop.permute.xlu1 %13028  ;;  %v11642_v11 = vpack.c.bf16 %v848_v10, %v847_v2  ;;  %v11644_v6 = vpack.c.bf16 %v852_v16, %v851_v28 }
 0x221   :  { %v13036_v49 = vunpack.i.h.bf16 %v13034_v44  ;;  %v13035_v3 = vunpack.i.l.bf16 %v13034_v44  ;;  %v13031_v33 = vunpack.i.h.bf16 %v13029_v56  ;;  %v13030_v50 = vunpack.i.l.bf16 %v13029_v56 }
 0x222   :  { %11643 = vmatprep.subr.bf16.mxu1 %v11642_v11 }
 0x223   :  { %v842_v54 = vsel %vm832_vm2, %v18241_v57, %v13031_v33  ;;  %v841_v43 = vsel %vm832_vm2, %v18242_v42, %v13030_v50  ;;  %11645 = vmatpush1.bf16.msra.mxu1 %v11644_v6  ;;  %v837_v28 = vsel %vm832_vm2, %v13030_v50, %v13035_v3  ;;  %v838_v11 = vsel %vm832_vm2, %v13031_v33, %v13036_v49 }
 0x224   :  { %v13044_v16 = vpop.permute.xlu0 %13043  ;;  %v13039_v2 = vpop.permute.xlu1 %13038  ;;  %v11646_v10 = vpack.c.bf16 %v838_v11, %v837_v28  ;;  %v11648_v57 = vpack.c.bf16 %v842_v54, %v841_v43  ;;  %v18243_v50 = vmov 0.0   ;;  %v854_v54 = vld [vmem:[%s17977_s5 + $0x8] sm:$0xff] }
 0x225   :  { %v13046_v44 = vunpack.i.h.bf16 %v13044_v16  ;;  %v13045_v25 = vunpack.i.l.bf16 %v13044_v16  ;;  %v13041_v56 = vunpack.i.h.bf16 %v13039_v2  ;;  %v13040_v23 = vunpack.i.l.bf16 %v13039_v2  ;;  %v855_v16 = vld [vmem:[%s17977_s5 + $0x10] sm:$0xff] }
 0x226   :  { %9347 = vmatmul.mubr.msk.f32.vlgmr.msra.gmra.mrb[8].mxu1 %vm249_vm0, %v853_v27  ;;  %11647 = vmatprep.subr.bf16.mxu1 %v11646_v10  ;;  %v11662_v2 = vpack.c.bf16 %v14541_v7, %v14539_v37  ;;  %v11668_v10 = vpack.c.bf16 %v14567_v22, %v14565_v18 }
 0x227   :  { %v843_v42 = vsel %vm832_vm2, %v13020_v12, %v13040_v23  ;;  %v844_v6 = vsel %vm832_vm2, %v13021_v40, %v13041_v56  ;;  %11649 = vmatpush1.bf16.msra.mxu1 %v11648_v57  ;;  %939 = vmatprep.mubr.f32.mxu1 %v18243_v50  ;;  %v839_v33 = vsel %vm832_vm2, %v13040_v23, %v13045_v25  ;;  %v14795_v57 = vld [vmem:[%s17977_s5 + $0x40] sm:$0xff] }
 0x228   :  { %v840_v43 = vsel %vm832_vm2, %v13041_v56, %v13046_v44  ;;  %v11652_v28 = vpack.c.bf16 %v844_v6, %v843_v42  ;;  %v833_v12 = vsel %vm832_vm2, %v13035_v3, %v13015_v55  ;;  %v834_v40 = vsel %vm832_vm2, %v13036_v49, %v13016_v19  ;;  %v856_v3 = vld [vmem:[%s17977_s5 + $0x18] sm:$0xff]  ;;  %v14807_v56 = vld [vmem:[%s17977_s5 + $0x48] sm:$0xff] }
 0x229   :  { %v11650_v11 = vpack.c.bf16 %v840_v43, %v839_v33  ;;  %v11654_v23 = vpack.c.bf16 %v834_v40, %v833_v12  ;;  %v835_v19 = vsel %vm832_vm2, %v13045_v25, %v13025_v35  ;;  %v836_v55 = vsel %vm832_vm2, %v13046_v44, %v13026_v52  ;;  %v14821_v33 = vpop.permute.xlu0 %13053  ;;  %v13049_v43 = vpop.permute.xlu1 %13048 }
 0x22a   :  { %9348 = vmatmul.mubr.msk.f32.gmra.mrb[10].mxu1 %vm249_vm0, %v854_v54  ;;  %v11658_v49 = vpack.c.bf16 %v836_v55, %v835_v19  ;;  %v11664_v52 = vpack.c.bf16 %v14534_v34, %v14532_v29  ;;  %v11666_v35 = vpack.c.bf16 %v14571_v47, %v14559_v45  ;;  %v11672_v44 = vpack.c.bf16 %v14536_v36, %v14526_v4 }
 0x22b   :  { %945 = vmatprep.mubr.f32.mxu1 %v18243_v50  ;;  %11651 = vmatprep.subr.bf16.mxu1 %v11650_v11  ;;  %v11674_v25 = vpack.c.bf16 %v14573_v62, %v14561_v9  ;;  %v11676_v42 = vpack.c.bf16 %v14569_v14, %v14555_v5  ;;  %v11678_v6 = vpack.c.bf16 %v14584_v59, %v14586_v38  ;;  %v13056_v11 = vunpack.i.h.bf16 %v14821_v33 }
 0x22c   :  { %11653 = vmatpush1.bf16.msra.mxu1 %v11652_v28  ;;  %v14829_v28 = vld [vmem:[%s17977_s5 + $0x58] sm:$0xff]  ;;  %v11682_v19 = vpack.c.bf16 %v14591_v31, %v14593_v24 }
 0x22d   :  { %11655 = vmatprep.subr.bf16.mxu1 %v11654_v23  ;;  %v13064_v12 = vpop.permute.xlu0 %13063  ;;  %v14831_v40 = vpop.permute.xlu1 %13058 }
 0x22e   :  { %9349 = vmatmul.mubr.msk.f32.gmra.mrb[12].mxu1 %vm249_vm0, %v855_v16 }
 0x22f   :  { %951 = vmatprep.mubr.f32.mxu1 %v18243_v50 }
 0x232   :  { %9350 = vmatmul.mubr.msk.f32.gmra.mrb[14].mxu1 %vm249_vm0, %v856_v3 }
 0x233   :  { %1022 = vmatprep.mubr.f32.mxu1 %v18243_v50 }
 0x236   :  { %9351 = vmatmul.mubr.msk.f32.vlgmr.msra.gmra.mrb[16].mxu1 %vm249_vm0, %v853_v27 }
 0x237   :  { %11657 = vmatpush3.bf16.msra.mxu1 %v11654_v23  ;;  %1028 = vmatprep.mubr.f32.mxu1 %v18243_v50  ;;  %v13051_v23 = vunpack.i.h.bf16 %v13049_v43 }
 0x238   :  { %11659 = vmatprep.subr.bf16.mxu1 %v11658_v49 }
 0x23a   :  { %9352 = vmatmul.mubr.msk.f32.gmra.mrb[18].mxu1 %vm249_vm0, %v854_v54 }
 0x23b   :  { %11661 = vmatpush3.bf16.msra.mxu1 %v11658_v49  ;;  %1034 = vmatprep.mubr.f32.mxu1 %v18243_v50  ;;  %v1461_v49 = vsel %vm1447_vm3, %v13051_v23, %v13056_v11 }
 0x23c   :  { %11663 = vmatprep.subr.bf16.mxu1 %v11662_v2  ;;  %v14848_v2 = vpop.permute.xlu0 %13073 }
 0x23e   :  { %9353 = vmatmul.mubr.msk.f32.gmra.mrb[20].mxu1 %vm249_vm0, %v855_v16 }
 0x23f   :  { %1040 = vmatprep.mubr.f32.mxu1 %v18243_v50 }
 0x242   :  { %9354 = vmatmul.mubr.msk.f32.gmra.mrb[22].mxu1 %vm249_vm0, %v856_v3 }
 0x243   :  { %11017 = vmatprep.mubr.msk.f32.mxu1 %vm249_vm0, %v853_v27  ;;  %v11670_v27 = vpack.c.bf16 %v14543_v0, %v14529_v21 }
 0x246   :  { %11018 = vmatmul.mubr.msk.f32.vlgmr.msra.gmra.mrb[24].mxu1 %vm249_vm0, %v854_v54  ;;  %v14819_v54 = vld [vmem:[%s17977_s5 + $0x50] sm:$0xff] }
 0x247   :  { %11665 = vmatpush1.bf16.msra.mxu1 %v11664_v52  ;;  %11020 = vmatprep.mubr.msk.f32.mxu1 %vm249_vm0, %v855_v16  ;;  %v13055_v16 = vunpack.i.l.bf16 %v14821_v33  ;;  %v13069_v52 = vpop.permute.xlu1 %13068  ;;  %v13066_v33 = vunpack.i.h.bf16 %v13064_v12 }
 0x248   :  { %11667 = vmatprep.subr.bf16.mxu1 %v11666_v35 }
 0x24a   :  { %11021 = vmatmul.mubr.msk.f32.gmra.mrb[26].mxu1 %vm249_vm0, %v856_v3  ;;  %v13050_v3 = vunpack.i.l.bf16 %v13049_v43  ;;  %v13065_v43 = vunpack.i.l.bf16 %v13064_v12 }
 0x24b   :  { %11669 = vmatpush1.bf16.msra.mxu1 %v11668_v10  ;;  %1208 = vmatprep.mubr.f32.mxu1 %v18243_v50  ;;  %v13061_v10 = vunpack.i.h.bf16 %v14831_v40 }
 0x24c   :  { %11671 = vmatprep.subr.bf16.mxu1 %v11670_v27  ;;  %v1460_v55 = vsel %vm1447_vm3, %v13050_v3, %v13055_v16  ;;  %v13060_v27 = vunpack.i.l.bf16 %v14831_v40  ;;  %v13075_v40 = vunpack.i.l.bf16 %v14848_v2 }
 0x24d   :  { %v11686_v35 = vpack.c.bf16 %v1461_v49, %v1460_v55  ;;  %v1465_v55 = vsel %vm1447_vm3, %v13061_v10, %v13051_v23  ;;  %v13076_v49 = vunpack.i.h.bf16 %v14848_v2 }
 0x24e   :  { %9359 = vmatmul.mubr.msk.f32.vlgmr.msra.gmra.mrb[8].mxu1 %vm249_vm0, %v14795_v57 }
 0x24f   :  { %11673 = vmatpush1.bf16.msra.mxu1 %v11672_v44  ;;  %1214 = vmatprep.mubr.f32.mxu1 %v18243_v50  ;;  %v13084_v44 = vpop.permute.xlu0 %13083  ;;  %v1467_v36 = vsel %vm1447_vm3, %v13076_v49, %v13066_v33 }
 0x250   :  { %11675 = vmatprep.subr.bf16.mxu1 %v11674_v25  ;;  %v13079_v25 = vpop.permute.xlu1 %13078  ;;  %v13085_v5 = vunpack.i.l.bf16 %v13084_v44 }
 0x251   :  { %v13081_v14 = vunpack.i.h.bf16 %v13079_v25  ;;  %v13080_v4 = vunpack.i.l.bf16 %v13079_v25 }
 0x252   :  { %9360 = vmatmul.mubr.msk.f32.gmra.mrb[10].mxu1 %vm249_vm0, %v14807_v56 }
 0x253   :  { %11677 = vmatpush1.bf16.msra.mxu1 %v11676_v42  ;;  %1220 = vmatprep.mubr.f32.mxu1 %v18243_v50  ;;  %v13071_v42 = vunpack.i.h.bf16 %v13069_v52  ;;  %v1452_v9 = vsel %vm1447_vm3, %v13080_v4, %v13085_v5 }
 0x254   :  { %11679 = vmatprep.subr.bf16.mxu1 %v11678_v6 }
 0x255   :  { %v1463_v23 = vsel %vm1447_vm3, %v13066_v33, %v13071_v42 }
 0x256   :  { %9361 = vmatmul.mubr.msk.f32.gmra.mrb[12].mxu1 %vm249_vm0, %v14819_v54 }
 0x257   :  { %1226 = vmatprep.mubr.f32.mxu1 %v18243_v50 }
 0x25a   :  { %9362 = vmatmul.mubr.msk.f32.gmra.mrb[14].mxu1 %vm249_vm0, %v14829_v28 }
 0x25b   :  { %1297 = vmatprep.mubr.f32.mxu1 %v18243_v50 }
 0x25e   :  { %9363 = vmatmul.mubr.msk.f32.vlgmr.msra.gmra.mrb[16].mxu1 %vm249_vm0, %v14795_v57 }
 0x25f   :  { %11681 = vmatpush3.bf16.msra.mxu1 %v11678_v6  ;;  %1303 = vmatprep.mubr.f32.mxu1 %v18243_v50  ;;  %v13070_v6 = vunpack.i.l.bf16 %v13069_v52  ;;  %v13089_v52 = vpop.permute.xlu1 %13088 }
 0x260   :  { %11683 = vmatprep.subr.bf16.mxu1 %v11682_v19  ;;  %v13091_v24 = vunpack.i.h.bf16 %v13089_v52 }
 0x261   :  { %v1462_v12 = vsel %vm1447_vm3, %v13065_v43, %v13070_v6 }
 0x262   :  { %9364 = vmatmul.mubr.msk.f32.gmra.mrb[18].mxu1 %vm249_vm0, %v14807_v56 }
 0x263   :  { %11685 = vmatpush3.bf16.msra.mxu1 %v11682_v19  ;;  %1309 = vmatprep.mubr.f32.mxu1 %v18243_v50  ;;  %v1464_v19 = vsel %vm1447_vm3, %v13060_v27, %v13050_v3  ;;  %v13094_v3 = vpop.permute.xlu0 %13093 }
 0x264   :  { %11687 = vmatprep.subr.bf16.mxu1 %v11686_v35  ;;  %v13086_v35 = vunpack.i.h.bf16 %v13084_v44  ;;  %v1466_v44 = vsel %vm1447_vm3, %v13075_v40, %v13065_v43  ;;  %v11688_v25 = vpack.c.bf16 %v1465_v55, %v1464_v19  ;;  %v13096_v62 = vunpack.i.h.bf16 %v13094_v3 }
 0x265   :  { %v13095_v0 = vunpack.i.l.bf16 %v13094_v3  ;;  %v13090_v43 = vunpack.i.l.bf16 %v13089_v52  ;;  %v11692_v33 = vpack.c.bf16 %v1467_v36, %v1466_v44  ;;  %v1456_v19 = vsel %vm1447_vm3, %v13055_v16, %v13080_v4 }
 0x266   :  { %9365 = vmatmul.mubr.msk.f32.gmra.mrb[20].mxu1 %vm249_vm0, %v14819_v54  ;;  %v1453_v21 = vsel %vm1447_vm3, %v13081_v14, %v13086_v35  ;;  %v1449_v16 = vsel %vm1447_vm3, %v13086_v35, %v13061_v10  ;;  %v14936_v10 = vld [vmem:[%s17977_s5 + $0x38] sm:$0xff]  ;;  %v1451_v52 = vsel %vm1447_vm3, %v13096_v62, %v13076_v49 }
 0x267   :  { %1315 = vmatprep.mubr.f32.mxu1 %v18243_v50  ;;  %v11694_v55 = vpack.c.bf16 %v1453_v21, %v1452_v9  ;;  %v1454_v36 = vsel %vm1447_vm3, %v13090_v43, %v13095_v0  ;;  %v1459_v21 = vsel %vm1447_vm3, %v13071_v42, %v13091_v24  ;;  %v1450_v3 = vsel %vm1447_vm3, %v13095_v0, %v13075_v40 }
 0x26a   :  { %9366 = vmatmul.mubr.msk.f32.gmra.mrb[22].mxu1 %vm249_vm0, %v14829_v28 }
 0x26b   :  { %11031 = vmatprep.mubr.msk.f32.mxu1 %vm249_vm0, %v14795_v57  ;;  %v11690_v57 = vpack.c.bf16 %v1463_v23, %v1462_v12  ;;  %v14898_v12 = vld [vmem:[%s17977_s5 + $0x20] sm:$0xff]  ;;  %v14928_v23 = vpop.permute.xlu0 %13103 }
 0x26c   :  { %v13106_v44 = vunpack.i.h.bf16 %v14928_v23 }
 0x26e   :  { %11032 = vmatmul.mubr.msk.f32.vlgmr.msra.gmra.mrb[24].mxu1 %vm249_vm0, %v14807_v56  ;;  %v1457_v56 = vsel %vm1447_vm3, %v13056_v11, %v13081_v14  ;;  %v1455_v14 = vsel %vm1447_vm3, %v13091_v24, %v13096_v62  ;;  %v1448_v11 = vsel %vm1447_vm3, %v13085_v5, %v13060_v27  ;;  %v13099_v5 = vpop.permute.xlu1 %13098 }
 0x26f   :  { %11689 = vmatpush1.bf16.msra.mxu1 %v11688_v25  ;;  %11034 = vmatprep.mubr.msk.f32.mxu1 %vm249_vm0, %v14819_v54  ;;  %v11696_v4 = vpack.c.bf16 %v1457_v56, %v1456_v19  ;;  %v1458_v54 = vsel %vm1447_vm3, %v13070_v6, %v13090_v43  ;;  %v11698_v9 = vpack.c.bf16 %v1455_v14, %v1454_v36  ;;  %v14926_v6 = vld [vmem:[%s17977_s5 + $0x30] sm:$0xff]  ;;  %v13114_v27 = vpop.permute.xlu0 %13113  ;;  %v13105_v25 = vunpack.i.l.bf16 %v14928_v23 }
 0x270   :  { %11691 = vmatprep.subr.bf16.mxu1 %v11690_v57  ;;  %v11700_v24 = vpack.c.bf16 %v1459_v21, %v1458_v54  ;;  %v11702_v42 = vpack.c.bf16 %v1449_v16, %v1448_v11  ;;  %v13101_v57 = vunpack.i.h.bf16 %v13099_v5  ;;  %v13100_v43 = vunpack.i.l.bf16 %v13099_v5 }
 0x271   :  { %v13116_v54 = vunpack.i.h.bf16 %v13114_v27  ;;  %v13115_v21 = vunpack.i.l.bf16 %v13114_v27 }
 0x272   :  { %11035 = vmatmul.mubr.msk.f32.gmra.mrb[26].mxu1 %vm249_vm0, %v14829_v28  ;;  %v14914_v28 = vld [vmem:[%s17977_s5 + $0x28] sm:$0xff]  ;;  %v14938_v35 = vpop.permute.xlu1 %13108  ;;  %v1817_v0 = vsel %vm1808_vm4, %v13100_v43, %v13105_v25  ;;  %v1818_v62 = vsel %vm1808_vm4, %v13101_v57, %v13106_v44 }
 0x273   :  { %11693 = vmatpush1.bf16.msra.mxu1 %v11692_v33  ;;  %1549 = vmatprep.mubr.f32.mxu1 %v18243_v50  ;;  %v11706_v33 = vpack.c.bf16 %v1451_v52, %v1450_v3  ;;  %v14961_v2 = vpop.permute.xlu0 %13123  ;;  %v11710_v40 = vpack.c.bf16 %v1818_v62, %v1817_v0  ;;  %v13111_v56 = vunpack.i.h.bf16 %v14938_v35  ;;  %v13110_v19 = vunpack.i.l.bf16 %v14938_v35 }
 0x274   :  { %11695 = vmatprep.subr.bf16.mxu1 %v11694_v55  ;;  %v13126_v16 = vunpack.i.h.bf16 %v14961_v2 }
 0x275   :  { %v1822_v11 = vsel %vm1808_vm4, %v13111_v56, %v13101_v57 }
 0x276   :  { %9375 = vmatmul.mubr.msk.f32.vlgmr.msra.gmra.mrb[8].mxu1 %vm249_vm0, %v14898_v12  ;;  %v13119_v49 = vpop.permute.xlu1 %13118  ;;  %v1824_v0 = vsel %vm1808_vm4, %v13126_v16, %v13116_v54 }
 0x277   :  { %11697 = vmatpush1.bf16.msra.mxu1 %v11696_v4  ;;  %1555 = vmatprep.mubr.f32.mxu1 %v18243_v50  ;;  %v13134_v55 = vpop.permute.xlu0 %13133  ;;  %v13121_v14 = vunpack.i.h.bf16 %v13119_v49  ;;  %v13120_v4 = vunpack.i.l.bf16 %v13119_v49 }
 0x278   :  { %11699 = vmatprep.subr.bf16.mxu1 %v11698_v9  ;;  %v1821_v9 = vsel %vm1808_vm4, %v13110_v19, %v13100_v43  ;;  %v13135_v23 = vunpack.i.l.bf16 %v13134_v55 }
 0x279   :  { %v1819_v27 = vsel %vm1808_vm4, %v13115_v21, %v13120_v4  ;;  %v1820_v3 = vsel %vm1808_vm4, %v13116_v54, %v13121_v14 }
 0x27a   :  { %9376 = vmatmul.mubr.msk.f32.gmra.mrb[10].mxu1 %vm249_vm0, %v14914_v28  ;;  %v13129_v36 = vpop.permute.xlu1 %13128 }
 0x27b   :  { %11701 = vmatpush1.bf16.msra.mxu1 %v11700_v24  ;;  %1561 = vmatprep.mubr.f32.mxu1 %v18243_v50  ;;  %v13125_v24 = vunpack.i.l.bf16 %v14961_v2  ;;  %v13131_v5 = vunpack.i.h.bf16 %v13129_v36  ;;  %v13130_v35 = vunpack.i.l.bf16 %v13129_v36  ;;  %v13144_v52 = vpop.permute.xlu0 %13143 }
 0x27c   :  { %11703 = vmatprep.subr.bf16.mxu1 %v11702_v42 }
 0x27d   :  { %v1823_v43 = vsel %vm1808_vm4, %v13125_v24, %v13115_v21  ;;  %v1809_v62 = vsel %vm1808_vm4, %v13130_v35, %v13135_v23 }
 0x27e   :  { %9377 = vmatmul.mubr.msk.f32.gmra.mrb[12].mxu1 %vm249_vm0, %v14926_v6  ;;  %v13139_v57 = vpop.permute.xlu1 %13138  ;;  %v11716_v54 = vpack.c.bf16 %v1824_v0, %v1823_v43  ;;  %v15039_v43 = vld [vmem:[%s17977_s5 + $0x70] sm:$0xff] }
 0x27f   :  { %1567 = vmatprep.mubr.f32.mxu1 %v18243_v50  ;;  %v13141_v36 = vunpack.i.h.bf16 %v13139_v57  ;;  %v13140_v21 = vunpack.i.l.bf16 %v13139_v57 }
 0x282   :  { %9378 = vmatmul.mubr.msk.f32.gmra.mrb[14].mxu1 %vm249_vm0, %v14936_v10 }
 0x283   :  { %1638 = vmatprep.mubr.f32.mxu1 %v18243_v50 }
 0x286   :  { %9379 = vmatmul.mubr.msk.f32.vlgmr.msra.gmra.mrb[16].mxu1 %vm249_vm0, %v14898_v12 }
 0x287   :  { %11705 = vmatpush3.bf16.msra.mxu1 %v11702_v42  ;;  %1644 = vmatprep.mubr.f32.mxu1 %v18243_v50  ;;  %v13136_v42 = vunpack.i.h.bf16 %v13134_v55  ;;  %v13145_v55 = vunpack.i.l.bf16 %v13144_v52 }
 0x288   :  { %11707 = vmatprep.subr.bf16.mxu1 %v11706_v33 }
 0x289   :  { %v1810_v49 = vsel %vm1808_vm4, %v13131_v5, %v13136_v42  ;;  %v1827_v0 = vsel %vm1808_vm4, %v13145_v55, %v13125_v24 }
 0x28a   :  { %9380 = vmatmul.mubr.msk.f32.gmra.mrb[18].mxu1 %vm249_vm0, %v14914_v28 }
 0x28b   :  { %11709 = vmatpush3.bf16.msra.mxu1 %v11706_v33  ;;  %1650 = vmatprep.mubr.f32.mxu1 %v18243_v50  ;;  %v11712_v33 = vpack.c.bf16 %v1822_v11, %v1821_v9  ;;  %v1813_v9 = vsel %vm1808_vm4, %v13105_v25, %v13130_v35  ;;  %v11718_v11 = vpack.c.bf16 %v1810_v49, %v1809_v62 }
 0x28c   :  { %11711 = vmatprep.subr.bf16.mxu1 %v11710_v40  ;;  %v13146_v40 = vunpack.i.h.bf16 %v13144_v52  ;;  %v1825_v52 = vsel %vm1808_vm4, %v13135_v23, %v13110_v19  ;;  %v13149_v19 = vpop.permute.xlu1 %13148 }
 0x28e   :  { %9381 = vmatmul.mubr.msk.f32.gmra.mrb[20].mxu1 %vm249_vm0, %v14926_v6 }
 0x28f   :  { %1656 = vmatprep.mubr.f32.mxu1 %v18243_v50 }
 0x290   :  { %v15051_v23 = vpop.permute.xlu1 %13158 }
 0x292   :  { %9382 = vmatmul.mubr.msk.f32.gmra.mrb[22].mxu1 %vm249_vm0, %v14936_v10 }
 0x293   :  { %11045 = vmatprep.mubr.msk.f32.mxu1 %vm249_vm0, %v14898_v12  ;;  %v11714_v12 = vpack.c.bf16 %v1820_v3, %v1819_v27  ;;  %v15011_v27 = vld [vmem:[%s17977_s5 + $0x60] sm:$0xff]  ;;  %v15027_v3 = vld [vmem:[%s17977_s5 + $0x68] sm:$0xff] }
 0x296   :  { %11046 = vmatmul.mubr.msk.f32.vlgmr.msra.gmra.mrb[24].mxu1 %vm249_vm0, %v14914_v28  ;;  %v1814_v28 = vsel %vm1808_vm4, %v13106_v44, %v13131_v5  ;;  %v1812_v44 = vsel %vm1808_vm4, %v13141_v36, %v13146_v40  ;;  %v1816_v5 = vsel %vm1808_vm4, %v13121_v14, %v13141_v36  ;;  %v13151_v36 = vunpack.i.h.bf16 %v13149_v19 }
 0x297   :  { %11713 = vmatpush1.bf16.msra.mxu1 %v11712_v33  ;;  %11048 = vmatprep.mubr.msk.f32.mxu1 %vm249_vm0, %v14926_v6  ;;  %v1811_v6 = vsel %vm1808_vm4, %v13140_v21, %v13145_v55  ;;  %v11720_v25 = vpack.c.bf16 %v1814_v28, %v1813_v9  ;;  %v15041_v33 = vpop.permute.xlu0 %13153  ;;  %v13161_v28 = vunpack.i.h.bf16 %v15051_v23  ;;  %v13160_v9 = vunpack.i.l.bf16 %v15051_v23 }
 0x298   :  { %11715 = vmatprep.subr.bf16.mxu1 %v11714_v12  ;;  %v11722_v35 = vpack.c.bf16 %v1812_v44, %v1811_v6  ;;  %v1828_v12 = vsel %vm1808_vm4, %v13146_v40, %v13126_v16  ;;  %v13156_v62 = vunpack.i.h.bf16 %v15041_v33  ;;  %v13155_v49 = vunpack.i.l.bf16 %v15041_v33  ;;  %v13169_v40 = vpop.permute.xlu1 %13168 }
 0x299   :  { %v13171_v44 = vunpack.i.h.bf16 %v13169_v40 }
 0x29a   :  { %11049 = vmatmul.mubr.msk.f32.gmra.mrb[26].mxu1 %vm249_vm0, %v14936_v10  ;;  %v1815_v10 = vsel %vm1808_vm4, %v13120_v4, %v13140_v21  ;;  %v1826_v4 = vsel %vm1808_vm4, %v13136_v42, %v13111_v56  ;;  %v15049_v56 = vld [vmem:[%s17977_s5 + $0x78] sm:$0xff]  ;;  %v13150_v21 = vunpack.i.l.bf16 %v13149_v19  ;;  %v2179_v16 = vsel %vm2169_vm5, %v13151_v36, %v13156_v62 }
 0x29b   :  { %11717 = vmatpush1.bf16.msra.mxu1 %v11716_v54  ;;  %1910 = vmatprep.mubr.f32.mxu1 %v18243_v50  ;;  %v11724_v14 = vpack.c.bf16 %v1816_v5, %v1815_v10  ;;  %v11726_v57 = vpack.c.bf16 %v1826_v4, %v1825_v52  ;;  %v13164_v42 = vpop.permute.xlu0 %13163  ;;  %v11730_v54 = vpack.c.bf16 %v1828_v12, %v1827_v0 }
 0x29c   :  { %11719 = vmatprep.subr.bf16.mxu1 %v11718_v11  ;;  %v2178_v2 = vsel %vm2169_vm5, %v13150_v21, %v13155_v49  ;;  %v13179_v6 = vpop.permute.xlu1 %13178  ;;  %v13166_v10 = vunpack.i.h.bf16 %v13164_v42  ;;  %v13165_v5 = vunpack.i.l.bf16 %v13164_v42  ;;  %v2183_v52 = vsel %vm2169_vm5, %v13161_v28, %v13151_v36 }
 0x29d   :  { %v11734_v55 = vpack.c.bf16 %v2179_v16, %v2178_v2  ;;  %v13181_v19 = vunpack.i.h.bf16 %v13179_v6  ;;  %v13180_v23 = vunpack.i.l.bf16 %v13179_v6 }
 0x29e   :  { %9391 = vmatmul.mubr.msk.f32.vlgmr.msra.gmra.mrb[8].mxu1 %vm249_vm0, %v15011_v27  ;;  %v2181_v0 = vsel %vm2169_vm5, %v13166_v10, %v13171_v44 }
 0x29f   :  { %11721 = vmatpush1.bf16.msra.mxu1 %v11720_v25  ;;  %1916 = vmatprep.mubr.f32.mxu1 %v18243_v50  ;;  %v15074_v24 = vpop.permute.xlu0 %13173  ;;  %v13170_v25 = vunpack.i.l.bf16 %v13169_v40 }
 0x2a0   :  { %11723 = vmatprep.subr.bf16.mxu1 %v11722_v35  ;;  %v2182_v35 = vsel %vm2169_vm5, %v13160_v9, %v13150_v21  ;;  %v13176_v4 = vunpack.i.h.bf16 %v15074_v24  ;;  %v13189_v36 = vpop.permute.xlu1 %13188 }
 0x2a1   :  { %v2180_v42 = vsel %vm2169_vm5, %v13165_v5, %v13170_v25  ;;  %v13190_v6 = vunpack.i.l.bf16 %v13189_v36 }
 0x2a2   :  { %9392 = vmatmul.mubr.msk.f32.gmra.mrb[10].mxu1 %vm249_vm0, %v15027_v3  ;;  %v2185_v2 = vsel %vm2169_vm5, %v13176_v4, %v13166_v10  ;;  %v11738_v16 = vpack.c.bf16 %v2181_v0, %v2180_v42  ;;  %v9404_v42 = vld [vmem:[%s17977_s5 + $0x88] sm:$0xff] }
 0x2a3   :  { %11725 = vmatpush1.bf16.msra.mxu1 %v11724_v14  ;;  %1922 = vmatprep.mubr.f32.mxu1 %v18243_v50  ;;  %v13184_v11 = vpop.permute.xlu0 %13183  ;;  %v13175_v14 = vunpack.i.l.bf16 %v15074_v24 }
 0x2a4   :  { %11727 = vmatprep.subr.bf16.mxu1 %v11726_v57  ;;  %v13185_v33 = vunpack.i.l.bf16 %v13184_v11 }
 0x2a5   :  { %v2184_v21 = vsel %vm2169_vm5, %v13175_v14, %v13165_v5  ;;  %v2174_v5 = vsel %vm2169_vm5, %v13155_v49, %v13180_v23  ;;  %v2176_v49 = vsel %vm2169_vm5, %v13170_v25, %v13190_v6 }
 0x2a6   :  { %9393 = vmatmul.mubr.msk.f32.gmra.mrb[12].mxu1 %vm249_vm0, %v15039_v43  ;;  %v11740_v10 = vpack.c.bf16 %v2185_v2, %v2184_v21  ;;  %v2186_v0 = vsel %vm2169_vm5, %v13185_v33, %v13160_v9 }
 0x2a7   :  { %1928 = vmatprep.mubr.f32.mxu1 %v18243_v50  ;;  %v13194_v12 = vpop.permute.xlu0 %13193 }
 0x2a8   :  { %v13196_v40 = vunpack.i.h.bf16 %v13194_v12 }
 0x2aa   :  { %9394 = vmatmul.mubr.msk.f32.gmra.mrb[14].mxu1 %vm249_vm0, %v15049_v56 }
 0x2ab   :  { %1999 = vmatprep.mubr.f32.mxu1 %v18243_v50 }
 0x2ae   :  { %9395 = vmatmul.mubr.msk.f32.vlgmr.msra.gmra.mrb[16].mxu1 %vm249_vm0, %v15011_v27 }
 0x2af   :  { %11729 = vmatpush3.bf16.msra.mxu1 %v11726_v57  ;;  %2005 = vmatprep.mubr.f32.mxu1 %v18243_v50  ;;  %v13186_v57 = vunpack.i.h.bf16 %v13184_v11  ;;  %v13191_v11 = vunpack.i.h.bf16 %v13189_v36  ;;  %v9405_v36 = vld [vmem:[%s17977_s5 + $0x90] sm:$0xff] }
 0x2b0   :  { %11731 = vmatprep.subr.bf16.mxu1 %v11730_v54 }
 0x2b1   :  { %v2171_v24 = vsel %vm2169_vm5, %v13181_v19, %v13186_v57 }
 0x2b2   :  { %9396 = vmatmul.mubr.msk.f32.gmra.mrb[18].mxu1 %vm249_vm0, %v15027_v3 }
 0x2b3   :  { %11733 = vmatpush3.bf16.msra.mxu1 %v11730_v54  ;;  %2011 = vmatprep.mubr.f32.mxu1 %v18243_v50  ;;  %v11736_v54 = vpack.c.bf16 %v2183_v52, %v2182_v35  ;;  %v9403_v52 = vld [vmem:[%s17977_s5 + $0x80] sm:$0xff] }
 0x2b4   :  { %11735 = vmatprep.subr.bf16.mxu1 %v11734_v55  ;;  %v13195_v55 = vunpack.i.l.bf16 %v13194_v12  ;;  %v2187_v12 = vsel %vm2169_vm5, %v13186_v57, %v13161_v28  ;;  %v9406_v28 = vld [vmem:[%s17977_s5 + $0x98] sm:$0xff]  ;;  %v2189_v57 = vsel %vm2169_vm5, %v13196_v40, %v13176_v4 }
 0x2b6   :  { %9397 = vmatmul.mubr.msk.f32.gmra.mrb[20].mxu1 %vm249_vm0, %v15039_v43  ;;  %v2188_v9 = vsel %vm2169_vm5, %v13195_v55, %v13175_v14  ;;  %v15212_v14 = vpop.permute.xlu1 %2496 }
 0x2b7   :  { %2017 = vmatprep.mubr.f32.mxu1 %v18243_v50 }
 0x2ba   :  { %9398 = vmatmul.mubr.msk.f32.gmra.mrb[22].mxu1 %vm249_vm0, %v15049_v56 }
 0x2bb   :  { %11059 = vmatprep.mubr.msk.f32.mxu1 %vm249_vm0, %v15011_v27  ;;  %v2170_v27 = vsel %vm2169_vm5, %v13180_v23, %v13185_v33  ;;  %v11754_v33 = vpack.c.bf16 %v2189_v57, %v2188_v9 }
 0x2bc   :  { %v11742_v35 = vpack.c.bf16 %v2171_v24, %v2170_v27  ;;  %v15221_v27 = vpop.permute.xlu0 %2501 }
 0x2be   :  { %11060 = vmatmul.mubr.msk.f32.vlgmr.msra.gmra.mrb[24].mxu1 %vm249_vm0, %v15027_v3  ;;  %v2175_v3 = vsel %vm2169_vm5, %v13156_v62, %v13181_v19  ;;  %v2173_v62 = vsel %vm2169_vm5, %v13191_v11, %v13196_v40 }
 0x2bf   :  { %11737 = vmatpush1.bf16.msra.mxu1 %v11736_v54  ;;  %11062 = vmatprep.mubr.msk.f32.mxu1 %vm249_vm0, %v15039_v43  ;;  %v2172_v43 = vsel %vm2169_vm5, %v13190_v6, %v13195_v55  ;;  %v11744_v19 = vpack.c.bf16 %v2175_v3, %v2174_v5  ;;  %v15233_v6 = vpop.permute.xlu1 %2506 }
 0x2c0   :  { %11739 = vmatprep.subr.bf16.mxu1 %v11738_v16  ;;  %v11746_v23 = vpack.c.bf16 %v2173_v62, %v2172_v43 }
 0x2c2   :  { %11063 = vmatmul.mubr.msk.f32.gmra.mrb[26].mxu1 %vm249_vm0, %v15049_v56  ;;  %v2177_v56 = vsel %vm2169_vm5, %v13171_v44, %v13191_v11  ;;  %v11750_v44 = vpack.c.bf16 %v2187_v12, %v2186_v0 }
 0x2c3   :  { %11741 = vmatpush1.bf16.msra.mxu1 %v11740_v10  ;;  %2271 = vmatprep.mubr.f32.mxu1 %v18243_v50  ;;  %v11748_v25 = vpack.c.bf16 %v2177_v56, %v2176_v49 }
 0x2c4   :  { %11743 = vmatprep.subr.bf16.mxu1 %v11742_v35 }
 0x2c6   :  { %9407 = vmatmul.mubr.msk.f32.vlgmr.msra.gmra.mrb[8].mxu1 %vm249_vm0, %v9403_v52 }
 0x2c7   :  { %11745 = vmatpush1.bf16.msra.mxu1 %v11744_v19  ;;  %2277 = vmatprep.mubr.f32.mxu1 %v18243_v50 }
 0x2c8   :  { %11747 = vmatprep.subr.bf16.mxu1 %v11746_v23 }
 0x2ca   :  { %9408 = vmatmul.mubr.msk.f32.gmra.mrb[10].mxu1 %vm249_vm0, %v9404_v42 }
 0x2cb   :  { %11749 = vmatpush1.bf16.msra.mxu1 %v11748_v25  ;;  %2283 = vmatprep.mubr.f32.mxu1 %v18243_v50 }
 0x2cc   :  { %11751 = vmatprep.subr.bf16.mxu1 %v11750_v44 }
 0x2ce   :  { %9409 = vmatmul.mubr.msk.f32.gmra.mrb[12].mxu1 %vm249_vm0, %v9405_v36 }
 0x2cf   :  { %2289 = vmatprep.mubr.f32.mxu1 %v18243_v50 }
 0x2d2   :  { %9410 = vmatmul.mubr.msk.f32.gmra.mrb[14].mxu1 %vm249_vm0, %v9406_v28 }
 0x2d3   :  { %2360 = vmatprep.mubr.f32.mxu1 %v18243_v50 }
 0x2d6   :  { %9411 = vmatmul.mubr.msk.f32.vlgmr.msra.gmra.mrb[16].mxu1 %vm249_vm0, %v9403_v52 }
 0x2d7   :  { %11753 = vmatpush3.bf16.msra.mxu1 %v11750_v44  ;;  %2366 = vmatprep.mubr.f32.mxu1 %v18243_v50 }
 0x2d8   :  { %11755 = vmatprep.subr.bf16.mxu1 %v11754_v33 }
 0x2da   :  { %9412 = vmatmul.mubr.msk.f32.gmra.mrb[18].mxu1 %vm249_vm0, %v9404_v42 }
 0x2db   :  { %11757 = vmatpush3.bf16.msra.mxu1 %v11754_v33  ;;  %2372 = vmatprep.mubr.f32.mxu1 %v18243_v50 }
 0x2dc   :  { %11904 = vmatprep.subr.msk.bf16.mxu1 %vm13985_vm1, %v14005_v15 }
 0x2de   :  { %9413 = vmatmul.mubr.msk.f32.gmra.mrb[20].mxu1 %vm249_vm0, %v9405_v36 }
 0x2df   :  { %2378 = vmatprep.mubr.f32.mxu1 %v18243_v50 }
 0x2e2   :  { %9414 = vmatmul.mubr.msk.f32.gmra.mrb[22].mxu1 %vm249_vm0, %v9406_v28 }
 0x2e3   :  { %11073 = vmatprep.mubr.msk.f32.mxu1 %vm249_vm0, %v9403_v52  ;;  %v15245_v52 = vpop.permute.xlu0 %2511 }
 0x2e6   :  { %11074 = vmatmul.mubr.msk.f32.vlgmr.msra.gmra.mrb[24].mxu1 %vm249_vm0, %v9404_v42 }
 0x2e7   :  { %11076 = vmatprep.mubr.msk.f32.mxu1 %vm249_vm0, %v9405_v36  ;;  %11907 = vmatpush3.bf16.xpose.msk.msra.mxu1 %vm13985_vm1, %v14016_v20 }
 0x2e8   :  { %11910 = vmatprep.subr.msk.bf16.mxu1 %vm13985_vm1, %v14038_v26 }
 0x2ea   :  { %11077 = vmatmul.mubr.msk.f32.gmra.mrb[26].mxu1 %vm249_vm0, %v9406_v28 }
 0x2ef   :  { %11913 = vmatpush3.bf16.xpose.msk.msra.mxu1 %vm13985_vm1, %v14087_v39 }
 0x2f0   :  { %11916 = vmatprep.subr.msk.bf16.mxu1 %vm13985_vm1, %v14091_v41 }
 0x2f7   :  { %11919 = vmatpush3.bf16.xpose.msk.msra.mxu1 %vm13985_vm1, %v14132_v51 }
 0x2f8   :  { %11922 = vmatprep.subr.msk.bf16.mxu1 %vm13985_vm1, %v14137_v53 }
 0x2ff   :  { %11925 = vmatpush3.bf16.xpose.msk.msra.mxu1 %vm13985_vm1, %v14177_v63 }
 0x300   :  { %11928 = vmatprep.subr.msk.bf16.mxu1 %vm13985_vm1, %v14181_v1 }
 0x307   :  { %11931 = vmatpush3.bf16.xpose.msk.msra.mxu1 %vm13985_vm1, %v14221_v13 }
 0x308   :  { %11934 = vmatprep.subr.msk.bf16.mxu1 %vm13985_vm1, %v14225_v17 }
 0x30f   :  { %11937 = vmatpush3.bf16.xpose.msk.msra.mxu1 %vm13985_vm1, %v14265_v30 }
 0x310   :  { %11940 = vmatprep.subr.msk.bf16.mxu1 %vm13985_vm1, %v14269_v32 }
 0x317   :  { %11943 = vmatpush3.bf16.xpose.msk.msra.mxu1 %vm13985_vm1, %v14309_v46 }
 0x318   :  { %11946 = vmatprep.subr.msk.bf16.mxu1 %vm13985_vm1, %v14313_v48 }
 0x31f   :  { %11949 = vmatpush3.bf16.xpose.msk.msra.mxu1 %vm13985_vm1, %v14347_v60 }
 0x399   :  { %v2273_v4 = vpop.f32.mrb[8].mxu1 }
 0x39a   :  { %v2275_v21 = vpop.f32.mrb[9].mxu1  ;;  %v15218_v2 = vadd.f32 %v15212_v14, %v2273_v4 }
 0x39b   :  { %v15215_v54 = vadd.f32 %v15212_v14, %v2275_v21 }
 0x39c   :  { %v2534_v42 = vmul.f32 %v15218_v2, %v15218_v2 }
 0x39d   :  { %v2279_v16 = vpop.f32.mrb[10].mxu1  ;;  %2618 = vmatprep.mubr.f32.mxu0 %v15215_v54  ;;  %v2535_v56 = vmul.f32 %v15215_v54, %v15215_v54 }
 0x39e   :  { %v2281_v24 = vpop.f32.mrb[11].mxu1  ;;  %2619 = vmatmul.mubr.f32.vlgmr.msra.gmra.mrb[12].mxu0 %v15218_v2  ;;  %v15229_v55 = vadd.f32 %v15221_v27, %v2279_v16 }
 0x39f   :  { %v15225_v40 = vadd.f32 %v15221_v27, %v2281_v24  ;;  %11793 = vmatpush3.bf16.msra.mxu0 %v14016_v20 }
 0x3a0   :  { %11795 = vmatprep.subr.bf16.mxu0 %v14038_v26  ;;  %v2539_v44 = vmul.f32 %v15229_v55, %v15229_v55 }
 0x3a1   :  { %v2285_v11 = vpop.f32.mrb[12].mxu1  ;;  %2623 = vmatprep.mubr.f32.mxu0 %v15225_v40  ;;  %v2540_v12 = vmul.f32 %v15225_v40, %v15225_v40 }
 0x3a2   :  { %v2287_v10 = vpop.f32.mrb[13].mxu1  ;;  %2624 = vmatmul.mubr.f32.gmra.mrb[14].mxu0 %v15229_v55  ;;  %v15241_v5 = vadd.f32 %v15233_v6, %v2285_v11 }
 0x3a3   :  { %v15237_v3 = vadd.f32 %v15233_v6, %v2287_v10  ;;  %11797 = vmatpush3.bf16.msra.mxu0 %v14087_v39 }
 0x3a4   :  { %11799 = vmatprep.subr.bf16.mxu0 %v14091_v41  ;;  %v2544_v57 = vmul.f32 %v15241_v5, %v15241_v5 }
 0x3a5   :  { %v2291_v35 = vpop.f32.mrb[14].mxu1  ;;  %2628 = vmatprep.mubr.f32.mxu0 %v15237_v3  ;;  %v2545_v28 = vmul.f32 %v15237_v3, %v15237_v3 }
 0x3a6   :  { %v2293_v43 = vpop.f32.mrb[15].mxu1  ;;  %2629 = vmatmul.mubr.f32.gmra.mrb[16].mxu0 %v15241_v5  ;;  %v15253_v19 = vadd.f32 %v15245_v52, %v2291_v35 }
 0x3a7   :  { %v15249_v62 = vadd.f32 %v15245_v52, %v2293_v43  ;;  %11801 = vmatpush3.bf16.msra.mxu0 %v14132_v51 }
 0x3a8   :  { %11803 = vmatprep.subr.bf16.mxu0 %v14137_v53  ;;  %v2549_v16 = vmul.f32 %v15253_v19, %v15253_v19  ;;  %v18268_v53 = vld [vmem:[#allocation36_spill] sm:$0xff] }
 0x3a9   :  { %v2362_v49 = vpop.f32.mrb[16].mxu1  ;;  %2633 = vmatprep.mubr.f32.mxu0 %v15249_v62  ;;  %v2550_v4 = vmul.f32 %v15249_v62, %v15249_v62 }
 0x3aa   :  { %v2364_v23 = vpop.f32.mrb[17].mxu1  ;;  %2634 = vmatmul.mubr.f32.gmra.mrb[18].mxu0 %v15253_v19  ;;  %v15288_v35 = vadd.f32 %v15212_v14, %v2362_v49 }
 0x3ab   :  { %2638 = vmatprep.mubr.f32.mxu0 %v2535_v56  ;;  %11805 = vmatpush3.bf16.msra.mxu0 %v14177_v63  ;;  %v15283_v24 = vadd.f32 %v15212_v14, %v2364_v23  ;;  %v18267_v63 = vld [vmem:[#allocation34_spill] sm:$0xff] }
 0x3ac   :  { %11807 = vmatprep.subr.bf16.mxu0 %v14181_v1  ;;  %v18266_v1 = vld [vmem:[#allocation32_spill] sm:$0xff] }
 0x3ad   :  { %v2368_v0 = vpop.f32.mrb[18].mxu1 }
 0x3ae   :  { %v2370_v25 = vpop.f32.mrb[19].mxu1  ;;  %2639 = vmatmul.mubr.f32.gmra.mrb[20].mxu0 %v2534_v42  ;;  %v15298_v23 = vadd.f32 %v15221_v27, %v2368_v0 }
 0x3af   :  { %2643 = vmatprep.mubr.f32.mxu0 %v2540_v12  ;;  %11809 = vmatpush3.bf16.msra.mxu0 %v14221_v13  ;;  %v15292_v43 = vadd.f32 %v15221_v27, %v2370_v25  ;;  %v18244_v12 = vld [vmem:[#allocation38_spill] sm:$0xff] }
 0x3b0   :  { %11811 = vmatprep.subr.bf16.mxu0 %v14225_v17  ;;  %v18264_v17 = vld [vmem:[#allocation28_spill] sm:$0xff]  ;;  %v18265_v13 = vld [vmem:[#allocation30_spill] sm:$0xff] }
 0x3b1   :  { %v2374_v36 = vpop.f32.mrb[20].mxu1 }
 0x3b2   :  { %v2376_v9 = vpop.f32.mrb[21].mxu1  ;;  %2644 = vmatmul.mubr.f32.gmra.mrb[22].mxu0 %v2539_v44  ;;  %v15308_v25 = vadd.f32 %v15233_v6, %v2374_v36  ;;  %v18245_v44 = vld [vmem:[#allocation39_spill] sm:$0xff]  ;;  %v2537_v36 = vmul.f32 %v15283_v24, %v15283_v24 }
 0x3b3   :  { %2648 = vmatprep.mubr.f32.mxu0 %v2545_v28  ;;  %11813 = vmatpush3.bf16.msra.mxu0 %v14265_v30  ;;  %v15302_v49 = vadd.f32 %v15233_v6, %v2376_v9  ;;  %v18246_v9 = vld [vmem:[#allocation40_spill] sm:$0xff]  ;;  %v18263_v30 = vld [vmem:[#allocation26_spill] sm:$0xff] }
 0x3b4   :  { %11815 = vmatprep.subr.bf16.mxu0 %v14269_v32  ;;  %v18259_v32 = vld [vmem:[#allocation18_spill] sm:$0xff] }
 0x3b5   :  { %v2380_v33 = vpop.f32.mrb[22].mxu1 }
 0x3b6   :  { %v2382_v21 = vpop.f32.mrb[23].mxu1  ;;  %2649 = vmatmul.mubr.f32.gmra.mrb[24].mxu0 %v2544_v57  ;;  %v15318_v0 = vadd.f32 %v15245_v52, %v2380_v33  ;;  %v2536_v57 = vmul.f32 %v15288_v35, %v15288_v35  ;;  %v2541_v33 = vmul.f32 %v15298_v23, %v15298_v23 }
 0x3b7   :  { %2653 = vmatprep.mubr.f32.mxu0 %v2550_v4  ;;  %11817 = vmatpush3.bf16.msra.mxu0 %v14309_v46  ;;  %v15312_v28 = vadd.f32 %v15245_v52, %v2382_v21  ;;  %v18247_v4 = vld [vmem:[#allocation41_spill] sm:$0xff]  ;;  %v2542_v21 = vmul.f32 %v15292_v43, %v15292_v43  ;;  %v18250_v46 = vld [vmem:[#allocation44_spill] sm:$0xff] }
 0x3b8   :  { %11819 = vmatprep.subr.bf16.mxu0 %v14313_v48  ;;  %v18249_v48 = vld [vmem:[#allocation43_spill] sm:$0xff] }
 0x3b9   :  { %v11075_v11 = vpop.f32.mrb[24].mxu1 }
 0x3ba   :  { %v2451_v10 = vpop.f32.mrb[25].mxu1  ;;  %2654 = vmatmul.mubr.f32.gmra.mrb[26].mxu0 %v2549_v16  ;;  %v18248_v16 = vld [vmem:[#allocation42_spill] sm:$0xff] }
 0x3bb   :  { %11821 = vmatpush3.bf16.msra.mxu0 %v14347_v60  ;;  %2723 = vmatprep.mubr.f32.mxu0 %v15283_v24  ;;  %v2546_v60 = vmul.f32 %v15308_v25, %v15308_v25 }
 0x3bc   :  { %11823 = vmatprep.subr.bf16.mxu0 %v14349_v61 }
 0x3bd   :  { %v11078_v56 = vpop.f32.mrb[26].mxu1 }
 0x3be   :  { %v2461_v42 = vpop.f32.mrb[27].mxu1  ;;  %2724 = vmatmul.mubr.f32.vlgmr.msra.gmra.mrb[28].mxu0 %v15288_v35 }
 0x3bf   :  { %2728 = vmatprep.mubr.f32.mxu0 %v15292_v43  ;;  %11825 = vmatpush3.bf16.msra.mxu0 %v14349_v61 }
 0x3c0   :  { %11827 = vmatprep.subr.bf16.mxu0 %v18244_v12 }
 0x3c2   :  { %2729 = vmatmul.mubr.f32.gmra.mrb[30].mxu0 %v15298_v23 }
 0x3c3   :  { %2733 = vmatprep.mubr.f32.mxu0 %v15302_v49  ;;  %11829 = vmatpush3.bf16.msra.mxu0 %v18244_v12 }
 0x3c4   :  { %11831 = vmatprep.subr.bf16.mxu0 %v18245_v44 }
 0x3c6   :  { %2734 = vmatmul.mubr.f32.gmra.mrb[32].mxu0 %v15308_v25 }
 0x3c7   :  { %2738 = vmatprep.mubr.f32.mxu0 %v15312_v28  ;;  %11833 = vmatpush3.bf16.msra.mxu0 %v18245_v44 }
 0x3c8   :  { %11835 = vmatprep.subr.bf16.mxu0 %v18246_v9 }
 0x3ca   :  { %2739 = vmatmul.mubr.f32.gmra.mrb[34].mxu0 %v15318_v0 }
 0x3cb   :  { %2743 = vmatprep.mubr.f32.mxu0 %v2537_v36  ;;  %11837 = vmatpush3.bf16.msra.mxu0 %v18246_v9  ;;  %v2547_v36 = vmul.f32 %v15302_v49, %v15302_v49 }
 0x3cc   :  { %11839 = vmatprep.subr.bf16.mxu0 %v18247_v4 }
 0x3ce   :  { %2744 = vmatmul.mubr.f32.gmra.mrb[36].mxu0 %v2536_v57  ;;  %v2552_v57 = vmul.f32 %v15312_v28, %v15312_v28 }
 0x3cf   :  { %2748 = vmatprep.mubr.f32.mxu0 %v2542_v21  ;;  %11841 = vmatpush3.bf16.msra.mxu0 %v18247_v4  ;;  %v2551_v21 = vmul.f32 %v15318_v0, %v15318_v0 }
 0x3d0   :  { %11843 = vmatprep.subr.bf16.mxu0 %v18248_v16 }
 0x3d2   :  { %2749 = vmatmul.mubr.f32.gmra.mrb[38].mxu0 %v2541_v33  ;;  %v15347_v33 = vadd.f32 %v15212_v14, %v2451_v10  ;;  %v15363_v14 = vadd.f32 %v11078_v56, %v15245_v52  ;;  %v18256_v56 = vld [vmem:[#allocation12_spill] sm:$0xff] }
 0x3d3   :  { %2753 = vmatprep.mubr.f32.mxu0 %v2547_v36  ;;  %11845 = vmatpush3.bf16.msra.mxu0 %v18248_v16  ;;  %v15352_v36 = vadd.f32 %v11075_v11, %v15221_v27  ;;  %v18254_v11 = vld [vmem:[#allocation7_spill] sm:$0xff] }
 0x3d4   :  { %11847 = vmatprep.subr.bf16.mxu0 %v18249_v48  ;;  %18253 = vst [vmem:[#allocation39_spill] sm:$0xff] %v15363_v14  ;;  %v2538_v10 = vmul.f32 %v15347_v33, %v15347_v33  ;;  %v2553_v52 = vmul.f32 %v15363_v14, %v15363_v14 }
 0x3d5   :  { %v2543_v27 = vmul.f32 %v15352_v36, %v15352_v36 }
 0x3d6   :  { %2754 = vmatmul.mubr.f32.gmra.mrb[40].mxu0 %v2546_v60  ;;  %v18251_v60 = vld [vmem:[#allocation6_spill] sm:$0xff] }
 0x3d7   :  { %2758 = vmatprep.mubr.f32.mxu0 %v2552_v57  ;;  %11849 = vmatpush3.bf16.msra.mxu0 %v18249_v48  ;;  %v15358_v57 = vadd.f32 %v15233_v6, %v2461_v42  ;;  %v18255_v42 = vld [vmem:[#allocation10_spill] sm:$0xff] }
 0x3d8   :  { %11851 = vmatprep.subr.bf16.mxu0 %v18250_v46 }
 0x3d9   :  { %18252 = vst [vmem:[#allocation38_spill] sm:$0xff] %v15358_v57  ;;  %v2548_v6 = vmul.f32 %v15358_v57, %v15358_v57 }
 0x3da   :  { %2759 = vmatmul.mubr.f32.gmra.mrb[42].mxu0 %v2551_v21  ;;  %v18257_v21 = vld [vmem:[#allocation14_spill] sm:$0xff] }
 0x3db   :  { %11853 = vmatpush3.bf16.msra.mxu0 %v18250_v46  ;;  %11111 = vmatprep.mubr.f32.mxu0 %v15347_v33 }
 0x3dc   :  { %11856 = vmatprep.subr.msk.bf16.mxu0 %vm13985_vm1, %v18251_v60 }
 0x3de   :  { %11112 = vmatmul.mubr.f32.vlgmr.msra.gmra.mrb[44].mxu0 %v15352_v36 }
 0x3df   :  { %11114 = vmatprep.mubr.f32.mxu0 %v15358_v57 }
 0x3e2   :  { %11115 = vmatmul.mubr.f32.gmra.mrb[46].mxu0 %v15363_v14 }
 0x3e3   :  { %11117 = vmatprep.mubr.f32.mxu0 %v2538_v10  ;;  %v18258_v10 = vld [vmem:[#allocation16_spill] sm:$0xff] }
 0x3e4   :  { %11859 = vmatpush3.bf16.xpose.msk.msra.mxu0 %vm13985_vm1, %v18254_v11 }
 0x3e5   :  { %11862 = vmatprep.subr.msk.bf16.mxu0 %vm13985_vm1, %v18255_v42 }
 0x3e6   :  { %11118 = vmatmul.mubr.f32.gmra.mrb[48].mxu0 %v2543_v27  ;;  %v18260_v27 = vld [vmem:[#allocation20_spill] sm:$0xff] }
 0x3e7   :  { %11120 = vmatprep.mubr.f32.mxu0 %v2548_v6  ;;  %v18261_v6 = vld [vmem:[#allocation22_spill] sm:$0xff] }
 0x3ea   :  { %11121 = vmatmul.mubr.f32.gmra.mrb[50].mxu0 %v2553_v52  ;;  %v18262_v52 = vld [vmem:[#allocation24_spill] sm:$0xff] }
 0x3ec   :  { %11865 = vmatpush3.bf16.xpose.msk.msra.mxu0 %vm13985_vm1, %v18256_v56 }
 0x3ed   :  { %11868 = vmatprep.subr.msk.bf16.mxu0 %vm13985_vm1, %v18257_v21 }
 0x3f4   :  { %11871 = vmatpush3.bf16.xpose.msk.msra.mxu0 %vm13985_vm1, %v18258_v10 }
 0x3f5   :  { %11874 = vmatprep.subr.msk.bf16.mxu0 %vm13985_vm1, %v18259_v32 }
 0x3fc   :  { %11877 = vmatpush3.bf16.xpose.msk.msra.mxu0 %vm13985_vm1, %v18260_v27 }
 0x3fd   :  { %11880 = vmatprep.subr.msk.bf16.mxu0 %vm13985_vm1, %v18261_v6 }
 0x404   :  { %11883 = vmatpush3.bf16.xpose.msk.msra.mxu0 %vm13985_vm1, %v18262_v52 }
 0x405   :  { %11886 = vmatprep.subr.msk.bf16.mxu0 %vm13985_vm1, %v18263_v30 }
 0x40c   :  { %11889 = vmatpush3.bf16.xpose.msk.msra.mxu0 %vm13985_vm1, %v18264_v17 }
 0x40d   :  { %11892 = vmatprep.subr.msk.bf16.mxu0 %vm13985_vm1, %v18265_v13 }
 0x414   :  { %11895 = vmatpush3.bf16.xpose.msk.msra.mxu0 %vm13985_vm1, %v18266_v1 }
 0x415   :  { %11898 = vmatprep.subr.msk.bf16.mxu0 %vm13985_vm1, %v18267_v63 }
 0x41c   :  { %11901 = vmatpush3.bf16.xpose.msk.msra.mxu0 %vm13985_vm1, %v18268_v53 }
 0x41d   :  { %11952 = vmatprep.subr.msk.bf16.mxu0 %vm13985_vm1, %v14349_v61 }
 0x471   :  { %v10150_v51 = vpop.f32.mrb[12].mxu0 }
 0x472   :  { %v10151_v41 = vpop.f32.mrb[13].mxu0 }
 0x473   :  { %v10152_v39 = vadd.f32 %v10151_v41, %v10150_v51 }
 0x475   :  { %v10153_v26 = vpop.f32.mrb[14].mxu0 }
 0x476   :  { %v10154_v20 = vpop.f32.mrb[15].mxu0 }
 0x477   :  { %v10155_v15 = vadd.f32 %v10154_v20, %v10153_v26 }
 0x479   :  { %v10156_v13 = vpop.f32.mrb[16].mxu0 }
 0x47a   :  { %v10157_v1 = vpop.f32.mrb[17].mxu0 }
 0x47b   :  { %v10158_v17 = vadd.f32 %v10157_v1, %v10156_v13 }
 0x47d   :  { %v10159_v30 = vpop.f32.mrb[18].mxu0 }
 0x47e   :  { %v10160_v52 = vpop.f32.mrb[19].mxu0 }
 0x47f   :  { %v10161_v63 = vadd.f32 %v10160_v52, %v10159_v30 }
 0x481   :  { %v10162_v6 = vpop.f32.mrb[20].mxu0 }
 0x482   :  { %v10163_v27 = vpop.f32.mrb[21].mxu0 }
 0x483   :  { %v10164_v32 = vadd.f32 %v10163_v27, %v10162_v6 }
 0x485   :  { %v10165_v53 = vpop.f32.mrb[22].mxu0 }
 0x486   :  { %v10166_v10 = vpop.f32.mrb[23].mxu0 }
 0x487   :  { %v10167_v21 = vadd.f32 %v10166_v10, %v10165_v53 }
 0x489   :  { %v10168_v56 = vpop.f32.mrb[24].mxu0 }
 0x48a   :  { %v10169_v42 = vpop.f32.mrb[25].mxu0 }
 0x48b   :  { %v10170_v11 = vadd.f32 %v10169_v42, %v10168_v56 }
 0x48d   :  { %v10171_v60 = vpop.f32.mrb[26].mxu0 }
 0x48e   :  { %v10172_v41 = vpop.f32.mrb[27].mxu0 }
 0x48f   :  { %v10173_v51 = vadd.f32 %v10172_v41, %v10171_v60 }
 0x491   :  { %v10206_v58 = vpop.f32.mrb[28].mxu0 }
 0x492   :  { %v10207_v20 = vpop.f32.mrb[29].mxu0 }
 0x493   :  { %v10208_v26 = vadd.f32 %v10207_v20, %v10206_v58 }
 0x495   :  { %v10209_v45 = vpop.f32.mrb[30].mxu0  ;;  %v2726_v1 = vadd.f32 %v10208_v26, %v10152_v39 }
 0x496   :  { %v10210_v13 = vpop.f32.mrb[31].mxu0 }
 0x497   :  { %v10211_v31 = vadd.f32 %v10210_v13, %v10209_v45 }
 0x499   :  { %v10212_v30 = vpop.f32.mrb[32].mxu0  ;;  %v2731_v52 = vadd.f32 %v10211_v31, %v10155_v15 }
 0x49a   :  { %v10213_v47 = vpop.f32.mrb[33].mxu0 }
 0x49b   :  { %v10214_v27 = vadd.f32 %v10213_v47, %v10212_v30 }
 0x49d   :  { %v10215_v6 = vpop.f32.mrb[34].mxu0  ;;  %v2736_v38 = vadd.f32 %v10214_v27, %v10158_v17 }
 0x49e   :  { %v10216_v53 = vpop.f32.mrb[35].mxu0 }
 0x49f   :  { %v10217_v10 = vadd.f32 %v10216_v53, %v10215_v6 }
 0x4a1   :  { %v10218_v59 = vpop.f32.mrb[36].mxu0  ;;  %v2741_v42 = vadd.f32 %v10217_v10, %v10161_v63 }
 0x4a2   :  { %v10219_v56 = vpop.f32.mrb[37].mxu0 }
 0x4a3   :  { %v10220_v57 = vadd.f32 %v10219_v56, %v10218_v59 }
 0x4a5   :  { %v10221_v60 = vpop.f32.mrb[38].mxu0  ;;  %v2746_v41 = vadd.f32 %v10220_v57, %v10164_v32 }
 0x4a6   :  { %v10222_v14 = vpop.f32.mrb[39].mxu0 }
 0x4a7   :  { %v10223_v58 = vadd.f32 %v10222_v14, %v10221_v60 }
 0x4a9   :  { %v10224_v20 = vpop.f32.mrb[40].mxu0  ;;  %v2751_v39 = vadd.f32 %v10223_v58, %v10167_v21 }
 0x4aa   :  { %v10225_v26 = vpop.f32.mrb[41].mxu0 }
 0x4ab   :  { %v10226_v45 = vadd.f32 %v10225_v26, %v10224_v20 }
 0x4ad   :  { %v10227_v13 = vpop.f32.mrb[42].mxu0  ;;  %v2756_v15 = vadd.f32 %v10226_v45, %v10170_v11 }
 0x4ae   :  { %v10228_v31 = vpop.f32.mrb[43].mxu0 }
 0x4af   :  { %v10229_v47 = vadd.f32 %v10228_v31, %v10227_v13 }
 0x4b1   :  { %v11113_v30 = vpop.f32.mrb[44].mxu0  ;;  %v2761_v17 = vadd.f32 %v10229_v47, %v10173_v51 }
 0x4b2   :  { %v2836_v27 = vadd.f32 %v11113_v30, %v2731_v52  ;;  %v2830_v6 = vpop.f32.mrb[45].mxu0 }
 0x4b3   :  { %v2831_v53 = vadd.f32 %v2830_v6, %v2726_v1 }
 0x4b4   :  { %v2870_v32 = vmul.f32 0.0625, %v2836_v27 }
 0x4b5   :  { %v11116_v63 = vpop.f32.mrb[46].mxu0  ;;  %v2869_v57 = vmul.f32 0.0625, %v2831_v53 }
 0x4b6   :  { %v2846_v10 = vadd.f32 %v11116_v63, %v2741_v42  ;;  %v2840_v59 = vpop.f32.mrb[47].mxu0  ;;  %v2878_v20 = vmul.f32 %v2870_v32, %v2870_v32 }
 0x4b7   :  { %v2841_v56 = vadd.f32 %v2840_v59, %v2736_v38  ;;  %v2877_v45 = vmul.f32 %v2869_v57, %v2869_v57 }
 0x4b8   :  { %v2872_v26 = vmul.f32 0.0625, %v2846_v10 }
 0x4b9   :  { %v11119_v14 = vpop.f32.mrb[48].mxu0  ;;  %v2871_v13 = vmul.f32 0.0625, %v2841_v56 }
 0x4ba   :  { %v2856_v60 = vadd.f32 %v11119_v14, %v2751_v39  ;;  %v2850_v21 = vpop.f32.mrb[49].mxu0  ;;  %v2880_v6 = vmul.f32 %v2872_v26, %v2872_v26 }
 0x4bb   :  { %v2851_v58 = vadd.f32 %v2850_v21, %v2746_v41  ;;  %v2879_v53 = vmul.f32 %v2871_v13, %v2871_v13 }
 0x4bc   :  { %v2874_v11 = vmul.f32 0.0625, %v2856_v60 }
 0x4bd   :  { %v2873_v31 = vmul.f32 0.0625, %v2851_v58  ;;  %v11122_v51 = vpop.f32.mrb[50].mxu0 }
 0x4be   :  { %v2882_v52 = vsub.f32 %v2874_v11, %v2878_v20  ;;  %v2866_v47 = vadd.f32 %v11122_v51, %v2761_v17  ;;  %v2860_v1 = vpop.f32.mrb[51].mxu0  ;;  %v2909_v17 = vpop.permute.xlu0 %2908 }
 0x4bf   :  { %v2881_v30 = vsub.f32 %v2873_v31, %v2877_v45  ;;  %v2861_v42 = vadd.f32 %v2860_v1, %v2756_v15  ;;  %v2904_v15 = vpop.permute.xlu1 %2903 }
 0x4c0   :  { %v2886_v38 = vmax.f32 %v2882_v52, 0.0  ;;  %v2876_v27 = vmul.f32 0.0625, %v2866_v47 }
 0x4c1   :  { %v2885_v63 = vmax.f32 %v2881_v30, 0.0  ;;  %v2875_v39 = vmul.f32 0.0625, %v2861_v42 }
 0x4c2   :  { %v2890_v59 = vadd.f32 1e-05, %v2886_v38  ;;  %v2884_v41 = vsub.f32 %v2876_v27, %v2880_v6  ;;  %v2919_v47 = vpop.permute.xlu0 %2918 }
 0x4c3   :  { %v2889_v14 = vadd.f32 1e-05, %v2885_v63  ;;  %v2883_v10 = vsub.f32 %v2875_v39, %v2879_v53  ;;  %v2914_v42 = vpop.permute.xlu1 %2913 }
 0x4c4   :  { %13597 = vrsqrt.f32 %v2890_v59  ;;  %v2888_v60 = vmax.f32 %v2884_v41, 0.0 }
 0x4c5   :  { %13599 = vrsqrt.f32 %v2889_v14  ;;  %v2887_v56 = vmax.f32 %v2883_v10, 0.0 }
 0x4c6   :  { %v2892_v21 = vadd.f32 1e-05, %v2888_v60  ;;  %v2941_v27 = vpop.permute.xlu0 %2940 }
 0x4c7   :  { %v2891_v58 = vadd.f32 1e-05, %v2887_v56 }
 0x4c8   :  { %13601 = vrsqrt.f32 %v2892_v21 }
 0x4c9   :  { %13603 = vrsqrt.f32 %v2891_v58 }
 0x4ca   :  { %v2951_v59 = vpop.permute.xlu0 %2950 }
 0x4ce   :  { %v13598_v20 = vpop.eup %13597 }
 0x4cf   :  { %v13600_v11 = vpop.eup %13599  ;;  %v15422_v45 = vmul.f32 %v13598_v20, %v2909_v17 }
 0x4d0   :  { %v2921_v31 = vmul.f32 %v13600_v11, %v2904_v15 }
 0x4d1   :  { %v2930_v51 = vmul.f32 %v15422_v45, %v2870_v32 }
 0x4d2   :  { %v13602_v52 = vpop.eup %13601  ;;  %10286 = vmatprep.mubr.msk.f32.mxu0 %vm249_vm0, %v2921_v31  ;;  %10334 = vmatprep.mubr.msk.f32.mxu1 %vm249_vm0, %v2921_v31  ;;  %v2929_v1 = vmul.f32 %v2921_v31, %v2869_v57 }
 0x4d3   :  { %v13604_v30 = vpop.eup %13603  ;;  %v2924_v6 = vmul.f32 %v13602_v52, %v2919_v47  ;;  %10287 = vmatmul.mubr.msk.f32.vlgmr.msra.gmra.mrb[52].mxu0 %vm249_vm0, %v2921_v31  ;;  %10335 = vmatmul.mubr.msk.f32.vlgmr.msra.gmra.mrb[28].mxu1 %vm249_vm0, %v2921_v31  ;;  %v2954_v53 = vsub.f32 %v2941_v27, %v2930_v51 }
 0x4d4   :  { %v2923_v38 = vmul.f32 %v13604_v30, %v2914_v42  ;;  %11955 = vmatpush3.bf16.xpose.msk.msra.mxu0 %vm13985_vm1, %v14349_v61  ;;  %10288 = vmatprep.mubr.msk.f32.mxu0 %vm249_vm0, %v15422_v45 }
 0x4d5   :  { %10336 = vmatprep.mubr.msk.f32.mxu1 %vm249_vm0, %v15422_v45  ;;  %11958 = vmatprep.subr.msk.bf16.mxu0 %vm13985_vm1, %v18244_v12  ;;  %v2932_v32 = vmul.f32 %v2924_v6, %v2872_v26  ;;  %v2936_v26 = vpop.permute.xlu1 %2935 }
 0x4d6   :  { %v2931_v57 = vmul.f32 %v2923_v38, %v2871_v13  ;;  %v2953_v13 = vsub.f32 %v2936_v26, %v2929_v1 }
 0x4d7   :  { %10289 = vmatmul.mubr.msk.f32.gmra.mrb[54].mxu0 %vm249_vm0, %v15422_v45  ;;  %10337 = vmatmul.mubr.msk.f32.gmra.mrb[30].mxu1 %vm249_vm0, %v15422_v45  ;;  %v2956_v41 = vsub.f32 %v2951_v59, %v2932_v32 }
 0x4d8   :  { %10290 = vmatprep.mubr.msk.f32.mxu0 %vm249_vm0, %v2923_v38  ;;  %10338 = vmatprep.mubr.msk.f32.mxu1 %vm249_vm0, %v2923_v38 }
 0x4d9   :  { %v2946_v63 = vpop.permute.xlu1 %2945 }
 0x4da   :  { %v2955_v39 = vsub.f32 %v2946_v63, %v2931_v57 }
 0x4db   :  { %10291 = vmatmul.mubr.msk.f32.gmra.mrb[56].mxu0 %vm249_vm0, %v2923_v38  ;;  %10339 = vmatmul.mubr.msk.f32.gmra.mrb[32].mxu1 %vm249_vm0, %v2923_v38 }
 0x4dc   :  { %11961 = vmatpush3.bf16.xpose.msk.msra.mxu0 %vm13985_vm1, %v18244_v12  ;;  %10292 = vmatprep.mubr.msk.f32.mxu0 %vm249_vm0, %v2924_v6 }
 0x4dd   :  { %10340 = vmatprep.mubr.msk.f32.mxu1 %vm249_vm0, %v2924_v6  ;;  %11964 = vmatprep.subr.msk.bf16.mxu0 %vm13985_vm1, %v18245_v44 }
 0x4df   :  { %10293 = vmatmul.mubr.msk.f32.gmra.mrb[58].mxu0 %vm249_vm0, %v2924_v6  ;;  %10341 = vmatmul.mubr.msk.f32.gmra.mrb[34].mxu1 %vm249_vm0, %v2924_v6 }
 0x4e0   :  { %10294 = vmatprep.mubr.msk.f32.mxu0 %vm249_vm0, %v2953_v13  ;;  %10342 = vmatprep.mubr.msk.f32.mxu1 %vm249_vm0, %v2953_v13 }
 0x4e3   :  { %10295 = vmatmul.mubr.msk.f32.gmra.mrb[60].mxu0 %vm249_vm0, %v2953_v13  ;;  %10343 = vmatmul.mubr.msk.f32.gmra.mrb[36].mxu1 %vm249_vm0, %v2953_v13 }
 0x4e4   :  { %11967 = vmatpush3.bf16.xpose.msk.msra.mxu0 %vm13985_vm1, %v18245_v44  ;;  %10296 = vmatprep.mubr.msk.f32.mxu0 %vm249_vm0, %v2954_v53 }
 0x4e5   :  { %10344 = vmatprep.mubr.msk.f32.mxu1 %vm249_vm0, %v2954_v53  ;;  %11970 = vmatprep.subr.msk.bf16.mxu0 %vm13985_vm1, %v18246_v9 }
 0x4e7   :  { %10297 = vmatmul.mubr.msk.f32.gmra.mrb[62].mxu0 %vm249_vm0, %v2954_v53  ;;  %10345 = vmatmul.mubr.msk.f32.gmra.mrb[38].mxu1 %vm249_vm0, %v2954_v53 }
 0x4e8   :  { %10298 = vmatprep.mubr.msk.f32.mxu0 %vm249_vm0, %v2955_v39  ;;  %10346 = vmatprep.mubr.msk.f32.mxu1 %vm249_vm0, %v2955_v39 }
 0x4eb   :  { %10299 = vmatmul.mubr.msk.f32.gmra.mrb[64].mxu0 %vm249_vm0, %v2955_v39  ;;  %10347 = vmatmul.mubr.msk.f32.gmra.mrb[40].mxu1 %vm249_vm0, %v2955_v39 }
 0x4ec   :  { %11973 = vmatpush3.bf16.xpose.msk.msra.mxu0 %vm13985_vm1, %v18246_v9  ;;  %10300 = vmatprep.mubr.msk.f32.mxu0 %vm249_vm0, %v2956_v41 }
 0x4ed   :  { %10348 = vmatprep.mubr.msk.f32.mxu1 %vm249_vm0, %v2956_v41  ;;  %11976 = vmatprep.subr.msk.bf16.mxu0 %vm13985_vm1, %v18247_v4 }
 0x4ef   :  { %10301 = vmatmul.mubr.msk.f32.gmra.mrb[66].mxu0 %vm249_vm0, %v2956_v41  ;;  %10349 = vmatmul.mubr.msk.f32.gmra.mrb[42].mxu1 %vm249_vm0, %v2956_v41 }
 0x4f0   :  { %11155 = vmatprep.mubr.msk.f32.mxu0 %vm249_vm0, %v2921_v31  ;;  %3747 = vmatprep.mubr.f32.mxu1 %v18243_v50 }
 0x4f4   :  { %11979 = vmatpush3.bf16.xpose.msk.msra.mxu0 %vm13985_vm1, %v18247_v4 }
 0x4f5   :  { %11982 = vmatprep.subr.msk.bf16.mxu0 %vm13985_vm1, %v18248_v16 }
 0x4fc   :  { %11985 = vmatpush3.bf16.xpose.msk.msra.mxu0 %vm13985_vm1, %v18248_v16 }
 0x4fd   :  { %11988 = vmatprep.subr.msk.bf16.mxu0 %vm13985_vm1, %v18249_v48 }
 0x504   :  { %11991 = vmatpush3.bf16.xpose.msk.msra.mxu0 %vm13985_vm1, %v18249_v48 }
 0x505   :  { %11994 = vmatprep.subr.msk.bf16.mxu0 %vm13985_vm1, %v18250_v46 }
 0x50c   :  { %11997 = vmatpush3.bf16.xpose.msk.msra.mxu0 %vm13985_vm1, %v18250_v46 }
 0x513   :  { %11156 = vmatmul.mubr.msk.f32.vlgmr.msra.gmra.mrb[68].mxu0 %vm249_vm0, %v15422_v45 }
 0x514   :  { %11158 = vmatprep.mubr.msk.f32.mxu0 %vm249_vm0, %v2923_v38 }
 0x517   :  { %11159 = vmatmul.mubr.msk.f32.gmra.mrb[70].mxu0 %vm249_vm0, %v2924_v6 }
 0x518   :  { %11161 = vmatprep.mubr.msk.f32.mxu0 %vm249_vm0, %v2953_v13 }
 0x51b   :  { %11162 = vmatmul.mubr.msk.f32.gmra.mrb[72].mxu0 %vm249_vm0, %v2954_v53 }
 0x51c   :  { %11164 = vmatprep.mubr.msk.f32.mxu0 %vm249_vm0, %v2955_v39 }
 0x51f   :  { %11165 = vmatmul.mubr.msk.f32.gmra.mrb[74].mxu0 %vm249_vm0, %v2956_v41 }
 0x520   :  { %3658 = vmatprep.mubr.f32.mxu0 %v18243_v50 }
 0x5a6   :  { %v3047_v14 = vpop.f32.mrb[52].mxu0  ;;  %v3160_v10 = vpop.f32.mrb[28].mxu1 }
 0x5a7   :  { %v3049_v60 = vpop.f32.mrb[53].mxu0  ;;  %v3162_v56 = vpop.f32.mrb[29].mxu1  ;;  %v3312_v30 = vmul.f32 %v3047_v14, %v15218_v2  ;;  %v3314_v42 = vmul.f32 %v3160_v10, %v15288_v35 }
 0x5a8   :  { %v3313_v6 = vmul.f32 %v3049_v60, %v15215_v54  ;;  %v3315_v38 = vmul.f32 %v3162_v56, %v15283_v24 }
 0x5aa   :  { %v3053_v21 = vpop.f32.mrb[54].mxu0  ;;  %v3166_v58 = vpop.f32.mrb[30].mxu1 }
 0x5ab   :  { %v3055_v17 = vpop.f32.mrb[55].mxu0  ;;  %v3168_v15 = vpop.f32.mrb[31].mxu1  ;;  %v3317_v2 = vmul.f32 %v3053_v21, %v15229_v55  ;;  %v3319_v35 = vmul.f32 %v3166_v58, %v15298_v23 }
 0x5ac   :  { %v3318_v24 = vmul.f32 %v3055_v17, %v15225_v40  ;;  %v3320_v59 = vmul.f32 %v3168_v15, %v15292_v43 }
 0x5ae   :  { %v3059_v20 = vpop.f32.mrb[56].mxu0  ;;  %v3172_v11 = vpop.f32.mrb[32].mxu1 }
 0x5af   :  { %v3061_v45 = vpop.f32.mrb[57].mxu0  ;;  %v3174_v31 = vpop.f32.mrb[33].mxu1  ;;  %v3322_v23 = vmul.f32 %v3059_v20, %v15241_v5  ;;  %v3324_v21 = vmul.f32 %v3172_v11, %v15308_v25 }
 0x5b0   :  { %v3323_v43 = vmul.f32 %v3061_v45, %v15237_v3  ;;  %v3325_v58 = vmul.f32 %v3174_v31, %v15302_v49 }
 0x5b2   :  { %v3065_v51 = vpop.f32.mrb[58].mxu0  ;;  %v3178_v52 = vpop.f32.mrb[34].mxu1 }
 0x5b3   :  { %v3067_v47 = vpop.f32.mrb[59].mxu0  ;;  %v3180_v1 = vpop.f32.mrb[35].mxu1  ;;  %v3327_v25 = vmul.f32 %v3065_v51, %v15253_v19  ;;  %v3329_v20 = vmul.f32 %v3178_v52, %v15318_v0 }
 0x5b4   :  { %v3328_v49 = vmul.f32 %v3067_v47, %v15249_v62  ;;  %v3330_v11 = vmul.f32 %v3180_v1, %v15312_v28 }
 0x5b6   :  { %v3071_v32 = vpop.f32.mrb[60].mxu0  ;;  %v3184_v57 = vpop.f32.mrb[36].mxu1 }
 0x5b7   :  { %v15521_v26 = vadd.f32 %v3312_v30, %v3071_v32  ;;  %v15523_v13 = vadd.f32 %v3314_v42, %v3184_v57  ;;  %v3073_v27 = vpop.f32.mrb[61].mxu0  ;;  %v3186_v53 = vpop.f32.mrb[37].mxu1 }
 0x5b8   :  { %v15525_v63 = vadd.f32 %v3313_v6, %v3073_v27  ;;  %v15527_v39 = vadd.f32 %v3315_v38, %v3186_v53 }
 0x5b9   :  { %v9523_v54 = vmul.f32 -1.442695, %v15521_v26 }
 0x5ba   :  { %v9524_v41 = vmul.f32 -1.442695, %v15525_v63  ;;  %v3077_v14 = vpop.f32.mrb[62].mxu0  ;;  %v3190_v10 = vpop.f32.mrb[38].mxu1 }
 0x5bb   :  { %13605 = vpow2.f32 %v9523_v54  ;;  %v3337_v60 = vadd.f32 %v3317_v2, %v3077_v14  ;;  %v15535_v56 = vadd.f32 %v3319_v35, %v3190_v10  ;;  %v3079_v30 = vpop.f32.mrb[63].mxu0  ;;  %v3192_v42 = vpop.f32.mrb[39].mxu1 }
 0x5bc   :  { %v3338_v6 = vadd.f32 %v3318_v24, %v3079_v30  ;;  %v15537_v55 = vadd.f32 %v3320_v59, %v3192_v42  ;;  %13607 = vpow2.f32 %v9524_v41 }
 0x5bd   :  { %v9528_v40 = vmul.f32 -1.442695, %v3337_v60 }
 0x5be   :  { %v9529_v17 = vmul.f32 -1.442695, %v3338_v6  ;;  %v3083_v15 = vpop.f32.mrb[64].mxu0  ;;  %v3196_v38 = vpop.f32.mrb[40].mxu1 }
 0x5bf   :  { %13609 = vpow2.f32 %v9528_v40  ;;  %v3342_v32 = vadd.f32 %v3322_v23, %v3083_v15  ;;  %v15543_v57 = vadd.f32 %v3324_v21, %v3196_v38  ;;  %v3085_v27 = vpop.f32.mrb[65].mxu0  ;;  %v3198_v53 = vpop.f32.mrb[41].mxu1 }
 0x5c0   :  { %v15545_v2 = vadd.f32 %v3323_v43, %v3085_v27  ;;  %v15547_v5 = vadd.f32 %v3325_v58, %v3198_v53  ;;  %13611 = vpow2.f32 %v9529_v17 }
 0x5c1   :  { %v9533_v3 = vmul.f32 -1.442695, %v3342_v32 }
 0x5c2   :  { %v3089_v45 = vpop.f32.mrb[66].mxu0  ;;  %v3202_v31 = vpop.f32.mrb[42].mxu1 }
 0x5c3   :  { %13613 = vpow2.f32 %v9533_v3  ;;  %v3347_v35 = vadd.f32 %v3327_v25, %v3089_v45  ;;  %v15553_v54 = vadd.f32 %v3329_v20, %v3202_v31  ;;  %v3091_v24 = vpop.f32.mrb[67].mxu0  ;;  %v3204_v59 = vpop.f32.mrb[43].mxu1  ;;  %v9526_v45 = vmul.f32 -1.442695, %v15527_v39 }
 0x5c4   :  { %v15555_v41 = vadd.f32 %v3328_v49, %v3091_v24  ;;  %v15557_v14 = vadd.f32 %v3330_v11, %v3204_v59  ;;  %v9534_v24 = vmul.f32 -1.442695, %v15545_v2 }
 0x5c5   :  { %v13606_v19 = vpop.eup %13605  ;;  %v9538_v0 = vmul.f32 -1.442695, %v3347_v35 }
 0x5c6   :  { %v3412_v51 = vadd.f32 1.0, %v13606_v19  ;;  %v13608_v52 = vpop.eup %13607  ;;  %v9536_v19 = vmul.f32 -1.442695, %v15547_v5 }
 0x5c7   :  { %13615 = vpow2.f32 %v9538_v0  ;;  %v3413_v62 = vadd.f32 1.0, %v13608_v52 }
 0x5c8   :  { %13617 = vrcp.f32 %v3412_v51  ;;  %v9541_v51 = vmul.f32 -1.442695, %v15557_v14 }
 0x5c9   :  { %v13610_v28 = vpop.eup %13609  ;;  %13619 = vrcp.f32 %v3413_v62 }
 0x5ca   :  { %v3417_v47 = vadd.f32 1.0, %v13610_v28  ;;  %v13612_v1 = vpop.eup %13611 }
 0x5cb   :  { %v3418_v10 = vadd.f32 1.0, %v13612_v1 }
 0x5cc   :  { %13621 = vrcp.f32 %v3417_v47 }
 0x5cd   :  { %v13614_v30 = vpop.eup %13613  ;;  %13623 = vrcp.f32 %v3418_v10  ;;  %v18275_v10 = vld [vmem:[#allocation39_spill] sm:$0xff] }
 0x5ce   :  { %v3422_v42 = vadd.f32 1.0, %v13614_v30 }
 0x5d0   :  { %13625 = vrcp.f32 %v3422_v42 }
 0x5d1   :  { %v13616_v23 = vpop.eup %13615 }
 0x5d2   :  { %v13618_v21 = vpop.eup %13617  ;;  %v3427_v40 = vadd.f32 1.0, %v13616_v23  ;;  %v18276_v23 = vld [vmem:[#allocation38_spill] sm:$0xff] }
 0x5d3   :  { %v13620_v43 = vpop.eup %13619  ;;  %v3472_v58 = vmul.f32 %v13618_v21, %v15521_v26 }
 0x5d4   :  { %13627 = vrcp.f32 %v3427_v40  ;;  %v3473_v15 = vmul.f32 %v13620_v43, %v15525_v63 }
 0x5d5   :  { %v15562_v53 = vadd.f32 %v3472_v58, %v14532_v29  ;;  %13629 = vpow2.f32 %v9526_v45 }
 0x5d6   :  { %v13622_v17 = vpop.eup %13621  ;;  %v15568_v49 = vadd.f32 %v3473_v15, %v14539_v37 }
 0x5d7   :  { %v3477_v38 = vmul.f32 %v13622_v17, %v3337_v60  ;;  %v13624_v27 = vpop.eup %13623  ;;  %18269 = vst [vmem:[#allocation40_spill] sm:$0xff] %v15562_v53 }
 0x5d8   :  { %v3478_v20 = vmul.f32 %v13624_v27, %v3338_v6  ;;  %18271 = vst [vmem:[#allocation42_spill] sm:$0xff] %v15568_v49  ;;  %v9525_v27 = vmul.f32 -1.442695, %v15523_v13 }
 0x5d9   :  { %v15565_v25 = vadd.f32 %v3477_v38, %v14534_v34 }
 0x5da   :  { %v13626_v3 = vpop.eup %13625  ;;  %v15571_v11 = vadd.f32 %v3478_v20, %v14541_v7 }
 0x5db   :  { %18270 = vst [vmem:[#allocation41_spill] sm:$0xff] %v15565_v25  ;;  %v15575_v26 = vpack.i.bf16 %v15565_v25, %v15562_v53  ;;  %v3482_v63 = vmul.f32 %v13626_v3, %v3342_v32 }
 0x5dc   :  { %18272 = vst [vmem:[#allocation43_spill] sm:$0xff] %v15571_v11  ;;  %v15581_v29 = vpack.i.bf16 %v15571_v11, %v15568_v49 }
 0x5dd   :  { %13198 = vrot.lane.b32.xlu1 %v15575_v26, %s13887_s0  ;;  %v15586_v37 = vadd.f32 %v3482_v63, %v14565_v18  ;;  %v9539_v18 = vmul.f32 -1.442695, %v15555_v41  ;;  %v9530_v63 = vmul.f32 -1.442695, %v15535_v56 }
 0x5de   :  { %v13628_v34 = vpop.eup %13627  ;;  %13203 = vrot.lane.b32.xlu0 %v15581_v29, %s13887_s0 }
 0x5df   :  { %v3487_v60 = vmul.f32 %v13628_v34, %v3347_v35  ;;  %18273 = vst [vmem:[#allocation44_spill] sm:$0xff] %v15586_v37  ;;  %v9531_v35 = vmul.f32 -1.442695, %v15537_v55  ;;  %v13630_v17 = vpop.eup %13629 }
 0x5e1   :  { %v15589_v7 = vadd.f32 %v3487_v60, %v14567_v22  ;;  %13631 = vpow2.f32 %v9531_v35  ;;  %v3415_v60 = vadd.f32 1.0, %v13630_v17 }
 0x5e2   :  { %13633 = vpow2.f32 %v9534_v24 }
 0x5e3   :  { %18274 = vst [vmem:[#allocation61_spill] sm:$0xff] %v15589_v7  ;;  %v15593_v6 = vpack.i.bf16 %v15589_v7, %v15586_v37  ;;  %13635 = vpow2.f32 %v9539_v18 }
 0x5e4   :  { %13637 = vpow2.f32 %v9536_v19 }
 0x5e5   :  { %13208 = vrot.lane.b32.xlu0 %v15593_v6, %s13887_s0  ;;  %13639 = vpow2.f32 %v9541_v51 }
 0x5e6   :  { %v11157_v32 = vpop.f32.mrb[68].mxu0 }
 0x5e7   :  { %v3273_v31 = vpop.f32.mrb[69].mxu0  ;;  %v3321_v0 = vmul.f32 %v11157_v32, %v15352_v36 }
 0x5e8   :  { %v3316_v52 = vmul.f32 %v3273_v31, %v15347_v33 }
 0x5ea   :  { %v11160_v59 = vpop.f32.mrb[70].mxu0 }
 0x5eb   :  { %v3283_v22 = vpop.f32.mrb[71].mxu0  ;;  %v3331_v30 = vmul.f32 %v11160_v59, %v18275_v10  ;;  %v13632_v38 = vpop.eup %13631 }
 0x5ec   :  { %v3326_v21 = vmul.f32 %v3283_v22, %v18276_v23  ;;  %v13634_v3 = vpop.eup %13633  ;;  %v3420_v32 = vadd.f32 1.0, %v13632_v38  ;;  %v9535_v23 = vmul.f32 -1.442695, %v15543_v57 }
 0x5ed   :  { %v13636_v34 = vpop.eup %13635  ;;  %v3423_v45 = vadd.f32 1.0, %v13634_v3 }
 0x5ee   :  { %v11163_v62 = vpop.f32.mrb[72].mxu0  ;;  %v13638_v31 = vpop.eup %13637  ;;  %v3428_v35 = vadd.f32 1.0, %v13636_v34 }
 0x5ef   :  { %v15605_v28 = vadd.f32 %v11163_v62, %v3321_v0  ;;  %v3293_v47 = vpop.f32.mrb[73].mxu0  ;;  %v13640_v24 = vpop.eup %13639  ;;  %v3425_v22 = vadd.f32 1.0, %v13638_v31 }
 0x5f0   :  { %v15607_v1 = vadd.f32 %v3316_v52, %v3293_v47  ;;  %v3430_v0 = vadd.f32 1.0, %v13640_v24  ;;  %v9540_v47 = vmul.f32 -1.442695, %v15553_v54 }
 0x5f1   :  { %v9532_v42 = vmul.f32 -1.442695, %v15605_v28 }
 0x5f2   :  { %v9527_v36 = vmul.f32 -1.442695, %v15607_v1  ;;  %v11166_v40 = vpop.f32.mrb[74].mxu0 }
 0x5f3   :  { %13641 = vpow2.f32 %v9532_v42  ;;  %v15613_v43 = vadd.f32 %v11166_v40, %v3331_v30  ;;  %v3303_v33 = vpop.f32.mrb[75].mxu0 }
 0x5f4   :  { %13643 = vpow2.f32 %v9527_v36  ;;  %v15615_v58 = vadd.f32 %v3326_v21, %v3303_v33 }
 0x5f5   :  { %v9542_v15 = vmul.f32 -1.442695, %v15613_v43 }
 0x5f6   :  { %v9537_v20 = vmul.f32 -1.442695, %v15615_v58 }
 0x5f7   :  { %13645 = vpow2.f32 %v9542_v15 }
 0x5f8   :  { %13647 = vpow2.f32 %v9537_v20 }
 0x5f9   :  { %13649 = vpow2.f32 %v9525_v27 }
 0x5fa   :  { %13651 = vpow2.f32 %v9530_v63 }
 0x5fb   :  { %13653 = vrcp.f32 %v3415_v60  ;;  %v18277_v60 = vld [vmem:[#allocation56_spill] sm:$0xff] }
 0x5fc   :  { %13655 = vrcp.f32 %v3420_v32 }
 0x5fd   :  { %v13642_v18 = vpop.eup %13641  ;;  %13657 = vrcp.f32 %v3423_v45 }
 0x5fe   :  { %v13644_v59 = vpop.eup %13643  ;;  %v3421_v19 = vadd.f32 1.0, %v13642_v18  ;;  %13659 = vrcp.f32 %v3428_v35  ;;  %v18279_v35 = vld [vmem:[#allocation57_spill] sm:$0xff] }
 0x5ff   :  { %v3416_v51 = vadd.f32 1.0, %v13644_v59 }
 0x600   :  { %13661 = vrcp.f32 %v3421_v19 }
 0x601   :  { %v13646_v52 = vpop.eup %13645  ;;  %13663 = vrcp.f32 %v3416_v51 }
 0x602   :  { %v13648_v62 = vpop.eup %13647  ;;  %13665 = vrcp.f32 %v3425_v22  ;;  %v3431_v10 = vadd.f32 1.0, %v13646_v52 }
 0x603   :  { %13667 = vrcp.f32 %v3430_v0  ;;  %v3426_v30 = vadd.f32 1.0, %v13648_v62  ;;  %v13650_v42 = vpop.eup %13649  ;;  %v18283_v62 = vld [vmem:[#allocation58_spill] sm:$0xff] }
 0x604   :  { %13669 = vrcp.f32 %v3431_v10  ;;  %v13652_v21 = vpop.eup %13651  ;;  %v3414_v52 = vadd.f32 1.0, %v13650_v42  ;;  %v18289_v42 = vld [vmem:[#allocation49_spill] sm:$0xff] }
 0x605   :  { %13671 = vrcp.f32 %v3426_v30  ;;  %v13654_v36 = vpop.eup %13653  ;;  %v3419_v59 = vadd.f32 1.0, %v13652_v21  ;;  %v18287_v21 = vld [vmem:[#allocation59_spill] sm:$0xff] }
 0x606   :  { %13673 = vpow2.f32 %v9540_v47  ;;  %v13656_v40 = vpop.eup %13655 }
 0x607   :  { %v13658_v33 = vpop.eup %13657  ;;  %13675 = vpow2.f32 %v9535_v23  ;;  %v3480_v22 = vmul.f32 %v13656_v40, %v15537_v55  ;;  %v3475_v55 = vmul.f32 %v13654_v36, %v15527_v39 }
 0x608   :  { %v13660_v17 = vpop.eup %13659  ;;  %v3483_v31 = vmul.f32 %v13658_v33, %v15545_v2  ;;  %13677 = vrcp.f32 %v3419_v59  ;;  %v18291_v33 = vld [vmem:[#allocation55_spill] sm:$0xff]  ;;  %v18297_v59 = vld [vmem:[#allocation48_spill] sm:$0xff] }
 0x609   :  { %v3488_v3 = vmul.f32 %v13660_v17, %v15555_v41  ;;  %v18281_v41 = vld [vmem:[#allocation54_spill] sm:$0xff]  ;;  %v15658_v40 = vadd.f32 %v3480_v22, %v18289_v42  ;;  %13679 = vrcp.f32 %v3414_v52 }
 0x60a   :  { %v13662_v15 = vpop.eup %13661  ;;  %v18303_v52 = vld [vmem:[#allocation50_spill] sm:$0xff] }
 0x60b   :  { %v13664_v38 = vpop.eup %13663  ;;  %v3481_v27 = vmul.f32 %v13662_v15, %v15605_v28  ;;  %v15636_v0 = vadd.f32 %v3488_v3, %v18281_v41  ;;  %v18293_v15 = vld [vmem:[#allocation47_spill] sm:$0xff]  ;;  %v9623_v42 = vld [vmem:[%s17978_s6 + $0x20] sm:$0xff] }
 0x60c   :  { %v13666_v20 = vpop.eup %13665  ;;  %v3476_v63 = vmul.f32 %v13664_v38, %v15607_v1  ;;  %v15670_v38 = vadd.f32 %v3475_v55, %v18293_v15  ;;  %v9629_v15 = vld [vmem:[%s17979_s7 + $0x30] sm:$0xff] }
 0x60d   :  { %v13668_v34 = vpop.eup %13667  ;;  %v15627_v32 = vadd.f32 %v3481_v27, %v18277_v60  ;;  %18282 = vst [vmem:[#allocation56_spill] sm:$0xff] %v15636_v0  ;;  %v3485_v23 = vmul.f32 %v13666_v20, %v15547_v5  ;;  %v18295_v27 = vld [vmem:[#allocation52_spill] sm:$0xff] }
 0x60e   :  { %v13670_v45 = vpop.eup %13669  ;;  %v15631_v24 = vadd.f32 %v3476_v63, %v18279_v35  ;;  %v3490_v1 = vmul.f32 %v13668_v34, %v15557_v14  ;;  %18294 = vst [vmem:[#allocation49_spill] sm:$0xff] %v15670_v38  ;;  %v13227_v3 = vpack.i.bf16 %v15658_v40, %v15670_v38 }
 0x60f   :  { %18278 = vst [vmem:[#allocation39_spill] sm:$0xff] %v15627_v32  ;;  %v13672_v18 = vpop.eup %13671  ;;  %v3491_v28 = vmul.f32 %v13670_v45, %v15613_v43  ;;  %v18285_v43 = vld [vmem:[#allocation51_spill] sm:$0xff]  ;;  %v15673_v20 = vadd.f32 %v3485_v23, %v18295_v27  ;;  %v9630_v27 = vld [vmem:[%s17979_s7 + $0x38] sm:$0xff] }
 0x610   :  { %18280 = vst [vmem:[#allocation38_spill] sm:$0xff] %v15631_v24  ;;  %v13674_v19 = vpop.eup %13673  ;;  %v3486_v51 = vmul.f32 %v13672_v18, %v15615_v58  ;;  %v15642_v2 = vpack.i.bf16 %v15627_v32, %v15631_v24  ;;  %v15649_v30 = vadd.f32 %v3483_v31, %v18285_v43  ;;  %18290 = vst [vmem:[#allocation51_spill] sm:$0xff] %v15658_v40 }
 0x611   :  { %v15645_v47 = vadd.f32 %v3491_v28, %v18283_v62  ;;  %v13676_v10 = vpop.eup %13675  ;;  %v3429_v58 = vadd.f32 1.0, %v13674_v19  ;;  %v15661_v17 = vadd.f32 %v3490_v1, %v18291_v33  ;;  %18296 = vst [vmem:[#allocation55_spill] sm:$0xff] %v15673_v20  ;;  %v18299_v19 = vld [vmem:[#allocation46_spill] sm:$0xff] }
 0x612   :  { %18286 = vst [vmem:[#allocation54_spill] sm:$0xff] %v15649_v30  ;;  %v15653_v14 = vadd.f32 %v3486_v51, %v18287_v21  ;;  %13213 = vrot.lane.b32.xlu1 %v15642_v2, %s13887_s0  ;;  %v13217_v39 = vpack.i.bf16 %v15636_v0, %v15649_v30  ;;  %v3424_v36 = vadd.f32 1.0, %v13676_v10  ;;  %v13678_v34 = vpop.eup %13677  ;;  %v9624_v33 = vld [vmem:[%s17978_s6 + $0x28] sm:$0xff] }
 0x613   :  { %18284 = vst [vmem:[#allocation57_spill] sm:$0xff] %v15645_v47  ;;  %18292 = vst [vmem:[#allocation59_spill] sm:$0xff] %v15661_v17  ;;  %13681 = vrcp.f32 %v3429_v58  ;;  %v13232_v63 = vpack.i.bf16 %v15661_v17, %v15673_v20  ;;  %v13680_v60 = vpop.eup %13679  ;;  %v3479_v45 = vmul.f32 %v13678_v34, %v15535_v56  ;;  %v9633_v34 = vld [vmem:[%s17980_s8 + $0x30] sm:$0xff] }
 0x614   :  { %18288 = vst [vmem:[#allocation58_spill] sm:$0xff] %v15653_v14  ;;  %v15667_v5 = vpack.i.bf16 %v15645_v47, %v15653_v14  ;;  %13683 = vrcp.f32 %v3424_v36  ;;  %v3474_v35 = vmul.f32 %v13680_v60, %v15523_v13  ;;  %v18301_v13 = vld [vmem:[#allocation53_spill] sm:$0xff]  ;;  %v9628_v36 = vld [vmem:[%s17979_s7 + $0x28] sm:$0xff] }
 0x615   :  { %v15695_v22 = vadd.f32 %v3479_v45, %v18297_v59  ;;  %v9634_v60 = vld [vmem:[%s17980_s8 + $0x38] sm:$0xff] }
 0x616   :  { %13218 = vrot.lane.b32.xlu1 %v13217_v39, %s13887_s0  ;;  %13223 = vrot.lane.b32.xlu0 %v15667_v5, %s13887_s0  ;;  %v15699_v41 = vadd.f32 %v3474_v35, %v18299_v19 }
 0x617   :  { %18298 = vst [vmem:[#allocation47_spill] sm:$0xff] %v15695_v22 }
 0x618   :  { %18300 = vst [vmem:[#allocation52_spill] sm:$0xff] %v15699_v41  ;;  %v13267_v51 = vpack.i.bf16 %v15695_v22, %v15699_v41 }
 0x61a   :  { %13228 = vrot.lane.b32.xlu1 %v13227_v3, %s13887_s0  ;;  %13233 = vrot.lane.b32.xlu0 %v13232_v63, %s13887_s0 }
 0x61d   :  { %v13682_v31 = vpop.eup %13681 }
 0x61e   :  { %13238 = vrot.lane.b32.xlu1 %v15575_v26, %s13889_s23  ;;  %13243 = vrot.lane.b32.xlu0 %v15581_v29, %s13889_s23  ;;  %v13684_v18 = vpop.eup %13683  ;;  %v3489_v28 = vmul.f32 %v13682_v31, %v15553_v54 }
 0x61f   :  { %v3484_v56 = vmul.f32 %v13684_v18, %v15543_v57 }
 0x620   :  { %v15706_v1 = vadd.f32 %v3489_v28, %v18301_v13 }
 0x621   :  { %v15711_v62 = vadd.f32 %v3484_v56, %v18303_v52 }
 0x622   :  { %13248 = vrot.lane.b32.xlu1 %v15642_v2, %s13889_s23  ;;  %13253 = vrot.lane.b32.xlu0 %v15593_v6, %s13889_s23  ;;  %18302 = vst [vmem:[#allocation48_spill] sm:$0xff] %v15706_v1 }
 0x623   :  { %18304 = vst [vmem:[#allocation46_spill] sm:$0xff] %v15711_v62  ;;  %v13277_v57 = vpack.i.bf16 %v15706_v1, %v15711_v62 }
 0x626   :  { %13258 = vrot.lane.b32.xlu1 %v13217_v39, %s13889_s23  ;;  %13263 = vrot.lane.b32.xlu0 %v15667_v5, %s13889_s23 }
 0x62a   :  { %13268 = vrot.lane.b32.xlu1 %v13267_v51, %s13887_s0  ;;  %13273 = vrot.lane.b32.xlu0 %v13227_v3, %s13889_s23 }
 0x62e   :  { %13278 = vrot.lane.b32.xlu1 %v13277_v57, %s13887_s0  ;;  %13283 = vrot.lane.b32.xlu0 %v13232_v63, %s13889_s23 }
 0x632   :  { %13288 = vrot.lane.b32.xlu1 %v15581_v29, %s13890_s24  ;;  %13293 = vrot.lane.b32.xlu0 %v13267_v51, %s13890_s24 }
 0x636   :  { %13298 = vrot.lane.b32.xlu1 %v15575_v26, %s13890_s24  ;;  %13303 = vrot.lane.b32.xlu0 %v13217_v39, %s13890_s24 }
 0x63a   :  { %13308 = vrot.lane.b32.xlu1 %v13277_v57, %s13890_s24  ;;  %13313 = vrot.lane.b32.xlu0 %v15593_v6, %s13890_s24 }
 0x63e   :  { %13318 = vrot.lane.b32.xlu1 %v15642_v2, %s13890_s24  ;;  %13328 = vrot.lane.b32.xlu0 %v15581_v29, %s13891_s25 }
 0x642   :  { %13323 = vrot.lane.b32.xlu1 %v13267_v51, %s13889_s23  ;;  %13338 = vrot.lane.b32.xlu0 %v15667_v5, %s13890_s24 }
 0x646   :  { %13333 = vrot.lane.b32.xlu1 %v13267_v51, %s13891_s25  ;;  %13343 = vrot.lane.b32.xlu0 %v15575_v26, %s13891_s25 }
 0x64a   :  { %13348 = vrot.lane.b32.xlu1 %v13277_v57, %s13889_s23  ;;  %13353 = vrot.lane.b32.xlu0 %v13217_v39, %s13891_s25  ;;  %v9626_v39 = vld [vmem:[%s17978_s6 + $0x38] sm:$0xff] }
 0x64e   :  { %13358 = vrot.lane.b32.xlu1 %v13277_v57, %s13891_s25  ;;  %13363 = vrot.lane.b32.xlu0 %v15593_v6, %s13891_s25 }
 0x64f   :  { %v13199_v54 = vpop.permute.xlu1 %13198 }
 0x650   :  { %v13201_v29 = vunpack.i.h.bf16 %v13199_v54  ;;  %v13200_v10 = vunpack.i.l.bf16 %v13199_v54  ;;  %v15743_v55 = vpop.permute.xlu0 %13203 }
 0x651   :  { %v13206_v43 = vunpack.i.h.bf16 %v15743_v55  ;;  %v13205_v23 = vunpack.i.l.bf16 %v15743_v55  ;;  %v12024_v55 = vpack.c.bf16 %v15565_v25, %v15562_v53 }
 0x652   :  { %13368 = vrot.lane.b32.xlu1 %v13227_v3, %s13890_s24  ;;  %13373 = vrot.lane.b32.xlu0 %v13232_v63, %s13890_s24 }
 0x653   :  { %v3569_v21 = vsel %vm832_vm2, %v13200_v10, %v13205_v23  ;;  %v3570_v6 = vsel %vm832_vm2, %v13201_v29, %v13206_v43 }
 0x654   :  { %v11998_v58 = vpack.c.bf16 %v3570_v6, %v3569_v21 }
 0x656   :  { %13378 = vrot.lane.b32.xlu1 %v13227_v3, %s13891_s25  ;;  %13383 = vrot.lane.b32.xlu0 %v15642_v2, %s13891_s25  ;;  %v9625_v2 = vld [vmem:[%s17978_s6 + $0x30] sm:$0xff]  ;;  %v9631_v3 = vld [vmem:[%s17980_s8 + $0x20] sm:$0xff] }
 0x657   :  { %11999 = vmatprep.subr.bf16.mxu0 %v11998_v58  ;;  %v13209_v45 = vpop.permute.xlu0 %13208 }
 0x658   :  { %v13211_v19 = vunpack.i.h.bf16 %v13209_v45  ;;  %v13210_v56 = vunpack.i.l.bf16 %v13209_v45 }
 0x65a   :  { %13388 = vrot.lane.b32.xlu1 %v13232_v63, %s13891_s25  ;;  %13393 = vrot.lane.b32.xlu0 %v15667_v5, %s13891_s25  ;;  %v9627_v5 = vld [vmem:[%s17979_s7 + $0x20] sm:$0xff]  ;;  %v9632_v63 = vld [vmem:[%s17980_s8 + $0x28] sm:$0xff] }
 0x65e   :  { %5219 = vperm.xlu1 %12996, %v9623_v42   ;;  %5224 = vperm.xlu0 %12992, %v9624_v33  }
 0x662   :  { %5229 = vperm.xlu1 %12996, %v9625_v2   ;;  %5234 = vperm.xlu0 %12992, %v9626_v39  }
 0x666   :  { %5627 = vperm.xlu1 %12996, %v9627_v5   ;;  %5632 = vperm.xlu0 %12992, %v9628_v36  }
 0x66a   :  { %5637 = vperm.xlu1 %12996, %v9629_v15   ;;  %5642 = vperm.xlu0 %12992, %v9630_v27  }
 0x66e   :  { %5660 = vperm.xlu1 %12996, %v9631_v3   ;;  %5665 = vperm.xlu0 %12992, %v9632_v63   ;;  %v15826_v63 = vld [vmem:[%s17977_s5 + $0xa0] sm:$0xff] }
 0x672   :  { %5670 = vperm.xlu1 %12996, %v9633_v34   ;;  %5675 = vperm.xlu0 %12992, %v9634_v60  }
 0x684   :  { %v13214_v31 = vpop.permute.xlu1 %13213 }
 0x685   :  { %v13216_v35 = vunpack.i.h.bf16 %v13214_v31  ;;  %v13215_v18 = vunpack.i.l.bf16 %v13214_v31 }
 0x687   :  { %v3574_v59 = vsel %vm832_vm2, %v13216_v35, %v13201_v29  ;;  %v3573_v28 = vsel %vm832_vm2, %v13215_v18, %v13200_v10 }
 0x688   :  { %v15803_v13 = vpop.permute.xlu1 %13218  ;;  %v13224_v51 = vpop.permute.xlu0 %13223  ;;  %v12000_v52 = vpack.c.bf16 %v3574_v59, %v3573_v28 }
 0x689   :  { %v13221_v57 = vunpack.i.h.bf16 %v15803_v13  ;;  %v13220_v54 = vunpack.i.l.bf16 %v15803_v13  ;;  %v13226_v21 = vunpack.i.h.bf16 %v13224_v51  ;;  %v13225_v6 = vunpack.i.l.bf16 %v13224_v51 }
 0x68a   :  { %12001 = vmatpush1.bf16.msra.mxu0 %v12000_v52  ;;  %v12022_v52 = vpack.c.bf16 %v15571_v11, %v15568_v49  ;;  %v18349_v11 = vld [vmem:[#allocation23_spill] sm:$0xff] }
 0x68b   :  { %v3576_v58 = vsel %vm832_vm2, %v13226_v21, %v13211_v19  ;;  %v3575_v29 = vsel %vm832_vm2, %v13225_v6, %v13210_v56  ;;  %v3571_v10 = vsel %vm832_vm2, %v13210_v56, %v13220_v54  ;;  %v3572_v42 = vsel %vm832_vm2, %v13211_v19, %v13221_v57 }
 0x68c   :  { %v13229_v33 = vpop.permute.xlu1 %13228  ;;  %v15819_v2 = vpop.permute.xlu0 %13233  ;;  %v12002_v39 = vpack.c.bf16 %v3572_v42, %v3571_v10  ;;  %v12004_v5 = vpack.c.bf16 %v3576_v58, %v3575_v29  ;;  %v15872_v29 = vld [vmem:[%s17977_s5 + $0xb8] sm:$0xff] }
 0x68d   :  { %v13231_v36 = vunpack.i.h.bf16 %v13229_v33  ;;  %v13230_v15 = vunpack.i.l.bf16 %v13229_v33  ;;  %v13236_v27 = vunpack.i.h.bf16 %v15819_v2  ;;  %v13235_v3 = vunpack.i.l.bf16 %v15819_v2 }
 0x68e   :  { %12003 = vmatprep.subr.bf16.mxu0 %v12002_v39 }
 0x68f   :  { %12005 = vmatpush1.bf16.msra.mxu0 %v12004_v5  ;;  %v3557_v34 = vsel %vm832_vm2, %v13230_v15, %v13215_v18  ;;  %v3558_v60 = vsel %vm832_vm2, %v13231_v36, %v13216_v35  ;;  %v3559_v45 = vsel %vm832_vm2, %v13235_v3, %v13225_v6  ;;  %v3560_v31 = vsel %vm832_vm2, %v13236_v27, %v13226_v21  ;;  %v15846_v35 = vld [vmem:[%s17977_s5 + $0xa8] sm:$0xff]  ;;  %v15860_v21 = vld [vmem:[%s17977_s5 + $0xb0] sm:$0xff] }
 0x690   :  { %v15836_v59 = vpop.permute.xlu1 %13238  ;;  %v15838_v28 = vpop.permute.xlu0 %13243  ;;  %v12014_v19 = vpack.c.bf16 %v3558_v60, %v3557_v34  ;;  %v12018_v56 = vpack.c.bf16 %v3560_v31, %v3559_v45 }
 0x692   :  { %9551 = vmatmul.mubr.msk.f32.vlgmr.msra.gmra.mrb[76].mxu0 %vm249_vm0, %v15826_v63  ;;  %12015 = vmatprep.subr.bf16.mxu0 %v12014_v19 }
 0x693   :  { %12017 = vmatpush3.bf16.msra.mxu0 %v12014_v19  ;;  %3664 = vmatprep.mubr.f32.mxu0 %v18243_v50 }
 0x694   :  { %v15848_v18 = vpop.permute.xlu1 %13248  ;;  %v15850_v51 = vpop.permute.xlu0 %13253  ;;  %12019 = vmatprep.subr.bf16.mxu0 %v12018_v56 }
 0x696   :  { %9552 = vmatmul.mubr.msk.f32.gmra.mrb[78].mxu0 %vm249_vm0, %v15846_v35 }
 0x697   :  { %12021 = vmatpush3.bf16.msra.mxu0 %v12018_v56  ;;  %3670 = vmatprep.mubr.f32.mxu0 %v18243_v50 }
 0x698   :  { %v15862_v6 = vpop.permute.xlu1 %13258  ;;  %v15864_v58 = vpop.permute.xlu0 %13263  ;;  %12023 = vmatprep.subr.bf16.mxu0 %v12022_v52 }
 0x69a   :  { %9553 = vmatmul.mubr.msk.f32.gmra.mrb[80].mxu0 %vm249_vm0, %v15860_v21 }
 0x69b   :  { %3676 = vmatprep.mubr.f32.mxu0 %v18243_v50 }
 0x69c   :  { %v13269_v10 = vpop.permute.xlu1 %13268  ;;  %v15874_v42 = vpop.permute.xlu0 %13273 }
 0x69d   :  { %v13271_v33 = vunpack.i.h.bf16 %v13269_v10  ;;  %v13270_v2 = vunpack.i.l.bf16 %v13269_v10 }
 0x69e   :  { %9554 = vmatmul.mubr.msk.f32.gmra.mrb[82].mxu0 %vm249_vm0, %v15872_v29 }
 0x69f   :  { %v3566_v39 = vsel %vm832_vm2, %v13206_v43, %v13271_v33  ;;  %v3565_v5 = vsel %vm832_vm2, %v13205_v23, %v13270_v2  ;;  %11175 = vmatprep.mubr.msk.f32.mxu0 %vm249_vm0, %v15826_v63  ;;  %v3561_v34 = vsel %vm832_vm2, %v13270_v2, %v13230_v15  ;;  %v3562_v60 = vsel %vm832_vm2, %v13271_v33, %v13231_v36 }
 0x6a0   :  { %v12008_v45 = vpack.c.bf16 %v3566_v39, %v3565_v5  ;;  %v13279_v31 = vpop.permute.xlu1 %13278  ;;  %v15892_v19 = vpop.permute.xlu0 %13283  ;;  %v12006_v56 = vpack.c.bf16 %v3562_v60, %v3561_v34  ;;  %v12026_v23 = vpack.c.bf16 %v15636_v0, %v15649_v30  ;;  %v13241_v5 = vunpack.i.h.bf16 %v15836_v59 }
 0x6a1   :  { %v13281_v43 = vunpack.i.h.bf16 %v13279_v31  ;;  %v13280_v52 = vunpack.i.l.bf16 %v13279_v31  ;;  %v13240_v34 = vunpack.i.l.bf16 %v15836_v59  ;;  %v18089_v60 = vunpack.i.h.bf16 %v15838_v28 }
 0x6a2   :  { %12007 = vmatprep.subr.bf16.mxu1 %v12006_v56  ;;  %11176 = vmatmul.mubr.msk.f32.vlgmr.msra.gmra.mrb[84].mxu0 %vm249_vm0, %v15846_v35  ;;  %v12030_v59 = vpack.c.bf16 %v15658_v40, %v15670_v38 }
 0x6a3   :  { %v3567_v36 = vsel %vm832_vm2, %v13220_v54, %v13280_v52  ;;  %v3568_v15 = vsel %vm832_vm2, %v13221_v57, %v13281_v43  ;;  %12025 = vmatpush1.bf16.msra.mxu0 %v12024_v55  ;;  %12009 = vmatpush1.bf16.msra.mxu1 %v12008_v45  ;;  %v3563_v10 = vsel %vm832_vm2, %v13280_v52, %v13235_v3  ;;  %v18090_v45 = vunpack.i.l.bf16 %v15838_v28  ;;  %v15950_v55 = vld [vmem:[%s17977_s5 + $0xe8] sm:$0xff] }
 0x6a4   :  { %12027 = vmatprep.subr.bf16.mxu0 %v12026_v23  ;;  %v15910_v33 = vpop.permute.xlu1 %13288  ;;  %v15912_v2 = vpop.permute.xlu0 %13293  ;;  %11178 = vmatprep.mubr.msk.f32.mxu0 %vm249_vm0, %v15860_v21  ;;  %v3564_v54 = vsel %vm832_vm2, %v13281_v43, %v13236_v27  ;;  %v12012_v13 = vpack.c.bf16 %v3568_v15, %v3567_v36  ;;  %v12028_v57 = vpack.c.bf16 %v15589_v7, %v15586_v37  ;;  %v15932_v27 = vld [vmem:[%s17977_s5 + $0xe0] sm:$0xff] }
 0x6a5   :  { %v12010_v39 = vpack.c.bf16 %v3564_v54, %v3563_v10  ;;  %v12038_v3 = vpack.c.bf16 %v15627_v32, %v15631_v24  ;;  %v12042_v43 = vpack.c.bf16 %v15645_v47, %v15653_v14  ;;  %v12032_v52 = vpack.c.bf16 %v15695_v22, %v15699_v41 }
 0x6a6   :  { %11179 = vmatmul.mubr.msk.f32.gmra.mrb[86].mxu0 %vm249_vm0, %v15872_v29  ;;  %v4184_v23 = vsel %vm1447_vm3, %v13240_v34, %v18090_v45  ;;  %v4185_v36 = vsel %vm1447_vm3, %v13241_v5, %v18089_v60  ;;  %v12034_v54 = vpack.c.bf16 %v15661_v17, %v15673_v20  ;;  %v13276_v60 = vunpack.i.h.bf16 %v15874_v42 }
 0x6a7   :  { %12029 = vmatpush1.bf16.msra.mxu0 %v12028_v57  ;;  %3933 = vmatprep.mubr.f32.mxu0 %v18243_v50  ;;  %v15977_v57 = vld [vmem:[%s17977_s5 + $0xf0] sm:$0xff]  ;;  %v13275_v45 = vunpack.i.l.bf16 %v15874_v42  ;;  %v18306_v17 = vunpack.i.l.bf16 %v15838_v28 }
 0x6a8   :  { %12011 = vmatprep.subr.bf16.mxu1 %v12010_v39  ;;  %12039 = vmatprep.subr.bf16.mxu0 %v12038_v3  ;;  %v15934_v31 = vpop.permute.xlu1 %13298  ;;  %v15936_v56 = vpop.permute.xlu0 %13303  ;;  %v13251_v39 = vunpack.i.h.bf16 %v15848_v18 }
 0x6a9   :  { %12013 = vmatpush1.bf16.msra.mxu1 %v12012_v13  ;;  %v12046_v13 = vpack.c.bf16 %v4185_v36, %v4184_v23  ;;  %v13260_v23 = vunpack.i.l.bf16 %v15862_v6 }
 0x6aa   :  { %12031 = vmatprep.subr.bf16.mxu1 %v12030_v59  ;;  %9563 = vmatmul.mubr.msk.f32.vlgmr.msra.gmra.mrb[76].mxu0 %vm249_vm0, %v15932_v27  ;;  %v4189_v36 = vsel %vm1447_vm3, %v13251_v39, %v13241_v5  ;;  %v13266_v5 = vunpack.i.h.bf16 %v15864_v58 }
 0x6ab   :  { %12041 = vmatpush3.bf16.msra.mxu0 %v12038_v3  ;;  %3939 = vmatprep.mubr.f32.mxu0 %v18243_v50  ;;  %v13250_v3 = vunpack.i.l.bf16 %v15848_v18 }
 0x6ac   :  { %9555 = vmatmul.mubr.msk.f32.vlgmr.msra.gmra.mrb[44].mxu1 %vm249_vm0, %v15826_v63  ;;  %12043 = vmatprep.subr.bf16.mxu0 %v12042_v43  ;;  %v15962_v15 = vpop.permute.xlu1 %13308  ;;  %v15964_v10 = vpop.permute.xlu0 %13313  ;;  %v12036_v63 = vpack.c.bf16 %v15706_v1, %v15711_v62 }
 0x6ad   :  { %12033 = vmatpush1.bf16.msra.mxu1 %v12032_v52  ;;  %3753 = vmatprep.mubr.f32.mxu1 %v18243_v50  ;;  %v13261_v52 = vunpack.i.h.bf16 %v15862_v6  ;;  %v4188_v18 = vsel %vm1447_vm3, %v13250_v3, %v13240_v34  ;;  %v13255_v6 = vunpack.i.l.bf16 %v15850_v51  ;;  %v13265_v34 = vunpack.i.l.bf16 %v15864_v58 }
 0x6ae   :  { %12035 = vmatprep.subr.bf16.mxu1 %v12034_v54  ;;  %9564 = vmatmul.mubr.msk.f32.gmra.mrb[78].mxu0 %vm249_vm0, %v15950_v55  ;;  %v13256_v54 = vunpack.i.h.bf16 %v15850_v51  ;;  %v12048_v40 = vpack.c.bf16 %v4189_v36, %v4188_v18  ;;  %v13285_v18 = vunpack.i.l.bf16 %v15892_v19 }
 0x6af   :  { %12045 = vmatpush3.bf16.msra.mxu0 %v12042_v43  ;;  %3945 = vmatprep.mubr.f32.mxu0 %v18243_v50  ;;  %v4186_v51 = vsel %vm1447_vm3, %v13255_v6, %v13260_v23 }
 0x6b0   :  { %9556 = vmatmul.mubr.msk.f32.gmra.mrb[46].mxu1 %vm249_vm0, %v15846_v35  ;;  %12047 = vmatprep.subr.bf16.mxu0 %v12046_v13  ;;  %v15983_v59 = vpop.permute.xlu1 %13318  ;;  %v15985_v43 = vpop.permute.xlu0 %13328  ;;  %v15996_v35 = vld [vmem:[%s17977_s5 + $0xf8] sm:$0xff] }
 0x6b1   :  { %12037 = vmatpush1.bf16.msra.mxu1 %v12036_v63  ;;  %3759 = vmatprep.mubr.f32.mxu1 %v18243_v50 }
 0x6b2   :  { %9565 = vmatmul.mubr.msk.f32.gmra.mrb[80].mxu0 %vm249_vm0, %v15977_v57 }
 0x6b3   :  { %3951 = vmatprep.mubr.f32.mxu0 %v18243_v50 }
 0x6b4   :  { %9557 = vmatmul.mubr.msk.f32.gmra.mrb[48].mxu1 %vm249_vm0, %v15860_v21  ;;  %v13324_v13 = vpop.permute.xlu1 %13323  ;;  %v16006_v63 = vpop.permute.xlu0 %13338  ;;  %v4187_v21 = vsel %vm1447_vm3, %v13256_v54, %v13261_v52 }
 0x6b5   :  { %v13326_v20 = vunpack.i.h.bf16 %v13324_v13  ;;  %v13325_v62 = vunpack.i.l.bf16 %v13324_v13  ;;  %3765 = vmatprep.mubr.f32.mxu1 %v18243_v50  ;;  %v18307_v13 = vunpack.i.h.bf16 %v15838_v28 }
 0x6b6   :  { %9566 = vmatmul.mubr.msk.f32.gmra.mrb[82].mxu0 %vm249_vm0, %v15996_v35 }
 0x6b7   :  { %v4180_v42 = vsel %vm1447_vm3, %v18306_v17, %v13325_v62  ;;  %v4181_v1 = vsel %vm1447_vm3, %v18307_v13, %v13326_v20  ;;  %11189 = vmatprep.mubr.msk.f32.mxu0 %vm249_vm0, %v15932_v27  ;;  %v4176_v58 = vsel %vm1447_vm3, %v13325_v62, %v13275_v45  ;;  %v4177_v38 = vsel %vm1447_vm3, %v13326_v20, %v13276_v60 }
 0x6b8   :  { %9558 = vmatmul.mubr.msk.f32.gmra.mrb[50].mxu1 %vm249_vm0, %v15872_v29  ;;  %v16035_v41 = vpop.permute.xlu1 %13333  ;;  %v16037_v17 = vpop.permute.xlu0 %13343  ;;  %v12054_v28 = vpack.c.bf16 %v4177_v38, %v4176_v58  ;;  %v12056_v22 = vpack.c.bf16 %v4181_v1, %v4180_v42  ;;  %v4190_v13 = vsel %vm1447_vm3, %v13265_v34, %v13255_v6  ;;  %v4191_v62 = vsel %vm1447_vm3, %v13266_v5, %v13256_v54 }
 0x6b9   :  { %4022 = vmatprep.mubr.f32.mxu1 %v18243_v50  ;;  %v12050_v20 = vpack.c.bf16 %v4187_v21, %v4186_v51  ;;  %v4172_v38 = vsel %vm1447_vm3, %v13275_v45, %v13250_v3  ;;  %v4173_v1 = vsel %vm1447_vm3, %v13276_v60, %v13251_v39  ;;  %v13286_v29 = vunpack.i.h.bf16 %v15892_v19  ;;  %v16073_v21 = vld [vmem:[%s17977_s5 + $0xc0] sm:$0xff] }
 0x6ba   :  { %11190 = vmatmul.mubr.msk.f32.vlgmr.msra.gmra.mrb[84].mxu0 %vm249_vm0, %v15950_v55  ;;  %12055 = vmatprep.subr.bf16.mxu1 %v12054_v28  ;;  %v13291_v45 = vunpack.i.h.bf16 %v15910_v33  ;;  %v13290_v60 = vunpack.i.l.bf16 %v15910_v33  ;;  %v13296_v39 = vunpack.i.h.bf16 %v15912_v2  ;;  %v12062_v19 = vpack.c.bf16 %v4173_v1, %v4172_v38 }
 0x6bb   :  { %12049 = vmatpush1.bf16.msra.mxu0 %v12048_v40  ;;  %11192 = vmatprep.mubr.msk.f32.mxu0 %vm249_vm0, %v15977_v57  ;;  %v12052_v40 = vpack.c.bf16 %v4191_v62, %v4190_v13  ;;  %v4174_v58 = vsel %vm1447_vm3, %v13285_v18, %v13265_v34  ;;  %v4175_v28 = vsel %vm1447_vm3, %v13286_v29, %v13266_v5 }
 0x6bc   :  { %9567 = vmatmul.mubr.msk.f32.vlgmr.msra.gmra.mrb[44].mxu1 %vm249_vm0, %v15932_v27  ;;  %12051 = vmatprep.subr.bf16.mxu0 %v12050_v20  ;;  %v13349_v36 = vpop.permute.xlu1 %13348  ;;  %v16056_v54 = vpop.permute.xlu0 %13353  ;;  %v13295_v27 = vunpack.i.l.bf16 %v15912_v2  ;;  %v12066_v62 = vpack.c.bf16 %v4175_v28, %v4174_v58  ;;  %v16096_v20 = vld [vmem:[%s17977_s5 + $0xc8] sm:$0xff]  ;;  %v4541_v34 = vsel %vm1808_vm4, %v13291_v45, %v13296_v39  ;;  %v18100_v58 = vunpack.i.h.bf16 %v16006_v63 }
 0x6bd   :  { %12057 = vmatpush1.bf16.msra.mxu1 %v12056_v22  ;;  %v13351_v6 = vunpack.i.h.bf16 %v13349_v36  ;;  %v13350_v51 = vunpack.i.l.bf16 %v13349_v36  ;;  %4028 = vmatprep.mubr.f32.mxu1 %v18243_v50  ;;  %v18101_v36 = vunpack.i.l.bf16 %v15983_v59  ;;  %v18099_v28 = vunpack.i.l.bf16 %v16006_v63 }
 0x6be   :  { %11193 = vmatmul.mubr.msk.f32.gmra.mrb[86].mxu0 %vm249_vm0, %v15996_v35  ;;  %v4540_v5 = vsel %vm1808_vm4, %v13290_v60, %v13295_v27 }
 0x6bf   :  { %v4182_v3 = vsel %vm1447_vm3, %v13260_v23, %v13350_v51  ;;  %v4183_v22 = vsel %vm1447_vm3, %v13261_v52, %v13351_v6  ;;  %12053 = vmatpush1.bf16.msra.mxu0 %v12052_v40  ;;  %4273 = vmatprep.mubr.f32.mxu0 %v18243_v50  ;;  %v4178_v42 = vsel %vm1447_vm3, %v13350_v51, %v13285_v18 }
 0x6c0   :  { %9568 = vmatmul.mubr.msk.f32.gmra.mrb[46].mxu1 %vm249_vm0, %v15950_v55  ;;  %12063 = vmatprep.subr.bf16.mxu0 %v12062_v19  ;;  %v16079_v2 = vpop.permute.xlu1 %13358  ;;  %v16081_v23 = vpop.permute.xlu0 %13363  ;;  %v4179_v52 = vsel %vm1447_vm3, %v13351_v6, %v13286_v29  ;;  %v12060_v13 = vpack.c.bf16 %v4183_v22, %v4182_v3  ;;  %v12070_v51 = vpack.c.bf16 %v4541_v34, %v4540_v5 }
 0x6c1   :  { %4034 = vmatprep.mubr.f32.mxu1 %v18243_v50  ;;  %v12058_v55 = vpack.c.bf16 %v4179_v52, %v4178_v42  ;;  %v16121_v42 = vld [vmem:[%s17977_s5 + $0xd0] sm:$0xff]  ;;  %v13321_v52 = vunpack.i.h.bf16 %v15983_v59 }
 0x6c2   :  { %9579 = vmatmul.mubr.msk.f32.vlgmr.msra.gmra.mrb[76].mxu0 %vm249_vm0, %v16073_v21 }
 0x6c3   :  { %12065 = vmatpush3.bf16.msra.mxu0 %v12062_v19  ;;  %4279 = vmatprep.mubr.f32.mxu0 %v18243_v50  ;;  %v13301_v19 = vunpack.i.h.bf16 %v15934_v31 }
 0x6c4   :  { %9569 = vmatmul.mubr.msk.f32.gmra.mrb[48].mxu1 %vm249_vm0, %v15977_v57  ;;  %12059 = vmatprep.subr.bf16.mxu1 %v12058_v55  ;;  %v13369_v38 = vpop.permute.xlu1 %13368  ;;  %v13374_v1 = vpop.permute.xlu0 %13373  ;;  %v13300_v57 = vunpack.i.l.bf16 %v15934_v31  ;;  %v13336_v31 = vunpack.i.h.bf16 %v16035_v41 }
 0x6c5   :  { %12061 = vmatpush1.bf16.msra.mxu1 %v12060_v13  ;;  %12067 = vmatprep.subr.bf16.mxu0 %v12066_v62  ;;  %v13371_v29 = vunpack.i.h.bf16 %v13369_v38  ;;  %v13370_v18 = vunpack.i.l.bf16 %v13369_v38  ;;  %v13376_v40 = vunpack.i.h.bf16 %v13374_v1  ;;  %v13375_v6 = vunpack.i.l.bf16 %v13374_v1 }
 0x6c6   :  { %4040 = vmatprep.mubr.f32.mxu1 %v18243_v50  ;;  %9580 = vmatmul.mubr.msk.f32.gmra.mrb[78].mxu0 %vm249_vm0, %v16096_v20 }
 0x6c7   :  { %v4536_v3 = vsel %vm1808_vm4, %v13295_v27, %v13370_v18  ;;  %v4537_v22 = vsel %vm1808_vm4, %v13296_v39, %v13371_v29  ;;  %12069 = vmatpush3.bf16.msra.mxu0 %v12066_v62  ;;  %v4532_v39 = vsel %vm1808_vm4, %v13370_v18, %v18101_v36  ;;  %4285 = vmatprep.mubr.f32.mxu0 %v18243_v50  ;;  %v13305_v36 = vunpack.i.l.bf16 %v15936_v56 }
 0x6c8   :  { %9570 = vmatmul.mubr.msk.f32.gmra.mrb[50].mxu1 %vm249_vm0, %v15996_v35  ;;  %12071 = vmatprep.subr.bf16.mxu0 %v12070_v51  ;;  %v16128_v27 = vpop.permute.xlu1 %13378  ;;  %v16130_v13 = vpop.permute.xlu0 %13383  ;;  %v12080_v55 = vpack.c.bf16 %v4537_v22, %v4536_v3  ;;  %v4533_v38 = vsel %vm1808_vm4, %v13371_v29, %v13321_v52  ;;  %v4534_v1 = vsel %vm1808_vm4, %v13375_v6, %v18099_v28  ;;  %v13311_v51 = vunpack.i.h.bf16 %v15962_v15  ;;  %v9578_v29 = vld [vmem:[%s17977_s5 + $0xd8] sm:$0xff] }
 0x6c9   :  { %v13380_v5 = vunpack.i.l.bf16 %v16128_v27  ;;  %4362 = vmatprep.mubr.f32.mxu1 %v18243_v50  ;;  %v13385_v35 = vunpack.i.l.bf16 %v16130_v13  ;;  %v4535_v18 = vsel %vm1808_vm4, %v13376_v40, %v18100_v58  ;;  %v13310_v3 = vunpack.i.l.bf16 %v15962_v15 }
 0x6ca   :  { %9581 = vmatmul.mubr.msk.f32.gmra.mrb[80].mxu0 %vm249_vm0, %v16121_v42  ;;  %v12078_v22 = vpack.c.bf16 %v4533_v38, %v4532_v39  ;;  %v4544_v28 = vsel %vm1808_vm4, %v13300_v57, %v13290_v60  ;;  %v13306_v58 = vunpack.i.h.bf16 %v15936_v56  ;;  %v13316_v15 = vunpack.i.h.bf16 %v15964_v10 }
 0x6cb   :  { %4291 = vmatprep.mubr.f32.mxu0 %v18243_v50  ;;  %v13315_v39 = vunpack.i.l.bf16 %v15964_v10  ;;  %v4539_v38 = vsel %vm1808_vm4, %v13311_v51, %v13376_v40  ;;  %v4538_v62 = vsel %vm1808_vm4, %v13310_v3, %v13375_v6  ;;  %v12082_v34 = vpack.c.bf16 %v4535_v18, %v4534_v1 }
 0x6cc   :  { %9583 = vmatmul.mubr.msk.f32.vlgmr.msra.gmra.mrb[44].mxu1 %vm249_vm0, %v16073_v21  ;;  %12079 = vmatprep.subr.bf16.mxu1 %v12078_v22  ;;  %v4545_v56 = vsel %vm1808_vm4, %v13301_v19, %v13291_v45  ;;  %v4892_v10 = vsel %vm2169_vm5, %v13380_v5, %v13385_v35  ;;  %v18308_v60 = vunpack.i.h.bf16 %v16130_v13  ;;  %v18309_v40 = vunpack.i.h.bf16 %v16128_v27 }
 0x6cd   :  { %4368 = vmatprep.mubr.f32.mxu1 %v18243_v50  ;;  %12081 = vmatpush1.bf16.msra.mxu1 %v12080_v55  ;;  %v4542_v45 = vsel %vm1808_vm4, %v13305_v36, %v13310_v3  ;;  %v4543_v6 = vsel %vm1808_vm4, %v13306_v58, %v13311_v51  ;;  %v12084_v55 = vpack.c.bf16 %v4539_v38, %v4538_v62 }
 0x6ce   :  { %9582 = vmatmul.mubr.msk.f32.gmra.mrb[82].mxu0 %vm249_vm0, %v9578_v29  ;;  %v4893_v33 = vsel %vm2169_vm5, %v18309_v40, %v18308_v60  ;;  %12083 = vmatprep.subr.bf16.mxu1 %v12082_v34  ;;  %v12072_v1 = vpack.c.bf16 %v4545_v56, %v4544_v28  ;;  %v4546_v18 = vsel %vm1808_vm4, %v13315_v39, %v13305_v36  ;;  %v16209_v60 = vpop.permute.xlu0 %13393  ;;  %v18310_v36 = vunpack.i.l.bf16 %v15983_v59 }
 0x6cf   :  { %11203 = vmatprep.mubr.msk.f32.mxu0 %vm249_vm0, %v16073_v21  ;;  %v4547_v34 = vsel %vm1808_vm4, %v13316_v15, %v13306_v58  ;;  %v12102_v22 = vpack.c.bf16 %v4893_v33, %v4892_v10  ;;  %v13389_v21 = vpop.permute.xlu1 %13388  ;;  %v12074_v62 = vpack.c.bf16 %v4543_v6, %v4542_v45  ;;  %v4549_v28 = vsel %vm1808_vm4, %v13321_v52, %v13301_v19 }
 0x6d0   :  { %9584 = vmatmul.mubr.msk.f32.gmra.mrb[46].mxu1 %vm249_vm0, %v16096_v20  ;;  %v4548_v58 = vsel %vm1808_vm4, %v18310_v36, %v13300_v57  ;;  %v12076_v51 = vpack.c.bf16 %v4547_v34, %v4546_v18  ;;  %v13390_v3 = vunpack.i.l.bf16 %v13389_v21  ;;  %v13396_v38 = vunpack.i.h.bf16 %v16209_v60  ;;  %v9591_v57 = vld [vmem:[%s17977_s5 + $0x100] sm:$0xff]  ;;  %v9593_v36 = vld [vmem:[%s17977_s5 + $0x110] sm:$0xff] }
 0x6d1   :  { %4374 = vmatprep.mubr.f32.mxu1 %v18243_v50  ;;  %12085 = vmatpush1.bf16.msra.mxu1 %v12084_v55  ;;  %v13395_v56 = vunpack.i.l.bf16 %v16209_v60  ;;  %v13335_v59 = vunpack.i.l.bf16 %v16035_v41  ;;  %v12086_v19 = vpack.c.bf16 %v4549_v28, %v4548_v58  ;;  %v18311_v52 = vunpack.i.l.bf16 %v16006_v63  ;;  %v9592_v55 = vld [vmem:[%s17977_s5 + $0x108] sm:$0xff]  ;;  %v9610_v60 = vld [vmem:[%s17977_s5 + $0x138] sm:$0xff] }
 0x6d2   :  { %11204 = vmatmul.mubr.msk.f32.vlgmr.msra.gmra.mrb[84].mxu0 %vm249_vm0, %v16096_v20  ;;  %12103 = vmatprep.subr.bf16.mxu1 %v12102_v22  ;;  %v13391_v20 = vunpack.i.h.bf16 %v13389_v21  ;;  %v18313_v33 = vunpack.i.h.bf16 %v16128_v27  ;;  %v13346_v58 = vunpack.i.h.bf16 %v16037_v17  ;;  %v13345_v28 = vunpack.i.l.bf16 %v16037_v17 }
 0x6d3   :  { %12073 = vmatpush1.bf16.msra.mxu0 %v12072_v1  ;;  %11206 = vmatprep.mubr.msk.f32.mxu0 %vm249_vm0, %v16121_v42  ;;  %v4550_v10 = vsel %vm1808_vm4, %v18311_v52, %v13315_v39  ;;  %v4896_v40 = vsel %vm2169_vm5, %v13335_v59, %v13380_v5  ;;  %v13331_v39 = vunpack.i.h.bf16 %v15985_v43  ;;  %v13361_v5 = vunpack.i.h.bf16 %v16079_v2 }
 0x6d4   :  { %9585 = vmatmul.mubr.msk.f32.gmra.mrb[48].mxu1 %vm249_vm0, %v16121_v42  ;;  %12075 = vmatprep.subr.bf16.mxu0 %v12074_v62  ;;  %v18312_v42 = vunpack.i.h.bf16 %v16006_v63  ;;  %v4897_v45 = vsel %vm2169_vm5, %v13336_v31, %v18313_v33  ;;  %v13330_v63 = vunpack.i.l.bf16 %v15985_v43  ;;  %v4895_v27 = vsel %vm2169_vm5, %v13391_v20, %v13396_v38 }
 0x6d5   :  { %4380 = vmatprep.mubr.f32.mxu1 %v18243_v50  ;;  %v12104_v43 = vpack.c.bf16 %v4897_v45, %v4896_v40  ;;  %v4901_v18 = vsel %vm2169_vm5, %v13331_v39, %v13336_v31  ;;  %v4899_v34 = vsel %vm2169_vm5, %v13361_v5, %v13391_v20  ;;  %v9594_v20 = vld [vmem:[%s17977_s5 + $0x118] sm:$0xff]  ;;  %v13355_v31 = vunpack.i.l.bf16 %v16056_v54 }
 0x6d6   :  { %11207 = vmatmul.mubr.msk.f32.gmra.mrb[86].mxu0 %vm249_vm0, %v9578_v29  ;;  %v4551_v41 = vsel %vm1808_vm4, %v18312_v42, %v13316_v15  ;;  %v4894_v15 = vsel %vm2169_vm5, %v13390_v3, %v13395_v56  ;;  %v4900_v1 = vsel %vm2169_vm5, %v13330_v63, %v13335_v59  ;;  %v4904_v17 = vsel %vm2169_vm5, %v13345_v28, %v13330_v63 }
 0x6d7   :  { %12077 = vmatpush1.bf16.msra.mxu0 %v12076_v51  ;;  %4633 = vmatprep.mubr.f32.mxu0 %v18243_v50  ;;  %v12090_v6 = vpack.c.bf16 %v4551_v41, %v4550_v10  ;;  %v12106_v22 = vpack.c.bf16 %v4895_v27, %v4894_v15  ;;  %v12094_v21 = vpack.c.bf16 %v4901_v18, %v4900_v1  ;;  %v18314_v51 = vld [vmem:[#allocation6_spill] sm:$0xff]  ;;  %v13365_v52 = vunpack.i.l.bf16 %v16081_v23  ;;  %v18316_v27 = vld [vmem:[#allocation7_spill] sm:$0xff]  ;;  %v18322_v18 = vld [vmem:[#allocation20_spill] sm:$0xff] }
 0x6d8   :  { %9586 = vmatmul.mubr.msk.f32.gmra.mrb[50].mxu1 %vm249_vm0, %v9578_v29  ;;  %12087 = vmatprep.subr.bf16.mxu0 %v12086_v19  ;;  %v13360_v29 = vunpack.i.l.bf16 %v16079_v2  ;;  %v4905_v59 = vsel %vm2169_vm5, %v13346_v58, %v13331_v39  ;;  %v9607_v41 = vld [vmem:[%s17977_s5 + $0x120] sm:$0xff]  ;;  %v4908_v33 = vsel %vm2169_vm5, %v13385_v35, %v13345_v28  ;;  %v18315_v45 = vunpack.i.h.bf16 %v16130_v13  ;;  %v9608_v15 = vld [vmem:[%s17977_s5 + $0x128] sm:$0xff]  ;;  %v18330_v28 = vld [vmem:[#allocation36_spill] sm:$0xff] }
 0x6d9   :  { %4722 = vmatprep.mubr.f32.mxu1 %v18243_v50  ;;  %v12096_v42 = vpack.c.bf16 %v4905_v59, %v4904_v17  ;;  %v4910_v13 = vsel %vm2169_vm5, %v13395_v56, %v13365_v52  ;;  %v18319_v56 = vld [vmem:[#allocation14_spill] sm:$0xff] }
 0x6da   :  { %9595 = vmatmul.mubr.msk.f32.vlgmr.msra.gmra.mrb[76].mxu0 %vm249_vm0, %v9591_v57  ;;  %v4898_v2 = vsel %vm2169_vm5, %v13360_v29, %v13390_v3  ;;  %v13356_v3 = vunpack.i.h.bf16 %v16056_v54  ;;  %v4902_v10 = vsel %vm2169_vm5, %v13355_v31, %v13360_v29  ;;  %v4909_v39 = vsel %vm2169_vm5, %v18315_v45, %v13346_v58  ;;  %v18321_v1 = vld [vmem:[#allocation18_spill] sm:$0xff] }
 0x6db   :  { %12089 = vmatpush3.bf16.msra.mxu0 %v12086_v19  ;;  %4639 = vmatprep.mubr.f32.mxu0 %v18243_v50  ;;  %v12108_v62 = vpack.c.bf16 %v4899_v34, %v4898_v2  ;;  %v13366_v19 = vunpack.i.h.bf16 %v16081_v23  ;;  %v4906_v23 = vsel %vm2169_vm5, %v13365_v52, %v13355_v31  ;;  %v12110_v35 = vpack.c.bf16 %v4909_v39, %v4908_v33  ;;  %v18323_v2 = vld [vmem:[#allocation22_spill] sm:$0xff]  ;;  %v18324_v34 = vld [vmem:[#allocation24_spill] sm:$0xff] }
 0x6dc   :  { %9599 = vmatmul.mubr.msk.f32.vlgmr.msra.gmra.mrb[44].mxu1 %vm249_vm0, %v9591_v57  ;;  %12091 = vmatprep.subr.bf16.mxu0 %v12090_v6  ;;  %v4903_v54 = vsel %vm2169_vm5, %v13356_v3, %v13361_v5  ;;  %v18317_v5 = vld [vmem:[#allocation10_spill] sm:$0xff] }
 0x6dd   :  { %12105 = vmatpush1.bf16.msra.mxu1 %v12104_v43  ;;  %4728 = vmatprep.mubr.f32.mxu1 %v18243_v50  ;;  %v12098_v40 = vpack.c.bf16 %v4903_v54, %v4902_v10  ;;  %v4911_v29 = vsel %vm2169_vm5, %v13396_v38, %v13366_v19  ;;  %v18318_v43 = vld [vmem:[#allocation12_spill] sm:$0xff]  ;;  %v18329_v58 = vld [vmem:[#allocation34_spill] sm:$0xff]  ;;  %v16412_v52 = vpop.permute.xlu1 %5219 }
 0x6de   :  { %12107 = vmatprep.subr.bf16.mxu1 %v12106_v22  ;;  %9596 = vmatmul.mubr.msk.f32.gmra.mrb[78].mxu0 %vm249_vm0, %v9592_v55  ;;  %v18320_v38 = vld [vmem:[#allocation16_spill] sm:$0xff]  ;;  %v18325_v22 = vld [vmem:[#allocation26_spill] sm:$0xff] }
 0x6df   :  { %12093 = vmatpush3.bf16.msra.mxu0 %v12090_v6  ;;  %4645 = vmatprep.mubr.f32.mxu0 %v18243_v50  ;;  %v9609_v6 = vld [vmem:[%s17977_s5 + $0x130] sm:$0xff] }
 0x6e0   :  { %9600 = vmatmul.mubr.msk.f32.gmra.mrb[46].mxu1 %vm249_vm0, %v9592_v55  ;;  %12095 = vmatprep.subr.bf16.mxu0 %v12094_v21  ;;  %v18326_v21 = vld [vmem:[#allocation28_spill] sm:$0xff] }
 0x6e1   :  { %12109 = vmatpush1.bf16.msra.mxu1 %v12108_v62  ;;  %4734 = vmatprep.mubr.f32.mxu1 %v18243_v50  ;;  %v18327_v62 = vld [vmem:[#allocation30_spill] sm:$0xff] }
 0x6e2   :  { %9597 = vmatmul.mubr.msk.f32.gmra.mrb[80].mxu0 %vm249_vm0, %v9593_v36  ;;  %12119 = vmatprep.subr.bf16.mxu1 %v18314_v51 }
 0x6e3   :  { %4651 = vmatprep.mubr.f32.mxu0 %v18243_v50 }
 0x6e4   :  { %9601 = vmatmul.mubr.msk.f32.gmra.mrb[48].mxu1 %vm249_vm0, %v9593_v36 }
 0x6e5   :  { %4740 = vmatprep.mubr.f32.mxu1 %v18243_v50 }
 0x6e6   :  { %9598 = vmatmul.mubr.msk.f32.gmra.mrb[82].mxu0 %vm249_vm0, %v9594_v20 }
 0x6e7   :  { %11217 = vmatprep.mubr.msk.f32.mxu0 %vm249_vm0, %v9591_v57  ;;  %v4907_v57 = vsel %vm2169_vm5, %v13366_v19, %v13356_v3 }
 0x6e8   :  { %9602 = vmatmul.mubr.msk.f32.gmra.mrb[50].mxu1 %vm249_vm0, %v9594_v20  ;;  %v12100_v63 = vpack.c.bf16 %v4907_v57, %v4906_v23 }
 0x6e9   :  { %5082 = vmatprep.mubr.f32.mxu1 %v18243_v50 }
 0x6ea   :  { %11218 = vmatmul.mubr.msk.f32.vlgmr.msra.gmra.mrb[84].mxu0 %vm249_vm0, %v9592_v55  ;;  %v12114_v55 = vpack.c.bf16 %v4911_v29, %v4910_v13  ;;  %v18337_v13 = vld [vmem:[#allocation11_spill] sm:$0xff] }
 0x6eb   :  { %12097 = vmatpush1.bf16.msra.mxu0 %v12096_v42  ;;  %11220 = vmatprep.mubr.msk.f32.mxu0 %vm249_vm0, %v9593_v36  ;;  %v18328_v36 = vld [vmem:[#allocation32_spill] sm:$0xff] }
 0x6ec   :  { %9615 = vmatmul.mubr.msk.f32.vlgmr.msra.gmra.mrb[44].mxu1 %vm249_vm0, %v9607_v41  ;;  %12099 = vmatprep.subr.bf16.mxu0 %v12098_v40  ;;  %v16425_v40 = vpop.permute.xlu0 %5224 }
 0x6ed   :  { %5088 = vmatprep.mubr.f32.mxu1 %v18243_v50  ;;  %12121 = vmatpush3.bf16.msra.mxu1 %v18316_v27 }
 0x6ee   :  { %11221 = vmatmul.mubr.msk.f32.gmra.mrb[86].mxu0 %vm249_vm0, %v9594_v20  ;;  %12123 = vmatprep.subr.bf16.mxu1 %v18317_v5  ;;  %v18331_v20 = vld [vmem:[#allocation8_spill] sm:$0xff] }
 0x6ef   :  { %12101 = vmatpush1.bf16.msra.mxu0 %v12100_v63  ;;  %4993 = vmatprep.mubr.f32.mxu0 %v18243_v50  ;;  %v18335_v63 = vld [vmem:[#allocation9_spill] sm:$0xff] }
 0x6f0   :  { %9616 = vmatmul.mubr.msk.f32.gmra.mrb[46].mxu1 %vm249_vm0, %v9608_v15  ;;  %12111 = vmatprep.subr.bf16.mxu0 %v12110_v35  ;;  %v16453_v26 = vpop.permute.xlu0 %5234 }
 0x6f1   :  { %5094 = vmatprep.mubr.f32.mxu1 %v18243_v50  ;;  %12125 = vmatpush3.bf16.msra.mxu1 %v18318_v43 }
 0x6f2   :  { %9611 = vmatmul.mubr.msk.f32.vlgmr.msra.gmra.mrb[76].mxu0 %vm249_vm0, %v9607_v41  ;;  %12127 = vmatprep.subr.bf16.mxu1 %v18319_v56 }
 0x6f3   :  { %12113 = vmatpush3.bf16.msra.mxu0 %v12110_v35  ;;  %4999 = vmatprep.mubr.f32.mxu0 %v18243_v50 }
 0x6f4   :  { %9617 = vmatmul.mubr.msk.f32.gmra.mrb[48].mxu1 %vm249_vm0, %v9609_v6  ;;  %12115 = vmatprep.subr.bf16.mxu0 %v12114_v55 }
 0x6f5   :  { %5100 = vmatprep.mubr.f32.mxu1 %v18243_v50  ;;  %12129 = vmatpush3.bf16.msra.mxu1 %v18320_v38 }
 0x6f6   :  { %9612 = vmatmul.mubr.msk.f32.gmra.mrb[78].mxu0 %vm249_vm0, %v9608_v15  ;;  %12131 = vmatprep.subr.bf16.mxu1 %v18321_v1 }
 0x6f7   :  { %12117 = vmatpush3.bf16.msra.mxu0 %v12114_v55  ;;  %5005 = vmatprep.mubr.f32.mxu0 %v18243_v50 }
 0x6f8   :  { %9618 = vmatmul.mubr.msk.f32.gmra.mrb[50].mxu1 %vm249_vm0, %v9610_v60  ;;  %12183 = vmatprep.subr.bf16.mxu0 %v14349_v61 }
 0x6f9   :  { %12133 = vmatpush3.bf16.msra.mxu1 %v18322_v18 }
 0x6fa   :  { %9613 = vmatmul.mubr.msk.f32.gmra.mrb[80].mxu0 %vm249_vm0, %v9609_v6  ;;  %12135 = vmatprep.subr.bf16.mxu1 %v18323_v2 }
 0x6fb   :  { %5011 = vmatprep.mubr.f32.mxu0 %v18243_v50 }
 0x6fd   :  { %12137 = vmatpush3.bf16.msra.mxu1 %v18324_v34 }
 0x6fe   :  { %9614 = vmatmul.mubr.msk.f32.gmra.mrb[82].mxu0 %vm249_vm0, %v9610_v60  ;;  %12139 = vmatprep.subr.bf16.mxu1 %v18325_v22 }
 0x6ff   :  { %11231 = vmatprep.mubr.msk.f32.mxu0 %vm249_vm0, %v9607_v41 }
 0x701   :  { %12141 = vmatpush3.bf16.msra.mxu1 %v18326_v21 }
 0x702   :  { %11232 = vmatmul.mubr.msk.f32.vlgmr.msra.gmra.mrb[84].mxu0 %vm249_vm0, %v9608_v15  ;;  %12143 = vmatprep.subr.bf16.mxu1 %v18327_v62 }
 0x703   :  { %11234 = vmatprep.mubr.msk.f32.mxu0 %vm249_vm0, %v9609_v6  ;;  %12185 = vmatpush3.bf16.msra.mxu0 %v14349_v61  ;;  %v16441_v6 = vpop.permute.xlu1 %5229 }
 0x704   :  { %12187 = vmatprep.subr.bf16.mxu0 %v18244_v12 }
 0x705   :  { %12145 = vmatpush3.bf16.msra.mxu1 %v18328_v36 }
 0x706   :  { %11235 = vmatmul.mubr.msk.f32.gmra.mrb[86].mxu0 %vm249_vm0, %v9610_v60  ;;  %12147 = vmatprep.subr.bf16.mxu1 %v18329_v58 }
 0x707   :  { %12189 = vmatpush3.bf16.msra.mxu0 %v18244_v12 }
 0x708   :  { %12191 = vmatprep.subr.bf16.mxu0 %v18245_v44 }
 0x709   :  { %12149 = vmatpush3.bf16.msra.mxu1 %v18330_v28 }
 0x70a   :  { %12151 = vmatprep.subr.bf16.mxu1 %v18331_v20 }
 0x70b   :  { %12193 = vmatpush3.bf16.msra.mxu0 %v18245_v44 }
 0x70c   :  { %12195 = vmatprep.subr.bf16.mxu0 %v18246_v9 }
 0x70f   :  { %12197 = vmatpush3.bf16.msra.mxu0 %v18246_v9 }
 0x710   :  { %12199 = vmatprep.subr.bf16.mxu0 %v18247_v4 }
 0x713   :  { %12201 = vmatpush3.bf16.msra.mxu0 %v18247_v4 }
 0x714   :  { %12203 = vmatprep.subr.bf16.mxu0 %v18248_v16 }
 0x717   :  { %12205 = vmatpush3.bf16.msra.mxu0 %v18248_v16 }
 0x718   :  { %12207 = vmatprep.subr.bf16.mxu0 %v18249_v48 }
 0x71b   :  { %12209 = vmatpush3.bf16.msra.mxu0 %v18249_v48 }
 0x71c   :  { %12211 = vmatprep.subr.bf16.mxu0 %v18250_v46 }
 0x71f   :  { %12213 = vmatpush3.bf16.msra.mxu0 %v18250_v46 }
 0x720   :  { %12264 = vmatprep.subr.msk.bf16.mxu0 %vm13985_vm1, %v18331_v20 }
 0x7bf   :  { %v16404_v3 = vpop.f32.mrb[44].mxu1 }
 0x7c0   :  { %v16406_v31 = vpop.f32.mrb[45].mxu1 }
 0x7c3   :  { %v16408_v17 = vpop.f32.mrb[46].mxu1 }
 0x7c4   :  { %v16410_v59 = vpop.f32.mrb[47].mxu1 }
 0x7c5   :  { %v4995_v19 = vpop.f32.mrb[76].mxu0 }
 0x7c6   :  { %v4997_v10 = vpop.f32.mrb[77].mxu0  ;;  %v16420_v41 = vadd.f32 %v16412_v52, %v4995_v19  ;;  %v18339_v19 = vld [vmem:[#allocation13_spill] sm:$0xff] }
 0x7c7   :  { %v16414_v54 = vpop.f32.mrb[48].mxu1  ;;  %v16417_v42 = vadd.f32 %v16412_v52, %v4997_v10 }
 0x7c8   :  { %18333 = vst [vmem:[#allocation50_spill] sm:$0xff] %v16420_v41  ;;  %v16422_v23 = vpop.f32.mrb[49].mxu1  ;;  %v5257_v37 = vmul.f32 %v16420_v41, %v16420_v41 }
 0x7c9   :  { %18332 = vst [vmem:[#allocation53_spill] sm:$0xff] %v16417_v42  ;;  %v5001_v57 = vpop.f32.mrb[78].mxu0  ;;  %5341 = vmatprep.mubr.f32.mxu1 %v16417_v42  ;;  %v5258_v24 = vmul.f32 %v16417_v42, %v16417_v42 }
 0x7ca   :  { %v5003_v33 = vpop.f32.mrb[79].mxu0  ;;  %5342 = vmatmul.mubr.f32.vlgmr.msra.gmra.mrb[52].mxu1 %v16420_v41  ;;  %v16435_v15 = vadd.f32 %v16425_v40, %v5001_v57  ;;  %v18341_v57 = vld [vmem:[#allocation15_spill] sm:$0xff] }
 0x7cb   :  { %v16428_v45 = vpop.f32.mrb[50].mxu1  ;;  %v16431_v39 = vadd.f32 %v16425_v40, %v5003_v33  ;;  %12153 = vmatpush3.bf16.msra.mxu1 %v18335_v63  ;;  %v18353_v41 = vld [vmem:[#allocation27_spill] sm:$0xff] }
 0x7cc   :  { %18336 = vst [vmem:[#allocation7_spill] sm:$0xff] %v16435_v15  ;;  %v16437_v35 = vpop.f32.mrb[51].mxu1  ;;  %12155 = vmatprep.subr.bf16.mxu1 %v18337_v13  ;;  %v5262_v42 = vmul.f32 %v16435_v15, %v16435_v15 }
 0x7cd   :  { %18334 = vst [vmem:[#allocation6_spill] sm:$0xff] %v16431_v39  ;;  %v5007_v29 = vpop.f32.mrb[80].mxu0  ;;  %5346 = vmatprep.mubr.f32.mxu1 %v16431_v39  ;;  %v5263_v25 = vmul.f32 %v16431_v39, %v16431_v39 }
 0x7ce   :  { %v5009_v55 = vpop.f32.mrb[81].mxu0  ;;  %5347 = vmatmul.mubr.f32.gmra.mrb[54].mxu1 %v16435_v15  ;;  %v16449_v10 = vadd.f32 %v16441_v6, %v5007_v29  ;;  %v18345_v29 = vld [vmem:[#allocation19_spill] sm:$0xff] }
 0x7cf   :  { %v16445_v60 = vadd.f32 %v16441_v6, %v5009_v55  ;;  %12157 = vmatpush3.bf16.msra.mxu1 %v18339_v19  ;;  %v18343_v55 = vld [vmem:[#allocation17_spill] sm:$0xff] }
 0x7d0   :  { %18340 = vst [vmem:[#allocation12_spill] sm:$0xff] %v16449_v10  ;;  %12159 = vmatprep.subr.bf16.mxu1 %v18341_v57 }
 0x7d1   :  { %18338 = vst [vmem:[#allocation10_spill] sm:$0xff] %v16445_v60  ;;  %v5013_v33 = vpop.f32.mrb[82].mxu0  ;;  %5351 = vmatprep.mubr.f32.mxu1 %v16445_v60 }
 0x7d2   :  { %v5015_v14 = vpop.f32.mrb[83].mxu0  ;;  %5352 = vmatmul.mubr.f32.gmra.mrb[56].mxu1 %v16449_v10  ;;  %v16461_v47 = vadd.f32 %v16453_v26, %v5013_v33 }
 0x7d3   :  { %v16457_v30 = vadd.f32 %v16453_v26, %v5015_v14  ;;  %12161 = vmatpush3.bf16.msra.mxu1 %v18343_v55  ;;  %v18347_v14 = vld [vmem:[#allocation21_spill] sm:$0xff] }
 0x7d4   :  { %18344 = vst [vmem:[#allocation16_spill] sm:$0xff] %v16461_v47  ;;  %12163 = vmatprep.subr.bf16.mxu1 %v18345_v29 }
 0x7d5   :  { %18342 = vst [vmem:[#allocation14_spill] sm:$0xff] %v16457_v30  ;;  %v11233_v0 = vpop.f32.mrb[84].mxu0  ;;  %5356 = vmatprep.mubr.f32.mxu1 %v16457_v30 }
 0x7d6   :  { %v5173_v32 = vpop.f32.mrb[85].mxu0  ;;  %5357 = vmatmul.mubr.f32.gmra.mrb[58].mxu1 %v16461_v47  ;;  %v16473_v33 = vadd.f32 %v11233_v0, %v16425_v40 }
 0x7d7   :  { %v16469_v7 = vadd.f32 %v16412_v52, %v5173_v32  ;;  %5361 = vmatprep.mubr.f32.mxu1 %v5258_v24  ;;  %12165 = vmatpush3.bf16.msra.mxu1 %v18347_v14  ;;  %v18351_v24 = vld [vmem:[#allocation25_spill] sm:$0xff] }
 0x7d8   :  { %18348 = vst [vmem:[#allocation20_spill] sm:$0xff] %v16473_v33  ;;  %12167 = vmatprep.subr.bf16.mxu1 %v18349_v11 }
 0x7d9   :  { %18346 = vst [vmem:[#allocation18_spill] sm:$0xff] %v16469_v7  ;;  %v11236_v49 = vpop.f32.mrb[86].mxu0  ;;  %11269 = vmatprep.mubr.f32.mxu0 %v16469_v7 }
 0x7da   :  { %v5183_v53 = vpop.f32.mrb[87].mxu0  ;;  %5362 = vmatmul.mubr.f32.gmra.mrb[60].mxu1 %v5257_v37  ;;  %11270 = vmatmul.mubr.f32.vlgmr.msra.gmra.mrb[88].mxu0 %v16473_v33  ;;  %v16487_v0 = vadd.f32 %v11236_v49, %v16453_v26  ;;  %v18354_v49 = vld [vmem:[#allocation29_spill] sm:$0xff]  ;;  %v5267_v37 = vmul.f32 %v16449_v10, %v16449_v10 }
 0x7db   :  { %v16483_v32 = vadd.f32 %v16441_v6, %v5183_v53  ;;  %5366 = vmatprep.mubr.f32.mxu1 %v5263_v25  ;;  %12169 = vmatpush3.bf16.msra.mxu1 %v18351_v24  ;;  %v5268_v53 = vmul.f32 %v16445_v60, %v16445_v60  ;;  %v5261_v25 = vmul.f32 %v16469_v7, %v16469_v7  ;;  %v18357_v7 = vld [vmem:[#allocation35_spill] sm:$0xff] }
 0x7dc   :  { %18352 = vst [vmem:[#allocation63_spill] sm:$0xff] %v16487_v0  ;;  %12171 = vmatprep.subr.bf16.mxu1 %v18353_v41  ;;  %12267 = vmatpush3.bf16.xpose.msk.msra.mxu0 %vm13985_vm1, %v18335_v63  ;;  %v18355_v63 = vld [vmem:[#allocation31_spill] sm:$0xff]  ;;  %v5266_v60 = vmul.f32 %v16473_v33, %v16473_v33  ;;  %v5276_v33 = vmul.f32 %v16487_v0, %v16487_v0 }
 0x7dd   :  { %18350 = vst [vmem:[#allocation62_spill] sm:$0xff] %v16483_v32  ;;  %11272 = vmatprep.mubr.f32.mxu0 %v16483_v32  ;;  %12270 = vmatprep.subr.msk.bf16.mxu0 %vm13985_vm1, %v18337_v13  ;;  %v5271_v13 = vmul.f32 %v16483_v32, %v16483_v32 }
 0x7de   :  { %5367 = vmatmul.mubr.f32.gmra.mrb[62].mxu1 %v5262_v42  ;;  %11273 = vmatmul.mubr.f32.gmra.mrb[90].mxu0 %v16487_v0  ;;  %v5273_v42 = vmul.f32 %v16457_v30, %v16457_v30  ;;  %v16522_v30 = vadd.f32 %v16412_v52, %v16406_v31  ;;  %v16541_v31 = vadd.f32 %v16425_v40, %v16410_v59 }
 0x7df   :  { %5371 = vmatprep.mubr.f32.mxu1 %v5268_v53  ;;  %12173 = vmatpush3.bf16.msra.mxu1 %v18354_v49  ;;  %v18356_v53 = vld [vmem:[#allocation33_spill] sm:$0xff]  ;;  %v16570_v59 = vadd.f32 %v16453_v26, %v16437_v35 }
 0x7e0   :  { %11275 = vmatprep.mubr.f32.mxu0 %v5261_v25  ;;  %12175 = vmatprep.subr.bf16.mxu1 %v18355_v63  ;;  %v5272_v25 = vmul.f32 %v16461_v47, %v16461_v47  ;;  %18358 = vst [vmem:[#allocation64_spill] sm:$0xff] %v16522_v30  ;;  %18361 = vst [vmem:[#allocation66_spill] sm:$0xff] %v16541_v31 }
 0x7e1   :  { %18365 = vst [vmem:[#allocation70_spill] sm:$0xff] %v16570_v59 }
 0x7e2   :  { %5372 = vmatmul.mubr.f32.gmra.mrb[64].mxu1 %v5267_v37  ;;  %11276 = vmatmul.mubr.f32.gmra.mrb[92].mxu0 %v5266_v60  ;;  %v18359_v60 = vld [vmem:[#allocation37_spill] sm:$0xff] }
 0x7e3   :  { %5376 = vmatprep.mubr.f32.mxu1 %v5273_v42  ;;  %12177 = vmatpush3.bf16.msra.mxu1 %v18356_v53 }
 0x7e4   :  { %11278 = vmatprep.mubr.f32.mxu0 %v5271_v13  ;;  %12179 = vmatprep.subr.bf16.mxu1 %v18357_v7  ;;  %v16531_v13 = vadd.f32 %v16412_v52, %v16404_v3  ;;  %v16547_v3 = vadd.f32 %v16425_v40, %v16408_v17  ;;  %v16551_v52 = vadd.f32 %v16441_v6, %v16422_v23 }
 0x7e5   :  { %12273 = vmatpush3.bf16.xpose.msk.msra.mxu0 %vm13985_vm1, %v18339_v19  ;;  %v16563_v17 = vadd.f32 %v16441_v6, %v16414_v54  ;;  %v16579_v54 = vadd.f32 %v16453_v26, %v16428_v45  ;;  %v5260_v23 = vmul.f32 %v16522_v30, %v16522_v30  ;;  %v5265_v26 = vmul.f32 %v16541_v31, %v16541_v31 }
 0x7e6   :  { %5377 = vmatmul.mubr.f32.gmra.mrb[66].mxu1 %v5272_v25  ;;  %11279 = vmatmul.mubr.f32.gmra.mrb[94].mxu0 %v5276_v33  ;;  %18360 = vst [vmem:[#allocation65_spill] sm:$0xff] %v16531_v13  ;;  %18362 = vst [vmem:[#allocation67_spill] sm:$0xff] %v16547_v3  ;;  %v5259_v40 = vmul.f32 %v16531_v13, %v16531_v13  ;;  %v5264_v45 = vmul.f32 %v16547_v3, %v16547_v3 }
 0x7e7   :  { %12181 = vmatpush3.bf16.msra.mxu1 %v18359_v60  ;;  %5446 = vmatprep.mubr.f32.mxu1 %v16522_v30  ;;  %18363 = vst [vmem:[#allocation68_spill] sm:$0xff] %v16551_v52  ;;  %18364 = vst [vmem:[#allocation69_spill] sm:$0xff] %v16563_v17  ;;  %v5270_v35 = vmul.f32 %v16551_v52, %v16551_v52  ;;  %v5269_v6 = vmul.f32 %v16563_v17, %v16563_v17 }
 0x7e8   :  { %12216 = vmatprep.subr.msk.bf16.mxu1 %vm13985_vm1, %v18314_v51  ;;  %12276 = vmatprep.subr.msk.bf16.mxu0 %vm13985_vm1, %v18341_v57  ;;  %18366 = vst [vmem:[#allocation71_spill] sm:$0xff] %v16579_v54  ;;  %v5275_v33 = vmul.f32 %v16570_v59, %v16570_v59  ;;  %v5274_v37 = vmul.f32 %v16579_v54, %v16579_v54 }
 0x7ea   :  { %5447 = vmatmul.mubr.f32.vlgmr.msra.gmra.mrb[68].mxu1 %v16531_v13 }
 0x7eb   :  { %5451 = vmatprep.mubr.f32.mxu1 %v16541_v31 }
 0x7ed   :  { %12279 = vmatpush3.bf16.xpose.msk.msra.mxu0 %vm13985_vm1, %v18343_v55 }
 0x7ee   :  { %5452 = vmatmul.mubr.f32.gmra.mrb[70].mxu1 %v16547_v3  ;;  %12282 = vmatprep.subr.msk.bf16.mxu0 %vm13985_vm1, %v18345_v29 }
 0x7ef   :  { %5456 = vmatprep.mubr.f32.mxu1 %v16551_v52 }
 0x7f0   :  { %12219 = vmatpush3.bf16.xpose.msk.msra.mxu1 %vm13985_vm1, %v18316_v27 }
 0x7f1   :  { %12222 = vmatprep.subr.msk.bf16.mxu1 %vm13985_vm1, %v18317_v5 }
 0x7f2   :  { %5457 = vmatmul.mubr.f32.gmra.mrb[72].mxu1 %v16563_v17 }
 0x7f3   :  { %5461 = vmatprep.mubr.f32.mxu1 %v16570_v59 }
 0x7f5   :  { %12285 = vmatpush3.bf16.xpose.msk.msra.mxu0 %vm13985_vm1, %v18347_v14 }
 0x7f6   :  { %5462 = vmatmul.mubr.f32.gmra.mrb[74].mxu1 %v16579_v54  ;;  %12288 = vmatprep.subr.msk.bf16.mxu0 %vm13985_vm1, %v18349_v11 }
 0x7f7   :  { %5466 = vmatprep.mubr.f32.mxu1 %v5260_v23 }
 0x7f8   :  { %12225 = vmatpush3.bf16.xpose.msk.msra.mxu1 %vm13985_vm1, %v18318_v43 }
 0x7f9   :  { %12228 = vmatprep.subr.msk.bf16.mxu1 %vm13985_vm1, %v18319_v56 }
 0x7fa   :  { %5467 = vmatmul.mubr.f32.gmra.mrb[76].mxu1 %v5259_v40 }
 0x7fb   :  { %5471 = vmatprep.mubr.f32.mxu1 %v5265_v26 }
 0x7fd   :  { %12291 = vmatpush3.bf16.xpose.msk.msra.mxu0 %vm13985_vm1, %v18351_v24 }
 0x7fe   :  { %5472 = vmatmul.mubr.f32.gmra.mrb[78].mxu1 %v5264_v45  ;;  %12294 = vmatprep.subr.msk.bf16.mxu0 %vm13985_vm1, %v18353_v41 }
 0x7ff   :  { %5476 = vmatprep.mubr.f32.mxu1 %v5270_v35 }
 0x800   :  { %12231 = vmatpush3.bf16.xpose.msk.msra.mxu1 %vm13985_vm1, %v18320_v38 }
 0x801   :  { %12234 = vmatprep.subr.msk.bf16.mxu1 %vm13985_vm1, %v18321_v1 }
 0x802   :  { %5477 = vmatmul.mubr.f32.gmra.mrb[80].mxu1 %v5269_v6 }
 0x803   :  { %5481 = vmatprep.mubr.f32.mxu1 %v5275_v33 }
 0x805   :  { %12297 = vmatpush3.bf16.xpose.msk.msra.mxu0 %vm13985_vm1, %v18354_v49 }
 0x806   :  { %5482 = vmatmul.mubr.f32.gmra.mrb[82].mxu1 %v5274_v37  ;;  %12300 = vmatprep.subr.msk.bf16.mxu0 %vm13985_vm1, %v18355_v63 }
 0x808   :  { %12237 = vmatpush3.bf16.xpose.msk.msra.mxu1 %vm13985_vm1, %v18322_v18 }
 0x809   :  { %12240 = vmatprep.subr.msk.bf16.mxu1 %vm13985_vm1, %v18323_v2 }
 0x80d   :  { %12303 = vmatpush3.bf16.xpose.msk.msra.mxu0 %vm13985_vm1, %v18356_v53 }
 0x80e   :  { %12306 = vmatprep.subr.msk.bf16.mxu0 %vm13985_vm1, %v18357_v7 }
 0x810   :  { %12243 = vmatpush3.bf16.xpose.msk.msra.mxu1 %vm13985_vm1, %v18324_v34 }
 0x811   :  { %12246 = vmatprep.subr.msk.bf16.mxu1 %vm13985_vm1, %v18325_v22 }
 0x815   :  { %12309 = vmatpush3.bf16.xpose.msk.msra.mxu0 %vm13985_vm1, %v18359_v60 }
 0x818   :  { %12249 = vmatpush3.bf16.xpose.msk.msra.mxu1 %vm13985_vm1, %v18326_v21 }
 0x819   :  { %12252 = vmatprep.subr.msk.bf16.mxu1 %vm13985_vm1, %v18327_v62 }
 0x820   :  { %12255 = vmatpush3.bf16.xpose.msk.msra.mxu1 %vm13985_vm1, %v18328_v36 }
 0x821   :  { %12258 = vmatprep.subr.msk.bf16.mxu1 %vm13985_vm1, %v18329_v58 }
 0x828   :  { %12261 = vmatpush3.bf16.xpose.msk.msra.mxu1 %vm13985_vm1, %v18330_v28 }
 0x829   :  { %12312 = vmatprep.subr.msk.bf16.mxu1 %vm13985_vm1, %v14349_v61 }
 0x89d   :  { %v10446_v42 = vpop.f32.mrb[52].mxu1 }
 0x89e   :  { %v10447_v25 = vpop.f32.mrb[53].mxu1 }
 0x89f   :  { %v10448_v23 = vadd.f32 %v10447_v25, %v10446_v42 }
 0x8a1   :  { %v10449_v40 = vpop.f32.mrb[54].mxu1 }
 0x8a2   :  { %v10450_v26 = vpop.f32.mrb[55].mxu1 }
 0x8a3   :  { %v10451_v45 = vadd.f32 %v10450_v26, %v10449_v40 }
 0x8a5   :  { %v10452_v35 = vpop.f32.mrb[56].mxu1 }
 0x8a6   :  { %v10453_v6 = vpop.f32.mrb[57].mxu1 }
 0x8a7   :  { %v10454_v33 = vadd.f32 %v10453_v6, %v10452_v35 }
 0x8a9   :  { %v10455_v37 = vpop.f32.mrb[58].mxu1 }
 0x8aa   :  { %v10456_v60 = vpop.f32.mrb[59].mxu1 }
 0x8ab   :  { %v10457_v7 = vadd.f32 %v10456_v60, %v10455_v37 }
 0x8ad   :  { %v10458_v53 = vpop.f32.mrb[60].mxu1  ;;  %v11271_v63 = vpop.f32.mrb[88].mxu0 }
 0x8ae   :  { %v10459_v49 = vpop.f32.mrb[61].mxu1  ;;  %v5553_v41 = vpop.f32.mrb[89].mxu0 }
 0x8af   :  { %v10460_v24 = vadd.f32 %v10459_v49, %v10458_v53 }
 0x8b1   :  { %v10461_v11 = vpop.f32.mrb[62].mxu1  ;;  %v11274_v14 = vpop.f32.mrb[90].mxu0 }
 0x8b2   :  { %v10462_v29 = vpop.f32.mrb[63].mxu1  ;;  %v5563_v55 = vpop.f32.mrb[91].mxu0 }
 0x8b3   :  { %v10463_v57 = vadd.f32 %v10462_v29, %v10461_v11 }
 0x8b5   :  { %v10464_v42 = vpop.f32.mrb[64].mxu1  ;;  %v11277_v25 = vpop.f32.mrb[92].mxu0 }
 0x8b6   :  { %v10465_v19 = vpop.f32.mrb[65].mxu1  ;;  %v5573_v40 = vpop.f32.mrb[93].mxu0 }
 0x8b7   :  { %v10466_v26 = vadd.f32 %v10465_v19, %v10464_v42 }
 0x8b9   :  { %v10467_v32 = vpop.f32.mrb[66].mxu1  ;;  %v11280_v35 = vpop.f32.mrb[94].mxu0 }
 0x8ba   :  { %v10468_v6 = vpop.f32.mrb[67].mxu1  ;;  %v5583_v0 = vpop.f32.mrb[95].mxu0 }
 0x8bb   :  { %v10469_v60 = vadd.f32 %v10468_v6, %v10467_v32 }
 0x8bd   :  { %v10502_v37 = vpop.f32.mrb[68].mxu1 }
 0x8be   :  { %v10503_v59 = vpop.f32.mrb[69].mxu1 }
 0x8bf   :  { %v10504_v54 = vadd.f32 %v10503_v59, %v10502_v37 }
 0x8c1   :  { %v5449_v47 = vadd.f32 %v10504_v54, %v10448_v23  ;;  %v10505_v49 = vpop.f32.mrb[70].mxu1 }
 0x8c2   :  { %v10506_v53 = vpop.f32.mrb[71].mxu1 }
 0x8c3   :  { %v5554_v52 = vadd.f32 %v5553_v41, %v5449_v47  ;;  %v10507_v17 = vadd.f32 %v10506_v53, %v10505_v49 }
 0x8c5   :  { %v5454_v10 = vadd.f32 %v10507_v17, %v10451_v45  ;;  %v10508_v11 = vpop.f32.mrb[72].mxu1  ;;  %v5592_v54 = vmul.f32 0.0625, %v5554_v52 }
 0x8c6   :  { %v10509_v29 = vpop.f32.mrb[73].mxu1 }
 0x8c7   :  { %v5559_v31 = vadd.f32 %v11271_v63, %v5454_v10  ;;  %v10510_v39 = vadd.f32 %v10509_v29, %v10508_v11  ;;  %v5600_v45 = vmul.f32 %v5592_v54, %v5592_v54 }
 0x8c9   :  { %v5459_v3 = vadd.f32 %v10510_v39, %v10454_v33  ;;  %v10511_v19 = vpop.f32.mrb[74].mxu1  ;;  %v5593_v49 = vmul.f32 0.0625, %v5559_v31 }
 0x8ca   :  { %v10512_v42 = vpop.f32.mrb[75].mxu1 }
 0x8cb   :  { %v5564_v15 = vadd.f32 %v5563_v55, %v5459_v3  ;;  %v10513_v30 = vadd.f32 %v10512_v42, %v10511_v19 }
 0x8cd   :  { %v5464_v13 = vadd.f32 %v10513_v30, %v10457_v7  ;;  %v10514_v32 = vpop.f32.mrb[76].mxu1  ;;  %v5594_v7 = vmul.f32 0.0625, %v5564_v15  ;;  %v5601_v30 = vmul.f32 %v5593_v49, %v5593_v49 }
 0x8ce   :  { %v10515_v6 = vpop.f32.mrb[77].mxu1 }
 0x8cf   :  { %v5569_v20 = vadd.f32 %v11274_v14, %v5464_v13  ;;  %v10516_v59 = vadd.f32 %v10515_v6, %v10514_v32  ;;  %v5602_v32 = vmul.f32 %v5594_v7, %v5594_v7 }
 0x8d1   :  { %v5469_v23 = vadd.f32 %v10516_v59, %v10460_v24  ;;  %v10517_v37 = vpop.f32.mrb[78].mxu1  ;;  %v5595_v31 = vmul.f32 0.0625, %v5569_v20 }
 0x8d2   :  { %v10518_v47 = vpop.f32.mrb[79].mxu1 }
 0x8d3   :  { %v5574_v41 = vadd.f32 %v5573_v40, %v5469_v23  ;;  %v10519_v17 = vadd.f32 %v10518_v47, %v10517_v37  ;;  %v5603_v15 = vmul.f32 %v5595_v31, %v5595_v31 }
 0x8d5   :  { %v5596_v63 = vmul.f32 0.0625, %v5574_v41  ;;  %v5474_v10 = vadd.f32 %v10519_v17, %v10463_v57  ;;  %v10520_v39 = vpop.f32.mrb[80].mxu1 }
 0x8d6   :  { %v10521_v33 = vpop.f32.mrb[81].mxu1 }
 0x8d7   :  { %v5604_v53 = vsub.f32 %v5596_v63, %v5600_v45  ;;  %v5579_v55 = vadd.f32 %v11277_v25, %v5474_v10  ;;  %v10522_v3 = vadd.f32 %v10521_v33, %v10520_v39 }
 0x8d9   :  { %v5608_v11 = vmax.f32 %v5604_v53, 0.0  ;;  %v5597_v14 = vmul.f32 0.0625, %v5579_v55  ;;  %v5479_v13 = vadd.f32 %v10522_v3, %v10466_v26  ;;  %v10523_v52 = vpop.f32.mrb[82].mxu1 }
 0x8da   :  { %v10524_v24 = vpop.f32.mrb[83].mxu1 }
 0x8db   :  { %v5612_v29 = vadd.f32 1e-05, %v5608_v11  ;;  %v5605_v19 = vsub.f32 %v5597_v14, %v5601_v30  ;;  %v5584_v40 = vadd.f32 %v5583_v0, %v5479_v13  ;;  %v10525_v42 = vadd.f32 %v10524_v24, %v10523_v52  ;;  %v5628_v0 = vpop.permute.xlu1 %5627 }
 0x8dd   :  { %13685 = vrsqrt.f32 %v5612_v29  ;;  %v5609_v57 = vmax.f32 %v5605_v19, 0.0  ;;  %v5598_v6 = vmul.f32 0.0625, %v5584_v40  ;;  %v5484_v59 = vadd.f32 %v10525_v42, %v10469_v60  ;;  %v5633_v60 = vpop.permute.xlu0 %5632 }
 0x8df   :  { %v5613_v23 = vadd.f32 1e-05, %v5609_v57  ;;  %v5606_v25 = vsub.f32 %v5598_v6, %v5602_v32  ;;  %v5589_v37 = vadd.f32 %v11280_v35, %v5484_v59  ;;  %v5638_v55 = vpop.permute.xlu1 %5637 }
 0x8e1   :  { %13687 = vrsqrt.f32 %v5613_v23  ;;  %v5610_v47 = vmax.f32 %v5606_v25, 0.0  ;;  %v5599_v41 = vmul.f32 0.0625, %v5589_v37  ;;  %v5643_v14 = vpop.permute.xlu0 %5642 }
 0x8e3   :  { %v5614_v26 = vadd.f32 1e-05, %v5610_v47  ;;  %v5607_v17 = vsub.f32 %v5599_v41, %v5603_v15  ;;  %v5661_v13 = vpop.permute.xlu1 %5660 }
 0x8e5   :  { %13689 = vrsqrt.f32 %v5614_v26  ;;  %v5611_v45 = vmax.f32 %v5607_v17, 0.0  ;;  %v5666_v24 = vpop.permute.xlu0 %5665 }
 0x8e7   :  { %v13686_v63 = vpop.eup %13685  ;;  %v5615_v10 = vadd.f32 1e-05, %v5611_v45  ;;  %v5671_v19 = vpop.permute.xlu1 %5670 }
 0x8e8   :  { %v16667_v39 = vmul.f32 %v13686_v63, %v5628_v0 }
 0x8e9   :  { %13691 = vrsqrt.f32 %v5615_v10  ;;  %v5676_v42 = vpop.permute.xlu0 %5675 }
 0x8ea   :  { %10582 = vmatprep.mubr.msk.f32.mxu1 %vm249_vm0, %v16667_v39  ;;  %10630 = vmatprep.mubr.msk.f32.mxu0 %vm249_vm0, %v16667_v39  ;;  %v5654_v20 = vmul.f32 %v16667_v39, %v5592_v54 }
 0x8eb   :  { %v13688_v35 = vpop.eup %13687  ;;  %10583 = vmatmul.mubr.msk.f32.vlgmr.msra.gmra.mrb[84].mxu1 %vm249_vm0, %v16667_v39  ;;  %10631 = vmatmul.mubr.msk.f32.vlgmr.msra.gmra.mrb[96].mxu0 %vm249_vm0, %v16667_v39 }
 0x8ec   :  { %12315 = vmatpush3.bf16.xpose.msk.msra.mxu1 %vm13985_vm1, %v14349_v61  ;;  %v16681_v33 = vmul.f32 %v13688_v35, %v5633_v60  ;;  %v18369_v60 = vld [vmem:[#allocation65_spill] sm:$0xff] }
 0x8ed   :  { %12318 = vmatprep.subr.msk.bf16.mxu1 %vm13985_vm1, %v18244_v12 }
 0x8ee   :  { %10584 = vmatprep.mubr.msk.f32.mxu1 %vm249_vm0, %v16681_v33  ;;  %10632 = vmatprep.mubr.msk.f32.mxu0 %vm249_vm0, %v16681_v33  ;;  %v5655_v54 = vmul.f32 %v16681_v33, %v5593_v49 }
 0x8ef   :  { %v13690_v53 = vpop.eup %13689  ;;  %10585 = vmatmul.mubr.msk.f32.gmra.mrb[86].mxu1 %vm249_vm0, %v16681_v33  ;;  %10633 = vmatmul.mubr.msk.f32.gmra.mrb[98].mxu0 %vm249_vm0, %v16681_v33 }
 0x8f0   :  { %v5647_v3 = vmul.f32 %v13690_v53, %v5638_v55  ;;  %v5679_v29 = vsub.f32 %v5666_v24, %v5655_v54  ;;  %v18370_v54 = vld [vmem:[#allocation53_spill] sm:$0xff]  ;;  %v18371_v55 = vld [vmem:[#allocation64_spill] sm:$0xff] }
 0x8f2   :  { %10586 = vmatprep.mubr.msk.f32.mxu1 %vm249_vm0, %v5647_v3  ;;  %10634 = vmatprep.mubr.msk.f32.mxu0 %vm249_vm0, %v5647_v3  ;;  %v5656_v30 = vmul.f32 %v5647_v3, %v5594_v7  ;;  %v5678_v7 = vsub.f32 %v5661_v13, %v5654_v20  ;;  %v18368_v20 = vld [vmem:[#allocation50_spill] sm:$0xff] }
 0x8f3   :  { %v13692_v11 = vpop.eup %13691  ;;  %10587 = vmatmul.mubr.msk.f32.gmra.mrb[88].mxu1 %vm249_vm0, %v5647_v3  ;;  %10635 = vmatmul.mubr.msk.f32.gmra.mrb[100].mxu0 %vm249_vm0, %v5647_v3 }
 0x8f4   :  { %12321 = vmatpush3.bf16.xpose.msk.msra.mxu1 %vm13985_vm1, %v18244_v12  ;;  %v5648_v49 = vmul.f32 %v13692_v11, %v5643_v14  ;;  %v5680_v40 = vsub.f32 %v5671_v19, %v5656_v30 }
 0x8f5   :  { %12324 = vmatprep.subr.msk.bf16.mxu1 %vm13985_vm1, %v18245_v44 }
 0x8f6   :  { %10588 = vmatprep.mubr.msk.f32.mxu1 %vm249_vm0, %v5648_v49  ;;  %10636 = vmatprep.mubr.msk.f32.mxu0 %vm249_vm0, %v5648_v49  ;;  %v5657_v52 = vmul.f32 %v5648_v49, %v5595_v31  ;;  %v18367_v31 = vld [vmem:[#allocation8_spill] sm:$0xff] }
 0x8f7   :  { %10589 = vmatmul.mubr.msk.f32.gmra.mrb[90].mxu1 %vm249_vm0, %v5648_v49  ;;  %10637 = vmatmul.mubr.msk.f32.gmra.mrb[102].mxu0 %vm249_vm0, %v5648_v49 }
 0x8f8   :  { %10590 = vmatprep.mubr.msk.f32.mxu1 %vm249_vm0, %v5678_v7  ;;  %10638 = vmatprep.mubr.msk.f32.mxu0 %vm249_vm0, %v5678_v7  ;;  %v5681_v32 = vsub.f32 %v5676_v42, %v5657_v52 }
 0x8fb   :  { %10591 = vmatmul.mubr.msk.f32.gmra.mrb[92].mxu1 %vm249_vm0, %v5678_v7  ;;  %10639 = vmatmul.mubr.msk.f32.gmra.mrb[104].mxu0 %vm249_vm0, %v5678_v7 }
 0x8fc   :  { %12327 = vmatpush3.bf16.xpose.msk.msra.mxu1 %vm13985_vm1, %v18245_v44  ;;  %10592 = vmatprep.mubr.msk.f32.mxu1 %vm249_vm0, %v5679_v29 }
 0x8fd   :  { %10640 = vmatprep.mubr.msk.f32.mxu0 %vm249_vm0, %v5679_v29  ;;  %12330 = vmatprep.subr.msk.bf16.mxu1 %vm13985_vm1, %v18246_v9 }
 0x8ff   :  { %10593 = vmatmul.mubr.msk.f32.gmra.mrb[94].mxu1 %vm249_vm0, %v5679_v29  ;;  %10641 = vmatmul.mubr.msk.f32.gmra.mrb[106].mxu0 %vm249_vm0, %v5679_v29 }
 0x900   :  { %10594 = vmatprep.mubr.msk.f32.mxu1 %vm249_vm0, %v5680_v40  ;;  %10642 = vmatprep.mubr.msk.f32.mxu0 %vm249_vm0, %v5680_v40 }
 0x903   :  { %10595 = vmatmul.mubr.msk.f32.gmra.mrb[96].mxu1 %vm249_vm0, %v5680_v40  ;;  %10643 = vmatmul.mubr.msk.f32.gmra.mrb[108].mxu0 %vm249_vm0, %v5680_v40 }
 0x904   :  { %12333 = vmatpush3.bf16.xpose.msk.msra.mxu1 %vm13985_vm1, %v18246_v9  ;;  %10596 = vmatprep.mubr.msk.f32.mxu1 %vm249_vm0, %v5681_v32 }
 0x905   :  { %10644 = vmatprep.mubr.msk.f32.mxu0 %vm249_vm0, %v5681_v32  ;;  %12336 = vmatprep.subr.msk.bf16.mxu1 %vm13985_vm1, %v18247_v4 }
 0x907   :  { %10597 = vmatmul.mubr.msk.f32.gmra.mrb[98].mxu1 %vm249_vm0, %v5681_v32  ;;  %10645 = vmatmul.mubr.msk.f32.gmra.mrb[110].mxu0 %vm249_vm0, %v5681_v32 }
 0x908   :  { %11313 = vmatprep.mubr.msk.f32.mxu1 %vm249_vm0, %v16667_v39  ;;  %6383 = vmatprep.mubr.f32.mxu0 %v18243_v50 }
 0x90c   :  { %12339 = vmatpush3.bf16.xpose.msk.msra.mxu1 %vm13985_vm1, %v18247_v4 }
 0x90d   :  { %12342 = vmatprep.subr.msk.bf16.mxu1 %vm13985_vm1, %v18248_v16 }
 0x914   :  { %12345 = vmatpush3.bf16.xpose.msk.msra.mxu1 %vm13985_vm1, %v18248_v16 }
 0x915   :  { %12348 = vmatprep.subr.msk.bf16.mxu1 %vm13985_vm1, %v18249_v48 }
 0x91c   :  { %12351 = vmatpush3.bf16.xpose.msk.msra.mxu1 %vm13985_vm1, %v18249_v48 }
 0x91d   :  { %12354 = vmatprep.subr.msk.bf16.mxu1 %vm13985_vm1, %v18250_v46 }
 0x924   :  { %12357 = vmatpush3.bf16.xpose.msk.msra.mxu1 %vm13985_vm1, %v18250_v46 }
 0x925   :  { %12479 = vmatprep.subr.bf16.mxu1 %v18314_v51 }
 0x92b   :  { %11314 = vmatmul.mubr.msk.f32.vlgmr.msra.gmra.mrb[100].mxu1 %vm249_vm0, %v16681_v33 }
 0x92c   :  { %11316 = vmatprep.mubr.msk.f32.mxu1 %vm249_vm0, %v5647_v3  ;;  %12481 = vmatpush3.bf16.msra.mxu1 %v18316_v27 }
 0x92d   :  { %12483 = vmatprep.subr.bf16.mxu1 %v18317_v5 }
 0x92f   :  { %11317 = vmatmul.mubr.msk.f32.gmra.mrb[102].mxu1 %vm249_vm0, %v5648_v49 }
 0x930   :  { %11319 = vmatprep.mubr.msk.f32.mxu1 %vm249_vm0, %v5678_v7  ;;  %12485 = vmatpush3.bf16.msra.mxu1 %v18318_v43 }
 0x931   :  { %12487 = vmatprep.subr.bf16.mxu1 %v18319_v56 }
 0x933   :  { %11320 = vmatmul.mubr.msk.f32.gmra.mrb[104].mxu1 %vm249_vm0, %v5679_v29  ;;  %v18372_v29 = vld [vmem:[#allocation7_spill] sm:$0xff] }
 0x934   :  { %11322 = vmatprep.mubr.msk.f32.mxu1 %vm249_vm0, %v5680_v40  ;;  %12489 = vmatpush3.bf16.msra.mxu1 %v18320_v38  ;;  %v18373_v40 = vld [vmem:[#allocation67_spill] sm:$0xff] }
 0x935   :  { %12491 = vmatprep.subr.bf16.mxu1 %v18321_v1 }
 0x937   :  { %11323 = vmatmul.mubr.msk.f32.gmra.mrb[106].mxu1 %vm249_vm0, %v5681_v32 }
 0x938   :  { %12493 = vmatpush3.bf16.msra.mxu1 %v18322_v18 }
 0x939   :  { %12495 = vmatprep.subr.bf16.mxu1 %v18323_v2 }
 0x93c   :  { %12497 = vmatpush3.bf16.msra.mxu1 %v18324_v34 }
 0x93d   :  { %12499 = vmatprep.subr.bf16.mxu1 %v18325_v22 }
 0x940   :  { %12501 = vmatpush3.bf16.msra.mxu1 %v18326_v21 }
 0x941   :  { %12503 = vmatprep.subr.bf16.mxu1 %v18327_v62 }
 0x944   :  { %12505 = vmatpush3.bf16.msra.mxu1 %v18328_v36 }
 0x945   :  { %12507 = vmatprep.subr.bf16.mxu1 %v18329_v58 }
 0x948   :  { %12509 = vmatpush3.bf16.msra.mxu1 %v18330_v28  ;;  %v18398_v28 = vld [vmem:[#allocation63_spill] sm:$0xff] }
 0x949   :  { %12511 = vmatprep.subr.bf16.mxu1 %v18367_v31 }
 0x9be   :  { %v5772_v57 = vpop.f32.mrb[84].mxu1  ;;  %v5885_v6 = vpop.f32.mrb[96].mxu0 }
 0x9bf   :  { %v5774_v59 = vpop.f32.mrb[85].mxu1  ;;  %v5887_v23 = vpop.f32.mrb[97].mxu0  ;;  %v6037_v35 = vmul.f32 %v5772_v57, %v18368_v20  ;;  %v6039_v33 = vmul.f32 %v5885_v6, %v18369_v60  ;;  %v18374_v57 = vld [vmem:[#allocation6_spill] sm:$0xff] }
 0x9c0   :  { %v6038_v53 = vmul.f32 %v5774_v59, %v18370_v54  ;;  %v6040_v3 = vmul.f32 %v5887_v23, %v18371_v55  ;;  %v18375_v59 = vld [vmem:[#allocation66_spill] sm:$0xff] }
 0x9c2   :  { %v5778_v25 = vpop.f32.mrb[86].mxu1  ;;  %v5891_v37 = vpop.f32.mrb[98].mxu0 }
 0x9c3   :  { %v5780_v15 = vpop.f32.mrb[87].mxu1  ;;  %v5893_v47 = vpop.f32.mrb[99].mxu0  ;;  %v6042_v19 = vmul.f32 %v5778_v25, %v18372_v29  ;;  %v6044_v42 = vmul.f32 %v5891_v37, %v18373_v40  ;;  %v18376_v37 = vld [vmem:[#allocation12_spill] sm:$0xff] }
 0x9c4   :  { %v6043_v6 = vmul.f32 %v5780_v15, %v18374_v57  ;;  %v6045_v23 = vmul.f32 %v5893_v47, %v18375_v59  ;;  %v18378_v47 = vld [vmem:[#allocation10_spill] sm:$0xff]  ;;  %v18379_v29 = vld [vmem:[#allocation68_spill] sm:$0xff] }
 0x9c6   :  { %v5784_v41 = vpop.f32.mrb[88].mxu1  ;;  %v5897_v26 = vpop.f32.mrb[100].mxu0 }
 0x9c7   :  { %v5786_v17 = vpop.f32.mrb[89].mxu1  ;;  %v5899_v45 = vpop.f32.mrb[101].mxu0 }
 0x9c8   :  { %v6050_v40 = vmul.f32 %v5899_v45, %v18379_v29  ;;  %v18382_v45 = vld [vmem:[#allocation14_spill] sm:$0xff] }
 0x9ca   :  { %v5790_v63 = vpop.f32.mrb[90].mxu1  ;;  %v5903_v0 = vpop.f32.mrb[102].mxu0 }
 0x9cb   :  { %v5792_v10 = vpop.f32.mrb[91].mxu1  ;;  %v5905_v39 = vpop.f32.mrb[103].mxu0 }
 0x9ce   :  { %v5796_v30 = vpop.f32.mrb[92].mxu1  ;;  %v5909_v11 = vpop.f32.mrb[104].mxu0 }
 0x9cf   :  { %v16790_v14 = vadd.f32 %v6037_v35, %v5796_v30  ;;  %v16792_v49 = vadd.f32 %v6039_v33, %v5909_v11  ;;  %v5798_v13 = vpop.f32.mrb[93].mxu1  ;;  %v5911_v7 = vpop.f32.mrb[105].mxu0  ;;  %v6047_v30 = vmul.f32 %v5784_v41, %v18376_v37  ;;  %v18377_v11 = vld [vmem:[#allocation69_spill] sm:$0xff]  ;;  %v18383_v37 = vld [vmem:[#allocation70_spill] sm:$0xff] }
 0x9d0   :  { %v16794_v52 = vadd.f32 %v6038_v53, %v5798_v13  ;;  %v16796_v24 = vadd.f32 %v6040_v3, %v5911_v7  ;;  %v6049_v13 = vmul.f32 %v5897_v26, %v18377_v11  ;;  %v6048_v7 = vmul.f32 %v5786_v17, %v18378_v47  ;;  %v18380_v26 = vld [vmem:[#allocation16_spill] sm:$0xff] }
 0x9d1   :  { %v9739_v32 = vmul.f32 -1.442695, %v16790_v14  ;;  %v6055_v11 = vmul.f32 %v5905_v39, %v18383_v37 }
 0x9d2   :  { %v9740_v20 = vmul.f32 -1.442695, %v16794_v52  ;;  %v5802_v35 = vpop.f32.mrb[94].mxu1  ;;  %v5915_v60 = vpop.f32.mrb[106].mxu0 }
 0x9d3   :  { %13693 = vpow2.f32 %v9739_v32  ;;  %v6062_v33 = vadd.f32 %v6042_v19, %v5802_v35  ;;  %v16804_v54 = vadd.f32 %v6044_v42, %v5915_v60  ;;  %v5804_v53 = vpop.f32.mrb[95].mxu1  ;;  %v5917_v55 = vpop.f32.mrb[107].mxu0  ;;  %v18381_v60 = vld [vmem:[#allocation71_spill] sm:$0xff] }
 0x9d4   :  { %v6063_v3 = vadd.f32 %v6043_v6, %v5804_v53  ;;  %v16806_v25 = vadd.f32 %v6045_v23, %v5917_v55  ;;  %13695 = vpow2.f32 %v9740_v20  ;;  %v6052_v20 = vmul.f32 %v5790_v63, %v18380_v26 }
 0x9d5   :  { %v9744_v15 = vmul.f32 -1.442695, %v6062_v33  ;;  %v6054_v53 = vmul.f32 %v5903_v0, %v18381_v60  ;;  %v6053_v55 = vmul.f32 %v5792_v10, %v18382_v45 }
 0x9d6   :  { %v9745_v57 = vmul.f32 -1.442695, %v6063_v3  ;;  %v5808_v32 = vpop.f32.mrb[96].mxu1  ;;  %v5921_v19 = vpop.f32.mrb[108].mxu0 }
 0x9d7   :  { %13697 = vpow2.f32 %v9744_v15  ;;  %v6067_v42 = vadd.f32 %v6047_v30, %v5808_v32  ;;  %v16812_v59 = vadd.f32 %v6049_v13, %v5921_v19  ;;  %v5810_v6 = vpop.f32.mrb[97].mxu1  ;;  %v5923_v23 = vpop.f32.mrb[109].mxu0 }
 0x9d8   :  { %v16814_v35 = vadd.f32 %v6048_v7, %v5810_v6  ;;  %v16816_v41 = vadd.f32 %v6050_v40, %v5923_v23  ;;  %13699 = vpow2.f32 %v9745_v57 }
 0x9d9   :  { %v9749_v17 = vmul.f32 -1.442695, %v6067_v42 }
 0x9da   :  { %v5814_v15 = vpop.f32.mrb[98].mxu1  ;;  %v5927_v30 = vpop.f32.mrb[110].mxu0 }
 0x9db   :  { %13701 = vpow2.f32 %v9749_v17  ;;  %v6072_v13 = vadd.f32 %v6052_v20, %v5814_v15  ;;  %v16822_v47 = vadd.f32 %v6054_v53, %v5927_v30  ;;  %v5816_v7 = vpop.f32.mrb[99].mxu1  ;;  %v5929_v29 = vpop.f32.mrb[111].mxu0 }
 0x9dc   :  { %v16824_v40 = vadd.f32 %v6053_v55, %v5816_v7  ;;  %v16826_v32 = vadd.f32 %v6055_v11, %v5929_v29  ;;  %v18384_v29 = vld [vmem:[#allocation40_spill] sm:$0xff] }
 0x9dd   :  { %v13694_v63 = vpop.eup %13693  ;;  %v9754_v0 = vmul.f32 -1.442695, %v6072_v13 }
 0x9de   :  { %v6137_v57 = vadd.f32 1.0, %v13694_v63  ;;  %v13696_v19 = vpop.eup %13695 }
 0x9df   :  { %13703 = vpow2.f32 %v9754_v0  ;;  %v6138_v10 = vadd.f32 1.0, %v13696_v19  ;;  %v18386_v0 = vld [vmem:[#allocation41_spill] sm:$0xff] }
 0x9e0   :  { %13705 = vrcp.f32 %v6137_v57 }
 0x9e1   :  { %v13698_v39 = vpop.eup %13697  ;;  %13707 = vrcp.f32 %v6138_v10 }
 0x9e2   :  { %v6142_v6 = vadd.f32 1.0, %v13698_v39  ;;  %v13700_v23 = vpop.eup %13699  ;;  %v18388_v39 = vld [vmem:[#allocation42_spill] sm:$0xff] }
 0x9e3   :  { %v6143_v26 = vadd.f32 1.0, %v13700_v23  ;;  %v18390_v23 = vld [vmem:[#allocation43_spill] sm:$0xff] }
 0x9e4   :  { %13709 = vrcp.f32 %v6142_v6 }
 0x9e5   :  { %v13702_v20 = vpop.eup %13701  ;;  %13711 = vrcp.f32 %v6143_v26 }
 0x9e6   :  { %v6147_v60 = vadd.f32 1.0, %v13702_v20 }
 0x9e8   :  { %13713 = vrcp.f32 %v6147_v60  ;;  %v18392_v60 = vld [vmem:[#allocation44_spill] sm:$0xff] }
 0x9e9   :  { %v13704_v53 = vpop.eup %13703 }
 0x9ea   :  { %v13706_v17 = vpop.eup %13705  ;;  %v6152_v45 = vadd.f32 1.0, %v13704_v53 }
 0x9eb   :  { %v13708_v55 = vpop.eup %13707  ;;  %v6197_v37 = vmul.f32 %v13706_v17, %v16790_v14  ;;  %v18394_v17 = vld [vmem:[#allocation61_spill] sm:$0xff] }
 0x9ec   :  { %13715 = vrcp.f32 %v6152_v45  ;;  %v6198_v15 = vmul.f32 %v13708_v55, %v16794_v52 }
 0x9ed   :  { %v16831_v63 = vadd.f32 %v6197_v37, %v18384_v29  ;;  %v9741_v37 = vmul.f32 -1.442695, %v16792_v49  ;;  %v9742_v29 = vmul.f32 -1.442695, %v16796_v24 }
 0x9ee   :  { %v13710_v11 = vpop.eup %13709  ;;  %v16837_v6 = vadd.f32 %v6198_v15, %v18388_v39  ;;  %v9750_v15 = vmul.f32 -1.442695, %v16814_v35  ;;  %v18396_v39 = vld [vmem:[#allocation20_spill] sm:$0xff] }
 0x9ef   :  { %v6202_v30 = vmul.f32 %v13710_v11, %v6062_v33  ;;  %v13712_v7 = vpop.eup %13711  ;;  %18385 = vst [vmem:[#allocation50_spill] sm:$0xff] %v16831_v63  ;;  %v9746_v11 = vmul.f32 -1.442695, %v16804_v54  ;;  %13717 = vpow2.f32 %v9741_v37 }
 0x9f0   :  { %v6203_v19 = vmul.f32 %v13712_v7, %v6063_v3  ;;  %18389 = vst [vmem:[#allocation53_spill] sm:$0xff] %v16837_v6 }
 0x9f1   :  { %v16834_v57 = vadd.f32 %v6202_v30, %v18386_v0  ;;  %v9755_v30 = vmul.f32 -1.442695, %v16824_v40  ;;  %13719 = vpow2.f32 %v9746_v11  ;;  %v9756_v11 = vmul.f32 -1.442695, %v16822_v47 }
 0x9f2   :  { %v13714_v10 = vpop.eup %13713  ;;  %v16840_v26 = vadd.f32 %v6203_v19, %v18390_v23  ;;  %v9747_v19 = vmul.f32 -1.442695, %v16806_v25  ;;  %13721 = vpow2.f32 %v9750_v15 }
 0x9f3   :  { %18387 = vst [vmem:[#allocation65_spill] sm:$0xff] %v16834_v57  ;;  %v16844_v14 = vpack.i.bf16 %v16834_v57, %v16831_v63  ;;  %v6207_v52 = vmul.f32 %v13714_v10, %v6067_v42  ;;  %v9751_v10 = vmul.f32 -1.442695, %v16812_v59  ;;  %13723 = vpow2.f32 %v9755_v30 }
 0x9f4   :  { %18391 = vst [vmem:[#allocation64_spill] sm:$0xff] %v16840_v26  ;;  %v16850_v33 = vpack.i.bf16 %v16840_v26, %v16837_v6  ;;  %13725 = vpow2.f32 %v9742_v29  ;;  %v9757_v30 = vmul.f32 -1.442695, %v16826_v32 }
 0x9f5   :  { %13398 = vrot.lane.b32.xlu1 %v16844_v14, %s13887_s0  ;;  %v16855_v53 = vadd.f32 %v6207_v52, %v18392_v60  ;;  %v9752_v52 = vmul.f32 -1.442695, %v16816_v41  ;;  %13727 = vpow2.f32 %v9747_v19 }
 0x9f6   :  { %v13716_v3 = vpop.eup %13715  ;;  %13403 = vrot.lane.b32.xlu0 %v16850_v33, %s13887_s0  ;;  %13729 = vpow2.f32 %v9751_v10 }
 0x9f7   :  { %v6212_v20 = vmul.f32 %v13716_v3, %v6072_v13  ;;  %18393 = vst [vmem:[#allocation7_spill] sm:$0xff] %v16855_v53  ;;  %v18397_v3 = vld [vmem:[#allocation18_spill] sm:$0xff]  ;;  %13731 = vpow2.f32 %v9752_v52 }
 0x9f9   :  { %v16858_v45 = vadd.f32 %v6212_v20, %v18394_v17 }
 0x9fb   :  { %18395 = vst [vmem:[#allocation67_spill] sm:$0xff] %v16858_v45  ;;  %v16862_v42 = vpack.i.bf16 %v16858_v45, %v16855_v53 }
 0x9fd   :  { %13408 = vrot.lane.b32.xlu0 %v16862_v42, %s13887_s0 }
 0x9fe   :  { %v11315_v55 = vpop.f32.mrb[100].mxu1 }
 0x9ff   :  { %v5998_v13 = vpop.f32.mrb[101].mxu1  ;;  %v6046_v23 = vmul.f32 %v11315_v55, %v18396_v39  ;;  %v18399_v39 = vld [vmem:[#allocation62_spill] sm:$0xff] }
 0xa00   :  { %v6041_v20 = vmul.f32 %v5998_v13, %v18397_v3 }
 0xa02   :  { %v11318_v7 = vpop.f32.mrb[102].mxu1 }
 0xa03   :  { %v6008_v0 = vpop.f32.mrb[103].mxu1  ;;  %v6056_v15 = vmul.f32 %v11318_v7, %v18398_v28 }
 0xa04   :  { %v6051_v13 = vmul.f32 %v6008_v0, %v18399_v39 }
 0xa06   :  { %v11321_v60 = vpop.f32.mrb[104].mxu1 }
 0xa07   :  { %v16876_v17 = vadd.f32 %v11321_v60, %v6046_v23  ;;  %v6018_v37 = vpop.f32.mrb[105].mxu1 }
 0xa08   :  { %v16878_v31 = vadd.f32 %v6041_v20, %v6018_v37  ;;  %v13718_v20 = vpop.eup %13717 }
 0xa09   :  { %v9748_v55 = vmul.f32 -1.442695, %v16876_v17  ;;  %v13720_v7 = vpop.eup %13719  ;;  %v6139_v37 = vadd.f32 1.0, %v13718_v20 }
 0xa0a   :  { %v9743_v29 = vmul.f32 -1.442695, %v16878_v31  ;;  %v11324_v23 = vpop.f32.mrb[106].mxu1  ;;  %v13722_v60 = vpop.eup %13721 }
 0xa0b   :  { %13733 = vpow2.f32 %v9748_v55  ;;  %v16886_v3 = vadd.f32 %v11324_v23, %v6056_v15  ;;  %v6028_v19 = vpop.f32.mrb[107].mxu1  ;;  %v13724_v0 = vpop.eup %13723  ;;  %v6144_v15 = vadd.f32 1.0, %v13720_v7  ;;  %v6148_v23 = vadd.f32 1.0, %v13722_v60 }
 0xa0c   :  { %13735 = vpow2.f32 %v9743_v29  ;;  %v16888_v10 = vadd.f32 %v6051_v13, %v6028_v19  ;;  %v13726_v55 = vpop.eup %13725  ;;  %v6153_v13 = vadd.f32 1.0, %v13724_v0 }
 0xa0d   :  { %13737 = vpow2.f32 %v9756_v11  ;;  %v9758_v28 = vmul.f32 -1.442695, %v16886_v3  ;;  %v13728_v39 = vpop.eup %13727  ;;  %v6140_v21 = vadd.f32 1.0, %v13726_v55 }
 0xa0e   :  { %13739 = vpow2.f32 %v9757_v30  ;;  %v9753_v52 = vmul.f32 -1.442695, %v16888_v10  ;;  %v13730_v29 = vpop.eup %13729  ;;  %v6145_v36 = vadd.f32 1.0, %v13728_v39 }
 0xa0f   :  { %13741 = vpow2.f32 %v9758_v28  ;;  %v13732_v19 = vpop.eup %13731 }
 0xa10   :  { %13743 = vpow2.f32 %v9753_v52  ;;  %v6150_v39 = vadd.f32 1.0, %v13732_v19  ;;  %v18400_v19 = vld [vmem:[#allocation39_spill] sm:$0xff] }
 0xa11   :  { %13745 = vrcp.f32 %v6139_v37 }
 0xa12   :  { %13747 = vrcp.f32 %v6144_v15  ;;  %v6149_v15 = vadd.f32 1.0, %v13730_v29 }
 0xa13   :  { %13749 = vrcp.f32 %v6148_v23 }
 0xa14   :  { %13751 = vrcp.f32 %v6153_v13 }
 0xa15   :  { %v13734_v11 = vpop.eup %13733 }
 0xa16   :  { %v13736_v58 = vpop.eup %13735  ;;  %v6146_v30 = vadd.f32 1.0, %v13734_v11 }
 0xa17   :  { %v13738_v62 = vpop.eup %13737  ;;  %v6141_v28 = vadd.f32 1.0, %v13736_v58 }
 0xa18   :  { %v13740_v20 = vpop.eup %13739  ;;  %13753 = vrcp.f32 %v6146_v30  ;;  %v6154_v60 = vadd.f32 1.0, %v13738_v62 }
 0xa19   :  { %v13742_v52 = vpop.eup %13741  ;;  %13755 = vrcp.f32 %v6141_v28  ;;  %v6155_v37 = vadd.f32 1.0, %v13740_v20 }
 0xa1a   :  { %v13744_v7 = vpop.eup %13743  ;;  %13757 = vrcp.f32 %v6145_v36  ;;  %v6156_v0 = vadd.f32 1.0, %v13742_v52 }
 0xa1b   :  { %13759 = vrcp.f32 %v6140_v21  ;;  %v6151_v22 = vadd.f32 1.0, %v13744_v7  ;;  %v13746_v23 = vpop.eup %13745  ;;  %v18401_v7 = vld [vmem:[#allocation38_spill] sm:$0xff] }
 0xa1c   :  { %13761 = vrcp.f32 %v6156_v0  ;;  %v13748_v55 = vpop.eup %13747 }
 0xa1d   :  { %13763 = vrcp.f32 %v6151_v22  ;;  %v13750_v58 = vpop.eup %13749 }
 0xa1e   :  { %13765 = vrcp.f32 %v6154_v60  ;;  %v13752_v13 = vpop.eup %13751  ;;  %v6208_v52 = vmul.f32 %v13750_v58, %v16814_v35  ;;  %v6199_v58 = vmul.f32 %v13746_v23, %v16792_v49  ;;  %v18411_v49 = vld [vmem:[#allocation51_spill] sm:$0xff] }
 0xa1f   :  { %13767 = vrcp.f32 %v6155_v37  ;;  %v6213_v21 = vmul.f32 %v13752_v13, %v16824_v40  ;;  %v6204_v37 = vmul.f32 %v13748_v55, %v16804_v54 }
 0xa20   :  { %13769 = vrcp.f32 %v6149_v15 }
 0xa21   :  { %13771 = vrcp.f32 %v6150_v39  ;;  %v18402_v39 = vld [vmem:[#allocation56_spill] sm:$0xff] }
 0xa22   :  { %v13754_v11 = vpop.eup %13753 }
 0xa23   :  { %v13756_v30 = vpop.eup %13755  ;;  %v6206_v62 = vmul.f32 %v13754_v11, %v16876_v17 }
 0xa24   :  { %v13758_v36 = vpop.eup %13757  ;;  %v6201_v29 = vmul.f32 %v13756_v30, %v16878_v31  ;;  %v16906_v31 = vadd.f32 %v6213_v21, %v18402_v39  ;;  %v18404_v30 = vld [vmem:[#allocation57_spill] sm:$0xff] }
 0xa25   :  { %v13760_v28 = vpop.eup %13759  ;;  %v16896_v22 = vadd.f32 %v6206_v62, %v18400_v19  ;;  %v6205_v17 = vmul.f32 %v13758_v36, %v16806_v25  ;;  %v18407_v36 = vld [vmem:[#allocation58_spill] sm:$0xff] }
 0xa26   :  { %v13762_v20 = vpop.eup %13761  ;;  %v16900_v60 = vadd.f32 %v6201_v29, %v18401_v7  ;;  %18403 = vst [vmem:[#allocation6_spill] sm:$0xff] %v16906_v31  ;;  %v6200_v25 = vmul.f32 %v13760_v28, %v16796_v24  ;;  %v18409_v29 = vld [vmem:[#allocation47_spill] sm:$0xff]  ;;  %v18413_v7 = vld [vmem:[#allocation52_spill] sm:$0xff] }
 0xa27   :  { %v13764_v0 = vpop.eup %13763  ;;  %v6216_v15 = vmul.f32 %v13762_v20, %v16886_v3  ;;  %v18405_v3 = vld [vmem:[#allocation54_spill] sm:$0xff]  ;;  %v16927_v19 = vadd.f32 %v6204_v37, %v18409_v29  ;;  %v16930_v23 = vadd.f32 %v6205_v17, %v18411_v49 }
 0xa28   :  { %v13766_v40 = vpop.eup %13765  ;;  %v6211_v13 = vmul.f32 %v13764_v0, %v16888_v10  ;;  %v16911_v11 = vpack.i.bf16 %v16896_v22, %v16900_v60  ;;  %v16919_v55 = vadd.f32 %v6208_v52, %v18405_v3  ;;  %v16939_v0 = vadd.f32 %v6199_v58, %v18413_v7 }
 0xa29   :  { %v13768_v35 = vpop.eup %13767  ;;  %v16915_v62 = vadd.f32 %v6216_v15, %v18404_v30  ;;  %18410 = vst [vmem:[#allocation69_spill] sm:$0xff] %v16927_v19  ;;  %18412 = vst [vmem:[#allocation10_spill] sm:$0xff] %v16930_v23  ;;  %v6214_v20 = vmul.f32 %v13766_v40, %v16822_v47  ;;  %v18415_v15 = vld [vmem:[#allocation49_spill] sm:$0xff]  ;;  %v18417_v47 = vld [vmem:[#allocation48_spill] sm:$0xff] }
 0xa2a   :  { %v13770_v54 = vpop.eup %13769  ;;  %18406 = vst [vmem:[#allocation66_spill] sm:$0xff] %v16919_v55  ;;  %v16922_v21 = vadd.f32 %v6211_v13, %v18407_v36  ;;  %13413 = vrot.lane.b32.xlu1 %v16911_v11, %s13887_s0  ;;  %v6215_v24 = vmul.f32 %v13768_v35, %v16826_v32  ;;  %v13417_v28 = vpack.i.bf16 %v16906_v31, %v16919_v55  ;;  %18414 = vst [vmem:[#allocation68_spill] sm:$0xff] %v16939_v0  ;;  %v18419_v40 = vld [vmem:[#allocation59_spill] sm:$0xff]  ;;  %v18421_v30 = vld [vmem:[#allocation46_spill] sm:$0xff] }
 0xa2b   :  { %v13772_v10 = vpop.eup %13771  ;;  %v16942_v39 = vadd.f32 %v6200_v25, %v18415_v15  ;;  %v6209_v37 = vmul.f32 %v13770_v54, %v16812_v59  ;;  %v16949_v32 = vadd.f32 %v6214_v20, %v18417_v47  ;;  %v13427_v35 = vpack.i.bf16 %v16927_v19, %v16939_v0  ;;  %v9840_v15 = vld [vmem:[%s17978_s6 + $0x48] sm:$0xff]  ;;  %v9845_v47 = vld [vmem:[%s17979_s7 + $0x50] sm:$0xff] }
 0xa2c   :  { %18408 = vst [vmem:[#allocation12_spill] sm:$0xff] %v16922_v21  ;;  %v13422_v52 = vpack.i.bf16 %v16915_v62, %v16922_v21  ;;  %v6210_v17 = vmul.f32 %v13772_v10, %v16816_v41  ;;  %v16952_v13 = vadd.f32 %v6215_v24, %v18419_v40  ;;  %v18423_v41 = vld [vmem:[#allocation55_spill] sm:$0xff]  ;;  %v9846_v40 = vld [vmem:[%s17979_s7 + $0x58] sm:$0xff] }
 0xa2d   :  { %18416 = vst [vmem:[#allocation16_spill] sm:$0xff] %v16942_v39  ;;  %18418 = vst [vmem:[#allocation71_spill] sm:$0xff] %v16949_v32  ;;  %v13432_v58 = vpack.i.bf16 %v16930_v23, %v16942_v39  ;;  %v16959_v59 = vadd.f32 %v6209_v37, %v18421_v30  ;;  %v9841_v37 = vld [vmem:[%s17978_s6 + $0x50] sm:$0xff] }
 0xa2e   :  { %13418 = vrot.lane.b32.xlu1 %v13417_v28, %s13887_s0  ;;  %13423 = vrot.lane.b32.xlu0 %v13422_v52, %s13887_s0  ;;  %18420 = vst [vmem:[#allocation14_spill] sm:$0xff] %v16952_v13  ;;  %v16962_v54 = vadd.f32 %v6210_v17, %v18423_v41  ;;  %v9844_v17 = vld [vmem:[%s17979_s7 + $0x48] sm:$0xff]  ;;  %v9849_v30 = vld [vmem:[%s17980_s8 + $0x50] sm:$0xff] }
 0xa2f   :  { %18422 = vst [vmem:[#allocation70_spill] sm:$0xff] %v16959_v59  ;;  %v13437_v25 = vpack.i.bf16 %v16949_v32, %v16959_v59  ;;  %v9850_v41 = vld [vmem:[%s17980_s8 + $0x58] sm:$0xff] }
 0xa30   :  { %18424 = vst [vmem:[#allocation40_spill] sm:$0xff] %v16962_v54  ;;  %v13442_v3 = vpack.i.bf16 %v16952_v13, %v16962_v54 }
 0xa32   :  { %13428 = vrot.lane.b32.xlu1 %v13427_v35, %s13887_s0  ;;  %13433 = vrot.lane.b32.xlu0 %v13432_v58, %s13887_s0 }
 0xa36   :  { %13438 = vrot.lane.b32.xlu1 %v13437_v25, %s13887_s0  ;;  %13443 = vrot.lane.b32.xlu0 %v13442_v3, %s13887_s0 }
 0xa3a   :  { %13448 = vrot.lane.b32.xlu1 %v16844_v14, %s13889_s23  ;;  %13453 = vrot.lane.b32.xlu0 %v16850_v33, %s13889_s23 }
 0xa3e   :  { %13458 = vrot.lane.b32.xlu1 %v16911_v11, %s13889_s23  ;;  %13463 = vrot.lane.b32.xlu0 %v16862_v42, %s13889_s23 }
 0xa42   :  { %13468 = vrot.lane.b32.xlu1 %v13417_v28, %s13889_s23  ;;  %13473 = vrot.lane.b32.xlu0 %v13422_v52, %s13889_s23 }
 0xa46   :  { %13478 = vrot.lane.b32.xlu1 %v13427_v35, %s13889_s23  ;;  %13483 = vrot.lane.b32.xlu0 %v13432_v58, %s13889_s23 }
 0xa4a   :  { %13488 = vrot.lane.b32.xlu1 %v13437_v25, %s13889_s23  ;;  %13493 = vrot.lane.b32.xlu0 %v13442_v3, %s13889_s23 }
 0xa4e   :  { %13498 = vrot.lane.b32.xlu1 %v16850_v33, %s13890_s24  ;;  %13503 = vrot.lane.b32.xlu0 %v13427_v35, %s13890_s24 }
 0xa52   :  { %13508 = vrot.lane.b32.xlu1 %v16844_v14, %s13890_s24  ;;  %13513 = vrot.lane.b32.xlu0 %v13417_v28, %s13890_s24 }
 0xa56   :  { %13518 = vrot.lane.b32.xlu1 %v13437_v25, %s13890_s24  ;;  %13523 = vrot.lane.b32.xlu0 %v16862_v42, %s13890_s24 }
 0xa5a   :  { %13528 = vrot.lane.b32.xlu1 %v13432_v58, %s13890_s24  ;;  %13533 = vrot.lane.b32.xlu0 %v16911_v11, %s13890_s24 }
 0xa5e   :  { %13538 = vrot.lane.b32.xlu1 %v13442_v3, %s13890_s24  ;;  %13543 = vrot.lane.b32.xlu0 %v13422_v52, %s13890_s24 }
 0xa62   :  { %13548 = vrot.lane.b32.xlu1 %v16850_v33, %s13891_s25  ;;  %13553 = vrot.lane.b32.xlu0 %v13427_v35, %s13891_s25  ;;  %v9847_v35 = vld [vmem:[%s17980_s8 + $0x40] sm:$0xff] }
 0xa66   :  { %13558 = vrot.lane.b32.xlu1 %v16844_v14, %s13891_s25  ;;  %13563 = vrot.lane.b32.xlu0 %v13417_v28, %s13891_s25 }
 0xa67   :  { %v13399_v36 = vpop.permute.xlu1 %13398 }
 0xa68   :  { %v13401_v10 = vunpack.i.h.bf16 %v13399_v36  ;;  %v13400_v29 = vunpack.i.l.bf16 %v13399_v36  ;;  %v17006_v49 = vpop.permute.xlu0 %13403 }
 0xa69   :  { %v13406_v20 = vunpack.i.h.bf16 %v17006_v49  ;;  %v18157_v24 = vunpack.i.l.bf16 %v17006_v49  ;;  %v18426_v34 = vunpack.i.l.bf16 %v17006_v49 }
 0xa6a   :  { %13568 = vrot.lane.b32.xlu1 %v13437_v25, %s13891_s25  ;;  %13573 = vrot.lane.b32.xlu0 %v16862_v42, %s13891_s25  ;;  %v9839_v42 = vld [vmem:[%s17978_s6 + $0x40] sm:$0xff] }
 0xa6b   :  { %v6294_v14 = vsel %vm832_vm2, %v13400_v29, %v18157_v24  ;;  %v6295_v28 = vsel %vm832_vm2, %v13401_v10, %v13406_v20  ;;  %v132_v25 = vld [vmem:[#allocation2] sm:$0x1] }
 0xa6c   :  { %v12358_v7 = vpack.c.bf16 %v6295_v28, %v6294_v14 }
 0xa6e   :  { %13578 = vrot.lane.b32.xlu1 %v13432_v58, %s13891_s25  ;;  %13583 = vrot.lane.b32.xlu0 %v16911_v11, %s13891_s25  ;;  %v9842_v11 = vld [vmem:[%s17978_s6 + $0x58] sm:$0xff]  ;;  %v9848_v58 = vld [vmem:[%s17980_s8 + $0x48] sm:$0xff] }
 0xa6f   :  { %12359 = vmatprep.subr.bf16.mxu0 %v12358_v7 }
 0xa72   :  { %13588 = vrot.lane.b32.xlu1 %v13442_v3, %s13891_s25  ;;  %13593 = vrot.lane.b32.xlu0 %v13422_v52, %s13891_s25  ;;  %v9843_v52 = vld [vmem:[%s17979_s7 + $0x40] sm:$0xff]  ;;  %v13409_v3 = vpop.permute.xlu0 %13408 }
 0xa76   :  { %7944 = vperm.xlu1 %12996, %v9839_v42   ;;  %7949 = vperm.xlu0 %12992, %v9840_v15   ;;  %v13411_v15 = vunpack.i.h.bf16 %v13409_v3 }
 0xa7a   :  { %7954 = vperm.xlu1 %12996, %v9841_v37   ;;  %7959 = vperm.xlu0 %12992, %v9842_v11   ;;  %v13410_v37 = vunpack.i.l.bf16 %v13409_v3 }
 0xa7e   :  { %8352 = vperm.xlu1 %12996, %v9843_v52   ;;  %8357 = vperm.xlu0 %12992, %v9844_v17  }
 0xa82   :  { %8362 = vperm.xlu1 %12996, %v9845_v47   ;;  %8367 = vperm.xlu0 %12992, %v9846_v40  }
 0xa86   :  { %8385 = vperm.xlu1 %12996, %v9847_v35   ;;  %8390 = vperm.xlu0 %12992, %v9848_v58  }
 0xa8a   :  { %8395 = vperm.xlu1 %12996, %v9849_v30   ;;  %8400 = vperm.xlu0 %12992, %v9850_v41  }
 0xa8e   :  { %8964 = vperm.xlu1 %12996, %v132_v25  }
 0xa9c   :  { %v13414_v36 = vpop.permute.xlu1 %13413 }
 0xa9d   :  { %v13416_v14 = vunpack.i.h.bf16 %v13414_v36  ;;  %v13415_v28 = vunpack.i.l.bf16 %v13414_v36 }
 0xa9f   :  { %v6299_v7 = vsel %vm832_vm2, %v13416_v14, %v13401_v10  ;;  %v6298_v42 = vsel %vm832_vm2, %v13415_v28, %v13400_v29 }
 0xaa0   :  { %v12360_v11 = vpack.c.bf16 %v6299_v7, %v6298_v42  ;;  %v13419_v52 = vpop.permute.xlu1 %13418  ;;  %v13424_v17 = vpop.permute.xlu0 %13423 }
 0xaa1   :  { %v13421_v47 = vunpack.i.h.bf16 %v13419_v52  ;;  %v13420_v40 = vunpack.i.l.bf16 %v13419_v52  ;;  %v13426_v35 = vunpack.i.h.bf16 %v13424_v17  ;;  %v13425_v58 = vunpack.i.l.bf16 %v13424_v17 }
 0xaa2   :  { %12361 = vmatpush1.bf16.msra.mxu0 %v12360_v11 }
 0xaa3   :  { %v6301_v30 = vsel %vm832_vm2, %v13426_v35, %v13411_v15  ;;  %v6300_v41 = vsel %vm832_vm2, %v13425_v58, %v13410_v37  ;;  %v6296_v10 = vsel %vm832_vm2, %v13410_v37, %v13420_v40  ;;  %v6297_v29 = vsel %vm832_vm2, %v13411_v15, %v13421_v47  ;;  %v9763_v15 = vld [vmem:[%s17977_s5 + $0x140] sm:$0xff] }
 0xaa4   :  { %v12364_v25 = vpack.c.bf16 %v6301_v30, %v6300_v41  ;;  %v13429_v3 = vpop.permute.xlu1 %13428  ;;  %v13434_v36 = vpop.permute.xlu0 %13433  ;;  %v12362_v7 = vpack.c.bf16 %v6297_v29, %v6296_v10 }
 0xaa5   :  { %v13431_v42 = vunpack.i.h.bf16 %v13429_v3  ;;  %v13430_v52 = vunpack.i.l.bf16 %v13429_v3  ;;  %v13436_v17 = vunpack.i.h.bf16 %v13434_v36  ;;  %v13435_v11 = vunpack.i.l.bf16 %v13434_v36 }
 0xaa6   :  { %12363 = vmatprep.subr.bf16.mxu0 %v12362_v7 }
 0xaa7   :  { %v6291_v24 = vsel %vm832_vm2, %v13406_v20, %v13431_v42  ;;  %v6290_v37 = vsel %vm832_vm2, %v18426_v34, %v13430_v52  ;;  %12365 = vmatpush1.bf16.msra.mxu0 %v12364_v25  ;;  %v6286_v30 = vsel %vm832_vm2, %v13430_v52, %v13435_v11  ;;  %v6287_v41 = vsel %vm832_vm2, %v13431_v42, %v13436_v17 }
 0xaa8   :  { %v12368_v10 = vpack.c.bf16 %v6291_v24, %v6290_v37  ;;  %v13439_v29 = vpop.permute.xlu1 %13438  ;;  %v13444_v3 = vpop.permute.xlu0 %13443  ;;  %v12366_v20 = vpack.c.bf16 %v6287_v41, %v6286_v30  ;;  %v9764_v24 = vld [vmem:[%s17977_s5 + $0x148] sm:$0xff]  ;;  %v9765_v41 = vld [vmem:[%s17977_s5 + $0x150] sm:$0xff] }
 0xaa9   :  { %v13441_v36 = vunpack.i.h.bf16 %v13439_v29  ;;  %v13440_v49 = vunpack.i.l.bf16 %v13439_v29  ;;  %v13446_v7 = vunpack.i.h.bf16 %v13444_v3  ;;  %v13445_v2 = vunpack.i.l.bf16 %v13444_v3  ;;  %v9759_v3 = vld [vmem:[%s17977_s5 + $0x180] sm:$0xff] }
 0xaaa   :  { %9767 = vmatmul.mubr.msk.f32.vlgmr.msra.gmra.mrb[112].mxu0 %vm249_vm0, %v9763_v15  ;;  %12367 = vmatprep.subr.bf16.mxu0 %v12366_v20  ;;  %v12382_v29 = vpack.c.bf16 %v16840_v26, %v16837_v6  ;;  %v12392_v20 = vpack.c.bf16 %v16927_v19, %v16939_v0 }
 0xaab   :  { %v6292_v34 = vsel %vm832_vm2, %v13420_v40, %v13440_v49  ;;  %v6293_v25 = vsel %vm832_vm2, %v13421_v47, %v13441_v36  ;;  %12369 = vmatpush1.bf16.msra.mxu0 %v12368_v10  ;;  %6389 = vmatprep.mubr.f32.mxu0 %v18243_v50  ;;  %v6288_v42 = vsel %vm832_vm2, %v13440_v49, %v13445_v2  ;;  %v17156_v49 = vld [vmem:[%s17977_s5 + $0x188] sm:$0xff] }
 0xaac   :  { %v6289_v52 = vsel %vm832_vm2, %v13441_v36, %v13446_v7  ;;  %v12372_v37 = vpack.c.bf16 %v6293_v25, %v6292_v34  ;;  %v6282_v40 = vsel %vm832_vm2, %v13435_v11, %v13415_v28  ;;  %v6283_v47 = vsel %vm832_vm2, %v13436_v17, %v13416_v14  ;;  %v9766_v14 = vld [vmem:[%s17977_s5 + $0x158] sm:$0xff]  ;;  %v17168_v25 = vld [vmem:[%s17977_s5 + $0x190] sm:$0xff] }
 0xaad   :  { %v12370_v30 = vpack.c.bf16 %v6289_v52, %v6288_v42  ;;  %v12374_v10 = vpack.c.bf16 %v6283_v47, %v6282_v40  ;;  %v6284_v28 = vsel %vm832_vm2, %v13445_v2, %v13425_v58  ;;  %v6285_v17 = vsel %vm832_vm2, %v13446_v7, %v13426_v35  ;;  %v17170_v42 = vpop.permute.xlu0 %13453  ;;  %v17178_v52 = vld [vmem:[%s17977_s5 + $0x198] sm:$0xff] }
 0xaae   :  { %9768 = vmatmul.mubr.msk.f32.gmra.mrb[114].mxu0 %vm249_vm0, %v9764_v24  ;;  %v12378_v11 = vpack.c.bf16 %v6285_v17, %v6284_v28  ;;  %v12384_v2 = vpack.c.bf16 %v16834_v57, %v16831_v63  ;;  %v12386_v35 = vpack.c.bf16 %v16906_v31, %v16919_v55  ;;  %v12388_v58 = vpack.c.bf16 %v16858_v45, %v16855_v53  ;;  %v18441_v45 = vld [vmem:[#allocation33_spill] sm:$0xff] }
 0xaaf   :  { %6395 = vmatprep.mubr.f32.mxu0 %v18243_v50  ;;  %12371 = vmatprep.subr.bf16.mxu0 %v12370_v30  ;;  %v12394_v36 = vpack.c.bf16 %v16952_v13, %v16962_v54  ;;  %v12396_v7 = vpack.c.bf16 %v16949_v32, %v16959_v59  ;;  %v12398_v34 = vpack.c.bf16 %v16896_v22, %v16900_v60  ;;  %v18443_v57 = vld [vmem:[#allocation37_spill] sm:$0xff] }
 0xab0   :  { %12373 = vmatpush1.bf16.msra.mxu0 %v12372_v37 }
 0xab1   :  { %12375 = vmatprep.subr.bf16.mxu0 %v12374_v10  ;;  %v13464_v40 = vpop.permute.xlu0 %13463 }
 0xab2   :  { %9769 = vmatmul.mubr.msk.f32.gmra.mrb[116].mxu0 %vm249_vm0, %v9765_v41 }
 0xab3   :  { %6401 = vmatprep.mubr.f32.mxu0 %v18243_v50 }
 0xab6   :  { %9770 = vmatmul.mubr.msk.f32.gmra.mrb[118].mxu0 %vm249_vm0, %v9766_v14 }
 0xab7   :  { %6472 = vmatprep.mubr.f32.mxu0 %v18243_v50 }
 0xaba   :  { %9771 = vmatmul.mubr.msk.f32.vlgmr.msra.gmra.mrb[120].mxu0 %vm249_vm0, %v9763_v15 }
 0xabb   :  { %12377 = vmatpush3.bf16.msra.mxu0 %v12374_v10  ;;  %6478 = vmatprep.mubr.f32.mxu0 %v18243_v50  ;;  %v13455_v10 = vunpack.i.l.bf16 %v17170_v42 }
 0xabc   :  { %12379 = vmatprep.subr.bf16.mxu0 %v12378_v11 }
 0xabe   :  { %9772 = vmatmul.mubr.msk.f32.gmra.mrb[122].mxu0 %vm249_vm0, %v9764_v24 }
 0xabf   :  { %12381 = vmatpush3.bf16.msra.mxu0 %v12378_v11  ;;  %6484 = vmatprep.mubr.f32.mxu0 %v18243_v50 }
 0xac0   :  { %12383 = vmatprep.subr.bf16.mxu0 %v12382_v29  ;;  %v17195_v29 = vpop.permute.xlu0 %13473 }
 0xac2   :  { %9773 = vmatmul.mubr.msk.f32.gmra.mrb[124].mxu0 %vm249_vm0, %v9765_v41 }
 0xac3   :  { %6490 = vmatprep.mubr.f32.mxu0 %v18243_v50 }
 0xac6   :  { %9774 = vmatmul.mubr.msk.f32.gmra.mrb[126].mxu0 %vm249_vm0, %v9766_v14 }
 0xac7   :  { %11333 = vmatprep.mubr.msk.f32.mxu0 %vm249_vm0, %v9763_v15  ;;  %v12390_v15 = vpack.c.bf16 %v16930_v23, %v16942_v39 }
 0xaca   :  { %11334 = vmatmul.mubr.msk.f32.vlgmr.msra.gmra.mrb[128].mxu0 %vm249_vm0, %v9764_v24  ;;  %v13449_v24 = vpop.permute.xlu1 %13448 }
 0xacb   :  { %12385 = vmatpush1.bf16.msra.mxu0 %v12384_v2  ;;  %11336 = vmatprep.mubr.msk.f32.mxu0 %vm249_vm0, %v9765_v41  ;;  %v13451_v47 = vunpack.i.h.bf16 %v13449_v24  ;;  %v13450_v30 = vunpack.i.l.bf16 %v13449_v24  ;;  %v13456_v41 = vunpack.i.h.bf16 %v17170_v42  ;;  %v13465_v24 = vunpack.i.l.bf16 %v13464_v40 }
 0xacc   :  { %12387 = vmatprep.subr.bf16.mxu0 %v12386_v35 }
 0xacd   :  { %v6909_v28 = vsel %vm1447_vm3, %v13450_v30, %v13455_v10  ;;  %v6910_v17 = vsel %vm1447_vm3, %v13451_v47, %v13456_v41 }
 0xace   :  { %11337 = vmatmul.mubr.msk.f32.gmra.mrb[130].mxu0 %vm249_vm0, %v9766_v14  ;;  %v17180_v37 = vpop.permute.xlu1 %13458  ;;  %v12402_v14 = vpack.c.bf16 %v16915_v62, %v16922_v21  ;;  %v12406_v2 = vpack.c.bf16 %v6910_v17, %v6909_v28 }
 0xacf   :  { %12389 = vmatpush1.bf16.msra.mxu0 %v12388_v58  ;;  %6658 = vmatprep.mubr.f32.mxu0 %v18243_v50  ;;  %v13461_v35 = vunpack.i.h.bf16 %v17180_v37  ;;  %v13460_v58 = vunpack.i.l.bf16 %v17180_v37  ;;  %v13475_v37 = vunpack.i.l.bf16 %v17195_v29 }
 0xad0   :  { %12391 = vmatprep.subr.bf16.mxu0 %v12390_v15 }
 0xad1   :  { %v6913_v42 = vsel %vm1447_vm3, %v13460_v58, %v13450_v30 }
 0xad2   :  { %9779 = vmatmul.mubr.msk.f32.vlgmr.msra.gmra.mrb[112].mxu0 %vm249_vm0, %v9759_v3  ;;  %v13469_v11 = vpop.permute.xlu1 %13468 }
 0xad3   :  { %12393 = vmatpush1.bf16.msra.mxu0 %v12392_v20  ;;  %6664 = vmatprep.mubr.f32.mxu0 %v18243_v50  ;;  %v13484_v20 = vpop.permute.xlu0 %13483 }
 0xad4   :  { %12395 = vmatprep.subr.bf16.mxu0 %v12394_v36  ;;  %v13471_v36 = vunpack.i.h.bf16 %v13469_v11  ;;  %v13486_v13 = vunpack.i.h.bf16 %v13484_v20  ;;  %v13485_v54 = vunpack.i.l.bf16 %v13484_v20  ;;  %v18427_v20 = vunpack.i.h.bf16 %v17195_v29 }
 0xad6   :  { %9780 = vmatmul.mubr.msk.f32.gmra.mrb[114].mxu0 %vm249_vm0, %v17156_v49  ;;  %v13479_v15 = vpop.permute.xlu1 %13478 }
 0xad7   :  { %12397 = vmatpush1.bf16.msra.mxu0 %v12396_v7  ;;  %6670 = vmatprep.mubr.f32.mxu0 %v18243_v50  ;;  %v13470_v7 = vunpack.i.l.bf16 %v13469_v11  ;;  %v13481_v17 = vunpack.i.h.bf16 %v13479_v15  ;;  %v13494_v11 = vpop.permute.xlu0 %13493 }
 0xad8   :  { %12399 = vmatprep.subr.bf16.mxu0 %v12398_v34  ;;  %v13496_v39 = vunpack.i.h.bf16 %v13494_v11  ;;  %v13495_v19 = vunpack.i.l.bf16 %v13494_v11 }
 0xada   :  { %9781 = vmatmul.mubr.msk.f32.gmra.mrb[116].mxu0 %vm249_vm0, %v17168_v25 }
 0xadb   :  { %6676 = vmatprep.mubr.f32.mxu0 %v18243_v50  ;;  %v17274_v11 = vpop.permute.xlu0 %13503 }
 0xade   :  { %9782 = vmatmul.mubr.msk.f32.gmra.mrb[118].mxu0 %vm249_vm0, %v17178_v52 }
 0xadf   :  { %6747 = vmatprep.mubr.f32.mxu0 %v18243_v50 }
 0xae2   :  { %9783 = vmatmul.mubr.msk.f32.vlgmr.msra.gmra.mrb[120].mxu0 %vm249_vm0, %v9759_v3 }
 0xae3   :  { %12401 = vmatpush3.bf16.msra.mxu0 %v12398_v34  ;;  %6753 = vmatprep.mubr.f32.mxu0 %v18243_v50  ;;  %v13466_v34 = vunpack.i.h.bf16 %v13464_v40  ;;  %v6911_v40 = vsel %vm1447_vm3, %v13465_v24, %v13470_v7 }
 0xae4   :  { %12403 = vmatprep.subr.bf16.mxu0 %v12402_v14 }
 0xae5   :  { %v6912_v30 = vsel %vm1447_vm3, %v13466_v34, %v13471_v36  ;;  %v6916_v32 = vsel %vm1447_vm3, %v18427_v20, %v13466_v34 }
 0xae6   :  { %9784 = vmatmul.mubr.msk.f32.gmra.mrb[122].mxu0 %vm249_vm0, %v17156_v49 }
 0xae7   :  { %12405 = vmatpush3.bf16.msra.mxu0 %v12402_v14  ;;  %6759 = vmatprep.mubr.f32.mxu0 %v18243_v50  ;;  %v6914_v14 = vsel %vm1447_vm3, %v13461_v35, %v13451_v47  ;;  %v13489_v47 = vpop.permute.xlu1 %13488 }
 0xae8   :  { %12407 = vmatprep.subr.bf16.mxu0 %v12406_v2  ;;  %v13480_v2 = vunpack.i.l.bf16 %v13479_v15  ;;  %v12408_v28 = vpack.c.bf16 %v6914_v14, %v6913_v42  ;;  %v6915_v15 = vsel %vm1447_vm3, %v13475_v37, %v13465_v24  ;;  %v6902_v42 = vsel %vm1447_vm3, %v13481_v17, %v13486_v13 }
 0xae9   :  { %v13491_v14 = vunpack.i.h.bf16 %v13489_v47  ;;  %v13490_v23 = vunpack.i.l.bf16 %v13489_v47  ;;  %v12412_v34 = vpack.c.bf16 %v6916_v32, %v6915_v15  ;;  %v6906_v24 = vsel %vm1447_vm3, %v13456_v41, %v13481_v17  ;;  %v17260_v17 = vld [vmem:[%s17977_s5 + $0x168] sm:$0xff] }
 0xaea   :  { %9785 = vmatmul.mubr.msk.f32.gmra.mrb[124].mxu0 %vm249_vm0, %v17168_v25  ;;  %v6901_v59 = vsel %vm1447_vm3, %v13480_v2, %v13485_v54  ;;  %v18428_v15 = vmov %v18427_v20 }
 0xaeb   :  { %6765 = vmatprep.mubr.f32.mxu0 %v18243_v50  ;;  %v6903_v32 = vsel %vm1447_vm3, %v13490_v23, %v13495_v19  ;;  %v13499_v47 = vpop.permute.xlu1 %13498  ;;  %v6900_v20 = vsel %vm1447_vm3, %v13496_v39, %v18428_v15 }
 0xaee   :  { %9786 = vmatmul.mubr.msk.f32.gmra.mrb[126].mxu0 %vm249_vm0, %v17178_v52 }
 0xaef   :  { %11347 = vmatprep.mubr.msk.f32.mxu0 %vm249_vm0, %v9759_v3  ;;  %v12410_v3 = vpack.c.bf16 %v6912_v30, %v6911_v40  ;;  %v12414_v40 = vpack.c.bf16 %v6902_v42, %v6901_v59  ;;  %v6908_v59 = vsel %vm1447_vm3, %v13471_v36, %v13491_v14  ;;  %v17272_v30 = vld [vmem:[%s17977_s5 + $0x170] sm:$0xff]  ;;  %v13500_v42 = vunpack.i.l.bf16 %v13499_v47 }
 0xaf2   :  { %11348 = vmatmul.mubr.msk.f32.vlgmr.msra.gmra.mrb[128].mxu0 %vm249_vm0, %v17156_v49  ;;  %v6905_v49 = vsel %vm1447_vm3, %v13455_v10, %v13480_v2  ;;  %v6897_v2 = vsel %vm1447_vm3, %v13485_v54, %v13460_v58  ;;  %v17284_v54 = vpop.permute.xlu1 %13508  ;;  %v6899_v58 = vsel %vm1447_vm3, %v13495_v19, %v13475_v37 }
 0xaf3   :  { %12409 = vmatpush1.bf16.msra.mxu0 %v12408_v28  ;;  %11350 = vmatprep.mubr.msk.f32.mxu0 %vm249_vm0, %v17168_v25  ;;  %v17244_v28 = vld [vmem:[%s17977_s5 + $0x160] sm:$0xff]  ;;  %v6904_v25 = vsel %vm1447_vm3, %v13491_v14, %v13496_v39  ;;  %v12416_v41 = vpack.c.bf16 %v6906_v24, %v6905_v49  ;;  %v13506_v14 = vunpack.i.h.bf16 %v17274_v11  ;;  %v12426_v49 = vpack.c.bf16 %v6900_v20, %v6899_v58 }
 0xaf4   :  { %12411 = vmatprep.subr.bf16.mxu0 %v12410_v3  ;;  %v12418_v10 = vpack.c.bf16 %v6904_v25, %v6903_v32  ;;  %v13501_v3 = vunpack.i.h.bf16 %v13499_v47  ;;  %v13510_v32 = vunpack.i.l.bf16 %v17284_v54 }
 0xaf6   :  { %11351 = vmatmul.mubr.msk.f32.gmra.mrb[130].mxu0 %vm249_vm0, %v17178_v52  ;;  %v6907_v52 = vsel %vm1447_vm3, %v13470_v7, %v13490_v23  ;;  %v6898_v23 = vsel %vm1447_vm3, %v13486_v13, %v13461_v35  ;;  %v17282_v13 = vld [vmem:[%s17977_s5 + $0x178] sm:$0xff]  ;;  %v13514_v35 = vpop.permute.xlu0 %13513  ;;  %v7266_v39 = vsel %vm1808_vm4, %v13501_v3, %v13506_v14  ;;  %v13519_v29 = vpop.permute.xlu1 %13518 }
 0xaf7   :  { %12413 = vmatpush1.bf16.msra.mxu0 %v12412_v34  ;;  %6998 = vmatprep.mubr.f32.mxu0 %v18243_v50  ;;  %v12420_v36 = vpack.c.bf16 %v6908_v59, %v6907_v52  ;;  %v12422_v7 = vpack.c.bf16 %v6898_v23, %v6897_v2  ;;  %v13505_v34 = vunpack.i.l.bf16 %v17274_v11  ;;  %v13521_v52 = vunpack.i.h.bf16 %v13519_v29 }
 0xaf8   :  { %12415 = vmatprep.subr.bf16.mxu0 %v12414_v40  ;;  %v13511_v40 = vunpack.i.h.bf16 %v17284_v54  ;;  %v13520_v59 = vunpack.i.l.bf16 %v13519_v29  ;;  %v13515_v2 = vunpack.i.l.bf16 %v13514_v35  ;;  %v7269_v23 = vsel %vm1808_vm4, %v13510_v32, %v13500_v42 }
 0xaf9   :  { %v7265_v19 = vsel %vm1808_vm4, %v13500_v42, %v13505_v34 }
 0xafa   :  { %9795 = vmatmul.mubr.msk.f32.vlgmr.msra.gmra.mrb[112].mxu0 %vm249_vm0, %v17244_v28  ;;  %v17306_v37 = vpop.permute.xlu0 %13523  ;;  %v12430_v24 = vpack.c.bf16 %v7266_v39, %v7265_v19  ;;  %v13529_v25 = vpop.permute.xlu1 %13528 }
 0xafb   :  { %12417 = vmatpush1.bf16.msra.mxu0 %v12416_v41  ;;  %7004 = vmatprep.mubr.f32.mxu0 %v18243_v50  ;;  %v13525_v47 = vunpack.i.l.bf16 %v17306_v37  ;;  %v13531_v11 = vunpack.i.h.bf16 %v13529_v25  ;;  %v13530_v54 = vunpack.i.l.bf16 %v13529_v25 }
 0xafc   :  { %12419 = vmatprep.subr.bf16.mxu0 %v12418_v10  ;;  %v13516_v10 = vunpack.i.h.bf16 %v13514_v35  ;;  %v7267_v35 = vsel %vm1808_vm4, %v13515_v2, %v13520_v59 }
 0xafd   :  { %v7271_v19 = vsel %vm1808_vm4, %v13525_v47, %v13515_v2  ;;  %v7262_v2 = vsel %vm1808_vm4, %v13506_v14, %v13531_v11 }
 0xafe   :  { %9796 = vmatmul.mubr.msk.f32.gmra.mrb[114].mxu0 %vm249_vm0, %v17260_v17  ;;  %v13534_v41 = vpop.permute.xlu0 %13533  ;;  %v7268_v20 = vsel %vm1808_vm4, %v13516_v10, %v13521_v52 }
 0xaff   :  { %12421 = vmatpush1.bf16.msra.mxu0 %v12420_v36  ;;  %7010 = vmatprep.mubr.f32.mxu0 %v18243_v50  ;;  %v7270_v36 = vsel %vm1808_vm4, %v13511_v40, %v13501_v3  ;;  %v13536_v58 = vunpack.i.h.bf16 %v13534_v41  ;;  %v13535_v15 = vunpack.i.l.bf16 %v13534_v41  ;;  %v13539_v3 = vpop.permute.xlu1 %13538 }
 0xb00   :  { %12423 = vmatprep.subr.bf16.mxu0 %v12422_v7  ;;  %v13541_v25 = vunpack.i.h.bf16 %v13539_v3  ;;  %v13540_v41 = vunpack.i.l.bf16 %v13539_v3  ;;  %v17372_v3 = vld [vmem:[%s17977_s5 + $0x1a8] sm:$0xff] }
 0xb01   :  { %v7257_v29 = vsel %vm1808_vm4, %v13530_v54, %v13535_v15 }
 0xb02   :  { %9797 = vmatmul.mubr.msk.f32.gmra.mrb[116].mxu0 %vm249_vm0, %v17272_v30  ;;  %v13544_v42 = vpop.permute.xlu0 %13543 }
 0xb03   :  { %7016 = vmatprep.mubr.f32.mxu0 %v18243_v50 }
 0xb06   :  { %9798 = vmatmul.mubr.msk.f32.gmra.mrb[118].mxu0 %vm249_vm0, %v17282_v13 }
 0xb07   :  { %7087 = vmatprep.mubr.f32.mxu0 %v18243_v50 }
 0xb0a   :  { %9799 = vmatmul.mubr.msk.f32.vlgmr.msra.gmra.mrb[120].mxu0 %vm249_vm0, %v17244_v28 }
 0xb0b   :  { %12425 = vmatpush3.bf16.msra.mxu0 %v12422_v7  ;;  %7093 = vmatprep.mubr.f32.mxu0 %v18243_v50  ;;  %v13526_v7 = vunpack.i.h.bf16 %v17306_v37 }
 0xb0c   :  { %12427 = vmatprep.subr.bf16.mxu0 %v12426_v49 }
 0xb0d   :  { %v7272_v39 = vsel %vm1808_vm4, %v13526_v7, %v13516_v10 }
 0xb0e   :  { %9800 = vmatmul.mubr.msk.f32.gmra.mrb[122].mxu0 %vm249_vm0, %v17260_v17  ;;  %v12436_v10 = vpack.c.bf16 %v7272_v39, %v7271_v19  ;;  %v17384_v19 = vld [vmem:[%s17977_s5 + $0x1b0] sm:$0xff]  ;;  %v13549_v39 = vpop.permute.xlu1 %13548 }
 0xb0f   :  { %12429 = vmatpush3.bf16.msra.mxu0 %v12426_v49  ;;  %7099 = vmatprep.mubr.f32.mxu0 %v18243_v50  ;;  %v12432_v49 = vpack.c.bf16 %v7270_v36, %v7269_v23  ;;  %v13546_v23 = vunpack.i.h.bf16 %v13544_v42  ;;  %v13545_v36 = vunpack.i.l.bf16 %v13544_v42  ;;  %v7273_v42 = vsel %vm1808_vm4, %v13535_v15, %v13510_v32 }
 0xb10   :  { %12431 = vmatprep.subr.bf16.mxu0 %v12430_v24  ;;  %v7258_v24 = vsel %vm1808_vm4, %v13531_v11, %v13536_v58  ;;  %v7264_v11 = vsel %vm1808_vm4, %v13521_v52, %v13541_v25 }
 0xb11   :  { %v7275_v15 = vsel %vm1808_vm4, %v13545_v36, %v13525_v47 }
 0xb12   :  { %9801 = vmatmul.mubr.msk.f32.gmra.mrb[124].mxu0 %vm249_vm0, %v17272_v30  ;;  %v17396_v32 = vpop.permute.xlu1 %13558 }
 0xb13   :  { %7105 = vmatprep.mubr.f32.mxu0 %v18243_v50 }
 0xb16   :  { %9802 = vmatmul.mubr.msk.f32.gmra.mrb[126].mxu0 %vm249_vm0, %v17282_v13  ;;  %v13569_v47 = vpop.permute.xlu1 %13568 }
 0xb17   :  { %11361 = vmatprep.mubr.msk.f32.mxu0 %vm249_vm0, %v17244_v28  ;;  %v12434_v28 = vpack.c.bf16 %v7268_v20, %v7267_v35  ;;  %v12438_v35 = vpack.c.bf16 %v7258_v24, %v7257_v29  ;;  %v17356_v20 = vld [vmem:[%s17977_s5 + $0x1a0] sm:$0xff]  ;;  %v7276_v29 = vsel %vm1808_vm4, %v13546_v23, %v13526_v7  ;;  %v13551_v24 = vunpack.i.h.bf16 %v13549_v39 }
 0xb1a   :  { %11362 = vmatmul.mubr.msk.f32.vlgmr.msra.gmra.mrb[128].mxu0 %vm249_vm0, %v17260_v17  ;;  %v7261_v17 = vsel %vm1808_vm4, %v13505_v34, %v13530_v54  ;;  %v7260_v34 = vsel %vm1808_vm4, %v13541_v25, %v13546_v23  ;;  %v13550_v25 = vunpack.i.l.bf16 %v13549_v39 }
 0xb1b   :  { %12433 = vmatpush1.bf16.msra.mxu0 %v12432_v49  ;;  %11364 = vmatprep.mubr.msk.f32.mxu0 %vm249_vm0, %v17272_v30  ;;  %v7259_v30 = vsel %vm1808_vm4, %v13540_v41, %v13545_v36  ;;  %v12440_v14 = vpack.c.bf16 %v7262_v2, %v7261_v17  ;;  %v12450_v17 = vpack.c.bf16 %v7276_v29, %v7275_v15  ;;  %v13561_v2 = vunpack.i.h.bf16 %v17396_v32 }
 0xb1c   :  { %12435 = vmatprep.subr.bf16.mxu0 %v12434_v28  ;;  %v12442_v54 = vpack.c.bf16 %v7260_v34, %v7259_v30  ;;  %v17386_v28 = vpop.permute.xlu0 %13553  ;;  %v13579_v30 = vpop.permute.xlu1 %13578 }
 0xb1d   :  { %v13581_v39 = vunpack.i.h.bf16 %v13579_v30 }
 0xb1e   :  { %11365 = vmatmul.mubr.msk.f32.gmra.mrb[130].mxu0 %vm249_vm0, %v17282_v13  ;;  %v7263_v13 = vsel %vm1808_vm4, %v13520_v59, %v13540_v41  ;;  %v7274_v59 = vsel %vm1808_vm4, %v13536_v58, %v13511_v40  ;;  %v17394_v40 = vld [vmem:[%s17977_s5 + $0x1b8] sm:$0xff]  ;;  %v13556_v41 = vunpack.i.h.bf16 %v17386_v28 }
 0xb1f   :  { %12437 = vmatpush1.bf16.msra.mxu0 %v12436_v10  ;;  %7358 = vmatprep.mubr.f32.mxu0 %v18243_v50  ;;  %v12444_v52 = vpack.c.bf16 %v7264_v11, %v7263_v13  ;;  %v12446_v49 = vpack.c.bf16 %v7274_v59, %v7273_v42  ;;  %v13555_v10 = vunpack.i.l.bf16 %v17386_v28  ;;  %v13570_v13 = vunpack.i.l.bf16 %v13569_v47 }
 0xb20   :  { %12439 = vmatprep.subr.bf16.mxu0 %v12438_v35  ;;  %v13564_v58 = vpop.permute.xlu0 %13563  ;;  %v7626_v7 = vsel %vm2169_vm5, %v13551_v24, %v13556_v41  ;;  %v13560_v35 = vunpack.i.l.bf16 %v17396_v32  ;;  %v7630_v59 = vsel %vm2169_vm5, %v13561_v2, %v13551_v24  ;;  %v13580_v28 = vunpack.i.l.bf16 %v13579_v30  ;;  %v13589_v24 = vpop.permute.xlu1 %13588 }
 0xb21   :  { %v7625_v37 = vsel %vm2169_vm5, %v13550_v25, %v13555_v10  ;;  %v13566_v11 = vunpack.i.h.bf16 %v13564_v58  ;;  %v13590_v30 = vunpack.i.l.bf16 %v13589_v24 }
 0xb22   :  { %9811 = vmatmul.mubr.msk.f32.vlgmr.msra.gmra.mrb[112].mxu0 %vm249_vm0, %v17356_v20  ;;  %v12454_v36 = vpack.c.bf16 %v7626_v7, %v7625_v37  ;;  %v7629_v42 = vsel %vm2169_vm5, %v13560_v35, %v13550_v25 }
 0xb23   :  { %12441 = vmatpush1.bf16.msra.mxu0 %v12440_v14  ;;  %7364 = vmatprep.mubr.f32.mxu0 %v18243_v50  ;;  %v13571_v14 = vunpack.i.h.bf16 %v13569_v47 }
 0xb24   :  { %12443 = vmatprep.subr.bf16.mxu0 %v12442_v54  ;;  %v17418_v23 = vpop.permute.xlu0 %13573  ;;  %v13565_v54 = vunpack.i.l.bf16 %v13564_v58 }
 0xb25   :  { %v7628_v29 = vsel %vm2169_vm5, %v13566_v11, %v13571_v14 }
 0xb26   :  { %9812 = vmatmul.mubr.msk.f32.gmra.mrb[114].mxu0 %vm249_vm0, %v17372_v3  ;;  %v7627_v58 = vsel %vm2169_vm5, %v13565_v54, %v13570_v13 }
 0xb27   :  { %12445 = vmatpush1.bf16.msra.mxu0 %v12444_v52  ;;  %7370 = vmatprep.mubr.f32.mxu0 %v18243_v50  ;;  %v13576_v52 = vunpack.i.h.bf16 %v17418_v23  ;;  %v12458_v47 = vpack.c.bf16 %v7628_v29, %v7627_v58  ;;  %v9823_v58 = vld [vmem:[%s17977_s5 + $0x1c0] sm:$0xff]  ;;  %v9824_v29 = vld [vmem:[%s17977_s5 + $0x1c8] sm:$0xff] }
 0xb28   :  { %12447 = vmatprep.subr.bf16.mxu0 %v12446_v49  ;;  %v13584_v34 = vpop.permute.xlu0 %13583 }
 0xb29   :  { %v13586_v32 = vunpack.i.h.bf16 %v13584_v34  ;;  %v13585_v15 = vunpack.i.l.bf16 %v13584_v34  ;;  %v7632_v7 = vsel %vm2169_vm5, %v13576_v52, %v13566_v11 }
 0xb2a   :  { %9813 = vmatmul.mubr.msk.f32.gmra.mrb[116].mxu0 %vm249_vm0, %v17384_v19 }
 0xb2b   :  { %7376 = vmatprep.mubr.f32.mxu0 %v18243_v50 }
 0xb2c   :  { %v13594_v25 = vpop.permute.xlu0 %13593 }
 0xb2d   :  { %v13596_v34 = vunpack.i.h.bf16 %v13594_v25 }
 0xb2e   :  { %9814 = vmatmul.mubr.msk.f32.gmra.mrb[118].mxu0 %vm249_vm0, %v17394_v40 }
 0xb2f   :  { %7447 = vmatprep.mubr.f32.mxu0 %v18243_v50 }
 0xb32   :  { %9815 = vmatmul.mubr.msk.f32.vlgmr.msra.gmra.mrb[120].mxu0 %vm249_vm0, %v17356_v20 }
 0xb33   :  { %12449 = vmatpush3.bf16.msra.mxu0 %v12446_v49  ;;  %7453 = vmatprep.mubr.f32.mxu0 %v18243_v50  ;;  %v13575_v49 = vunpack.i.l.bf16 %v17418_v23  ;;  %v7618_v23 = vsel %vm2169_vm5, %v13581_v39, %v13586_v32 }
 0xb34   :  { %12451 = vmatprep.subr.bf16.mxu0 %v12450_v17 }
 0xb35   :  { %v7631_v37 = vsel %vm2169_vm5, %v13575_v49, %v13565_v54  ;;  %v7622_v54 = vsel %vm2169_vm5, %v13556_v41, %v13581_v39  ;;  %v7623_v41 = vsel %vm2169_vm5, %v13570_v13, %v13590_v30 }
 0xb36   :  { %9816 = vmatmul.mubr.msk.f32.gmra.mrb[122].mxu0 %vm249_vm0, %v17372_v3  ;;  %v12460_v11 = vpack.c.bf16 %v7632_v7, %v7631_v37 }
 0xb37   :  { %12453 = vmatpush3.bf16.msra.mxu0 %v12450_v17  ;;  %7459 = vmatprep.mubr.f32.mxu0 %v18243_v50  ;;  %v12456_v17 = vpack.c.bf16 %v7630_v59, %v7629_v42  ;;  %v13595_v42 = vunpack.i.l.bf16 %v13594_v25  ;;  %v7634_v25 = vsel %vm2169_vm5, %v13586_v32, %v13561_v2  ;;  %v9826_v2 = vld [vmem:[%s17977_s5 + $0x1d8] sm:$0xff]  ;;  %v7636_v32 = vsel %vm2169_vm5, %v13596_v34, %v13576_v52  ;;  %v17556_v52 = vpop.permute.xlu1 %7944 }
 0xb38   :  { %12455 = vmatprep.subr.bf16.mxu0 %v12454_v36  ;;  %v13591_v36 = vunpack.i.h.bf16 %v13589_v24  ;;  %v7633_v24 = vsel %vm2169_vm5, %v13585_v15, %v13560_v35 }
 0xb39   :  { %v7635_v35 = vsel %vm2169_vm5, %v13595_v42, %v13575_v49 }
 0xb3a   :  { %9817 = vmatmul.mubr.msk.f32.gmra.mrb[124].mxu0 %vm249_vm0, %v17384_v19 }
 0xb3b   :  { %7465 = vmatprep.mubr.f32.mxu0 %v18243_v50 }
 0xb3e   :  { %9818 = vmatmul.mubr.msk.f32.gmra.mrb[126].mxu0 %vm249_vm0, %v17394_v40 }
 0xb3f   :  { %11375 = vmatprep.mubr.msk.f32.mxu0 %vm249_vm0, %v17356_v20  ;;  %v7617_v20 = vsel %vm2169_vm5, %v13580_v28, %v13585_v15  ;;  %v12474_v15 = vpack.c.bf16 %v7636_v32, %v7635_v35  ;;  %v18436_v32 = vld [vmem:[#allocation23_spill] sm:$0xff] }
 0xb40   :  { %v12462_v59 = vpack.c.bf16 %v7618_v23, %v7617_v20  ;;  %v17565_v20 = vpop.permute.xlu0 %7949 }
 0xb42   :  { %11376 = vmatmul.mubr.msk.f32.vlgmr.msra.gmra.mrb[128].mxu0 %vm249_vm0, %v17372_v3  ;;  %v7621_v3 = vsel %vm2169_vm5, %v13555_v10, %v13580_v28  ;;  %v7620_v10 = vsel %vm2169_vm5, %v13591_v36, %v13596_v34 }
 0xb43   :  { %12457 = vmatpush1.bf16.msra.mxu0 %v12456_v17  ;;  %11378 = vmatprep.mubr.msk.f32.mxu0 %vm249_vm0, %v17384_v19  ;;  %v7619_v19 = vsel %vm2169_vm5, %v13590_v30, %v13595_v42  ;;  %v12464_v28 = vpack.c.bf16 %v7622_v54, %v7621_v3  ;;  %v9825_v17 = vld [vmem:[%s17977_s5 + $0x1d0] sm:$0xff]  ;;  %v18429_v30 = vld [vmem:[#allocation9_spill] sm:$0xff]  ;;  %v17577_v3 = vpop.permute.xlu1 %7954 }
 0xb44   :  { %12459 = vmatprep.subr.bf16.mxu0 %v12458_v47  ;;  %v12466_v39 = vpack.c.bf16 %v7620_v10, %v7619_v19  ;;  %v18430_v42 = vld [vmem:[#allocation11_spill] sm:$0xff] }
 0xb45   :  { %v18432_v10 = vld [vmem:[#allocation15_spill] sm:$0xff] }
 0xb46   :  { %11379 = vmatmul.mubr.msk.f32.gmra.mrb[130].mxu0 %vm249_vm0, %v17394_v40  ;;  %v7624_v40 = vsel %vm2169_vm5, %v13571_v14, %v13591_v36  ;;  %v12470_v14 = vpack.c.bf16 %v7634_v25, %v7633_v24  ;;  %v18434_v25 = vld [vmem:[#allocation19_spill] sm:$0xff] }
 0xb47   :  { %12461 = vmatpush1.bf16.msra.mxu0 %v12460_v11  ;;  %7718 = vmatprep.mubr.f32.mxu0 %v18243_v50  ;;  %v12468_v13 = vpack.c.bf16 %v7624_v40, %v7623_v41  ;;  %v17589_v41 = vpop.permute.xlu0 %7959 }
 0xb48   :  { %12463 = vmatprep.subr.bf16.mxu0 %v12462_v59 }
 0xb4a   :  { %9827 = vmatmul.mubr.msk.f32.vlgmr.msra.gmra.mrb[112].mxu0 %vm249_vm0, %v9823_v58 }
 0xb4b   :  { %12465 = vmatpush1.bf16.msra.mxu0 %v12464_v28  ;;  %7724 = vmatprep.mubr.f32.mxu0 %v18243_v50 }
 0xb4c   :  { %12467 = vmatprep.subr.bf16.mxu0 %v12466_v39 }
 0xb4e   :  { %9828 = vmatmul.mubr.msk.f32.gmra.mrb[114].mxu0 %vm249_vm0, %v9824_v29 }
 0xb4f   :  { %12469 = vmatpush1.bf16.msra.mxu0 %v12468_v13  ;;  %7730 = vmatprep.mubr.f32.mxu0 %v18243_v50 }
 0xb50   :  { %12471 = vmatprep.subr.bf16.mxu0 %v12470_v14 }
 0xb52   :  { %9829 = vmatmul.mubr.msk.f32.gmra.mrb[116].mxu0 %vm249_vm0, %v9825_v17 }
 0xb53   :  { %7736 = vmatprep.mubr.f32.mxu0 %v18243_v50 }
 0xb56   :  { %9830 = vmatmul.mubr.msk.f32.gmra.mrb[118].mxu0 %vm249_vm0, %v9826_v2 }
 0xb57   :  { %7807 = vmatprep.mubr.f32.mxu0 %v18243_v50 }
 0xb5a   :  { %9831 = vmatmul.mubr.msk.f32.vlgmr.msra.gmra.mrb[120].mxu0 %vm249_vm0, %v9823_v58 }
 0xb5b   :  { %12473 = vmatpush3.bf16.msra.mxu0 %v12470_v14  ;;  %7813 = vmatprep.mubr.f32.mxu0 %v18243_v50 }
 0xb5c   :  { %12475 = vmatprep.subr.bf16.mxu0 %v12474_v15 }
 0xb5e   :  { %9832 = vmatmul.mubr.msk.f32.gmra.mrb[122].mxu0 %vm249_vm0, %v9824_v29 }
 0xb5f   :  { %12477 = vmatpush3.bf16.msra.mxu0 %v12474_v15  ;;  %7819 = vmatprep.mubr.f32.mxu0 %v18243_v50 }
 0xb60   :  { %12672 = vmatprep.subr.msk.bf16.mxu0 %vm13985_vm1, %v14349_v61 }
 0xb62   :  { %9833 = vmatmul.mubr.msk.f32.gmra.mrb[124].mxu0 %vm249_vm0, %v9825_v17 }
 0xb63   :  { %7825 = vmatprep.mubr.f32.mxu0 %v18243_v50 }
 0xb66   :  { %9834 = vmatmul.mubr.msk.f32.gmra.mrb[126].mxu0 %vm249_vm0, %v9826_v2 }
 0xb67   :  { %11389 = vmatprep.mubr.msk.f32.mxu0 %vm249_vm0, %v9823_v58  ;;  %v18431_v58 = vld [vmem:[#allocation13_spill] sm:$0xff] }
 0xb6a   :  { %11390 = vmatmul.mubr.msk.f32.vlgmr.msra.gmra.mrb[128].mxu0 %vm249_vm0, %v9824_v29  ;;  %v18433_v29 = vld [vmem:[#allocation17_spill] sm:$0xff] }
 0xb6b   :  { %11392 = vmatprep.mubr.msk.f32.mxu0 %vm249_vm0, %v9825_v17  ;;  %12675 = vmatpush3.bf16.xpose.msk.msra.mxu0 %vm13985_vm1, %v14349_v61 }
 0xb6c   :  { %12678 = vmatprep.subr.msk.bf16.mxu0 %vm13985_vm1, %v18244_v12 }
 0xb6e   :  { %11393 = vmatmul.mubr.msk.f32.gmra.mrb[130].mxu0 %vm249_vm0, %v9826_v2  ;;  %v18435_v2 = vld [vmem:[#allocation21_spill] sm:$0xff] }
 0xb73   :  { %12681 = vmatpush3.bf16.xpose.msk.msra.mxu0 %vm13985_vm1, %v18244_v12 }
 0xb74   :  { %12684 = vmatprep.subr.msk.bf16.mxu0 %vm13985_vm1, %v18245_v44 }
 0xb7b   :  { %12687 = vmatpush3.bf16.xpose.msk.msra.mxu0 %vm13985_vm1, %v18245_v44 }
 0xb7c   :  { %12690 = vmatprep.subr.msk.bf16.mxu0 %vm13985_vm1, %v18246_v9 }
 0xb83   :  { %12693 = vmatpush3.bf16.xpose.msk.msra.mxu0 %vm13985_vm1, %v18246_v9 }
 0xb84   :  { %12696 = vmatprep.subr.msk.bf16.mxu0 %vm13985_vm1, %v18247_v4 }
 0xb8b   :  { %12699 = vmatpush3.bf16.xpose.msk.msra.mxu0 %vm13985_vm1, %v18247_v4 }
 0xb8c   :  { %12702 = vmatprep.subr.msk.bf16.mxu0 %vm13985_vm1, %v18248_v16 }
 0xb93   :  { %12705 = vmatpush3.bf16.xpose.msk.msra.mxu0 %vm13985_vm1, %v18248_v16 }
 0xb94   :  { %12708 = vmatprep.subr.msk.bf16.mxu0 %vm13985_vm1, %v18249_v48 }
 0xb9b   :  { %12711 = vmatpush3.bf16.xpose.msk.msra.mxu0 %vm13985_vm1, %v18249_v48 }
 0xb9c   :  { %12714 = vmatprep.subr.msk.bf16.mxu0 %vm13985_vm1, %v18250_v46 }
 0xba3   :  { %12717 = vmatpush3.bf16.xpose.msk.msra.mxu0 %vm13985_vm1, %v18250_v46 }
 0xc1d   :  { %v7720_v33 = vpop.f32.mrb[112].mxu0 }
 0xc1e   :  { %v7722_v49 = vpop.f32.mrb[113].mxu0  ;;  %v17562_v7 = vadd.f32 %v17556_v52, %v7720_v33 }
 0xc1f   :  { %v17559_v37 = vadd.f32 %v17556_v52, %v7722_v49 }
 0xc20   :  { %v7982_v35 = vmul.f32 %v17562_v7, %v17562_v7 }
 0xc21   :  { %v7726_v47 = vpop.f32.mrb[114].mxu0  ;;  %8066 = vmatprep.mubr.f32.mxu1 %v17559_v37  ;;  %v7983_v14 = vmul.f32 %v17559_v37, %v17559_v37 }
 0xc22   :  { %v7728_v23 = vpop.f32.mrb[115].mxu0  ;;  %8067 = vmatmul.mubr.f32.vlgmr.msra.gmra.mrb[108].mxu1 %v17562_v7  ;;  %v17573_v34 = vadd.f32 %v17565_v20, %v7726_v47  ;;  %v18437_v47 = vld [vmem:[#allocation25_spill] sm:$0xff] }
 0xc23   :  { %v17569_v36 = vadd.f32 %v17565_v20, %v7728_v23  ;;  %12513 = vmatpush3.bf16.msra.mxu1 %v18429_v30 }
 0xc24   :  { %12515 = vmatprep.subr.bf16.mxu1 %v18430_v42  ;;  %v7987_v23 = vmul.f32 %v17573_v34, %v17573_v34 }
 0xc25   :  { %v7732_v11 = vpop.f32.mrb[116].mxu0  ;;  %8071 = vmatprep.mubr.f32.mxu1 %v17569_v36  ;;  %v7988_v33 = vmul.f32 %v17569_v36, %v17569_v36 }
 0xc26   :  { %v7734_v54 = vpop.f32.mrb[117].mxu0  ;;  %8072 = vmatmul.mubr.f32.gmra.mrb[110].mxu1 %v17573_v34  ;;  %v17585_v19 = vadd.f32 %v17577_v3, %v7732_v11  ;;  %v18438_v11 = vld [vmem:[#allocation27_spill] sm:$0xff] }
 0xc27   :  { %v17581_v59 = vadd.f32 %v17577_v3, %v7734_v54  ;;  %12517 = vmatpush3.bf16.msra.mxu1 %v18431_v58 }
 0xc28   :  { %12519 = vmatprep.subr.bf16.mxu1 %v18432_v10 }
 0xc29   :  { %v7738_v28 = vpop.f32.mrb[118].mxu0  ;;  %8076 = vmatprep.mubr.f32.mxu1 %v17581_v59 }
 0xc2a   :  { %v7740_v40 = vpop.f32.mrb[119].mxu0  ;;  %8077 = vmatmul.mubr.f32.gmra.mrb[112].mxu1 %v17585_v19  ;;  %v17597_v24 = vadd.f32 %v17589_v41, %v7738_v28  ;;  %v7993_v28 = vmul.f32 %v17581_v59, %v17581_v59 }
 0xc2b   :  { %v17593_v39 = vadd.f32 %v17589_v41, %v7740_v40  ;;  %12521 = vmatpush3.bf16.msra.mxu1 %v18433_v29 }
 0xc2c   :  { %12523 = vmatprep.subr.bf16.mxu1 %v18434_v25 }
 0xc2d   :  { %v7809_v13 = vpop.f32.mrb[120].mxu0  ;;  %8081 = vmatprep.mubr.f32.mxu1 %v17593_v39  ;;  %v7998_v31 = vmul.f32 %v17593_v39, %v17593_v39 }
 0xc2e   :  { %v7811_v17 = vpop.f32.mrb[121].mxu0  ;;  %8082 = vmatmul.mubr.f32.gmra.mrb[114].mxu1 %v17597_v24 }
 0xc2f   :  { %8086 = vmatprep.mubr.f32.mxu1 %v7983_v14  ;;  %12525 = vmatpush3.bf16.msra.mxu1 %v18435_v2  ;;  %v18439_v14 = vld [vmem:[#allocation29_spill] sm:$0xff]  ;;  %v17627_v53 = vadd.f32 %v17556_v52, %v7811_v17 }
 0xc30   :  { %12527 = vmatprep.subr.bf16.mxu1 %v18436_v32 }
 0xc31   :  { %v7815_v15 = vpop.f32.mrb[122].mxu0 }
 0xc32   :  { %v7817_v49 = vpop.f32.mrb[123].mxu0  ;;  %8087 = vmatmul.mubr.f32.gmra.mrb[116].mxu1 %v7982_v35  ;;  %v7992_v35 = vmul.f32 %v17585_v19, %v17585_v19  ;;  %v17642_v17 = vadd.f32 %v17565_v20, %v7815_v15 }
 0xc33   :  { %8091 = vmatprep.mubr.f32.mxu1 %v7988_v33  ;;  %12529 = vmatpush3.bf16.msra.mxu1 %v18437_v47  ;;  %v18440_v33 = vld [vmem:[#allocation31_spill] sm:$0xff] }
 0xc34   :  { %12531 = vmatprep.subr.bf16.mxu1 %v18438_v11  ;;  %18445 = vst [vmem:[#allocation42_spill] sm:$0xff] %v17642_v17 }
 0xc35   :  { %v7821_v54 = vpop.f32.mrb[124].mxu0 }
 0xc36   :  { %v7823_v40 = vpop.f32.mrb[125].mxu0  ;;  %8092 = vmatmul.mubr.f32.gmra.mrb[118].mxu1 %v7987_v23  ;;  %v7997_v23 = vmul.f32 %v17597_v24, %v17597_v24 }
 0xc37   :  { %8096 = vmatprep.mubr.f32.mxu1 %v7993_v28  ;;  %12533 = vmatpush3.bf16.msra.mxu1 %v18439_v14  ;;  %v18442_v28 = vld [vmem:[#allocation35_spill] sm:$0xff] }
 0xc38   :  { %12535 = vmatprep.subr.bf16.mxu1 %v18440_v33 }
 0xc39   :  { %v7827_v0 = vpop.f32.mrb[126].mxu0 }
 0xc3a   :  { %v7829_v55 = vpop.f32.mrb[127].mxu0  ;;  %8097 = vmatmul.mubr.f32.gmra.mrb[120].mxu1 %v7992_v35  ;;  %v17632_v35 = vadd.f32 %v17556_v52, %v7809_v13  ;;  %v17646_v13 = vadd.f32 %v17577_v3, %v7823_v40  ;;  %v17662_v15 = vadd.f32 %v17589_v41, %v7827_v0  ;;  %v7989_v0 = vmul.f32 %v17642_v17, %v17642_v17 }
 0xc3b   :  { %8101 = vmatprep.mubr.f32.mxu1 %v7998_v31  ;;  %12537 = vmatpush3.bf16.msra.mxu1 %v18441_v45  ;;  %v17636_v31 = vadd.f32 %v17565_v20, %v7817_v49  ;;  %v17652_v49 = vadd.f32 %v17577_v3, %v7821_v54 }
 0xc3c   :  { %12539 = vmatprep.subr.bf16.mxu1 %v18442_v28  ;;  %18446 = vst [vmem:[#allocation43_spill] sm:$0xff] %v17646_v13  ;;  %18449 = vst [vmem:[#allocation20_spill] sm:$0xff] %v17662_v15  ;;  %v7999_v40 = vmul.f32 %v17662_v15, %v17662_v15 }
 0xc3d   :  { %v11391_v26 = vpop.f32.mrb[128].mxu0  ;;  %18444 = vst [vmem:[#allocation41_spill] sm:$0xff] %v17636_v31  ;;  %18447 = vst [vmem:[#allocation44_spill] sm:$0xff] %v17652_v49  ;;  %v7994_v54 = vmul.f32 %v17652_v49, %v17652_v49 }
 0xc3e   :  { %v7898_v6 = vpop.f32.mrb[129].mxu0  ;;  %8102 = vmatmul.mubr.f32.gmra.mrb[122].mxu1 %v7997_v23 }
 0xc3f   :  { %12541 = vmatpush3.bf16.msra.mxu1 %v18443_v57  ;;  %8171 = vmatprep.mubr.f32.mxu1 %v17627_v53  ;;  %v17691_v23 = vadd.f32 %v17556_v52, %v7898_v6  ;;  %v18458_v52 = vld [vmem:[#allocation8_spill] sm:$0xff] }
 0xc40   :  { %12543 = vmatprep.subr.bf16.mxu1 %v14349_v61 }
 0xc41   :  { %v11394_v63 = vpop.f32.mrb[130].mxu0 }
 0xc42   :  { %v7908_v21 = vpop.f32.mrb[131].mxu0  ;;  %8172 = vmatmul.mubr.f32.vlgmr.msra.gmra.mrb[124].mxu1 %v17632_v35  ;;  %v17707_v6 = vadd.f32 %v11394_v63, %v17589_v41 }
 0xc43   :  { %8176 = vmatprep.mubr.f32.mxu1 %v17636_v31  ;;  %12545 = vmatpush3.bf16.msra.mxu1 %v14349_v61  ;;  %v17656_v61 = vadd.f32 %v17589_v41, %v7829_v55  ;;  %v7984_v55 = vmul.f32 %v17632_v35, %v17632_v35 }
 0xc44   :  { %12547 = vmatprep.subr.bf16.mxu1 %v18244_v12  ;;  %v8001_v63 = vmul.f32 %v17707_v6, %v17707_v6 }
 0xc45   :  { %18448 = vst [vmem:[#allocation61_spill] sm:$0xff] %v17656_v61 }
 0xc46   :  { %8177 = vmatmul.mubr.f32.gmra.mrb[126].mxu1 %v17642_v17 }
 0xc47   :  { %8181 = vmatprep.mubr.f32.mxu1 %v17646_v13  ;;  %12549 = vmatpush3.bf16.msra.mxu1 %v18244_v12  ;;  %v7985_v12 = vmul.f32 %v17627_v53, %v17627_v53 }
 0xc48   :  { %12551 = vmatprep.subr.bf16.mxu1 %v18245_v44 }
 0xc4a   :  { %8182 = vmatmul.mubr.f32.gmra.mrb[128].mxu1 %v17652_v49 }
 0xc4b   :  { %8186 = vmatprep.mubr.f32.mxu1 %v17656_v61  ;;  %12553 = vmatpush3.bf16.msra.mxu1 %v18245_v44  ;;  %v7990_v44 = vmul.f32 %v17636_v31, %v17636_v31 }
 0xc4c   :  { %12555 = vmatprep.subr.bf16.mxu1 %v18246_v9 }
 0xc4e   :  { %8187 = vmatmul.mubr.f32.gmra.mrb[130].mxu1 %v17662_v15 }
 0xc4f   :  { %8191 = vmatprep.mubr.f32.mxu1 %v7985_v12  ;;  %12557 = vmatpush3.bf16.msra.mxu1 %v18246_v9  ;;  %v7995_v9 = vmul.f32 %v17646_v13, %v17646_v13 }
 0xc50   :  { %12559 = vmatprep.subr.bf16.mxu1 %v18247_v4 }
 0xc52   :  { %8192 = vmatmul.mubr.f32.gmra.mrb[132].mxu1 %v7984_v55 }
 0xc53   :  { %8196 = vmatprep.mubr.f32.mxu1 %v7990_v44  ;;  %12561 = vmatpush3.bf16.msra.mxu1 %v18247_v4  ;;  %v8000_v4 = vmul.f32 %v17656_v61, %v17656_v61 }
 0xc54   :  { %12563 = vmatprep.subr.bf16.mxu1 %v18248_v16 }
 0xc56   :  { %8197 = vmatmul.mubr.f32.gmra.mrb[134].mxu1 %v7989_v0 }
 0xc57   :  { %8201 = vmatprep.mubr.f32.mxu1 %v7995_v9  ;;  %12565 = vmatpush3.bf16.msra.mxu1 %v18248_v16  ;;  %v17696_v16 = vadd.f32 %v11391_v26, %v17565_v20 }
 0xc58   :  { %12567 = vmatprep.subr.bf16.mxu1 %v18249_v48 }
 0xc59   :  { %v7991_v26 = vmul.f32 %v17696_v16, %v17696_v16 }
 0xc5a   :  { %8202 = vmatmul.mubr.f32.gmra.mrb[136].mxu1 %v7994_v54 }
 0xc5b   :  { %8206 = vmatprep.mubr.f32.mxu1 %v8000_v4  ;;  %12569 = vmatpush3.bf16.msra.mxu1 %v18249_v48  ;;  %v17702_v48 = vadd.f32 %v17577_v3, %v7908_v21  ;;  %v18457_v21 = vld [vmem:[#allocation36_spill] sm:$0xff] }
 0xc5c   :  { %12571 = vmatprep.subr.bf16.mxu1 %v18250_v46 }
 0xc5e   :  { %8207 = vmatmul.mubr.f32.gmra.mrb[138].mxu1 %v7999_v40 }
 0xc5f   :  { %12573 = vmatpush3.bf16.msra.mxu1 %v18250_v46  ;;  %11427 = vmatprep.mubr.f32.mxu1 %v17691_v23  ;;  %v7986_v46 = vmul.f32 %v17691_v23, %v17691_v23 }
 0xc60   :  { %12576 = vmatprep.subr.msk.bf16.mxu1 %vm13985_vm1, %v18314_v51  ;;  %v7996_v51 = vmul.f32 %v17702_v48, %v17702_v48 }
 0xc62   :  { %11428 = vmatmul.mubr.f32.vlgmr.msra.gmra.mrb[140].mxu1 %v17696_v16 }
 0xc63   :  { %11430 = vmatprep.mubr.f32.mxu1 %v17702_v48 }
 0xc66   :  { %11431 = vmatmul.mubr.f32.gmra.mrb[142].mxu1 %v17707_v6 }
 0xc67   :  { %11433 = vmatprep.mubr.f32.mxu1 %v7986_v46 }
 0xc68   :  { %12579 = vmatpush3.bf16.xpose.msk.msra.mxu1 %vm13985_vm1, %v18316_v27  ;;  %v18450_v27 = vld [vmem:[#allocation22_spill] sm:$0xff] }
 0xc69   :  { %12582 = vmatprep.subr.msk.bf16.mxu1 %vm13985_vm1, %v18317_v5  ;;  %v18451_v5 = vld [vmem:[#allocation24_spill] sm:$0xff] }
 0xc6a   :  { %11434 = vmatmul.mubr.f32.gmra.mrb[144].mxu1 %v7991_v26 }
 0xc6b   :  { %11436 = vmatprep.mubr.f32.mxu1 %v7996_v51 }
 0xc6e   :  { %11437 = vmatmul.mubr.f32.gmra.mrb[146].mxu1 %v8001_v63 }
 0xc70   :  { %12585 = vmatpush3.bf16.xpose.msk.msra.mxu1 %vm13985_vm1, %v18318_v43  ;;  %v18452_v43 = vld [vmem:[#allocation26_spill] sm:$0xff] }
 0xc71   :  { %12588 = vmatprep.subr.msk.bf16.mxu1 %vm13985_vm1, %v18319_v56  ;;  %v18453_v56 = vld [vmem:[#allocation28_spill] sm:$0xff] }
 0xc78   :  { %12591 = vmatpush3.bf16.xpose.msk.msra.mxu1 %vm13985_vm1, %v18320_v38  ;;  %v18454_v38 = vld [vmem:[#allocation30_spill] sm:$0xff] }
 0xc79   :  { %12594 = vmatprep.subr.msk.bf16.mxu1 %vm13985_vm1, %v18321_v1  ;;  %v18455_v1 = vld [vmem:[#allocation32_spill] sm:$0xff] }
 0xc80   :  { %12597 = vmatpush3.bf16.xpose.msk.msra.mxu1 %vm13985_vm1, %v18322_v18  ;;  %v18456_v18 = vld [vmem:[#allocation34_spill] sm:$0xff] }
 0xc81   :  { %12600 = vmatprep.subr.msk.bf16.mxu1 %vm13985_vm1, %v18450_v27 }
 0xc88   :  { %12603 = vmatpush3.bf16.xpose.msk.msra.mxu1 %vm13985_vm1, %v18451_v5 }
 0xc89   :  { %12606 = vmatprep.subr.msk.bf16.mxu1 %vm13985_vm1, %v18452_v43 }
 0xc90   :  { %12609 = vmatpush3.bf16.xpose.msk.msra.mxu1 %vm13985_vm1, %v18453_v56 }
 0xc91   :  { %12612 = vmatprep.subr.msk.bf16.mxu1 %vm13985_vm1, %v18454_v38 }
 0xc98   :  { %12615 = vmatpush3.bf16.xpose.msk.msra.mxu1 %vm13985_vm1, %v18455_v1 }
 0xc99   :  { %12618 = vmatprep.subr.msk.bf16.mxu1 %vm13985_vm1, %v18456_v18 }
 0xca0   :  { %12621 = vmatpush3.bf16.xpose.msk.msra.mxu1 %vm13985_vm1, %v18457_v21 }
 0xca1   :  { %12624 = vmatprep.subr.msk.bf16.mxu1 %vm13985_vm1, %v18458_v52 }
 0xcf5   :  { %v10742_v20 = vpop.f32.mrb[108].mxu1 }
 0xcf6   :  { %v10743_v3 = vpop.f32.mrb[109].mxu1 }
 0xcf7   :  { %v10744_v41 = vadd.f32 %v10743_v3, %v10742_v20 }
 0xcf9   :  { %v10745_v12 = vpop.f32.mrb[110].mxu1 }
 0xcfa   :  { %v10746_v55 = vpop.f32.mrb[111].mxu1 }
 0xcfb   :  { %v10747_v44 = vadd.f32 %v10746_v55, %v10745_v12 }
 0xcfd   :  { %v10748_v0 = vpop.f32.mrb[112].mxu1 }
 0xcfe   :  { %v10749_v9 = vpop.f32.mrb[113].mxu1 }
 0xcff   :  { %v10750_v54 = vadd.f32 %v10749_v9, %v10748_v0 }
 0xd01   :  { %v10751_v4 = vpop.f32.mrb[114].mxu1 }
 0xd02   :  { %v10752_v40 = vpop.f32.mrb[115].mxu1 }
 0xd03   :  { %v10753_v46 = vadd.f32 %v10752_v40, %v10751_v4 }
 0xd05   :  { %v10754_v26 = vpop.f32.mrb[116].mxu1 }
 0xd06   :  { %v10755_v51 = vpop.f32.mrb[117].mxu1 }
 0xd07   :  { %v10756_v63 = vadd.f32 %v10755_v51, %v10754_v26 }
 0xd09   :  { %v10757_v27 = vpop.f32.mrb[118].mxu1 }
 0xd0a   :  { %v10758_v5 = vpop.f32.mrb[119].mxu1 }
 0xd0b   :  { %v10759_v43 = vadd.f32 %v10758_v5, %v10757_v27 }
 0xd0d   :  { %v10760_v56 = vpop.f32.mrb[120].mxu1 }
 0xd0e   :  { %v10761_v38 = vpop.f32.mrb[121].mxu1 }
 0xd0f   :  { %v10762_v1 = vadd.f32 %v10761_v38, %v10760_v56 }
 0xd11   :  { %v10763_v18 = vpop.f32.mrb[122].mxu1 }
 0xd12   :  { %v10764_v21 = vpop.f32.mrb[123].mxu1 }
 0xd13   :  { %v10765_v52 = vadd.f32 %v10764_v21, %v10763_v18 }
 0xd15   :  { %v10798_v20 = vpop.f32.mrb[124].mxu1 }
 0xd16   :  { %v10799_v3 = vpop.f32.mrb[125].mxu1 }
 0xd17   :  { %v10800_v12 = vadd.f32 %v10799_v3, %v10798_v20 }
 0xd19   :  { %v10801_v55 = vpop.f32.mrb[126].mxu1  ;;  %v8174_v0 = vadd.f32 %v10800_v12, %v10744_v41 }
 0xd1a   :  { %v10802_v9 = vpop.f32.mrb[127].mxu1 }
 0xd1b   :  { %v10803_v61 = vadd.f32 %v10802_v9, %v10801_v55 }
 0xd1d   :  { %v10804_v4 = vpop.f32.mrb[128].mxu1  ;;  %v8179_v40 = vadd.f32 %v10803_v61, %v10747_v44 }
 0xd1e   :  { %v10805_v15 = vpop.f32.mrb[129].mxu1 }
 0xd1f   :  { %v10806_v26 = vadd.f32 %v10805_v15, %v10804_v4 }
 0xd21   :  { %v10807_v51 = vpop.f32.mrb[130].mxu1  ;;  %v8184_v13 = vadd.f32 %v10806_v26, %v10750_v54 }
 0xd22   :  { %v10808_v27 = vpop.f32.mrb[131].mxu1 }
 0xd23   :  { %v10809_v5 = vadd.f32 %v10808_v27, %v10807_v51 }
 0xd25   :  { %v10810_v49 = vpop.f32.mrb[132].mxu1  ;;  %v8189_v56 = vadd.f32 %v10809_v5, %v10753_v46 }
 0xd26   :  { %v10811_v38 = vpop.f32.mrb[133].mxu1 }
 0xd27   :  { %v10812_v31 = vadd.f32 %v10811_v38, %v10810_v49 }
 0xd29   :  { %v10813_v18 = vpop.f32.mrb[134].mxu1  ;;  %v8194_v21 = vadd.f32 %v10812_v31, %v10756_v63 }
 0xd2a   :  { %v10814_v17 = vpop.f32.mrb[135].mxu1 }
 0xd2b   :  { %v10815_v20 = vadd.f32 %v10814_v17, %v10813_v18 }
 0xd2d   :  { %v10816_v3 = vpop.f32.mrb[136].mxu1  ;;  %v8199_v41 = vadd.f32 %v10815_v20, %v10759_v43 }
 0xd2e   :  { %v10817_v12 = vpop.f32.mrb[137].mxu1 }
 0xd2f   :  { %v10818_v55 = vadd.f32 %v10817_v12, %v10816_v3 }
 0xd31   :  { %v10819_v9 = vpop.f32.mrb[138].mxu1  ;;  %v8204_v61 = vadd.f32 %v10818_v55, %v10762_v1 }
 0xd32   :  { %v10820_v44 = vpop.f32.mrb[139].mxu1 }
 0xd33   :  { %v10821_v15 = vadd.f32 %v10820_v44, %v10819_v9 }
 0xd35   :  { %v11429_v4 = vpop.f32.mrb[140].mxu1  ;;  %v8209_v54 = vadd.f32 %v10821_v15, %v10765_v52 }
 0xd36   :  { %v8284_v26 = vadd.f32 %v11429_v4, %v8179_v40  ;;  %v8278_v51 = vpop.f32.mrb[141].mxu1 }
 0xd37   :  { %v8279_v27 = vadd.f32 %v8278_v51, %v8174_v0 }
 0xd38   :  { %v8318_v31 = vmul.f32 0.0625, %v8284_v26 }
 0xd39   :  { %v11432_v46 = vpop.f32.mrb[142].mxu1  ;;  %v8317_v63 = vmul.f32 0.0625, %v8279_v27 }
 0xd3a   :  { %v8294_v5 = vadd.f32 %v11432_v46, %v8189_v56  ;;  %v8288_v49 = vpop.f32.mrb[143].mxu1  ;;  %v8326_v3 = vmul.f32 %v8318_v31, %v8318_v31 }
 0xd3b   :  { %v8289_v38 = vadd.f32 %v8288_v49, %v8184_v13  ;;  %v8325_v55 = vmul.f32 %v8317_v63, %v8317_v63 }
 0xd3c   :  { %v8320_v12 = vmul.f32 0.0625, %v8294_v5 }
 0xd3d   :  { %v11435_v17 = vpop.f32.mrb[144].mxu1  ;;  %v8319_v9 = vmul.f32 0.0625, %v8289_v38 }
 0xd3e   :  { %v8304_v18 = vadd.f32 %v11435_v17, %v8199_v41  ;;  %v8298_v43 = vpop.f32.mrb[145].mxu1  ;;  %v8328_v51 = vmul.f32 %v8320_v12, %v8320_v12 }
 0xd3f   :  { %v8299_v20 = vadd.f32 %v8298_v43, %v8194_v21  ;;  %v8327_v27 = vmul.f32 %v8319_v9, %v8319_v9 }
 0xd40   :  { %v8322_v1 = vmul.f32 0.0625, %v8304_v18 }
 0xd41   :  { %v8321_v44 = vmul.f32 0.0625, %v8299_v20  ;;  %v11438_v52 = vpop.f32.mrb[146].mxu1 }
 0xd42   :  { %v8330_v40 = vsub.f32 %v8322_v1, %v8326_v3  ;;  %v8314_v15 = vadd.f32 %v11438_v52, %v8209_v54  ;;  %v8308_v0 = vpop.f32.mrb[147].mxu1  ;;  %v8353_v54 = vpop.permute.xlu1 %8352 }
 0xd43   :  { %v8329_v4 = vsub.f32 %v8321_v44, %v8325_v55  ;;  %v8309_v56 = vadd.f32 %v8308_v0, %v8204_v61  ;;  %v8358_v61 = vpop.permute.xlu0 %8357 }
 0xd44   :  { %v8334_v13 = vmax.f32 %v8330_v40, 0.0  ;;  %v8324_v26 = vmul.f32 0.0625, %v8314_v15 }
 0xd45   :  { %v8333_v46 = vmax.f32 %v8329_v4, 0.0  ;;  %v8323_v41 = vmul.f32 0.0625, %v8309_v56 }
 0xd46   :  { %v8338_v49 = vadd.f32 1e-05, %v8334_v13  ;;  %v8332_v21 = vsub.f32 %v8324_v26, %v8328_v51  ;;  %v8363_v1 = vpop.permute.xlu1 %8362 }
 0xd47   :  { %v8337_v17 = vadd.f32 1e-05, %v8333_v46  ;;  %v8331_v5 = vsub.f32 %v8323_v41, %v8327_v27  ;;  %v8368_v44 = vpop.permute.xlu0 %8367 }
 0xd48   :  { %13773 = vrsqrt.f32 %v8338_v49  ;;  %v8336_v18 = vmax.f32 %v8332_v21, 0.0 }
 0xd49   :  { %13775 = vrsqrt.f32 %v8337_v17  ;;  %v8335_v38 = vmax.f32 %v8331_v5, 0.0 }
 0xd4a   :  { %v8340_v43 = vadd.f32 1e-05, %v8336_v18  ;;  %v8386_v56 = vpop.permute.xlu1 %8385 }
 0xd4b   :  { %v8339_v20 = vadd.f32 1e-05, %v8335_v38 }
 0xd4c   :  { %13777 = vrsqrt.f32 %v8340_v43 }
 0xd4d   :  { %13779 = vrsqrt.f32 %v8339_v20 }
 0xd4e   :  { %v8396_v49 = vpop.permute.xlu1 %8395 }
 0xd52   :  { %v13774_v3 = vpop.eup %13773 }
 0xd53   :  { %v13776_v55 = vpop.eup %13775  ;;  %v8371_v40 = vmul.f32 %v13774_v3, %v8358_v61 }
 0xd54   :  { %v8370_v52 = vmul.f32 %v13776_v55, %v8353_v54 }
 0xd55   :  { %v8380_v26 = vmul.f32 %v8371_v40, %v8318_v31 }
 0xd56   :  { %v13778_v15 = vpop.eup %13777  ;;  %10878 = vmatprep.mubr.msk.f32.mxu1 %vm249_vm0, %v8370_v52  ;;  %11471 = vmatprep.mubr.msk.f32.mxu0 %vm249_vm0, %v8370_v52  ;;  %v8379_v0 = vmul.f32 %v8370_v52, %v8317_v63  ;;  %v8391_v63 = vpop.permute.xlu0 %8390 }
 0xd57   :  { %v13780_v4 = vpop.eup %13779  ;;  %10879 = vmatmul.mubr.msk.f32.vlgmr.msra.gmra.mrb[148].mxu1 %vm249_vm0, %v8370_v52  ;;  %11472 = vmatmul.mubr.msk.f32.vlgmr.msra.gmra.mrb[132].mxu0 %vm249_vm0, %v8371_v40  ;;  %v8373_v13 = vmul.f32 %v13778_v15, %v8368_v44 }
 0xd58   :  { %v8372_v51 = vmul.f32 %v13780_v4, %v8363_v1  ;;  %12627 = vmatpush3.bf16.xpose.msk.msra.mxu1 %vm13985_vm1, %v18429_v30  ;;  %10880 = vmatprep.mubr.msk.f32.mxu1 %vm249_vm0, %v8371_v40  ;;  %v8403_v27 = vsub.f32 %v8386_v56, %v8379_v0  ;;  %v8404_v30 = vsub.f32 %v8391_v63, %v8380_v26 }
 0xd59   :  { %12630 = vmatprep.subr.msk.bf16.mxu1 %vm13985_vm1, %v18430_v42  ;;  %v8382_v41 = vmul.f32 %v8373_v13, %v8320_v12 }
 0xd5a   :  { %11474 = vmatprep.mubr.msk.f32.mxu0 %vm249_vm0, %v8372_v51  ;;  %v8381_v46 = vmul.f32 %v8372_v51, %v8319_v9  ;;  %v8401_v31 = vpop.permute.xlu0 %8400 }
 0xd5b   :  { %10881 = vmatmul.mubr.msk.f32.gmra.mrb[150].mxu1 %vm249_vm0, %v8371_v40  ;;  %11475 = vmatmul.mubr.msk.f32.gmra.mrb[134].mxu0 %vm249_vm0, %v8373_v13  ;;  %v8406_v9 = vsub.f32 %v8401_v31, %v8382_v41 }
 0xd5c   :  { %10882 = vmatprep.mubr.msk.f32.mxu1 %vm249_vm0, %v8372_v51  ;;  %11477 = vmatprep.mubr.msk.f32.mxu0 %vm249_vm0, %v8403_v27  ;;  %v8405_v42 = vsub.f32 %v8396_v49, %v8381_v46 }
 0xd5f   :  { %10883 = vmatmul.mubr.msk.f32.gmra.mrb[152].mxu1 %vm249_vm0, %v8372_v51  ;;  %11478 = vmatmul.mubr.msk.f32.gmra.mrb[136].mxu0 %vm249_vm0, %v8404_v30 }
 0xd60   :  { %12633 = vmatpush3.bf16.xpose.msk.msra.mxu1 %vm13985_vm1, %v18431_v58  ;;  %10884 = vmatprep.mubr.msk.f32.mxu1 %vm249_vm0, %v8373_v13 }
 0xd61   :  { %11480 = vmatprep.mubr.msk.f32.mxu0 %vm249_vm0, %v8405_v42  ;;  %12636 = vmatprep.subr.msk.bf16.mxu1 %vm13985_vm1, %v18432_v10 }
 0xd63   :  { %10885 = vmatmul.mubr.msk.f32.gmra.mrb[154].mxu1 %vm249_vm0, %v8373_v13  ;;  %11481 = vmatmul.mubr.msk.f32.gmra.mrb[138].mxu0 %vm249_vm0, %v8406_v9 }
 0xd64   :  { %10886 = vmatprep.mubr.msk.f32.mxu1 %vm249_vm0, %v8403_v27  ;;  %9038 = vmatprep.mubr.f32.mxu0 %v18243_v50 }
 0xd67   :  { %10887 = vmatmul.mubr.msk.f32.gmra.mrb[156].mxu1 %vm249_vm0, %v8403_v27 }
 0xd68   :  { %12639 = vmatpush3.bf16.xpose.msk.msra.mxu1 %vm13985_vm1, %v18433_v29  ;;  %10888 = vmatprep.mubr.msk.f32.mxu1 %vm249_vm0, %v8404_v30 }
 0xd69   :  { %12642 = vmatprep.subr.msk.bf16.mxu1 %vm13985_vm1, %v18434_v25 }
 0xd6b   :  { %10889 = vmatmul.mubr.msk.f32.gmra.mrb[158].mxu1 %vm249_vm0, %v8404_v30 }
 0xd6c   :  { %10890 = vmatprep.mubr.msk.f32.mxu1 %vm249_vm0, %v8405_v42 }
 0xd6f   :  { %10891 = vmatmul.mubr.msk.f32.gmra.mrb[160].mxu1 %vm249_vm0, %v8405_v42 }
 0xd70   :  { %12645 = vmatpush3.bf16.xpose.msk.msra.mxu1 %vm13985_vm1, %v18435_v2  ;;  %10892 = vmatprep.mubr.msk.f32.mxu1 %vm249_vm0, %v8406_v9 }
 0xd71   :  { %12648 = vmatprep.subr.msk.bf16.mxu1 %vm13985_vm1, %v18436_v32 }
 0xd73   :  { %10893 = vmatmul.mubr.msk.f32.gmra.mrb[162].mxu1 %vm249_vm0, %v8406_v9 }
 0xd74   :  { %10926 = vmatprep.mubr.msk.f32.mxu1 %vm249_vm0, %v8370_v52 }
 0xd78   :  { %12651 = vmatpush3.bf16.xpose.msk.msra.mxu1 %vm13985_vm1, %v18437_v47 }
 0xd79   :  { %12654 = vmatprep.subr.msk.bf16.mxu1 %vm13985_vm1, %v18438_v11 }
 0xd80   :  { %12657 = vmatpush3.bf16.xpose.msk.msra.mxu1 %vm13985_vm1, %v18439_v14 }
 0xd81   :  { %12660 = vmatprep.subr.msk.bf16.mxu1 %vm13985_vm1, %v18440_v33 }
 0xd88   :  { %12663 = vmatpush3.bf16.xpose.msk.msra.mxu1 %vm13985_vm1, %v18441_v45 }
 0xd89   :  { %12666 = vmatprep.subr.msk.bf16.mxu1 %vm13985_vm1, %v18442_v28 }
 0xd90   :  { %12669 = vmatpush3.bf16.xpose.msk.msra.mxu1 %vm13985_vm1, %v18443_v57 }
 0xd97   :  { %10927 = vmatmul.mubr.msk.f32.vlgmr.msra.gmra.mrb[164].mxu1 %vm249_vm0, %v8370_v52 }
 0xd98   :  { %10928 = vmatprep.mubr.msk.f32.mxu1 %vm249_vm0, %v8371_v40 }
 0xd9b   :  { %10929 = vmatmul.mubr.msk.f32.gmra.mrb[166].mxu1 %vm249_vm0, %v8371_v40 }
 0xd9c   :  { %10930 = vmatprep.mubr.msk.f32.mxu1 %vm249_vm0, %v8372_v51 }
 0xd9f   :  { %10931 = vmatmul.mubr.msk.f32.gmra.mrb[168].mxu1 %vm249_vm0, %v8372_v51 }
 0xda0   :  { %10932 = vmatprep.mubr.msk.f32.mxu1 %vm249_vm0, %v8373_v13 }
 0xda3   :  { %10933 = vmatmul.mubr.msk.f32.gmra.mrb[170].mxu1 %vm249_vm0, %v8373_v13 }
 0xda4   :  { %10934 = vmatprep.mubr.msk.f32.mxu1 %vm249_vm0, %v8403_v27 }
 0xda7   :  { %10935 = vmatmul.mubr.msk.f32.gmra.mrb[172].mxu1 %vm249_vm0, %v8403_v27 }
 0xda8   :  { %10936 = vmatprep.mubr.msk.f32.mxu1 %vm249_vm0, %v8404_v30 }
 0xdab   :  { %10937 = vmatmul.mubr.msk.f32.gmra.mrb[174].mxu1 %vm249_vm0, %v8404_v30 }
 0xdac   :  { %10938 = vmatprep.mubr.msk.f32.mxu1 %vm249_vm0, %v8405_v42 }
 0xdaf   :  { %10939 = vmatmul.mubr.msk.f32.gmra.mrb[176].mxu1 %vm249_vm0, %v8405_v42 }
 0xdb0   :  { %10940 = vmatprep.mubr.msk.f32.mxu1 %vm249_vm0, %v8406_v9 }
 0xdb3   :  { %10941 = vmatmul.mubr.msk.f32.gmra.mrb[178].mxu1 %vm249_vm0, %v8406_v9 }
 0xdb4   :  { %9109 = vmatprep.mubr.f32.mxu1 %v18243_v50 }
 0xe2a   :  { %v8497_v8 = vpop.f32.mrb[148].mxu1  ;;  %v11473_v57 = vpop.f32.mrb[132].mxu0 }
 0xe2b   :  { %v8499_v45 = vpop.f32.mrb[149].mxu1  ;;  %v8723_v58 = vpop.f32.mrb[133].mxu0  ;;  %v8771_v32 = vmul.f32 %v11473_v57, %v17696_v16  ;;  %v8762_v3 = vmul.f32 %v8497_v8, %v17562_v7 }
 0xe2c   :  { %v8766_v47 = vmul.f32 %v8723_v58, %v17691_v23  ;;  %v8763_v1 = vmul.f32 %v8499_v45, %v17559_v37 }
 0xe2e   :  { %v8503_v10 = vpop.f32.mrb[150].mxu1  ;;  %v11476_v29 = vpop.f32.mrb[134].mxu0 }
 0xe2f   :  { %v8505_v25 = vpop.f32.mrb[151].mxu1  ;;  %v8733_v2 = vpop.f32.mrb[135].mxu0  ;;  %v8781_v17 = vmul.f32 %v11476_v29, %v17707_v6  ;;  %v8767_v15 = vmul.f32 %v8503_v10, %v17573_v34 }
 0xe30   :  { %v8776_v18 = vmul.f32 %v8733_v2, %v17702_v48  ;;  %v8768_v7 = vmul.f32 %v8505_v25, %v17569_v36 }
 0xe32   :  { %v8509_v11 = vpop.f32.mrb[152].mxu1  ;;  %v11479_v14 = vpop.f32.mrb[136].mxu0 }
 0xe33   :  { %v17855_v33 = vadd.f32 %v11479_v14, %v8771_v32  ;;  %v8511_v28 = vpop.f32.mrb[153].mxu1  ;;  %v8743_v12 = vpop.f32.mrb[137].mxu0  ;;  %v8772_v63 = vmul.f32 %v8509_v11, %v17585_v19 }
 0xe34   :  { %v17857_v21 = vadd.f32 %v8766_v47, %v8743_v12  ;;  %v8773_v30 = vmul.f32 %v8511_v28, %v17581_v59 }
 0xe35   :  { %v9964_v5 = vmul.f32 -1.442695, %v17855_v33 }
 0xe36   :  { %v9959_v38 = vmul.f32 -1.442695, %v17857_v21  ;;  %v8515_v43 = vpop.f32.mrb[154].mxu1  ;;  %v11482_v16 = vpop.f32.mrb[138].mxu0 }
 0xe37   :  { %13781 = vpow2.f32 %v9964_v5  ;;  %v17863_v23 = vadd.f32 %v11482_v16, %v8781_v17  ;;  %v8517_v20 = vpop.f32.mrb[155].mxu1  ;;  %v8753_v54 = vpop.f32.mrb[139].mxu0  ;;  %v8777_v19 = vmul.f32 %v8515_v43, %v17597_v24 }
 0xe38   :  { %13783 = vpow2.f32 %v9959_v38  ;;  %v17865_v61 = vadd.f32 %v8776_v18, %v8753_v54  ;;  %v8778_v59 = vmul.f32 %v8517_v20, %v17593_v39 }
 0xe39   :  { %v9974_v6 = vmul.f32 -1.442695, %v17863_v23 }
 0xe3a   :  { %v9969_v48 = vmul.f32 -1.442695, %v17865_v61  ;;  %v8521_v55 = vpop.f32.mrb[156].mxu1 }
 0xe3b   :  { %13785 = vpow2.f32 %v9974_v6  ;;  %v17871_v44 = vadd.f32 %v8762_v3, %v8521_v55  ;;  %v8523_v52 = vpop.f32.mrb[157].mxu1 }
 0xe3c   :  { %13787 = vpow2.f32 %v9969_v48  ;;  %v17873_v40 = vadd.f32 %v8763_v1, %v8523_v52 }
 0xe3d   :  { %v9955_v0 = vmul.f32 -1.442695, %v17871_v44 }
 0xe3e   :  { %v9956_v4 = vmul.f32 -1.442695, %v17873_v40  ;;  %v8527_v56 = vpop.f32.mrb[158].mxu1 }
 0xe3f   :  { %13789 = vpow2.f32 %v9955_v0  ;;  %v17879_v37 = vadd.f32 %v8767_v15, %v8527_v56  ;;  %v8529_v51 = vpop.f32.mrb[159].mxu1 }
 0xe40   :  { %13791 = vpow2.f32 %v9956_v4  ;;  %v17881_v13 = vadd.f32 %v8768_v7, %v8529_v51  ;;  %v18459_v51 = vld [vmem:[#allocation12_spill] sm:$0xff] }
 0xe41   :  { %v13782_v26 = vpop.eup %13781  ;;  %v9960_v27 = vmul.f32 -1.442695, %v17879_v37 }
 0xe42   :  { %v13784_v34 = vpop.eup %13783  ;;  %v8871_v46 = vadd.f32 1.0, %v13782_v26  ;;  %v9961_v36 = vmul.f32 -1.442695, %v17881_v13  ;;  %v8533_v41 = vpop.f32.mrb[160].mxu1 }
 0xe43   :  { %v8866_v49 = vadd.f32 1.0, %v13784_v34  ;;  %13793 = vpow2.f32 %v9960_v27  ;;  %v17887_v42 = vadd.f32 %v8772_v63, %v8533_v41  ;;  %v8535_v31 = vpop.f32.mrb[161].mxu1  ;;  %v18460_v41 = vld [vmem:[#allocation50_spill] sm:$0xff] }
 0xe44   :  { %13795 = vrcp.f32 %v8871_v46  ;;  %v17889_v9 = vadd.f32 %v8773_v30, %v8535_v31  ;;  %v18461_v31 = vld [vmem:[#allocation65_spill] sm:$0xff] }
 0xe45   :  { %v13786_v8 = vpop.eup %13785  ;;  %13797 = vrcp.f32 %v8866_v49  ;;  %v9965_v57 = vmul.f32 -1.442695, %v17887_v42 }
 0xe46   :  { %v13788_v45 = vpop.eup %13787  ;;  %v8881_v58 = vadd.f32 1.0, %v13786_v8  ;;  %13799 = vpow2.f32 %v9961_v36  ;;  %v9966_v10 = vmul.f32 -1.442695, %v17889_v9  ;;  %v8539_v29 = vpop.f32.mrb[162].mxu1 }
 0xe47   :  { %v8876_v25 = vadd.f32 1.0, %v13788_v45  ;;  %13801 = vpow2.f32 %v9965_v57  ;;  %v17895_v2 = vadd.f32 %v8777_v19, %v8539_v29  ;;  %v8541_v32 = vpop.f32.mrb[163].mxu1 }
 0xe48   :  { %13803 = vrcp.f32 %v8881_v58  ;;  %v17897_v47 = vadd.f32 %v8778_v59, %v8541_v32  ;;  %v18462_v58 = vld [vmem:[#allocation53_spill] sm:$0xff] }
 0xe49   :  { %v13790_v11 = vpop.eup %13789  ;;  %13805 = vrcp.f32 %v8876_v25  ;;  %v9970_v24 = vmul.f32 -1.442695, %v17895_v2 }
 0xe4a   :  { %v13792_v14 = vpop.eup %13791  ;;  %v8862_v28 = vadd.f32 1.0, %v13790_v11  ;;  %13807 = vpow2.f32 %v9966_v10  ;;  %v9971_v39 = vmul.f32 -1.442695, %v17897_v47  ;;  %v18463_v10 = vld [vmem:[#allocation64_spill] sm:$0xff] }
 0xe4b   :  { %v8863_v12 = vadd.f32 1.0, %v13792_v14  ;;  %13809 = vpow2.f32 %v9970_v24  ;;  %v18464_v14 = vld [vmem:[#allocation7_spill] sm:$0xff] }
 0xe4c   :  { %13811 = vrcp.f32 %v8862_v28 }
 0xe4d   :  { %v13794_v17 = vpop.eup %13793  ;;  %13813 = vpow2.f32 %v9971_v39  ;;  %v18465_v39 = vld [vmem:[#allocation67_spill] sm:$0xff] }
 0xe4e   :  { %v13796_v5 = vpop.eup %13795  ;;  %v8867_v18 = vadd.f32 1.0, %v13794_v17  ;;  %13815 = vrcp.f32 %v8863_v12 }
 0xe4f   :  { %v13798_v38 = vpop.eup %13797  ;;  %v8931_v43 = vmul.f32 %v13796_v5, %v17855_v33  ;;  %v18466_v5 = vld [vmem:[#allocation66_spill] sm:$0xff] }
 0xe50   :  { %v13800_v16 = vpop.eup %13799  ;;  %v8926_v20 = vmul.f32 %v13798_v38, %v17857_v21  ;;  %13817 = vrcp.f32 %v8867_v18  ;;  %v18467_v38 = vld [vmem:[#allocation6_spill] sm:$0xff] }
 0xe51   :  { %v13802_v54 = vpop.eup %13801  ;;  %v17904_v3 = vadd.f32 %v8931_v43, %v16896_v22  ;;  %v8868_v6 = vadd.f32 1.0, %v13800_v16 }
 0xe52   :  { %v13804_v1 = vpop.eup %13803  ;;  %v8946_v48 = vadd.f32 %v8926_v20, %v16900_v60  ;;  %v8872_v55 = vadd.f32 1.0, %v13802_v54  ;;  %v13892_v54 = vmov 0.0|0.0  }
 0xe53   :  { %v13806_v52 = vpop.eup %13805  ;;  %v8941_v15 = vmul.f32 %v13804_v1, %v17863_v23  ;;  %13819 = vrcp.f32 %v8868_v6 }
 0xe54   :  { %v13808_v0 = vpop.eup %13807  ;;  %v12735_v33 = vpack.c.bf16 %v17904_v3, %v8946_v48  ;;  %v8936_v7 = vmul.f32 %v13806_v52, %v17865_v61  ;;  %13821 = vrcp.f32 %v8872_v55 }
 0xe55   :  { %v13810_v21 = vpop.eup %13809  ;;  %v8961_v4 = vadd.f32 %v8941_v15, %v16915_v62  ;;  %v8873_v22 = vadd.f32 1.0, %v13808_v0 }
 0xe56   :  { %v13812_v56 = vpop.eup %13811  ;;  %v8956_v26 = vadd.f32 %v8936_v7, %v18459_v51  ;;  %v8877_v63 = vadd.f32 1.0, %v13810_v21  ;;  %v18468_v21 = vld [vmem:[#allocation42_spill] sm:$0xff] }
 0xe57   :  { %13823 = vrcp.f32 %v8873_v22  ;;  %v13814_v60 = vpop.eup %13813  ;;  %v8922_v34 = vmul.f32 %v13812_v56, %v17871_v44  ;;  %v18469_v22 = vld [vmem:[#allocation41_spill] sm:$0xff] }
 0xe58   :  { %v12738_v27 = vpack.c.bf16 %v8961_v4, %v8956_v26  ;;  %13825 = vrcp.f32 %v8877_v63  ;;  %v13816_v23 = vpop.eup %13815  ;;  %v8878_v46 = vadd.f32 1.0, %v13814_v60 }
 0xe59   :  { %v8923_v36 = vmul.f32 %v13816_v23, %v17873_v40  ;;  %v8942_v49 = vadd.f32 %v8922_v34, %v18460_v41  ;;  %v18470_v23 = vld [vmem:[#allocation44_spill] sm:$0xff] }
 0xe5a   :  { %v13818_v30 = vpop.eup %13817  ;;  %13827 = vrcp.f32 %v8878_v46 }
 0xe5b   :  { %v8927_v61 = vmul.f32 %v13818_v30, %v17879_v37  ;;  %v8943_v59 = vadd.f32 %v8923_v36, %v18462_v58 }
 0xe5d   :  { %v13820_v62 = vpop.eup %13819  ;;  %v8947_v8 = vadd.f32 %v8927_v61, %v18461_v31 }
 0xe5e   :  { %v13822_v19 = vpop.eup %13821  ;;  %v8928_v57 = vmul.f32 %v13820_v62, %v17881_v13 }
 0xe5f   :  { %v12720_v45 = vpack.c.bf16 %v8947_v8, %v8942_v49  ;;  %v8932_v25 = vmul.f32 %v13822_v19, %v17887_v42  ;;  %v18472_v49 = vld [vmem:[#allocation20_spill] sm:$0xff]  ;;  %v18473_v19 = vld [vmem:[#allocation61_spill] sm:$0xff] }
 0xe60   :  { %v8948_v44 = vadd.f32 %v8928_v57, %v18463_v10 }
 0xe61   :  { %v13824_v29 = vpop.eup %13823  ;;  %v8952_v28 = vadd.f32 %v8932_v25, %v18464_v14 }
 0xe62   :  { %v13826_v37 = vpop.eup %13825  ;;  %v12718_v32 = vpack.c.bf16 %v8948_v44, %v8943_v59  ;;  %v8933_v11 = vmul.f32 %v13824_v29, %v17889_v9  ;;  %v17931_v9 = vld [vmem:[%s17981_s9] sm:$0x1]  ;;  %s13895_s9 = smov [#allocation3]  }
 0xe63   :  { %v8937_v40 = vmul.f32 %v13826_v37, %v17895_v2  ;;  %s9242_s14 = sshll.u32 %s13895_s9, 4  ;;  %s9243_s14 = int_to_ptr.vmem [resolvable:$true] %s9242_s14 }
 0xe64   :  { %12719 = vmatprep.subr.bf16.mxu0 %v12718_v32  ;;  %v13828_v24 = vpop.eup %13827  ;;  %v8953_v18 = vadd.f32 %v8933_v11, %v18466_v5  ;;  %s13861_s4 = scalar_lea.vmem %s9243_s14, 80  ;;  %s13865_s3 = scalar_lea.vmem %s9243_s14, 96 }
 0xe65   :  { %v8957_v13 = vadd.f32 %v8937_v40, %v18465_v39  ;;  %12721 = vmatpush1.bf16.msra.mxu0 %v12720_v45  ;;  %v8938_v12 = vmul.f32 %v13828_v24, %v17897_v47  ;;  %p13862_p0 = scmp.ne.s32.totalorder %s9243_s14, %s13861_s4  ;;  %p13866_p1 = scmp.lt.s32.totalorder %s9243_s14, %s9243_s14 }
 0xe66   :  { %p13867_p2 = scmp.lt.s32.totalorder %s13865_s3, %s13861_s4 }
 0xe67   :  { %v12724_v17 = vpack.c.bf16 %v8957_v13, %v8952_v28  ;;  %v8958_v42 = vadd.f32 %v8938_v12, %v18467_v38 }
 0xe68   :  { %p13868_p3 = por %p13867_p2, %p13866_p1 }
 0xe69   :  { %v12722_v16 = vpack.c.bf16 %v8958_v42, %v8953_v18 }
 0xe6a   :  { %v8610_v43 = vpop.f32.mrb[164].mxu1  ;;  %p13869_p4 = pnand %p13868_p3, %p13862_p0 }
 0xe6b   :  { %v8612_v20 = vpop.f32.mrb[165].mxu1  ;;  %12723 = vmatprep.subr.bf16.mxu0 %v12722_v16  ;;  %v8764_v55 = vmul.f32 %v8610_v43, %v17632_v35 }
 0xe6c   :  { %12725 = vmatpush1.bf16.msra.mxu0 %v12724_v17  ;;  %v8765_v52 = vmul.f32 %v8612_v20, %v17627_v53  ;;  %v18471_v53 = vld [vmem:[#allocation43_spill] sm:$0xff] }
 0xe6d   :  { %12734 = vmatprep.subr.bf16.mxu0 %v13892_v54 }
 0xe6e   :  { %v8616_v2 = vpop.f32.mrb[166].mxu1 }
 0xe6f   :  { %v8618_v3 = vpop.f32.mrb[167].mxu1  ;;  %9975 = vmatmul.mubr.msk.f32.vlgmr.msra.gmra.mrb[140].mxu0 %vm249_vm0, %v17931_v9  ;;  %v8769_v4 = vmul.f32 %v8616_v2, %v18468_v21  ;;  %v18476_v21 = vld [vmem:[#allocation16_spill] sm:$0xff] }
 0xe70   :  { %12736 = vmatpush3.bf16.msra.mxu0 %v12735_v33  ;;  %11491 = vmatprep.mubr.msk.f32.mxu0 %vm13893_vm6, %v18243_v50  ;;  %v8770_v56 = vmul.f32 %v8618_v3, %v18469_v22 }
 0xe71   :  { %12737 = vmatprep.subr.bf16.mxu0 %v13892_v54 }
 0xe72   :  { %v8622_v47 = vpop.f32.mrb[168].mxu1 }
 0xe73   :  { %v8624_v6 = vpop.f32.mrb[169].mxu1  ;;  %v8774_v35 = vmul.f32 %v8622_v47, %v18470_v23 }
 0xe74   :  { %12739 = vmatpush3.bf16.msra.mxu0 %v12738_v27  ;;  %v8775_v46 = vmul.f32 %v8624_v6, %v18471_v53 }
 0xe76   :  { %v8628_v1 = vpop.f32.mrb[170].mxu1 }
 0xe77   :  { %v8630_v48 = vpop.f32.mrb[171].mxu1  ;;  %11492 = vmatmul.mubr.msk.f32.vlgmr.msra.gmra.mrb[142].mxu0 %vm249_vm0, %v17931_v9  ;;  %v8779_v31 = vmul.f32 %v8628_v1, %v18472_v49  ;;  %v18481_v49 = vld [vmem:[#allocation14_spill] sm:$0xff] }
 0xe78   :  { %v8780_v57 = vmul.f32 %v8630_v48, %v18473_v19  ;;  %v18474_v48 = vld [vmem:[#allocation68_spill] sm:$0xff]  ;;  %v18482_v19 = vld [vmem:[#allocation45_spill] sm:$0xff] }
 0xe7a   :  { %v8634_v15 = vpop.f32.mrb[172].mxu1 }
 0xe7b   :  { %v8784_v0 = vadd.f32 %v8764_v55, %v8634_v15  ;;  %v8636_v7 = vpop.f32.mrb[173].mxu1 }
 0xe7c   :  { %v8785_v33 = vadd.f32 %v8765_v52, %v8636_v7  ;;  %v18475_v52 = vld [vmem:[#allocation69_spill] sm:$0xff] }
 0xe7d   :  { %v9957_v50 = vmul.f32 -1.442695, %v8784_v0 }
 0xe7e   :  { %v9958_v51 = vmul.f32 -1.442695, %v8785_v33  ;;  %v8640_v26 = vpop.f32.mrb[174].mxu1 }
 0xe7f   :  { %13829 = vpow2.f32 %v9957_v50  ;;  %v8789_v63 = vadd.f32 %v8769_v4, %v8640_v26  ;;  %v8642_v60 = vpop.f32.mrb[175].mxu1  ;;  %v18477_v50 = vld [vmem:[#allocation10_spill] sm:$0xff] }
 0xe80   :  { %13831 = vpow2.f32 %v9958_v51  ;;  %v8790_v27 = vadd.f32 %v8770_v56, %v8642_v60 }
 0xe81   :  { %v9962_v34 = vmul.f32 -1.442695, %v8789_v63 }
 0xe82   :  { %v9963_v30 = vmul.f32 -1.442695, %v8790_v27  ;;  %v8646_v61 = vpop.f32.mrb[176].mxu1 }
 0xe83   :  { %13833 = vpow2.f32 %v9962_v34  ;;  %v8794_v36 = vadd.f32 %v8774_v35, %v8646_v61  ;;  %v8648_v62 = vpop.f32.mrb[177].mxu1  ;;  %v18479_v34 = vld [vmem:[#allocation71_spill] sm:$0xff]  ;;  %v18480_v61 = vld [vmem:[#allocation40_spill] sm:$0xff] }
 0xe84   :  { %13835 = vpow2.f32 %v9963_v30  ;;  %v8795_v41 = vadd.f32 %v8775_v46, %v8648_v62 }
 0xe85   :  { %v9967_v8 = vmul.f32 -1.442695, %v8794_v36 }
 0xe86   :  { %v9968_v45 = vmul.f32 -1.442695, %v8795_v41  ;;  %v8652_v58 = vpop.f32.mrb[178].mxu1 }
 0xe87   :  { %13837 = vpow2.f32 %v9967_v8  ;;  %v8799_v59 = vadd.f32 %v8779_v31, %v8652_v58  ;;  %v8654_v10 = vpop.f32.mrb[179].mxu1 }
 0xe88   :  { %13839 = vpow2.f32 %v9968_v45  ;;  %v8800_v44 = vadd.f32 %v8780_v57, %v8654_v10 }
 0xe89   :  { %v13830_v29 = vpop.eup %13829  ;;  %v9972_v25 = vmul.f32 -1.442695, %v8799_v59 }
 0xe8a   :  { %v13832_v37 = vpop.eup %13831  ;;  %v8864_v32 = vadd.f32 1.0, %v13830_v29  ;;  %v9973_v40 = vmul.f32 -1.442695, %v8800_v44 }
 0xe8b   :  { %v8865_v11 = vadd.f32 1.0, %v13832_v37  ;;  %13841 = vpow2.f32 %v9972_v25  ;;  %v13894_v37 = vmov 1966171168  }
 0xe8c   :  { %13843 = vrcp.f32 %v8864_v32  ;;  %v9194_v32 = vunpack.c.l.s4 %v13894_v37 }
 0xe8d   :  { %v13834_v24 = vpop.eup %13833  ;;  %13845 = vrcp.f32 %v8865_v11 }
 0xe8e   :  { %v13836_v14 = vpop.eup %13835  ;;  %v8869_v28 = vadd.f32 1.0, %v13834_v24  ;;  %13847 = vpow2.f32 %v9973_v40  ;;  %v9195_v40 = vunpack.c.0.s8 %v9194_v32 }
 0xe8f   :  { %v8870_v39 = vadd.f32 1.0, %v13836_v14 }
 0xe90   :  { %13849 = vrcp.f32 %v8869_v28  ;;  %v9198_v28 = vsub.s32 %v9195_v40, %v18482_v19 }
 0xe91   :  { %v13838_v13 = vpop.eup %13837  ;;  %13851 = vrcp.f32 %v8870_v39 }
 0xe92   :  { %v13840_v12 = vpop.eup %13839  ;;  %v8874_v17 = vadd.f32 1.0, %v13838_v13 }
 0xe93   :  { %v8875_v5 = vadd.f32 1.0, %v13840_v12 }
 0xe94   :  { %13853 = vrcp.f32 %v8874_v17 }
 0xe95   :  { %v13842_v18 = vpop.eup %13841  ;;  %13855 = vrcp.f32 %v8875_v5 }
 0xe96   :  { %v13844_v38 = vpop.eup %13843  ;;  %v8879_v42 = vadd.f32 1.0, %v13842_v18 }
 0xe97   :  { %v13846_v43 = vpop.eup %13845  ;;  %v8924_v20 = vmul.f32 %v13844_v38, %v8784_v0 }
 0xe98   :  { %v13848_v16 = vpop.eup %13847  ;;  %13857 = vrcp.f32 %v8879_v42  ;;  %v8925_v3 = vmul.f32 %v13846_v43, %v8785_v33  ;;  %v18484_v43 = vlaneseq }
 0xe99   :  { %v8880_v2 = vadd.f32 1.0, %v13848_v16  ;;  %v8944_v55 = vadd.f32 %v8924_v20, %v18474_v48 }
 0xe9a   :  { %v13850_v54 = vpop.eup %13849  ;;  %v8945_v4 = vadd.f32 %v8925_v3, %v18476_v21  ;;  %vm9233_vm7 = vcmp.lt.s32.totalorder %v18484_v43, 640 }
 0xe9b   :  { %v13852_v47 = vpop.eup %13851  ;;  %v8929_v6 = vmul.f32 %v13850_v54, %v8789_v63  ;;  %13859 = vrcp.f32 %v8880_v2 }
 0xe9c   :  { %v8930_v1 = vmul.f32 %v13852_v47, %v8790_v27  ;;  %v18478_v27 = vld [vmem:[#allocation70_spill] sm:$0xff] }
 0xe9d   :  { %v8949_v15 = vadd.f32 %v8929_v6, %v18475_v52 }
 0xe9e   :  { %v13854_v7 = vpop.eup %13853  ;;  %v8950_v22 = vadd.f32 %v8930_v1, %v18477_v50 }
 0xe9f   :  { %v12728_v56 = vpack.c.bf16 %v8949_v15, %v8944_v55  ;;  %v13856_v26 = vpop.eup %13855  ;;  %v8934_v0 = vmul.f32 %v13854_v7, %v8794_v36  ;;  %v8965_v36 = vpop.permute.xlu1 %8964 }
 0xea0   :  { %v12726_v51 = vpack.c.bf16 %v8950_v22, %v8945_v4  ;;  %v8935_v63 = vmul.f32 %v13856_v26, %v8795_v41  ;;  %v18483_v41 = vsub.s32 0, %v18482_v19 }
 0xea1   :  { %v8954_v35 = vadd.f32 %v8934_v0, %v18478_v27 }
 0xea2   :  { %v13858_v60 = vpop.eup %13857  ;;  %12727 = vmatprep.subr.bf16.mxu1 %v12726_v51  ;;  %v8955_v62 = vadd.f32 %v8935_v63, %v18480_v61  ;;  %v8970_v57 = vrot.slane %v8965_v36, %v18483_v41 }
 0xea3   :  { %v8939_v33 = vmul.f32 %v13858_v60, %v8799_v59  ;;  %12729 = vmatpush1.bf16.msra.mxu1 %v12728_v56 }
 0xea5   :  { %v13860_v23 = vpop.eup %13859  ;;  %v8959_v53 = vadd.f32 %v8939_v33, %v18479_v34 }
 0xea6   :  { %v8940_v46 = vmul.f32 %v13860_v23, %v8800_v44 }
 0xea7   :  { %v12732_v30 = vpack.c.bf16 %v8959_v53, %v8954_v35 }
 0xea8   :  { %v8960_v31 = vadd.f32 %v8940_v46, %v18481_v49 }
 0xeaa   :  { %v12730_v8 = vpack.c.bf16 %v8960_v31, %v8955_v62 }
 0xeac   :  { %12731 = vmatprep.subr.bf16.mxu1 %v12730_v8 }
 0xead   :  { %12733 = vmatpush1.bf16.msra.mxu1 %v12732_v30 }
 0xeb0   :  { %9976 = vmatmul.mubr.msk.f32.vlgmr.msra.gmra.mrb[180].mxu1 %vm249_vm0, %v17931_v9 }
 0xf42   :  { %v9040_v45 = vpop.f32.mrb[140].mxu0 }
 0xf43   :  { %v9041_v58 = vadd.f32 %v9040_v45, %v8970_v57  ;;  %v9042_v59 = vpop.f32.mrb[141].mxu0 }
 0xf44   :  { %v9043_v10 = vadd.f32 %v9042_v59, %v8970_v57 }
 0xf46   :  { %v9191_v44 = vcombine.low %v9041_v58, %v9043_v10 }
 0xf48   :  { %v9199_v12 = vrot.slane %v9191_v44, %v9198_v28 }
 0xf4a   :  { %v9182_v29 = vpop.f32.mrb[142].mxu0 }
 0xf4b   :  { %v11493_v25 = vpop.f32.mrb[143].mxu0  ;;  %v9183_v9 = vadd.f32 %v9182_v29, %v8970_v57 }
 0xf4d   :  { %v9213_v17 = vrot.slane %v9183_v9, %v9198_v28 }
 0xf4f   :  { %v9228_v38 = vrot.slane %v9213_v17, %v9198_v28 }
 0xf83   :  { %v9111_v11 = vpop.f32.mrb[180].mxu1 }
 0xf84   :  { %v9112_v24 = vadd.f32 %v9111_v11, %v8970_v57  ;;  %v9113_v14 = vpop.f32.mrb[181].mxu1 }
 0xf85   :  { %v9114_v39 = vadd.f32 %v9113_v14, %v8970_v57 }
 0xf87   :  { %v9192_v13 = vcombine.low %v9112_v24, %v9114_v39 }
 0xf89   :  { %v9206_v5 = vrot.slane %v9192_v13, %v9198_v28 }
 0xf8b   :  { %v9214_v18 = vcombine.low %v9199_v12, %v9206_v5 }
 0xf8d   :  { %v9221_v42 = vrot.slane %v9214_v18, %v9198_v28 }
 0xf8f   :  { %v9229_v16 = vcombine.low %v9221_v42, %v9228_v38 }
 0xf91   :  { %9235 = vst.msk [vmem:[#allocation3] sm:$0x1f] %vm9233_vm7, %v9229_v16 }
 0xf92   :  { %13872 = shalt.err (!%p13869_p4)
}
 0xf93   :  { %s13873_s17 = scalar_lea.hbm %s17983_s11, 80 }
 0xf94   :  { %p13874_p5 = scmp.ne.s32.totalorder %s17983_s11, %s13873_s17  ;;  %p13877_p6 = scmp.lt.u32.totalorder %s13873_s17, %s17983_s11 }
 0xf96   :  { %p13879_p7 = pnand %p13877_p6, %p13874_p5 }
 0xf98   :  { %13882 = shalt.err (!%p13879_p7)
}
 0xf99   :  { %9245 = dma.vmem_to_hbm [thread:$0]  %s9243_s14, 80, %s17983_s11, [#allocation4]  }
 0xf9a   :  { %13883 = dma.done.wait [#allocation4], 80  }
 0xf9b   :  { %13884 = vsyncadd [#allocation4], 4294967216 }
 0xf9c   :  { %9249 = vsyncpa [#allocation4], 1 }

</bundles_post_ra>
